<compile_context>
chip_gen: v6e
topology: v6e:2x2x1
jax: 0.10.0
libtpu: 0.0.40
codegen_flags: <defaults>
</compile_context>

<pallas_src>
import functools

import jax
import jax.numpy as jnp
from jax.experimental import pallas as pl
from jax.experimental.pallas import tpu as pltpu

_LANE = 128      # lane width -> lane-dense output padding target
_M_ALIGN = 256   # MXU M alignment (256 on v6e/v7x; also a multiple of v5e's 128)


def _round_up(n, m):
    return ((n + m - 1) // m) * m


def mnist_fc_kernel(x_ref,
                    w1_ref, b1_ref,
                    w2_ref, b2_ref,
                    w3_ref, b3_ref,
                    w4_ref, b4_ref,
                    w5_ref, b5_ref,
                    o_ref):
    # One grid step = one batch tile. All 5 pre-transposed bf16 weight matrices (~1.2 MB
    # total) are VMEM-resident via constant index_maps, so each step is 5 MXU matmuls plus
    # VPU bias/ReLU on one batch tile.  Input arrives as f32 and is cast to bf16 on the VPU.
    h = x_ref[...].astype(jnp.bfloat16)                 # (TM, 784) bf16

    def layer(h, w_ref, b_ref, relu):
        # weights pre-transposed: (in, out); bf16 operands, f32 accumulate on the MXU.
        y = jnp.dot(h, w_ref[...], preferred_element_type=jnp.float32)
        y = y + b_ref[...]                              # (1, out) f32 bias, broadcast add
        if relu:
            y = jnp.maximum(y, 0.0)                     # f32 VPU (v5e has no bf16 VPU)
            return y.astype(jnp.bfloat16)               # feed next MXU in bf16
        return y                                        # final layer stays f32

    h = layer(h, w1_ref, b1_ref, relu=True)
    h = layer(h, w2_ref, b2_ref, relu=True)
    h = layer(h, w3_ref, b3_ref, relu=True)
    h = layer(h, w4_ref, b4_ref, relu=True)
    y = layer(h, w5_ref, b5_ref, relu=False)            # (TM, 128) f32, lane-dense
    o_ref[...] = y


def _select_tiling(B, tm):
    """Batch tile aligned to the MXU M dim; >= 2 tiles when the batch justifies it (v7x)."""
    b_min = _round_up(B, _M_ALIGN)
    tile_m = _round_up(min(tm, b_min), _M_ALIGN)        # multiple of 256, never tiny
    # v7x megacore: make sure the "parallel" batch axis has >= 2 tiles to shard across the
    # two TensorCores whenever the (padded) batch spans at least two aligned tiles.
    if b_min >= 2 * _M_ALIGN and _round_up(B, tile_m) // tile_m < 2:
        tile_m = max(_M_ALIGN, (b_min // 2) // _M_ALIGN * _M_ALIGN)
    b_pad = _round_up(B, tile_m)
    return tile_m, b_pad


@functools.partial(jax.jit, static_argnames=("tm", "single_buffer_weights"))
def _mnist_fc_forward(x, params, *, tm, single_buffer_weights):
    """x: (B, 1, 28, 28) float32.  params: list of (W, b), W: (out, in) as in torch.nn.Linear."""
    B = x.shape[0]
    x_flat = x.reshape(B, -1).astype(jnp.float32)       # torch.nn.Flatten -> (B, 784), f32
    d_in = x_flat.shape[1]
    n_out = params[-1][0].shape[0]                      # 10
    n_out_pad = _round_up(n_out, _LANE)                 # 128: lane-dense output stores

    tile_m, b_pad = _select_tiling(B, tm)
    if b_pad != B:
        x_flat = jnp.pad(x_flat, ((0, b_pad - B), (0, 0)))

    w_pipe = dict(pipeline_mode=pl.Buffered(1)) if single_buffer_weights else {}

    # Flatten params: W -> (in, out) bf16 (lane-dense, no in-kernel transpose), b -> (1, out) f32.
    flat_params = []
    in_specs = [pl.BlockSpec((tile_m, d_in), lambda i: (i, 0))]      # x: batch-tiled, f32
    n_layers = len(params)
    for li, (w, b) in enumerate(params):
        wt = jnp.asarray(w).T.astype(jnp.bfloat16)                   # (in, out)
        b2 = jnp.asarray(b).reshape(1, -1).astype(jnp.float32)       # (1, out)
        if li == n_layers - 1 and n_out_pad != n_out:
            # Zero-pad the last layer so the output block is 128-lane dense; the padded
            # columns compute exact zeros and are sliced away in the wrapper.
            wt = jnp.pad(wt, ((0, 0), (0, n_out_pad - n_out)))
            b2 = jnp.pad(b2, ((0, 0), (0, n_out_pad - n_out)))
        flat_params += [wt, b2]
        # Constant index_map -> weights/biases stay VMEM-resident across batch tiles;
        # single-buffered (no redundant second prefetch stream) when supported.
        in_specs += [pl.BlockSpec(wt.shape, lambda i: (0, 0), **w_pipe),
                     pl.BlockSpec(b2.shape, lambda i: (0, 0), **w_pipe)]

    grid = (b_pad // tile_m,)

    flops = 2 * b_pad * sum(int(w.shape[0]) * int(w.shape[1]) for w, _ in params)
    bytes_accessed = (b_pad * d_in * 4                                # f32 input DMA
                      + sum(int(w.size) * 2 + int(b.size) * 4 for w, b in params)
                      + b_pad * n_out_pad * 4)                        # f32 output

    out = pl.pallas_call(
        mnist_fc_kernel,
        out_shape=jax.ShapeDtypeStruct((b_pad, n_out_pad), jnp.float32),
        grid_spec=pltpu.PrefetchScalarGridSpec(
            num_scalar_prefetch=0,
            grid=grid,
            in_specs=in_specs,
            out_specs=pl.BlockSpec((tile_m, n_out_pad), lambda i: (i, 0)),
        ),
        compiler_params=pltpu.CompilerParams(
            dimension_semantics=("parallel",),
            # Large batch tiles + f32 input blocks can exceed v5e's 16 MiB default scoped
            # VMEM limit; raise it (still under v7x's 64 MiB physical VMEM per core).
            vmem_limit_bytes=48 * 1024 * 1024,
        ),
        cost_estimate=pl.CostEstimate(flops=flops, transcendentals=0,
                                      bytes_accessed=bytes_accessed),
    )(x_flat, *flat_params)
    return out[:B, :n_out]


def mnist_fc_forward(x, params, *, tm=1024):
    try:
        return _mnist_fc_forward(x, params, tm=tm, single_buffer_weights=True)
    except Exception:
        # Some jax versions reject pl.Buffered(1) on a top-level pallas_call BlockSpec.
        # Single-buffering the resident weights is only a minor VMEM saving, so fall back.
        return _mnist_fc_forward(x, params, tm=tm, single_buffer_weights=False)


def init_params(key):
    """Deterministic init matching torch.nn.Linear shapes (W: (out, in), b: (out,))."""
    dims = [784, 512, 256, 128, 64, 10]
    params = []
    for i in range(len(dims) - 1):
        fan_in, fan_out = dims[i], dims[i + 1]
        key, kw, kb = jax.random.split(key, 3)
        bound = 1.0 / (fan_in ** 0.5)
        w = jax.random.uniform(kw, (fan_out, fan_in), jnp.float32, -bound, bound)
        b = jax.random.uniform(kb, (fan_out,), jnp.float32, -bound, bound)
        params.append((w, b))
    return params


def reference_forward(x, params):
    """Pure-JAX reference matching the kernel's bf16-matmul / f32-accumulate numerics."""
    h = x.reshape(x.shape[0], -1)
    for i, (w, b) in enumerate(params):
        y = jnp.dot(h.astype(jnp.bfloat16), w.T.astype(jnp.bfloat16),
                    preferred_element_type=jnp.float32) + b
        if i < len(params) - 1:
            y = jnp.maximum(y, 0.0)
        h = y
    return h


if __name__ == "__main__":
    key = jax.random.PRNGKey(0)
    k_x, k_p = jax.random.split(key)

    B = 8
    x = jax.random.normal(k_x, (B, 1, 28, 28), jnp.float32)   # MNIST-shaped NCHW input
    params = init_params(k_p)

    y = mnist_fc_forward(x, params)
    y = jax.block_until_ready(y)

    y_ref = reference_forward(x, params)
    assert y.shape == (B, 10)
    assert jnp.allclose(y, y_ref, atol=1e-2, rtol=1e-2), "mismatch vs JAX reference"
    print("KERNEL_OK")
</pallas_src>

<mosaic_0001>
module attributes {stable_mosaic.version = 11 : i64} {
  func.func @mnist_fc_kernel(%arg0: i32, %arg1: memref<256x784xf32, #tpu.memory_space<vmem>>, %arg2: memref<784x512xbf16, #tpu.memory_space<vmem>>, %arg3: memref<1x512xf32, #tpu.memory_space<vmem>>, %arg4: memref<512x256xbf16, #tpu.memory_space<vmem>>, %arg5: memref<1x256xf32, #tpu.memory_space<vmem>>, %arg6: memref<256x128xbf16, #tpu.memory_space<vmem>>, %arg7: memref<1x128xf32, #tpu.memory_space<vmem>>, %arg8: memref<128x64xbf16, #tpu.memory_space<vmem>>, %arg9: memref<1x64xf32, #tpu.memory_space<vmem>>, %arg10: memref<64x128xbf16, #tpu.memory_space<vmem>>, %arg11: memref<1x128xf32, #tpu.memory_space<vmem>>, %arg12: memref<256x128xf32, #tpu.memory_space<vmem>>) attributes {dimension_semantics = [#tpu.dimension_semantics<parallel>], iteration_bounds = array<i64: 1>, scalar_prefetch = 0 : i64, scratch_operands = 0 : i64, tpu.core_type = #tpu.core_type<tc>, window_params = [{transform_indices = @transform_0, window_bounds = array<i64: 256, 784>}, {pipeline_mode = #tpu.pipeline_mode<synchronous>, transform_indices = @transform_1, window_bounds = array<i64: 784, 512>}, {pipeline_mode = #tpu.pipeline_mode<synchronous>, transform_indices = @transform_2, window_bounds = array<i64: 1, 512>}, {pipeline_mode = #tpu.pipeline_mode<synchronous>, transform_indices = @transform_3, window_bounds = array<i64: 512, 256>}, {pipeline_mode = #tpu.pipeline_mode<synchronous>, transform_indices = @transform_4, window_bounds = array<i64: 1, 256>}, {pipeline_mode = #tpu.pipeline_mode<synchronous>, transform_indices = @transform_5, window_bounds = array<i64: 256, 128>}, {pipeline_mode = #tpu.pipeline_mode<synchronous>, transform_indices = @transform_6, window_bounds = array<i64: 1, 128>}, {pipeline_mode = #tpu.pipeline_mode<synchronous>, transform_indices = @transform_7, window_bounds = array<i64: 128, 64>}, {pipeline_mode = #tpu.pipeline_mode<synchronous>, transform_indices = @transform_8, window_bounds = array<i64: 1, 64>}, {pipeline_mode = #tpu.pipeline_mode<synchronous>, transform_indices = @transform_9, window_bounds = array<i64: 64, 128>}, {pipeline_mode = #tpu.pipeline_mode<synchronous>, transform_indices = @transform_10, window_bounds = array<i64: 1, 128>}, {transform_indices = @transform_11, window_bounds = array<i64: 256, 128>}]} {
    %c0 = arith.constant 0 : index
    %c0_0 = arith.constant 0 : index
    %0 = vector.load %arg1[%c0, %c0_0] : memref<256x784xf32, #tpu.memory_space<vmem>>, vector<256x784xf32>
    %1 = arith.truncf %0 : vector<256x784xf32> to vector<256x784xbf16>
    %c0_1 = arith.constant 0 : index
    %c0_2 = arith.constant 0 : index
    %2 = vector.load %arg2[%c0_1, %c0_2] : memref<784x512xbf16, #tpu.memory_space<vmem>>, vector<784x512xbf16>
    %cst = arith.constant dense<0.000000e+00> : vector<256x512xf32>
    %3 = tpu.matmul %1, %2, %cst {dimension_numbers = #tpu.dot_dimension_numbers<[1], [0], [0], [1], [0, 0, 1, 1], [], []>} : vector<256x784xbf16>, vector<784x512xbf16>, vector<256x512xf32> -> vector<256x512xf32>
    %c0_3 = arith.constant 0 : index
    %c0_4 = arith.constant 0 : index
    %4 = vector.load %arg3[%c0_3, %c0_4] : memref<1x512xf32, #tpu.memory_space<vmem>>, vector<1x512xf32>
    %5 = vector.broadcast %4 : vector<1x512xf32> to vector<256x512xf32>
    %6 = arith.addf %3, %5 : vector<256x512xf32>
    %cst_5 = arith.constant 0.000000e+00 : f32
    %7 = vector.broadcast %cst_5 : f32 to vector<256x512xf32>
    %8 = arith.maximumf %6, %7 : vector<256x512xf32>
    %9 = arith.truncf %8 : vector<256x512xf32> to vector<256x512xbf16>
    %c0_6 = arith.constant 0 : index
    %c0_7 = arith.constant 0 : index
    %10 = vector.load %arg4[%c0_6, %c0_7] : memref<512x256xbf16, #tpu.memory_space<vmem>>, vector<512x256xbf16>
    %cst_8 = arith.constant dense<0.000000e+00> : vector<256x256xf32>
    %11 = tpu.matmul %9, %10, %cst_8 {dimension_numbers = #tpu.dot_dimension_numbers<[1], [0], [0], [1], [0, 0, 1, 1], [], []>} : vector<256x512xbf16>, vector<512x256xbf16>, vector<256x256xf32> -> vector<256x256xf32>
    %c0_9 = arith.constant 0 : index
    %c0_10 = arith.constant 0 : index
    %12 = vector.load %arg5[%c0_9, %c0_10] : memref<1x256xf32, #tpu.memory_space<vmem>>, vector<1x256xf32>
    %13 = vector.broadcast %12 : vector<1x256xf32> to vector<256x256xf32>
    %14 = arith.addf %11, %13 : vector<256x256xf32>
    %cst_11 = arith.constant 0.000000e+00 : f32
    %15 = vector.broadcast %cst_11 : f32 to vector<256x256xf32>
    %16 = arith.maximumf %14, %15 : vector<256x256xf32>
    %17 = arith.truncf %16 : vector<256x256xf32> to vector<256x256xbf16>
    %c0_12 = arith.constant 0 : index
    %c0_13 = arith.constant 0 : index
    %18 = vector.load %arg6[%c0_12, %c0_13] : memref<256x128xbf16, #tpu.memory_space<vmem>>, vector<256x128xbf16>
    %cst_14 = arith.constant dense<0.000000e+00> : vector<256x128xf32>
    %19 = tpu.matmul %17, %18, %cst_14 {dimension_numbers = #tpu.dot_dimension_numbers<[1], [0], [0], [1], [0, 0, 1, 1], [], []>} : vector<256x256xbf16>, vector<256x128xbf16>, vector<256x128xf32> -> vector<256x128xf32>
    %c0_15 = arith.constant 0 : index
    %c0_16 = arith.constant 0 : index
    %20 = vector.load %arg7[%c0_15, %c0_16] : memref<1x128xf32, #tpu.memory_space<vmem>>, vector<1x128xf32>
    %21 = vector.broadcast %20 : vector<1x128xf32> to vector<256x128xf32>
    %22 = arith.addf %19, %21 : vector<256x128xf32>
    %cst_17 = arith.constant 0.000000e+00 : f32
    %23 = vector.broadcast %cst_17 : f32 to vector<256x128xf32>
    %24 = arith.maximumf %22, %23 : vector<256x128xf32>
    %25 = arith.truncf %24 : vector<256x128xf32> to vector<256x128xbf16>
    %c0_18 = arith.constant 0 : index
    %c0_19 = arith.constant 0 : index
    %26 = vector.load %arg8[%c0_18, %c0_19] : memref<128x64xbf16, #tpu.memory_space<vmem>>, vector<128x64xbf16>
    %cst_20 = arith.constant dense<0.000000e+00> : vector<256x64xf32>
    %27 = tpu.matmul %25, %26, %cst_20 {dimension_numbers = #tpu.dot_dimension_numbers<[1], [0], [0], [1], [0, 0, 1, 1], [], []>} : vector<256x128xbf16>, vector<128x64xbf16>, vector<256x64xf32> -> vector<256x64xf32>
    %c0_21 = arith.constant 0 : index
    %c0_22 = arith.constant 0 : index
    %28 = vector.load %arg9[%c0_21, %c0_22] : memref<1x64xf32, #tpu.memory_space<vmem>>, vector<1x64xf32>
    %29 = vector.broadcast %28 : vector<1x64xf32> to vector<256x64xf32>
    %30 = arith.addf %27, %29 : vector<256x64xf32>
    %cst_23 = arith.constant 0.000000e+00 : f32
    %31 = vector.broadcast %cst_23 : f32 to vector<256x64xf32>
    %32 = arith.maximumf %30, %31 : vector<256x64xf32>
    %33 = arith.truncf %32 : vector<256x64xf32> to vector<256x64xbf16>
    %c0_24 = arith.constant 0 : index
    %c0_25 = arith.constant 0 : index
    %34 = vector.load %arg10[%c0_24, %c0_25] : memref<64x128xbf16, #tpu.memory_space<vmem>>, vector<64x128xbf16>
    %cst_26 = arith.constant dense<0.000000e+00> : vector<256x128xf32>
    %35 = tpu.matmul %33, %34, %cst_26 {dimension_numbers = #tpu.dot_dimension_numbers<[1], [0], [0], [1], [0, 0, 1, 1], [], []>} : vector<256x64xbf16>, vector<64x128xbf16>, vector<256x128xf32> -> vector<256x128xf32>
    %c0_27 = arith.constant 0 : index
    %c0_28 = arith.constant 0 : index
    %36 = vector.load %arg11[%c0_27, %c0_28] : memref<1x128xf32, #tpu.memory_space<vmem>>, vector<1x128xf32>
    %37 = vector.broadcast %36 : vector<1x128xf32> to vector<256x128xf32>
    %38 = arith.addf %35, %37 : vector<256x128xf32>
    %c0_29 = arith.constant 0 : index
    %c0_30 = arith.constant 0 : index
    %39 = vector.load %arg12[%c0_29, %c0_30] : memref<256x128xf32, #tpu.memory_space<vmem>>, vector<256x128xf32>
    tpu.vector_store %arg12[%c0_29, %c0_30], %38 {strides = array<i32>} : memref<256x128xf32, #tpu.memory_space<vmem>>, vector<256x128xf32>,
    return
  }
  func.func @transform_0(%arg0: i32) -> (i32, i32) {
    %c0_i32 = arith.constant 0 : i32
    %c0_i32_0 = arith.constant 0 : i32
    return %arg0, %c0_i32 : i32, i32
  }
  func.func @transform_1(%arg0: i32) -> (i32, i32) {
    %c0_i32 = arith.constant 0 : i32
    %c0_i32_0 = arith.constant 0 : i32
    %c0_i32_1 = arith.constant 0 : i32
    return %c0_i32, %c0_i32_0 : i32, i32
  }
  func.func @transform_2(%arg0: i32) -> (i32, i32) {
    %c0_i32 = arith.constant 0 : i32
    %c0_i32_0 = arith.constant 0 : i32
    %c0_i32_1 = arith.constant 0 : i32
    return %c0_i32, %c0_i32_0 : i32, i32
  }
  func.func @transform_3(%arg0: i32) -> (i32, i32) {
    %c0_i32 = arith.constant 0 : i32
    %c0_i32_0 = arith.constant 0 : i32
    %c0_i32_1 = arith.constant 0 : i32
    return %c0_i32, %c0_i32_0 : i32, i32
  }
  func.func @transform_4(%arg0: i32) -> (i32, i32) {
    %c0_i32 = arith.constant 0 : i32
    %c0_i32_0 = arith.constant 0 : i32
    %c0_i32_1 = arith.constant 0 : i32
    return %c0_i32, %c0_i32_0 : i32, i32
  }
  func.func @transform_5(%arg0: i32) -> (i32, i32) {
    %c0_i32 = arith.constant 0 : i32
    %c0_i32_0 = arith.constant 0 : i32
    %c0_i32_1 = arith.constant 0 : i32
    return %c0_i32, %c0_i32_0 : i32, i32
  }
  func.func @transform_6(%arg0: i32) -> (i32, i32) {
    %c0_i32 = arith.constant 0 : i32
    %c0_i32_0 = arith.constant 0 : i32
    %c0_i32_1 = arith.constant 0 : i32
    return %c0_i32, %c0_i32_0 : i32, i32
  }
  func.func @transform_7(%arg0: i32) -> (i32, i32) {
    %c0_i32 = arith.constant 0 : i32
    %c0_i32_0 = arith.constant 0 : i32
    %c0_i32_1 = arith.constant 0 : i32
    return %c0_i32, %c0_i32_0 : i32, i32
  }
  func.func @transform_8(%arg0: i32) -> (i32, i32) {
    %c0_i32 = arith.constant 0 : i32
    %c0_i32_0 = arith.constant 0 : i32
    %c0_i32_1 = arith.constant 0 : i32
    return %c0_i32, %c0_i32_0 : i32, i32
  }
  func.func @transform_9(%arg0: i32) -> (i32, i32) {
    %c0_i32 = arith.constant 0 : i32
    %c0_i32_0 = arith.constant 0 : i32
    %c0_i32_1 = arith.constant 0 : i32
    return %c0_i32, %c0_i32_0 : i32, i32
  }
  func.func @transform_10(%arg0: i32) -> (i32, i32) {
    %c0_i32 = arith.constant 0 : i32
    %c0_i32_0 = arith.constant 0 : i32
    %c0_i32_1 = arith.constant 0 : i32
    return %c0_i32, %c0_i32_0 : i32, i32
  }
  func.func @transform_11(%arg0: i32) -> (i32, i32) {
    %c0_i32 = arith.constant 0 : i32
    %c0_i32_0 = arith.constant 0 : i32
    return %arg0, %c0_i32 : i32, i32
  }
}

module attributes {stable_mosaic.version = 11 : i64} {
  func.func @mnist_fc_kernel(%arg0: i32, %arg1: memref<256x784xf32, #tpu.memory_space<vmem>>, %arg2: memref<784x512xbf16, #tpu.memory_space<vmem>>, %arg3: memref<1x512xf32, #tpu.memory_space<vmem>>, %arg4: memref<512x256xbf16, #tpu.memory_space<vmem>>, %arg5: memref<1x256xf32, #tpu.memory_space<vmem>>, %arg6: memref<256x128xbf16, #tpu.memory_space<vmem>>, %arg7: memref<1x128xf32, #tpu.memory_space<vmem>>, %arg8: memref<128x64xbf16, #tpu.memory_space<vmem>>, %arg9: memref<1x64xf32, #tpu.memory_space<vmem>>, %arg10: memref<64x128xbf16, #tpu.memory_space<vmem>>, %arg11: memref<1x128xf32, #tpu.memory_space<vmem>>, %arg12: memref<256x128xf32, #tpu.memory_space<vmem>>) attributes {dimension_semantics = [#tpu.dimension_semantics<parallel>], iteration_bounds = array<i64: 1>, scalar_prefetch = 0 : i64, scratch_operands = 0 : i64, tpu.core_type = #tpu.core_type<tc>, window_params = [{transform_indices = @transform_0, window_bounds = array<i64: 256, 784>}, {pipeline_mode = #tpu.pipeline_mode<synchronous>, transform_indices = @transform_1, window_bounds = array<i64: 784, 512>}, {pipeline_mode = #tpu.pipeline_mode<synchronous>, transform_indices = @transform_2, window_bounds = array<i64: 1, 512>}, {pipeline_mode = #tpu.pipeline_mode<synchronous>, transform_indices = @transform_3, window_bounds = array<i64: 512, 256>}, {pipeline_mode = #tpu.pipeline_mode<synchronous>, transform_indices = @transform_4, window_bounds = array<i64: 1, 256>}, {pipeline_mode = #tpu.pipeline_mode<synchronous>, transform_indices = @transform_5, window_bounds = array<i64: 256, 128>}, {pipeline_mode = #tpu.pipeline_mode<synchronous>, transform_indices = @transform_6, window_bounds = array<i64: 1, 128>}, {pipeline_mode = #tpu.pipeline_mode<synchronous>, transform_indices = @transform_7, window_bounds = array<i64: 128, 64>}, {pipeline_mode = #tpu.pipeline_mode<synchronous>, transform_indices = @transform_8, window_bounds = array<i64: 1, 64>}, {pipeline_mode = #tpu.pipeline_mode<synchronous>, transform_indices = @transform_9, window_bounds = array<i64: 64, 128>}, {pipeline_mode = #tpu.pipeline_mode<synchronous>, transform_indices = @transform_10, window_bounds = array<i64: 1, 128>}, {transform_indices = @transform_11, window_bounds = array<i64: 256, 128>}]} {
    %c0 = arith.constant 0 : index
    %c0_0 = arith.constant 0 : index
    %0 = vector.load %arg1[%c0, %c0_0] : memref<256x784xf32, #tpu.memory_space<vmem>>, vector<256x784xf32>
    %1 = arith.truncf %0 : vector<256x784xf32> to vector<256x784xbf16>
    %c0_1 = arith.constant 0 : index
    %c0_2 = arith.constant 0 : index
    %2 = vector.load %arg2[%c0_1, %c0_2] : memref<784x512xbf16, #tpu.memory_space<vmem>>, vector<784x512xbf16>
    %cst = arith.constant dense<0.000000e+00> : vector<256x512xf32>
    %3 = tpu.matmul %1, %2, %cst {dimension_numbers = #tpu.dot_dimension_numbers<[1], [0], [0], [1], [0, 0, 1, 1], [], []>} : vector<256x784xbf16>, vector<784x512xbf16>, vector<256x512xf32> -> vector<256x512xf32>
    %c0_3 = arith.constant 0 : index
    %c0_4 = arith.constant 0 : index
    %4 = vector.load %arg3[%c0_3, %c0_4] : memref<1x512xf32, #tpu.memory_space<vmem>>, vector<1x512xf32>
    %5 = vector.broadcast %4 : vector<1x512xf32> to vector<256x512xf32>
    %6 = arith.addf %3, %5 : vector<256x512xf32>
    %cst_5 = arith.constant 0.000000e+00 : f32
    %7 = vector.broadcast %cst_5 : f32 to vector<256x512xf32>
    %8 = arith.maximumf %6, %7 : vector<256x512xf32>
    %9 = arith.truncf %8 : vector<256x512xf32> to vector<256x512xbf16>
    %c0_6 = arith.constant 0 : index
    %c0_7 = arith.constant 0 : index
    %10 = vector.load %arg4[%c0_6, %c0_7] : memref<512x256xbf16, #tpu.memory_space<vmem>>, vector<512x256xbf16>
    %cst_8 = arith.constant dense<0.000000e+00> : vector<256x256xf32>
    %11 = tpu.matmul %9, %10, %cst_8 {dimension_numbers = #tpu.dot_dimension_numbers<[1], [0], [0], [1], [0, 0, 1, 1], [], []>} : vector<256x512xbf16>, vector<512x256xbf16>, vector<256x256xf32> -> vector<256x256xf32>
    %c0_9 = arith.constant 0 : index
    %c0_10 = arith.constant 0 : index
    %12 = vector.load %arg5[%c0_9, %c0_10] : memref<1x256xf32, #tpu.memory_space<vmem>>, vector<1x256xf32>
    %13 = vector.broadcast %12 : vector<1x256xf32> to vector<256x256xf32>
    %14 = arith.addf %11, %13 : vector<256x256xf32>
    %cst_11 = arith.constant 0.000000e+00 : f32
    %15 = vector.broadcast %cst_11 : f32 to vector<256x256xf32>
    %16 = arith.maximumf %14, %15 : vector<256x256xf32>
    %17 = arith.truncf %16 : vector<256x256xf32> to vector<256x256xbf16>
    %c0_12 = arith.constant 0 : index
    %c0_13 = arith.constant 0 : index
    %18 = vector.load %arg6[%c0_12, %c0_13] : memref<256x128xbf16, #tpu.memory_space<vmem>>, vector<256x128xbf16>
    %cst_14 = arith.constant dense<0.000000e+00> : vector<256x128xf32>
    %19 = tpu.matmul %17, %18, %cst_14 {dimension_numbers = #tpu.dot_dimension_numbers<[1], [0], [0], [1], [0, 0, 1, 1], [], []>} : vector<256x256xbf16>, vector<256x128xbf16>, vector<256x128xf32> -> vector<256x128xf32>
    %c0_15 = arith.constant 0 : index
    %c0_16 = arith.constant 0 : index
    %20 = vector.load %arg7[%c0_15, %c0_16] : memref<1x128xf32, #tpu.memory_space<vmem>>, vector<1x128xf32>
    %21 = vector.broadcast %20 : vector<1x128xf32> to vector<256x128xf32>
    %22 = arith.addf %19, %21 : vector<256x128xf32>
    %cst_17 = arith.constant 0.000000e+00 : f32
    %23 = vector.broadcast %cst_17 : f32 to vector<256x128xf32>
    %24 = arith.maximumf %22, %23 : vector<256x128xf32>
    %25 = arith.truncf %24 : vector<256x128xf32> to vector<256x128xbf16>
    %c0_18 = arith.constant 0 : index
    %c0_19 = arith.constant 0 : index
    %26 = vector.load %arg8[%c0_18, %c0_19] : memref<128x64xbf16, #tpu.memory_space<vmem>>, vector<128x64xbf16>
    %cst_20 = arith.constant dense<0.000000e+00> : vector<256x64xf32>
    %27 = tpu.matmul %25, %26, %cst_20 {dimension_numbers = #tpu.dot_dimension_numbers<[1], [0], [0], [1], [0, 0, 1, 1], [], []>} : vector<256x128xbf16>, vector<128x64xbf16>, vector<256x64xf32> -> vector<256x64xf32>
    %c0_21 = arith.constant 0 : index
    %c0_22 = arith.constant 0 : index
    %28 = vector.load %arg9[%c0_21, %c0_22] : memref<1x64xf32, #tpu.memory_space<vmem>>, vector<1x64xf32>
    %29 = vector.broadcast %28 : vector<1x64xf32> to vector<256x64xf32>
    %30 = arith.addf %27, %29 : vector<256x64xf32>
    %cst_23 = arith.constant 0.000000e+00 : f32
    %31 = vector.broadcast %cst_23 : f32 to vector<256x64xf32>
    %32 = arith.maximumf %30, %31 : vector<256x64xf32>
    %33 = arith.truncf %32 : vector<256x64xf32> to vector<256x64xbf16>
    %c0_24 = arith.constant 0 : index
    %c0_25 = arith.constant 0 : index
    %34 = vector.load %arg10[%c0_24, %c0_25] : memref<64x128xbf16, #tpu.memory_space<vmem>>, vector<64x128xbf16>
    %cst_26 = arith.constant dense<0.000000e+00> : vector<256x128xf32>
    %35 = tpu.matmul %33, %34, %cst_26 {dimension_numbers = #tpu.dot_dimension_numbers<[1], [0], [0], [1], [0, 0, 1, 1], [], []>} : vector<256x64xbf16>, vector<64x128xbf16>, vector<256x128xf32> -> vector<256x128xf32>
    %c0_27 = arith.constant 0 : index
    %c0_28 = arith.constant 0 : index
    %36 = vector.load %arg11[%c0_27, %c0_28] : memref<1x128xf32, #tpu.memory_space<vmem>>, vector<1x128xf32>
    %37 = vector.broadcast %36 : vector<1x128xf32> to vector<256x128xf32>
    %38 = arith.addf %35, %37 : vector<256x128xf32>
    %c0_29 = arith.constant 0 : index
    %c0_30 = arith.constant 0 : index
    %39 = vector.load %arg12[%c0_29, %c0_30] : memref<256x128xf32, #tpu.memory_space<vmem>>, vector<256x128xf32>
    tpu.vector_store %arg12[%c0_29, %c0_30], %38 {strides = array<i32>} : memref<256x128xf32, #tpu.memory_space<vmem>>, vector<256x128xf32>,
    return
  }
  func.func @transform_0(%arg0: i32) -> (i32, i32) {
    %c0_i32 = arith.constant 0 : i32
    %c0_i32_0 = arith.constant 0 : i32
    return %arg0, %c0_i32 : i32, i32
  }
  func.func @transform_1(%arg0: i32) -> (i32, i32) {
    %c0_i32 = arith.constant 0 : i32
    %c0_i32_0 = arith.constant 0 : i32
    %c0_i32_1 = arith.constant 0 : i32
    return %c0_i32, %c0_i32_0 : i32, i32
  }
  func.func @transform_2(%arg0: i32) -> (i32, i32) {
    %c0_i32 = arith.constant 0 : i32
    %c0_i32_0 = arith.constant 0 : i32
    %c0_i32_1 = arith.constant 0 : i32
    return %c0_i32, %c0_i32_0 : i32, i32
  }
  func.func @transform_3(%arg0: i32) -> (i32, i32) {
    %c0_i32 = arith.constant 0 : i32
    %c0_i32_0 = arith.constant 0 : i32
    %c0_i32_1 = arith.constant 0 : i32
    return %c0_i32, %c0_i32_0 : i32, i32
  }
  func.func @transform_4(%arg0: i32) -> (i32, i32) {
    %c0_i32 = arith.constant 0 : i32
    %c0_i32_0 = arith.constant 0 : i32
    %c0_i32_1 = arith.constant 0 : i32
    return %c0_i32, %c0_i32_0 : i32, i32
  }
  func.func @transform_5(%arg0: i32) -> (i32, i32) {
    %c0_i32 = arith.constant 0 : i32
    %c0_i32_0 = arith.constant 0 : i32
    %c0_i32_1 = arith.constant 0 : i32
    return %c0_i32, %c0_i32_0 : i32, i32
  }
  func.func @transform_6(%arg0: i32) -> (i32, i32) {
    %c0_i32 = arith.constant 0 : i32
    %c0_i32_0 = arith.constant 0 : i32
    %c0_i32_1 = arith.constant 0 : i32
    return %c0_i32, %c0_i32_0 : i32, i32
  }
  func.func @transform_7(%arg0: i32) -> (i32, i32) {
    %c0_i32 = arith.constant 0 : i32
    %c0_i32_0 = arith.constant 0 : i32
    %c0_i32_1 = arith.constant 0 : i32
    return %c0_i32, %c0_i32_0 : i32, i32
  }
  func.func @transform_8(%arg0: i32) -> (i32, i32) {
    %c0_i32 = arith.constant 0 : i32
    %c0_i32_0 = arith.constant 0 : i32
    %c0_i32_1 = arith.constant 0 : i32
    return %c0_i32, %c0_i32_0 : i32, i32
  }
  func.func @transform_9(%arg0: i32) -> (i32, i32) {
    %c0_i32 = arith.constant 0 : i32
    %c0_i32_0 = arith.constant 0 : i32
    %c0_i32_1 = arith.constant 0 : i32
    return %c0_i32, %c0_i32_0 : i32, i32
  }
  func.func @transform_10(%arg0: i32) -> (i32, i32) {
    %c0_i32 = arith.constant 0 : i32
    %c0_i32_0 = arith.constant 0 : i32
    %c0_i32_1 = arith.constant 0 : i32
    return %c0_i32, %c0_i32_0 : i32, i32
  }
  func.func @transform_11(%arg0: i32) -> (i32, i32) {
    %c0_i32 = arith.constant 0 : i32
    %c0_i32_0 = arith.constant 0 : i32
    return %arg0, %c0_i32 : i32, i32
  }
}

</mosaic_0001>

<bundles_post_ra>
// kernel: _mnist_fc_forward.1
= control target key start
LH: loop header
LB: loop body
LE: loop exit
PB: predicated region body
PF: predicated region fallthrough
CT: control target
= control target key end

     0   :  { %vm1573_vm0 = vcmask 130048   ;;  %vm4899_vm1 = vcmask 523264   ;;  %s9373_s1 = inlined_call_operand.vmem [shape: bf16[784,512], index: 1, kind: input, shape index: {}]   ;;  %s9374_s0 = inlined_call_operand.vmem [shape: f32[256,784], index: 0, kind: input, shape index: {}]   ;;  %s9375_s2 = inlined_call_operand.vmem [shape: f32[1,512], index: 2, kind: input, shape index: {}]   ;;  %s9376_s3 = inlined_call_operand.vmem [shape: bf16[512,256], index: 3, kind: input, shape index: {}]   ;;  %s9377_s5 = inlined_call_operand.vmem [shape: bf16[256,128], index: 5, kind: input, shape index: {}]   ;;  %s9378_s4 = inlined_call_operand.vmem [shape: f32[1,256], index: 4, kind: input, shape index: {}]   ;;  %s9379_s7 = inlined_call_operand.vmem [shape: bf16[128,64], index: 7, kind: input, shape index: {}]   ;;  %s9380_s6 = inlined_call_operand.vmem [shape: f32[1,128], index: 6, kind: input, shape index: {}]   ;;  %s9381_s9 = inlined_call_operand.vmem [shape: bf16[64,128], index: 9, kind: input, shape index: {}]   ;;  %s9382_s8 = inlined_call_operand.vmem [shape: f32[1,64], index: 8, kind: input, shape index: {}]   ;;  %s9383_s10 = inlined_call_operand.vmem [shape: f32[1,128], index: 10, kind: input, shape index: {}]   ;;  %s9384_s11 = inlined_call_operand.vmem [shape: f32[256,128], index: 11, kind: output, shape index: {}]  }
   0x1   :  { %v5729_v0 = vld [vmem:[%s9373_s1 + $0xe4] ss:$16 sps:$4 sm:$0xff]   ;;  %v5733_v2 = vld [vmem:[%s9373_s1 + $0xe0] ss:$16 sps:$4 sm:$0xff]   ;;  %v40_v46 = vld [vmem:[%s9374_s0 + $0x8] sm:$0xff] }
   0x2   :  { %v5731_v1 = vld [vmem:[%s9373_s1 + $0x2e4] ss:$16 sps:$4 sm:$0xff]   ;;  %1622 = vmatprep.subr.bf16.mxu0 %v5729_v0  ;;  %v5734_v3 = vld [vmem:[%s9373_s1 + $0x2e0] ss:$16 sps:$4 sm:$0xff]   ;;  %v42_v48 = vld [vmem:[%s9374_s0 + $0x18] sm:$0xff] }
   0x3   :  { %1815 = vmatprep.subr.bf16.mxu1 %v5731_v1  ;;  %v5735_v4 = vld [vmem:[%s9373_s1 + $0xc4] ss:$16 sps:$4 sm:$0xff]   ;;  %1623 = vmatpush1.bf16.msra.mxu0 %v5733_v2  ;;  %v5739_v6 = vld [vmem:[%s9373_s1 + $0xc0] ss:$16 sps:$4 sm:$0xff]  }
   0x4   :  { %1816 = vmatpush1.bf16.msra.mxu1 %v5734_v3  ;;  %v5737_v5 = vld [vmem:[%s9373_s1 + $0x2c4] ss:$16 sps:$4 sm:$0xff]   ;;  %1624 = vmatprep.subr.bf16.mxu0 %v5735_v4  ;;  %v5740_v7 = vld [vmem:[%s9373_s1 + $0x2c0] ss:$16 sps:$4 sm:$0xff]  }
   0x5   :  { %1817 = vmatprep.subr.bf16.mxu1 %v5737_v5  ;;  %v5741_v8 = vld [vmem:[%s9373_s1 + $0xa4] ss:$16 sps:$4 sm:$0xff]   ;;  %v5745_v10 = vld [vmem:[%s9373_s1 + $0xa0] ss:$16 sps:$4 sm:$0xff]  }
   0x6   :  { %v5743_v9 = vld [vmem:[%s9373_s1 + $0x2a4] ss:$16 sps:$4 sm:$0xff]   ;;  %v5746_v11 = vld [vmem:[%s9373_s1 + $0x2a0] ss:$16 sps:$4 sm:$0xff]  }
   0x7   :  { %1625 = vmatpush1.bf16.msra.mxu0 %v5739_v6  ;;  %v5747_v12 = vld [vmem:[%s9373_s1 + $0x84] ss:$16 sps:$4 sm:$0xff]   ;;  %v5751_v14 = vld [vmem:[%s9373_s1 + $0x80] ss:$16 sps:$4 sm:$0xff]  }
   0x8   :  { %1818 = vmatpush1.bf16.msra.mxu1 %v5740_v7  ;;  %1626 = vmatprep.subr.bf16.mxu0 %v5741_v8  ;;  %v5749_v13 = vld [vmem:[%s9373_s1 + $0x284] ss:$16 sps:$4 sm:$0xff]   ;;  %v5752_v15 = vld [vmem:[%s9373_s1 + $0x280] ss:$16 sps:$4 sm:$0xff]   ;;  %v46_v7 = vld [vmem:[%s9374_s0 + $0x38] sm:$0xff] }
   0x9   :  { %1819 = vmatprep.subr.bf16.mxu1 %v5743_v9  ;;  %v5753_v16 = vld [vmem:[%s9373_s1 + $0x64] ss:$16 sps:$4 sm:$0xff]   ;;  %v5757_v18 = vld [vmem:[%s9373_s1 + $0x60] ss:$16 sps:$4 sm:$0xff]   ;;  %v48_v9 = vld [vmem:[%s9374_s0 + $0x48] sm:$0xff] }
   0xa   :  { %v5755_v17 = vld [vmem:[%s9373_s1 + $0x264] ss:$16 sps:$4 sm:$0xff]   ;;  %v5758_v19 = vld [vmem:[%s9373_s1 + $0x260] ss:$16 sps:$4 sm:$0xff]  }
   0xb   :  { %1627 = vmatpush1.bf16.msra.mxu0 %v5745_v10  ;;  %v5759_v20 = vld [vmem:[%s9373_s1 + $0x44] ss:$16 sps:$4 sm:$0xff]   ;;  %v5763_v22 = vld [vmem:[%s9373_s1 + $0x40] ss:$16 sps:$4 sm:$0xff]  }
   0xc   :  { %1820 = vmatpush1.bf16.msra.mxu1 %v5746_v11  ;;  %1628 = vmatprep.subr.bf16.mxu0 %v5747_v12  ;;  %v5761_v21 = vld [vmem:[%s9373_s1 + $0x244] ss:$16 sps:$4 sm:$0xff]   ;;  %v5764_v23 = vld [vmem:[%s9373_s1 + $0x240] ss:$16 sps:$4 sm:$0xff]   ;;  %v54_v12 = vld [vmem:[%s9374_s0 + $0x78] sm:$0xff] }
   0xd   :  { %1821 = vmatprep.subr.bf16.mxu1 %v5749_v13  ;;  %v5765_v24 = vld [vmem:[%s9373_s1 + $0x24] ss:$16 sps:$4 sm:$0xff]   ;;  %v5769_v26 = vld [vmem:[%s9373_s1 + $0x20] ss:$16 sps:$4 sm:$0xff]  }
   0xe   :  { %v5767_v25 = vld [vmem:[%s9373_s1 + $0x224] ss:$16 sps:$4 sm:$0xff]   ;;  %v5770_v27 = vld [vmem:[%s9373_s1 + $0x220] ss:$16 sps:$4 sm:$0xff]  }
   0xf   :  { %1629 = vmatpush1.bf16.msra.mxu0 %v5751_v14  ;;  %v5771_v28 = vld [vmem:[%s9373_s1 + $0x4] ss:$16 sps:$4 sm:$0xff]   ;;  %v5775_v30 = vld [vmem:[%s9373_s1] ss:$16 sps:$4 sm:$0xff]   ;;  %v56_v14 = vld [vmem:[%s9374_s0 + $0x88] sm:$0xff] }
  0x10   :  { %1822 = vmatpush1.bf16.msra.mxu1 %v5752_v15  ;;  %1630 = vmatprep.subr.bf16.mxu0 %v5753_v16  ;;  %v5773_v29 = vld [vmem:[%s9373_s1 + $0x204] ss:$16 sps:$4 sm:$0xff]   ;;  %v5776_v31 = vld [vmem:[%s9373_s1 + $0x200] ss:$16 sps:$4 sm:$0xff]  }
  0x11   :  { %1823 = vmatprep.subr.bf16.mxu1 %v5755_v17  ;;  %v5777_v32 = vld [vmem:[%s9373_s1 + $0x1e4] ss:$16 sps:$4 sm:$0xff]   ;;  %v5781_v34 = vld [vmem:[%s9373_s1 + $0x1e0] ss:$16 sps:$4 sm:$0xff]  }
  0x12   :  { %v5779_v33 = vld [vmem:[%s9373_s1 + $0x3e4] ss:$16 sps:$4 sm:$0xff]   ;;  %v5782_v35 = vld [vmem:[%s9373_s1 + $0x3e0] ss:$16 sps:$4 sm:$0xff]  }
  0x13   :  { %1631 = vmatpush1.bf16.msra.mxu0 %v5757_v18  ;;  %v5783_v36 = vld [vmem:[%s9373_s1 + $0x1c4] ss:$16 sps:$4 sm:$0xff]   ;;  %v5787_v38 = vld [vmem:[%s9373_s1 + $0x1c0] ss:$16 sps:$4 sm:$0xff]  }
  0x14   :  { %1824 = vmatpush1.bf16.msra.mxu1 %v5758_v19  ;;  %1632 = vmatprep.subr.bf16.mxu0 %v5759_v20  ;;  %v5785_v37 = vld [vmem:[%s9373_s1 + $0x3c4] ss:$16 sps:$4 sm:$0xff]   ;;  %v5788_v39 = vld [vmem:[%s9373_s1 + $0x3c0] ss:$16 sps:$4 sm:$0xff]  }
  0x15   :  { %1825 = vmatprep.subr.bf16.mxu1 %v5761_v21  ;;  %v5789_v40 = vld [vmem:[%s9373_s1 + $0x1a4] ss:$16 sps:$4 sm:$0xff]   ;;  %v5793_v42 = vld [vmem:[%s9373_s1 + $0x1a0] ss:$16 sps:$4 sm:$0xff]  }
  0x16   :  { %v5791_v41 = vld [vmem:[%s9373_s1 + $0x3a4] ss:$16 sps:$4 sm:$0xff]   ;;  %v5794_v43 = vld [vmem:[%s9373_s1 + $0x3a0] ss:$16 sps:$4 sm:$0xff]  }
  0x17   :  { %1633 = vmatpush1.bf16.msra.mxu0 %v5763_v22  ;;  %v5795_v44 = vld [vmem:[%s9373_s1 + $0x184] ss:$16 sps:$4 sm:$0xff]   ;;  %v5799_v50 = vld [vmem:[%s9373_s1 + $0x180] ss:$16 sps:$4 sm:$0xff]  }
  0x18   :  { %1826 = vmatpush1.bf16.msra.mxu1 %v5764_v23  ;;  %1634 = vmatprep.subr.bf16.mxu0 %v5765_v24  ;;  %v5797_v45 = vld [vmem:[%s9373_s1 + $0x384] ss:$16 sps:$4 sm:$0xff]   ;;  %v5800_v51 = vld [vmem:[%s9373_s1 + $0x380] ss:$16 sps:$4 sm:$0xff]   ;;  %v60_v23 = vld [vmem:[%s9374_s0 + $0xa8] sm:$0xff] }
  0x19   :  { %1827 = vmatprep.subr.bf16.mxu1 %v5767_v25  ;;  %v47_v47 = vld [vmem:[%s9374_s0 + $0x40] sm:$0xff]  ;;  %v49_v49 = vld [vmem:[%s9374_s0 + $0x50] sm:$0xff] }
  0x1a   :  { %v5801_v52 = vld [vmem:[%s9373_s1 + $0x164] ss:$16 sps:$4 sm:$0xff]   ;;  %v6368_v53 = vpack.c.bf16 %v47_v47, %v40_v46  ;;  %v6370_v54 = vpack.c.bf16 %v49_v49, %v42_v48  ;;  %v5805_v56 = vld [vmem:[%s9373_s1 + $0x160] ss:$16 sps:$4 sm:$0xff]  }
  0x1b   :  { %1635 = vmatpush1.bf16.msra.mxu0 %v5769_v26  ;;  %v5803_v55 = vld [vmem:[%s9373_s1 + $0x364] ss:$16 sps:$4 sm:$0xff]   ;;  %v5806_v57 = vld [vmem:[%s9373_s1 + $0x360] ss:$16 sps:$4 sm:$0xff]   ;;  %v62_v26 = vld [vmem:[%s9374_s0 + $0xb8] sm:$0xff] }
  0x1c   :  { %1828 = vmatpush1.bf16.msra.mxu1 %v5770_v27  ;;  %1636 = vmatprep.subr.bf16.mxu0 %v5771_v28  ;;  %v5807_v58 = vld [vmem:[%s9373_s1 + $0x144] ss:$16 sps:$4 sm:$0xff]   ;;  %v5811_v60 = vld [vmem:[%s9373_s1 + $0x140] ss:$16 sps:$4 sm:$0xff]   ;;  %v68_v28 = vld [vmem:[%s9374_s0 + $0xe8] sm:$0xff] }
  0x1d   :  { %1829 = vmatprep.subr.bf16.mxu1 %v5773_v29  ;;  %1654 = vmatprep.mubr.bf16.mxu0 %v6368_v53  ;;  %v5809_v59 = vld [vmem:[%s9373_s1 + $0x344] ss:$16 sps:$4 sm:$0xff]   ;;  %v5812_v61 = vld [vmem:[%s9373_s1 + $0x340] ss:$16 sps:$4 sm:$0xff]  }
  0x1e   :  { %1847 = vmatprep.mubr.bf16.mxu1 %v6370_v54  ;;  %v5813_v62 = vld [vmem:[%s9373_s1 + $0x124] ss:$16 sps:$4 sm:$0xff]   ;;  %v5817_v0 = vld [vmem:[%s9373_s1 + $0x120] ss:$16 sps:$4 sm:$0xff]  }
  0x1f   :  { %1637 = vmatpush1.bf16.msra.mxu0 %v5775_v30  ;;  %v5815_v63 = vld [vmem:[%s9373_s1 + $0x324] ss:$16 sps:$4 sm:$0xff]   ;;  %v5818_v1 = vld [vmem:[%s9373_s1 + $0x320] ss:$16 sps:$4 sm:$0xff]   ;;  %v70_v30 = vld [vmem:[%s9374_s0 + $0xf8] sm:$0xff] }
  0x20   :  { %1830 = vmatpush1.bf16.msra.mxu1 %v5776_v31  ;;  %1638 = vmatprep.subr.bf16.mxu0 %v5777_v32  ;;  %v5819_v2 = vld [vmem:[%s9373_s1 + $0x104] ss:$16 sps:$4 sm:$0xff]   ;;  %v5823_v4 = vld [vmem:[%s9373_s1 + $0x100] ss:$16 sps:$4 sm:$0xff]  }
  0x21   :  { %1831 = vmatprep.subr.bf16.mxu1 %v5779_v33  ;;  %v5821_v3 = vld [vmem:[%s9373_s1 + $0x304] ss:$16 sps:$4 sm:$0xff]   ;;  %v5824_v5 = vld [vmem:[%s9373_s1 + $0x300] ss:$16 sps:$4 sm:$0xff]  }
  0x22   :  { %v39_v6 = vld [vmem:[%s9374_s0] sm:$0xff]  ;;  %v41_v8 = vld [vmem:[%s9374_s0 + $0x10] sm:$0xff] }
  0x23   :  { %1639 = vmatpush2.bf16.msra.mxu0 %v5781_v34  ;;  %v5827_v10 = vld [vmem:[%s9373_s1 + $0x4e4] ss:$16 sps:$4 sm:$0xff]   ;;  %v6449_v16 = vpack.c.bf16 %v46_v7, %v39_v6  ;;  %v6451_v17 = vpack.c.bf16 %v48_v9, %v41_v8  ;;  %v5825_v18 = vld [vmem:[%s9373_s1 + $0x4e0] ss:$16 sps:$4 sm:$0xff]  }
  0x24   :  { %1832 = vmatpush2.bf16.msra.mxu1 %v5782_v35  ;;  %1640 = vmatprep.subr.bf16.mxu0 %v5783_v36  ;;  %v5830_v11 = vld [vmem:[%s9373_s1 + $0x604] ss:$16 sps:$4 sm:$0xff]   ;;  %v5828_v19 = vld [vmem:[%s9373_s1 + $0x600] ss:$16 sps:$4 sm:$0xff]  }
  0x25   :  { %1833 = vmatprep.subr.bf16.mxu1 %v5785_v37  ;;  %v61_v13 = vld [vmem:[%s9374_s0 + $0xb0] sm:$0xff]  ;;  %v63_v15 = vld [vmem:[%s9374_s0 + $0xc0] sm:$0xff] }
  0x26   :  { %v6459_v20 = vpack.c.bf16 %v61_v13, %v54_v12  ;;  %v6461_v21 = vpack.c.bf16 %v63_v15, %v56_v14  ;;  %v53_v22 = vld [vmem:[%s9374_s0 + $0x70] sm:$0xff]  ;;  %v55_v25 = vld [vmem:[%s9374_s0 + $0x80] sm:$0xff]  ;;  %v104_v12 = vld [vmem:[%s9374_s0 + $0x208] sm:$0xff] }
  0x27   :  { %1641 = vmatpush2.bf16.msra.mxu0 %v5787_v38  ;;  %v5833_v24 = vld [vmem:[%s9373_s1 + $0x4c4] ss:$16 sps:$4 sm:$0xff]   ;;  %v5831_v27 = vld [vmem:[%s9373_s1 + $0x4c0] ss:$16 sps:$4 sm:$0xff]   ;;  %v6500_v33 = vpack.c.bf16 %v60_v23, %v53_v22  ;;  %v6502_v34 = vpack.c.bf16 %v62_v26, %v55_v25  ;;  %v110_v13 = vld [vmem:[%s9374_s0 + $0x238] sm:$0xff] }
  0x28   :  { %1834 = vmatpush2.bf16.msra.mxu1 %v5788_v39  ;;  %1642 = vmatprep.subr.bf16.mxu0 %v5789_v40  ;;  %v75_v29 = vld [vmem:[%s9374_s0 + $0x120] sm:$0xff]  ;;  %v77_v31 = vld [vmem:[%s9374_s0 + $0x130] sm:$0xff]  ;;  %v74_v40 = vld [vmem:[%s9374_s0 + $0x118] sm:$0xff] }
  0x29   :  { %1835 = vmatprep.subr.bf16.mxu1 %v5791_v41  ;;  %v5836_v32 = vld [vmem:[%s9373_s1 + $0x4a4] ss:$16 sps:$4 sm:$0xff]   ;;  %v6504_v35 = vpack.c.bf16 %v75_v29, %v68_v28  ;;  %v6506_v36 = vpack.c.bf16 %v77_v31, %v70_v30  ;;  %v5834_v37 = vld [vmem:[%s9373_s1 + $0x4a0] ss:$16 sps:$4 sm:$0xff]   ;;  %v112_v15 = vld [vmem:[%s9374_s0 + $0x248] sm:$0xff] }
  0x2a   :  { %v67_v38 = vld [vmem:[%s9374_s0 + $0xe0] sm:$0xff]  ;;  %v69_v41 = vld [vmem:[%s9374_s0 + $0xf0] sm:$0xff]  ;;  %v116_v30 = vld [vmem:[%s9374_s0 + $0x268] sm:$0xff] }
  0x2b   :  { %1643 = vmatpush2.bf16.msra.mxu0 %v5793_v42  ;;  %v5839_v39 = vld [vmem:[%s9373_s1 + $0x484] ss:$16 sps:$4 sm:$0xff]   ;;  %v76_v42 = vld [vmem:[%s9374_s0 + $0x128] sm:$0xff]  ;;  %v5837_v47 = vld [vmem:[%s9373_s1 + $0x480] ss:$16 sps:$4 sm:$0xff]   ;;  %v6548_v49 = vpack.c.bf16 %v74_v40, %v67_v38 }
  0x2c   :  { %1836 = vmatpush2.bf16.msra.mxu1 %v5794_v43  ;;  %1644 = vmatprep.subr.bf16.mxu0 %v5795_v44  ;;  %v82_v43 = vld [vmem:[%s9374_s0 + $0x158] sm:$0xff]  ;;  %v89_v44 = vld [vmem:[%s9374_s0 + $0x190] sm:$0xff]  ;;  %v91_v46 = vld [vmem:[%s9374_s0 + $0x1a0] sm:$0xff] }
  0x2d   :  { %1837 = vmatprep.subr.bf16.mxu1 %v5797_v45  ;;  %v84_v45 = vld [vmem:[%s9374_s0 + $0x168] sm:$0xff]  ;;  %v5842_v48 = vld [vmem:[%s9373_s1 + $0x464] ss:$16 sps:$4 sm:$0xff]   ;;  %v5846_v7 = vld [vmem:[%s9373_s1 + $0x420] ss:$16 sps:$4 sm:$0xff]  }
  0x2e   :  { %v95_v8 = vld [vmem:[%s9374_s0 + $0x1c0] sm:$0xff]  ;;  %v117_v14 = vld [vmem:[%s9374_s0 + $0x270] sm:$0xff] }
  0x2f   :  { %1645 = vmatpush2.bf16.msra.mxu0 %v5799_v50  ;;  %v6550_v50 = vpack.c.bf16 %v76_v42, %v69_v41  ;;  %v5851_v9 = vld [vmem:[%s9373_s1 + $0x404] ss:$16 sps:$4 sm:$0xff]   ;;  %v6648_v25 = vpack.c.bf16 %v117_v14, %v110_v13  ;;  %v5855_v41 = vld [vmem:[%s9373_s1 + $0x5c0] ss:$16 sps:$4 sm:$0xff]  }
  0x30   :  { %1838 = vmatpush2.bf16.msra.mxu1 %v5800_v51  ;;  %1646 = vmatprep.subr.bf16.mxu0 %v5801_v52  ;;  %v6552_v51 = vpack.c.bf16 %v89_v44, %v82_v43  ;;  %v6554_v52 = vpack.c.bf16 %v91_v46, %v84_v45  ;;  %v5854_v22 = vld [vmem:[%s9373_s1 + $0x5e4] ss:$16 sps:$4 sm:$0xff]  }
  0x31   :  { %1839 = vmatprep.subr.bf16.mxu1 %v5803_v55  ;;  %v5840_v55 = vld [vmem:[%s9373_s1 + $0x460] ss:$16 sps:$4 sm:$0xff]   ;;  %v5857_v29 = vld [vmem:[%s9373_s1 + $0x5c4] ss:$16 sps:$4 sm:$0xff]  }
  0x32   :  { %v109_v28 = vld [vmem:[%s9374_s0 + $0x230] sm:$0xff]  ;;  %v111_v31 = vld [vmem:[%s9374_s0 + $0x240] sm:$0xff] }
  0x33   :  { %1647 = vmatpush2.bf16.msra.mxu0 %v5805_v56  ;;  %v81_v56 = vld [vmem:[%s9374_s0 + $0x150] sm:$0xff]  ;;  %v131_v38 = vld [vmem:[%s9374_s0 + $0x2e0] sm:$0xff]  ;;  %v6692_v43 = vpack.c.bf16 %v116_v30, %v109_v28 }
  0x34   :  { %1840 = vmatpush2.bf16.msra.mxu1 %v5806_v57  ;;  %1648 = vmatprep.subr.bf16.mxu0 %v5807_v58  ;;  %v5845_v57 = vld [vmem:[%s9373_s1 + $0x444] ss:$16 sps:$4 sm:$0xff]   ;;  %v88_v58 = vld [vmem:[%s9374_s0 + $0x188] sm:$0xff]  ;;  %v5867_v28 = vld [vmem:[%s9373_s1 + $0x540] ss:$16 sps:$4 sm:$0xff]  }
  0x35   :  { %1841 = vmatprep.subr.bf16.mxu1 %v5809_v59  ;;  %v83_v59 = vld [vmem:[%s9374_s0 + $0x160] sm:$0xff]  ;;  %v133_v40 = vld [vmem:[%s9374_s0 + $0x2f0] sm:$0xff] }
  0x36   :  { %v5860_v42 = vld [vmem:[%s9373_s1 + $0x5a4] ss:$16 sps:$4 sm:$0xff]  }
  0x37   :  { %1649 = vmatpush2.bf16.msra.mxu0 %v5811_v60  ;;  %v90_v60 = vld [vmem:[%s9374_s0 + $0x198] sm:$0xff]  ;;  %v139_v13 = vld [vmem:[%s9374_s0 + $0x320] sm:$0xff] }
  0x38   :  { %1842 = vmatpush2.bf16.msra.mxu1 %v5812_v61  ;;  %1650 = vmatprep.subr.bf16.mxu0 %v5813_v62  ;;  %v96_v61 = vld [vmem:[%s9374_s0 + $0x1c8] sm:$0xff]  ;;  %v103_v62 = vld [vmem:[%s9374_s0 + $0x200] sm:$0xff] }
  0x39   :  { %1843 = vmatprep.subr.bf16.mxu1 %v5815_v63  ;;  %v98_v63 = vld [vmem:[%s9374_s0 + $0x1d8] sm:$0xff]  ;;  %v5869_v14 = vld [vmem:[%s9373_s1 + $0x544] ss:$16 sps:$4 sm:$0xff]  }
  0x3b   :  { %1651 = vmatpush2.bf16.msra.mxu0 %v5817_v0  ;;  %v105_v0 = vld [vmem:[%s9374_s0 + $0x210] sm:$0xff] }
  0x3c   :  { %1844 = vmatpush2.bf16.msra.mxu1 %v5818_v1  ;;  %1652 = vmatprep.subr.bf16.mxu0 %v5819_v2  ;;  %v5843_v1 = vld [vmem:[%s9373_s1 + $0x440] ss:$16 sps:$4 sm:$0xff]   ;;  %v5848_v2 = vld [vmem:[%s9373_s1 + $0x424] ss:$16 sps:$4 sm:$0xff]   ;;  %v6602_v6 = vpack.c.bf16 %v105_v0, %v98_v63 }
  0x3d   :  { %1845 = vmatprep.subr.bf16.mxu1 %v5821_v3  ;;  %v6596_v3 = vpack.c.bf16 %v88_v58, %v81_v56  ;;  %v130_v56 = vld [vmem:[%s9374_s0 + $0x2d8] sm:$0xff]  ;;  %v132_v58 = vld [vmem:[%s9374_s0 + $0x2e8] sm:$0xff]  ;;  %v5861_v63 = vld [vmem:[%s9373_s1 + $0x580] ss:$16 sps:$4 sm:$0xff]  }
  0x3e   :  { %v5866_v0 = vld [vmem:[%s9373_s1 + $0x564] ss:$16 sps:$4 sm:$0xff]  }
  0x3f   :  { %1653 = vmatpush2.bf16.msra.mxu0 %v5823_v4  ;;  %v6598_v4 = vpack.c.bf16 %v90_v60, %v83_v59  ;;  %v138_v59 = vld [vmem:[%s9374_s0 + $0x318] sm:$0xff]  ;;  %v145_v60 = vld [vmem:[%s9374_s0 + $0x350] sm:$0xff] }
  0x40   :  { %1846 = vmatpush2.bf16.msra.mxu1 %v5824_v5  ;;  %2008 = vmatprep.subr.bf16.mxu0 %v5827_v10  ;;  %v6600_v5 = vpack.c.bf16 %v103_v62, %v96_v61  ;;  %v102_v10 = vld [vmem:[%s9374_s0 + $0x1f8] sm:$0xff]  ;;  %v140_v61 = vld [vmem:[%s9374_s0 + $0x328] sm:$0xff]  ;;  %v147_v62 = vld [vmem:[%s9374_s0 + $0x360] sm:$0xff] }
  0x41   :  { %2215 = vmatprep.subr.bf16.mxu1 %v5830_v11  ;;  %v97_v11 = vld [vmem:[%s9374_s0 + $0x1d0] sm:$0xff]  ;;  %v6644_v23 = vpack.c.bf16 %v102_v10, %v95_v8  ;;  %v6746_v8 = vpack.c.bf16 %v147_v62, %v140_v61 }
  0x42   :  { %1655 = vmatmul.mubr.bf16.vlgmr.msra.gmra.mxu0 %v6449_v16  ;;  %v5864_v10 = vld [vmem:[%s9373_s1 + $0x560] ss:$16 sps:$4 sm:$0xff]  }
  0x43   :  { %1848 = vmatmul.mubr.bf16.vlgmr.msra.gmra.mxu1 %v6451_v17  ;;  %2009 = vmatpush1.bf16.msra.mxu0 %v5825_v18  ;;  %v119_v18 = vld [vmem:[%s9374_s0 + $0x280] sm:$0xff] }
  0x44   :  { %2216 = vmatpush1.bf16.msra.mxu1 %v5828_v19  ;;  %1664 = vmatprep.mubr.bf16.mxu0 %v6459_v20  ;;  %v5849_v19 = vld [vmem:[%s9373_s1 + $0x400] ss:$16 sps:$4 sm:$0xff]   ;;  %v6650_v26 = vpack.c.bf16 %v119_v18, %v112_v15  ;;  %v146_v15 = vld [vmem:[%s9374_s0 + $0x358] sm:$0xff]  ;;  %v152_v18 = vld [vmem:[%s9374_s0 + $0x388] sm:$0xff] }
  0x45   :  { %1857 = vmatprep.mubr.bf16.mxu1 %v6461_v21  ;;  %2010 = vmatprep.subr.bf16.mxu0 %v5833_v24  ;;  %v6646_v24 = vpack.c.bf16 %v104_v12, %v97_v11  ;;  %v137_v11 = vld [vmem:[%s9374_s0 + $0x310] sm:$0xff]  ;;  %v144_v12 = vld [vmem:[%s9374_s0 + $0x348] sm:$0xff] }
  0x46   :  { %v6791_v30 = vpack.c.bf16 %v144_v12, %v137_v11  ;;  %v174_v11 = vld [vmem:[%s9374_s0 + $0x438] sm:$0xff]  ;;  %v180_v12 = vld [vmem:[%s9374_s0 + $0x468] sm:$0xff] }
  0x47   :  { %2011 = vmatpush1.bf16.msra.mxu0 %v5831_v27  ;;  %v5852_v27 = vld [vmem:[%s9373_s1 + $0x5e0] ss:$16 sps:$4 sm:$0xff]  }
  0x48   :  { %2012 = vmatprep.subr.bf16.mxu0 %v5836_v32  ;;  %v118_v32 = vld [vmem:[%s9374_s0 + $0x278] sm:$0xff] }
  0x49   :  { %v6694_v44 = vpack.c.bf16 %v118_v32, %v111_v31  ;;  %v6793_v31 = vpack.c.bf16 %v146_v15, %v139_v13  ;;  %v187_v13 = vld [vmem:[%s9374_s0 + $0x4a0] sm:$0xff]  ;;  %v189_v15 = vld [vmem:[%s9374_s0 + $0x4b0] sm:$0xff] }
  0x4a   :  { %1665 = vmatmul.mubr.bf16.gmra.mxu0 %v6500_v33 }
  0x4b   :  { %1858 = vmatmul.mubr.bf16.gmra.mxu1 %v6502_v34  ;;  %1674 = vmatprep.mubr.bf16.mxu0 %v6504_v35 }
  0x4c   :  { %1867 = vmatprep.mubr.bf16.mxu1 %v6506_v36  ;;  %2013 = vmatpush1.bf16.msra.mxu0 %v5834_v37  ;;  %v124_v37 = vld [vmem:[%s9374_s0 + $0x2a8] sm:$0xff] }
  0x4d   :  { %2014 = vmatprep.subr.bf16.mxu0 %v5839_v39  ;;  %v126_v39 = vld [vmem:[%s9374_s0 + $0x2b8] sm:$0xff]  ;;  %v6696_v45 = vpack.c.bf16 %v131_v38, %v124_v37  ;;  %v5870_v38 = vld [vmem:[%s9373_s1 + $0x520] ss:$16 sps:$4 sm:$0xff]  }
  0x4e   :  { %v6698_v46 = vpack.c.bf16 %v133_v40, %v126_v39  ;;  %v151_v39 = vld [vmem:[%s9374_s0 + $0x380] sm:$0xff]  ;;  %v158_v40 = vld [vmem:[%s9374_s0 + $0x3b8] sm:$0xff] }
  0x50   :  { %2015 = vmatpush1.bf16.msra.mxu0 %v5837_v47  ;;  %v5858_v47 = vld [vmem:[%s9373_s1 + $0x5a0] ss:$16 sps:$4 sm:$0xff]  }
  0x51   :  { %2016 = vmatprep.subr.bf16.mxu0 %v5842_v48  ;;  %v123_v48 = vld [vmem:[%s9374_s0 + $0x2a0] sm:$0xff] }
  0x52   :  { %1675 = vmatmul.mubr.bf16.gmra.mxu0 %v6548_v49 }
  0x53   :  { %1868 = vmatmul.mubr.bf16.gmra.mxu1 %v6550_v50  ;;  %1684 = vmatprep.mubr.bf16.mxu0 %v6552_v51 }
  0x54   :  { %1877 = vmatprep.mubr.bf16.mxu1 %v6554_v52  ;;  %2017 = vmatpush1.bf16.msra.mxu0 %v5840_v55  ;;  %v5863_v55 = vld [vmem:[%s9373_s1 + $0x584] ss:$16 sps:$4 sm:$0xff]  }
  0x55   :  { %2018 = vmatprep.subr.bf16.mxu0 %v5845_v57  ;;  %v125_v57 = vld [vmem:[%s9374_s0 + $0x2b0] sm:$0xff] }
  0x58   :  { %2019 = vmatpush1.bf16.msra.mxu0 %v5843_v1  ;;  %v6740_v1 = vpack.c.bf16 %v130_v56, %v123_v48  ;;  %v166_v48 = vld [vmem:[%s9374_s0 + $0x3f8] sm:$0xff]  ;;  %v168_v56 = vld [vmem:[%s9374_s0 + $0x408] sm:$0xff] }
  0x59   :  { %2020 = vmatprep.subr.bf16.mxu0 %v5848_v2  ;;  %v6742_v2 = vpack.c.bf16 %v132_v58, %v125_v57  ;;  %v175_v57 = vld [vmem:[%s9374_s0 + $0x440] sm:$0xff] }
  0x5a   :  { %1685 = vmatmul.mubr.bf16.gmra.mxu0 %v6596_v3  ;;  %v5873_v58 = vld [vmem:[%s9373_s1 + $0x500] ss:$16 sps:$4 sm:$0xff]  }
  0x5b   :  { %1878 = vmatmul.mubr.bf16.gmra.mxu1 %v6598_v4  ;;  %1694 = vmatprep.mubr.bf16.mxu0 %v6600_v5 }
  0x5c   :  { %1887 = vmatprep.mubr.bf16.mxu1 %v6602_v6  ;;  %2021 = vmatpush1.bf16.msra.mxu0 %v5846_v7  ;;  %v6744_v7 = vpack.c.bf16 %v145_v60, %v138_v59  ;;  %v5878_v59 = vld [vmem:[%s9373_s1 + $0xec] ss:$16 sps:$4 sm:$0xff]   ;;  %v6839_v60 = vpack.c.bf16 %v158_v40, %v151_v39 }
  0x5d   :  { %2022 = vmatprep.subr.bf16.mxu0 %v5851_v9  ;;  %v5881_v9 = vld [vmem:[%s9373_s1 + $0x2ec] ss:$16 sps:$4 sm:$0xff]  }
  0x5e   :  { %2587 = vmatprep.subr.bf16.mxu1 %v5881_v9  ;;  %v172_v9 = vld [vmem:[%s9374_s0 + $0x428] sm:$0xff]  ;;  %v194_v40 = vld [vmem:[%s9374_s0 + $0x4d8] sm:$0xff] }
  0x5f   :  { %v188_v39 = vld [vmem:[%s9374_s0 + $0x4a8] sm:$0xff] }
  0x60   :  { %2023 = vmatpush1.bf16.msra.mxu0 %v5849_v19  ;;  %v159_v19 = vld [vmem:[%s9374_s0 + $0x3c0] sm:$0xff] }
  0x61   :  { %2024 = vmatprep.subr.bf16.mxu0 %v5854_v22  ;;  %v154_v22 = vld [vmem:[%s9374_s0 + $0x398] sm:$0xff]  ;;  %v6795_v32 = vpack.c.bf16 %v159_v19, %v152_v18 }
  0x62   :  { %1695 = vmatmul.mubr.bf16.gmra.mxu0 %v6644_v23 }
  0x63   :  { %1888 = vmatmul.mubr.bf16.gmra.mxu1 %v6646_v24  ;;  %1704 = vmatprep.mubr.bf16.mxu0 %v6648_v25 }
  0x64   :  { %1897 = vmatprep.mubr.bf16.mxu1 %v6650_v26  ;;  %2025 = vmatpush2.bf16.msra.mxu0 %v5852_v27  ;;  %v161_v27 = vld [vmem:[%s9374_s0 + $0x3d0] sm:$0xff] }
  0x65   :  { %2026 = vmatprep.subr.bf16.mxu0 %v5857_v29  ;;  %v5872_v29 = vld [vmem:[%s9373_s1 + $0x524] ss:$16 sps:$4 sm:$0xff]   ;;  %v6797_v37 = vpack.c.bf16 %v161_v27, %v154_v22  ;;  %v6879_v22 = vpack.c.bf16 %v187_v13, %v180_v12  ;;  %v210_v12 = vld [vmem:[%s9374_s0 + $0x558] sm:$0xff] }
  0x66   :  { %v217_v13 = vld [vmem:[%s9374_s0 + $0x590] sm:$0xff] }
  0x67   :  { %9468 = vst [vmem:[#allocation4_spill] sm:$0xff] %v6879_v22 }
  0x68   :  { %2027 = vmatpush2.bf16.msra.mxu0 %v5855_v41  ;;  %v153_v41 = vld [vmem:[%s9374_s0 + $0x390] sm:$0xff] }
  0x69   :  { %2028 = vmatprep.subr.bf16.mxu0 %v5860_v42  ;;  %v160_v42 = vld [vmem:[%s9374_s0 + $0x3c8] sm:$0xff] }
  0x6a   :  { %1705 = vmatmul.mubr.bf16.gmra.mxu0 %v6692_v43  ;;  %v6841_v61 = vpack.c.bf16 %v160_v42, %v153_v41  ;;  %v201_v41 = vld [vmem:[%s9374_s0 + $0x510] sm:$0xff]  ;;  %v196_v42 = vld [vmem:[%s9374_s0 + $0x4e8] sm:$0xff] }
  0x6b   :  { %1898 = vmatmul.mubr.bf16.gmra.mxu1 %v6694_v44  ;;  %1714 = vmatprep.mubr.bf16.mxu0 %v6696_v45 }
  0x6c   :  { %1907 = vmatprep.mubr.bf16.mxu1 %v6698_v46  ;;  %2029 = vmatpush2.bf16.msra.mxu0 %v5858_v47  ;;  %v5875_v47 = vld [vmem:[%s9373_s1 + $0x504] ss:$16 sps:$4 sm:$0xff]  }
  0x6d   :  { %2030 = vmatprep.subr.bf16.mxu0 %v5863_v55  ;;  %v173_v55 = vld [vmem:[%s9374_s0 + $0x430] sm:$0xff] }
  0x6e   :  { %v6843_v62 = vpack.c.bf16 %v173_v55, %v166_v48 }
  0x70   :  { %2031 = vmatpush2.bf16.msra.mxu0 %v5861_v63  ;;  %v6845_v63 = vpack.c.bf16 %v175_v57, %v168_v56  ;;  %v6915_v56 = vpack.c.bf16 %v201_v41, %v194_v40  ;;  %v209_v40 = vld [vmem:[%s9374_s0 + $0x550] sm:$0xff]  ;;  %v216_v41 = vld [vmem:[%s9374_s0 + $0x588] sm:$0xff] }
  0x71   :  { %2032 = vmatprep.subr.bf16.mxu0 %v5866_v0  ;;  %v165_v0 = vld [vmem:[%s9374_s0 + $0x3f0] sm:$0xff] }
  0x72   :  { %1715 = vmatmul.mubr.bf16.gmra.mxu0 %v6740_v1  ;;  %v6875_v18 = vpack.c.bf16 %v172_v9, %v165_v0  ;;  %9472 = vst [vmem:[#allocation8_spill] sm:$0xff] %v6915_v56  ;;  %v195_v0 = vld [vmem:[%s9374_s0 + $0x4e0] sm:$0xff]  ;;  %v202_v9 = vld [vmem:[%s9374_s0 + $0x518] sm:$0xff] }
  0x73   :  { %1908 = vmatmul.mubr.bf16.gmra.mxu1 %v6742_v2  ;;  %1724 = vmatprep.mubr.bf16.mxu0 %v6744_v7 }
  0x74   :  { %1917 = vmatprep.mubr.bf16.mxu1 %v6746_v8  ;;  %2033 = vmatpush2.bf16.msra.mxu0 %v5864_v10  ;;  %v167_v10 = vld [vmem:[%s9374_s0 + $0x400] sm:$0xff]  ;;  %9466 = vst [vmem:[#allocation2_spill] sm:$0xff] %v6875_v18 }
  0x75   :  { %2034 = vmatprep.subr.bf16.mxu0 %v5869_v14  ;;  %v182_v14 = vld [vmem:[%s9374_s0 + $0x478] sm:$0xff]  ;;  %v6877_v19 = vpack.c.bf16 %v174_v11, %v167_v10  ;;  %v208_v10 = vld [vmem:[%s9374_s0 + $0x548] sm:$0xff]  ;;  %v215_v11 = vld [vmem:[%s9374_s0 + $0x580] sm:$0xff] }
  0x76   :  { %v6881_v27 = vpack.c.bf16 %v189_v15, %v182_v14  ;;  %v6949_v15 = vpack.c.bf16 %v202_v9, %v195_v0  ;;  %v6985_v9 = vpack.c.bf16 %v216_v41, %v209_v40  ;;  %v236_v40 = vld [vmem:[%s9374_s0 + $0x628] sm:$0xff]  ;;  %v243_v41 = vld [vmem:[%s9374_s0 + $0x660] sm:$0xff] }
  0x77   :  { %9467 = vst [vmem:[#allocation3_spill] sm:$0xff] %v6877_v19 }
  0x78   :  { %2035 = vmatpush2.bf16.msra.mxu0 %v5867_v28  ;;  %9469 = vst [vmem:[#allocation5_spill] sm:$0xff] %v6881_v27  ;;  %v179_v28 = vld [vmem:[%s9374_s0 + $0x460] sm:$0xff]  ;;  %9475 = vst [vmem:[#allocation11_spill] sm:$0xff] %v6949_v15 }
  0x79   :  { %2036 = vmatprep.subr.bf16.mxu0 %v5872_v29  ;;  %v186_v29 = vld [vmem:[%s9374_s0 + $0x498] sm:$0xff]  ;;  %9479 = vst [vmem:[#allocation15_spill] sm:$0xff] %v6985_v9 }
  0x7a   :  { %1725 = vmatmul.mubr.bf16.gmra.mxu0 %v6791_v30  ;;  %v6911_v48 = vpack.c.bf16 %v186_v29, %v179_v28  ;;  %v6951_v28 = vpack.c.bf16 %v215_v11, %v208_v10  ;;  %v6953_v29 = vpack.c.bf16 %v217_v13, %v210_v12  ;;  %v221_v12 = vld [vmem:[%s9374_s0 + $0x5b0] sm:$0xff]  ;;  %v228_v13 = vld [vmem:[%s9374_s0 + $0x5e8] sm:$0xff] }
  0x7b   :  { %1918 = vmatmul.mubr.bf16.gmra.mxu1 %v6793_v31  ;;  %1734 = vmatprep.mubr.bf16.mxu0 %v6795_v32 }
  0x7c   :  { %1927 = vmatprep.mubr.bf16.mxu1 %v6797_v37  ;;  %2037 = vmatpush2.bf16.msra.mxu0 %v5870_v38  ;;  %v181_v38 = vld [vmem:[%s9374_s0 + $0x470] sm:$0xff]  ;;  %9470 = vst [vmem:[#allocation6_spill] sm:$0xff] %v6911_v48  ;;  %9476 = vst [vmem:[#allocation12_spill] sm:$0xff] %v6951_v28 }
  0x7d   :  { %2038 = vmatprep.subr.bf16.mxu0 %v5875_v47  ;;  %v203_v47 = vld [vmem:[%s9374_s0 + $0x520] sm:$0xff]  ;;  %v6913_v55 = vpack.c.bf16 %v188_v39, %v181_v38  ;;  %9477 = vst [vmem:[#allocation13_spill] sm:$0xff] %v6953_v29  ;;  %v214_v39 = vld [vmem:[%s9374_s0 + $0x578] sm:$0xff] }
  0x7e   :  { %v6917_v57 = vpack.c.bf16 %v203_v47, %v196_v42  ;;  %v207_v38 = vld [vmem:[%s9374_s0 + $0x540] sm:$0xff]  ;;  %v222_v42 = vld [vmem:[%s9374_s0 + $0x5b8] sm:$0xff]  ;;  %v229_v47 = vld [vmem:[%s9374_s0 + $0x5f0] sm:$0xff] }
  0x7f   :  { %9471 = vst [vmem:[#allocation7_spill] sm:$0xff] %v6913_v55  ;;  %v6983_v0 = vpack.c.bf16 %v214_v39, %v207_v38  ;;  %v6987_v10 = vpack.c.bf16 %v229_v47, %v222_v42  ;;  %v223_v38 = vld [vmem:[%s9374_s0 + $0x5c0] sm:$0xff]  ;;  %v230_v39 = vld [vmem:[%s9374_s0 + $0x5f8] sm:$0xff]  ;;  %v245_v47 = vld [vmem:[%s9374_s0 + $0x670] sm:$0xff] }
  0x80   :  { %2039 = vmatpush2.bf16.msra.mxu0 %v5873_v58  ;;  %9473 = vst [vmem:[#allocation9_spill] sm:$0xff] %v6917_v57  ;;  %v193_v58 = vld [vmem:[%s9374_s0 + $0x4d0] sm:$0xff]  ;;  %v238_v42 = vld [vmem:[%s9374_s0 + $0x638] sm:$0xff] }
  0x81   :  { %2394 = vmatprep.subr.bf16.mxu0 %v5878_v59  ;;  %v200_v59 = vld [vmem:[%s9374_s0 + $0x508] sm:$0xff]  ;;  %9478 = vst [vmem:[#allocation14_spill] sm:$0xff] %v6983_v0  ;;  %9480 = vst [vmem:[#allocation16_spill] sm:$0xff] %v6987_v10 }
  0x82   :  { %1735 = vmatmul.mubr.bf16.gmra.mxu0 %v6839_v60  ;;  %v6947_v14 = vpack.c.bf16 %v200_v59, %v193_v58  ;;  %v224_v58 = vld [vmem:[%s9374_s0 + $0x5c8] sm:$0xff]  ;;  %v231_v59 = vld [vmem:[%s9374_s0 + $0x600] sm:$0xff] }
  0x83   :  { %1928 = vmatmul.mubr.bf16.gmra.mxu1 %v6841_v61  ;;  %1744 = vmatprep.mubr.bf16.mxu0 %v6843_v62  ;;  %v6989_v11 = vpack.c.bf16 %v231_v59, %v224_v58  ;;  %v7019_v58 = vpack.c.bf16 %v228_v13, %v221_v12  ;;  %v7021_v59 = vpack.c.bf16 %v230_v39, %v223_v38  ;;  %v244_v12 = vld [vmem:[%s9374_s0 + $0x668] sm:$0xff]  ;;  %v250_v13 = vld [vmem:[%s9374_s0 + $0x698] sm:$0xff]  ;;  %v257_v38 = vld [vmem:[%s9374_s0 + $0x6d0] sm:$0xff] }
  0x84   :  { %1937 = vmatprep.mubr.bf16.mxu1 %v6845_v63  ;;  %9474 = vst [vmem:[#allocation10_spill] sm:$0xff] %v6947_v14  ;;  %v252_v39 = vld [vmem:[%s9374_s0 + $0x6a8] sm:$0xff] }
  0x85   :  { %9481 = vst [vmem:[#allocation17_spill] sm:$0xff] %v6989_v11  ;;  %9482 = vst [vmem:[#allocation18_spill] sm:$0xff] %v7019_v58 }
  0x86   :  { %9483 = vst [vmem:[#allocation19_spill] sm:$0xff] %v7021_v59 }
  0x8a   :  { %1745 = vmatmul.mubr.bf16.gmra.mxu0 %v6875_v18 }
  0x8b   :  { %1938 = vmatmul.mubr.bf16.gmra.mxu1 %v6877_v19  ;;  %1754 = vmatprep.mubr.bf16.mxu0 %v6879_v22 }
  0x8c   :  { %1947 = vmatprep.mubr.bf16.mxu1 %v6881_v27 }
  0x92   :  { %1755 = vmatmul.mubr.bf16.gmra.mxu0 %v6911_v48 }
  0x93   :  { %1948 = vmatmul.mubr.bf16.gmra.mxu1 %v6913_v55  ;;  %1764 = vmatprep.mubr.bf16.mxu0 %v6915_v56 }
  0x94   :  { %1957 = vmatprep.mubr.bf16.mxu1 %v6917_v57 }
  0x9a   :  { %1765 = vmatmul.mubr.bf16.gmra.mxu0 %v6947_v14  ;;  %v5891_v14 = vld [vmem:[%s9373_s1 + $0x2a8] ss:$16 sps:$4 sm:$0xff]  }
  0x9b   :  { %1958 = vmatmul.mubr.bf16.gmra.mxu1 %v6949_v15  ;;  %1774 = vmatprep.mubr.bf16.mxu0 %v6951_v28  ;;  %v256_v28 = vld [vmem:[%s9374_s0 + $0x6c8] sm:$0xff] }
  0x9c   :  { %1967 = vmatprep.mubr.bf16.mxu1 %v6953_v29  ;;  %v237_v29 = vld [vmem:[%s9374_s0 + $0x630] sm:$0xff]  ;;  %v5888_v15 = vld [vmem:[%s9373_s1 + $0xa8] ss:$16 sps:$4 sm:$0xff]  }
  0xa2   :  { %1775 = vmatmul.mubr.bf16.gmra.mxu0 %v6983_v0  ;;  %v242_v0 = vld [vmem:[%s9374_s0 + $0x658] sm:$0xff] }
  0xa3   :  { %1968 = vmatmul.mubr.bf16.gmra.mxu1 %v6985_v9  ;;  %1784 = vmatprep.mubr.bf16.mxu0 %v6987_v10  ;;  %v7025_v10 = vpack.c.bf16 %v245_v47, %v238_v42  ;;  %v235_v9 = vld [vmem:[%s9374_s0 + $0x620] sm:$0xff]  ;;  %v7057_v42 = vpack.c.bf16 %v244_v12, %v237_v29  ;;  %v7059_v47 = vpack.c.bf16 %v257_v38, %v250_v13  ;;  %v258_v29 = vld [vmem:[%s9374_s0 + $0x6d8] sm:$0xff] }
  0xa4   :  { %1977 = vmatprep.mubr.bf16.mxu1 %v6989_v11  ;;  %v7023_v11 = vpack.c.bf16 %v243_v41, %v236_v40  ;;  %v259_v40 = vld [vmem:[%s9374_s0 + $0x6e0] sm:$0xff]  ;;  %v7055_v41 = vpack.c.bf16 %v242_v0, %v235_v9  ;;  %v44_v0 = vld [vmem:[%s9374_s0 + $0x28] sm:$0xff] }
  0xa5   :  { %9485 = vst [vmem:[#allocation21_spill] sm:$0xff] %v7025_v10  ;;  %9487 = vst [vmem:[#allocation23_spill] sm:$0xff] %v7057_v42  ;;  %v51_v9 = vld [vmem:[%s9374_s0 + $0x60] sm:$0xff] }
  0xa6   :  { %9484 = vst [vmem:[#allocation20_spill] sm:$0xff] %v7023_v11  ;;  %9486 = vst [vmem:[#allocation22_spill] sm:$0xff] %v7055_v41  ;;  %v7089_v38 = vpack.c.bf16 %v51_v9, %v44_v0  ;;  %v58_v0 = vld [vmem:[%s9374_s0 + $0x98] sm:$0xff]  ;;  %v65_v9 = vld [vmem:[%s9374_s0 + $0xd0] sm:$0xff] }
  0xa7   :  { %9488 = vst [vmem:[#allocation24_spill] sm:$0xff] %v7059_v47 }
  0xa8   :  { %9492 = vst [vmem:[#allocation28_spill] sm:$0xff] %v7089_v38 }
  0xaa   :  { %1785 = vmatmul.mubr.bf16.gmra.mxu0 %v7019_v58  ;;  %v249_v58 = vld [vmem:[%s9374_s0 + $0x690] sm:$0xff] }
  0xab   :  { %1978 = vmatmul.mubr.bf16.gmra.mxu1 %v7021_v59  ;;  %1794 = vmatprep.mubr.bf16.mxu0 %v7023_v11  ;;  %v7061_v59 = vpack.c.bf16 %v259_v40, %v252_v39  ;;  %v7085_v12 = vpack.c.bf16 %v256_v28, %v249_v58  ;;  %v43_v39 = vld [vmem:[%s9374_s0 + $0x20] sm:$0xff]  ;;  %v50_v40 = vld [vmem:[%s9374_s0 + $0x58] sm:$0xff]  ;;  %v52_v28 = vld [vmem:[%s9374_s0 + $0x68] sm:$0xff] }
  0xac   :  { %1987 = vmatprep.mubr.bf16.mxu1 %v7025_v10  ;;  %v251_v10 = vld [vmem:[%s9374_s0 + $0x6a0] sm:$0xff]  ;;  %v5876_v58 = vld [vmem:[%s9373_s1 + $0xe8] ss:$16 sps:$4 sm:$0xff]  }
  0xad   :  { %9489 = vst [vmem:[#allocation25_spill] sm:$0xff] %v7061_v59  ;;  %9490 = vst [vmem:[#allocation26_spill] sm:$0xff] %v7085_v12  ;;  %v7087_v13 = vpack.c.bf16 %v258_v29, %v251_v10  ;;  %v9397_v10 = vmov 0   ;;  %v5879_v29 = vld [vmem:[%s9373_s1 + $0x2e8] ss:$16 sps:$4 sm:$0xff]  }
  0xaf   :  { %9491 = vst [vmem:[#allocation27_spill] sm:$0xff] %v7087_v13 }
  0xb2   :  { %1795 = vmatmul.mubr.bf16.gmra.mxu0 %v7055_v41 }
  0xb3   :  { %1988 = vmatmul.mubr.bf16.gmra.mxu1 %v7057_v42  ;;  %1804 = vmatprep.mubr.bf16.mxu0 %v7059_v47  ;;  %v45_v47 = vld [vmem:[%s9374_s0 + $0x30] sm:$0xff]  ;;  %v5887_v42 = vld [vmem:[%s9373_s1 + $0x2cc] ss:$16 sps:$4 sm:$0xff]  }
  0xb4   :  { %1997 = vmatprep.mubr.bf16.mxu1 %v7061_v59  ;;  %v5884_v59 = vld [vmem:[%s9373_s1 + $0xcc] ss:$16 sps:$4 sm:$0xff]  }
  0xba   :  { %1805 = vmatmul.mubr.bf16.gmra.mxu0 %v7085_v12  ;;  %v57_v12 = vld [vmem:[%s9374_s0 + $0x90] sm:$0xff] }
  0xbb   :  { %1998 = vmatmul.mubr.bf16.gmra.mxu1 %v7087_v13  ;;  %2040 = vmatprep.mubr.bf16.mxu0 %v7089_v38  ;;  %v7119_v38 = vpack.c.bf16 %v50_v40, %v43_v39  ;;  %v7121_v13 = vpack.c.bf16 %v52_v28, %v45_v47  ;;  %v64_v47 = vld [vmem:[%s9374_s0 + $0xc8] sm:$0xff]  ;;  %v59_v39 = vld [vmem:[%s9374_s0 + $0xa0] sm:$0xff]  ;;  %v66_v40 = vld [vmem:[%s9374_s0 + $0xd8] sm:$0xff] }
  0xbc   :  { %2233 = vmatprep.mubr.bf16.mxu1 %v9397_v10  ;;  %v7123_v10 = vpack.c.bf16 %v65_v9, %v58_v0  ;;  %v5882_v28 = vld [vmem:[%s9373_s1 + $0xc8] ss:$16 sps:$4 sm:$0xff]   ;;  %v7166_v41 = vpack.c.bf16 %v64_v47, %v57_v12  ;;  %v7168_v11 = vpack.c.bf16 %v66_v40, %v59_v39  ;;  %v71_v12 = vld [vmem:[%s9374_s0 + $0x100] sm:$0xff]  ;;  %v73_v47 = vld [vmem:[%s9374_s0 + $0x110] sm:$0xff] }
  0xbd   :  { %9493 = vst [vmem:[#allocation29_spill] sm:$0xff] %v7119_v38  ;;  %9494 = vst [vmem:[#allocation30_spill] sm:$0xff] %v7121_v13  ;;  %v5885_v0 = vld [vmem:[%s9373_s1 + $0x2c8] ss:$16 sps:$4 sm:$0xff]  }
  0xbe   :  { %9495 = vst [vmem:[#allocation31_spill] sm:$0xff] %v7123_v10  ;;  %v72_v9 = vld [vmem:[%s9374_s0 + $0x108] sm:$0xff]  ;;  %9497 = vst [vmem:[#allocation32_spill] sm:$0xff] %v7166_v41  ;;  %v86_v40 = vld [vmem:[%s9374_s0 + $0x178] sm:$0xff] }
  0xbf   :  { %9498 = vst [vmem:[#allocation33_spill] sm:$0xff] %v7168_v11  ;;  %v80_v39 = vld [vmem:[%s9374_s0 + $0x148] sm:$0xff] }
  0xc2   :  { %2041 = vmatmul.mubr.bf16.vlgmr.msra.gmra.mxu0 %v7119_v38  ;;  %v5893_v38 = vld [vmem:[%s9373_s1 + $0x2ac] ss:$16 sps:$4 sm:$0xff]  }
  0xc3   :  { %5341 = vmatmul.mubr.msk.bf16.vlgmr.msra.gmra.mxu1 %vm1573_vm0, %v7121_v13  ;;  %2395 = vmatpush1.bf16.msra.mxu0 %v5876_v58  ;;  %v9496_v13 = vmov 0   ;;  %v79_v58 = vld [vmem:[%s9374_s0 + $0x140] sm:$0xff] }
  0xc4   :  { %2588 = vmatpush1.bf16.msra.mxu1 %v5879_v29  ;;  %2050 = vmatprep.mubr.bf16.mxu0 %v7123_v10  ;;  %v5890_v29 = vld [vmem:[%s9373_s1 + $0xac] ss:$16 sps:$4 sm:$0xff]   ;;  %v7170_v10 = vpack.c.bf16 %v79_v58, %v72_v9  ;;  %v5897_v9 = vld [vmem:[%s9373_s1 + $0x288] ss:$16 sps:$4 sm:$0xff]  }
  0xc5   :  { %2243 = vmatprep.mubr.bf16.mxu1 %v9496_v13  ;;  %2396 = vmatprep.subr.bf16.mxu0 %v5884_v59  ;;  %v5896_v59 = vld [vmem:[%s9373_s1 + $0x8c] ss:$16 sps:$4 sm:$0xff]  }
  0xc6   :  { %2589 = vmatprep.subr.bf16.mxu1 %v5887_v42  ;;  %9499 = vst [vmem:[#allocation34_spill] sm:$0xff] %v7170_v10  ;;  %v5899_v42 = vld [vmem:[%s9373_s1 + $0x28c] ss:$16 sps:$4 sm:$0xff]  }
  0xc7   :  { %2397 = vmatpush1.bf16.msra.mxu0 %v5882_v28  ;;  %v93_v28 = vld [vmem:[%s9374_s0 + $0x1b0] sm:$0xff]  ;;  %v5902_v58 = vld [vmem:[%s9373_s1 + $0x6c] ss:$16 sps:$4 sm:$0xff]  }
  0xc8   :  { %2590 = vmatpush1.bf16.msra.mxu1 %v5885_v0  ;;  %2398 = vmatprep.subr.bf16.mxu0 %v5890_v29  ;;  %v5894_v0 = vld [vmem:[%s9373_s1 + $0x88] ss:$16 sps:$4 sm:$0xff]   ;;  %v7221_v29 = vpack.c.bf16 %v80_v39, %v73_v47  ;;  %v85_v47 = vld [vmem:[%s9374_s0 + $0x170] sm:$0xff] }
  0xc9   :  { %2591 = vmatprep.subr.bf16.mxu1 %v5893_v38  ;;  %v78_v38 = vld [vmem:[%s9374_s0 + $0x138] sm:$0xff]  ;;  %v92_v39 = vld [vmem:[%s9374_s0 + $0x1a8] sm:$0xff] }
  0xca   :  { %2051 = vmatmul.mubr.bf16.gmra.mxu0 %v7166_v41  ;;  %9501 = vst [vmem:[#allocation36_spill] sm:$0xff] %v7221_v29 }
  0xcb   :  { %5342 = vmatmul.mubr.msk.bf16.gmra.mxu1 %vm1573_vm0, %v7168_v11  ;;  %2060 = vmatprep.mubr.bf16.mxu0 %v7170_v10  ;;  %v7223_v10 = vpack.c.bf16 %v93_v28, %v86_v40  ;;  %v87_v40 = vld [vmem:[%s9374_s0 + $0x180] sm:$0xff]  ;;  %v94_v28 = vld [vmem:[%s9374_s0 + $0x1b8] sm:$0xff] }
  0xcc   :  { %2253 = vmatprep.mubr.bf16.mxu1 %v9496_v13  ;;  %2399 = vmatpush1.bf16.msra.mxu0 %v5888_v15  ;;  %v7219_v15 = vpack.c.bf16 %v78_v38, %v71_v12  ;;  %v5908_v12 = vld [vmem:[%s9373_s1 + $0x4c] ss:$16 sps:$4 sm:$0xff]  }
  0xcd   :  { %2592 = vmatpush1.bf16.msra.mxu1 %v5891_v14  ;;  %2400 = vmatprep.subr.bf16.mxu0 %v5896_v59  ;;  %v5905_v14 = vld [vmem:[%s9373_s1 + $0x26c] ss:$16 sps:$4 sm:$0xff]   ;;  %9502 = vst [vmem:[#allocation37_spill] sm:$0xff] %v7223_v10  ;;  %v5900_v59 = vld [vmem:[%s9373_s1 + $0x68] ss:$16 sps:$4 sm:$0xff]  }
  0xce   :  { %2593 = vmatprep.subr.bf16.mxu1 %v5899_v42  ;;  %9500 = vst [vmem:[#allocation35_spill] sm:$0xff] %v7219_v15  ;;  %v5903_v42 = vld [vmem:[%s9373_s1 + $0x268] ss:$16 sps:$4 sm:$0xff]   ;;  %v5911_v38 = vld [vmem:[%s9373_s1 + $0x24c] ss:$16 sps:$4 sm:$0xff]  }
  0xd0   :  { %2401 = vmatpush1.bf16.msra.mxu0 %v5894_v0  ;;  %v100_v0 = vld [vmem:[%s9374_s0 + $0x1e8] sm:$0xff] }
  0xd1   :  { %2594 = vmatpush1.bf16.msra.mxu1 %v5897_v9  ;;  %2402 = vmatprep.subr.bf16.mxu0 %v5902_v58  ;;  %v107_v9 = vld [vmem:[%s9374_s0 + $0x220] sm:$0xff]  ;;  %v5906_v58 = vld [vmem:[%s9373_s1 + $0x48] ss:$16 sps:$4 sm:$0xff]  }
  0xd2   :  { %2595 = vmatprep.subr.bf16.mxu1 %v5905_v14  ;;  %2061 = vmatmul.mubr.bf16.gmra.mxu0 %v7219_v15  ;;  %v5909_v14 = vld [vmem:[%s9373_s1 + $0x248] ss:$16 sps:$4 sm:$0xff]   ;;  %v7276_v15 = vpack.c.bf16 %v107_v9, %v100_v0  ;;  %v121_v9 = vld [vmem:[%s9374_s0 + $0x290] sm:$0xff] }
  0xd3   :  { %5343 = vmatmul.mubr.msk.bf16.gmra.mxu1 %vm1573_vm0, %v7221_v29  ;;  %2070 = vmatprep.mubr.bf16.mxu0 %v7223_v10  ;;  %v5914_v10 = vld [vmem:[%s9373_s1 + $0x2c] ss:$16 sps:$4 sm:$0xff]  }
  0xd4   :  { %2263 = vmatprep.mubr.bf16.mxu1 %v9496_v13  ;;  %2403 = vmatpush1.bf16.msra.mxu0 %v5900_v59  ;;  %v5917_v29 = vld [vmem:[%s9373_s1 + $0x22c] ss:$16 sps:$4 sm:$0xff]   ;;  %v7272_v59 = vpack.c.bf16 %v92_v39, %v85_v47  ;;  %9505 = vst [vmem:[#allocation40_spill] sm:$0xff] %v7276_v15 }
  0xd5   :  { %2596 = vmatpush1.bf16.msra.mxu1 %v5903_v42  ;;  %2404 = vmatprep.subr.bf16.mxu0 %v5908_v12  ;;  %v7274_v42 = vpack.c.bf16 %v94_v28, %v87_v40  ;;  %v5912_v12 = vld [vmem:[%s9373_s1 + $0x28] ss:$16 sps:$4 sm:$0xff]   ;;  %v5920_v47 = vld [vmem:[%s9373_s1 + $0xc] ss:$16 sps:$4 sm:$0xff]   ;;  %v99_v40 = vld [vmem:[%s9374_s0 + $0x1e0] sm:$0xff] }
  0xd6   :  { %2597 = vmatprep.subr.bf16.mxu1 %v5911_v38  ;;  %9503 = vst [vmem:[#allocation38_spill] sm:$0xff] %v7272_v59  ;;  %v5915_v38 = vld [vmem:[%s9373_s1 + $0x228] ss:$16 sps:$4 sm:$0xff]   ;;  %v5923_v39 = vld [vmem:[%s9373_s1 + $0x20c] ss:$16 sps:$4 sm:$0xff]  }
  0xd7   :  { %9504 = vst [vmem:[#allocation39_spill] sm:$0xff] %v7274_v42  ;;  %v108_v28 = vld [vmem:[%s9374_s0 + $0x228] sm:$0xff]  ;;  %v114_v0 = vld [vmem:[%s9374_s0 + $0x258] sm:$0xff] }
  0xd8   :  { %2405 = vmatpush1.bf16.msra.mxu0 %v5906_v58  ;;  %v5918_v58 = vld [vmem:[%s9373_s1 + $0x8] ss:$16 sps:$4 sm:$0xff]  }
  0xd9   :  { %2598 = vmatpush1.bf16.msra.mxu1 %v5909_v14  ;;  %2406 = vmatprep.subr.bf16.mxu0 %v5914_v10  ;;  %v106_v10 = vld [vmem:[%s9374_s0 + $0x218] sm:$0xff] }
  0xda   :  { %2599 = vmatprep.subr.bf16.mxu1 %v5917_v29  ;;  %2071 = vmatmul.mubr.bf16.gmra.mxu0 %v7272_v59  ;;  %v101_v29 = vld [vmem:[%s9374_s0 + $0x1f0] sm:$0xff]  ;;  %v5921_v14 = vld [vmem:[%s9373_s1 + $0x208] ss:$16 sps:$4 sm:$0xff]   ;;  %v7329_v59 = vpack.c.bf16 %v121_v9, %v114_v0  ;;  %v135_v9 = vld [vmem:[%s9374_s0 + $0x300] sm:$0xff] }
  0xdb   :  { %5344 = vmatmul.mubr.msk.bf16.gmra.mxu1 %vm1573_vm0, %v7274_v42  ;;  %2080 = vmatprep.mubr.bf16.mxu0 %v7276_v15  ;;  %v5926_v15 = vld [vmem:[%s9373_s1 + $0x1ec] ss:$16 sps:$4 sm:$0xff]  }
  0xdc   :  { %2273 = vmatprep.mubr.bf16.mxu1 %v9496_v13  ;;  %2407 = vmatpush1.bf16.msra.mxu0 %v5912_v12  ;;  %v5929_v42 = vld [vmem:[%s9373_s1 + $0x3ec] ss:$16 sps:$4 sm:$0xff]   ;;  %v7325_v12 = vpack.c.bf16 %v106_v10, %v99_v40  ;;  %9508 = vst [vmem:[#allocation43_spill] sm:$0xff] %v7329_v59 }
  0xdd   :  { %2600 = vmatpush1.bf16.msra.mxu1 %v5915_v38  ;;  %2408 = vmatprep.subr.bf16.mxu0 %v5920_v47  ;;  %v7327_v38 = vpack.c.bf16 %v108_v28, %v101_v29  ;;  %v5924_v47 = vld [vmem:[%s9373_s1 + $0x1e8] ss:$16 sps:$4 sm:$0xff]   ;;  %v5932_v40 = vld [vmem:[%s9373_s1 + $0x1cc] ss:$16 sps:$4 sm:$0xff]   ;;  %v113_v29 = vld [vmem:[%s9374_s0 + $0x250] sm:$0xff] }
  0xde   :  { %2601 = vmatprep.subr.bf16.mxu1 %v5923_v39  ;;  %9506 = vst [vmem:[#allocation41_spill] sm:$0xff] %v7325_v12  ;;  %v5927_v39 = vld [vmem:[%s9373_s1 + $0x3e8] ss:$16 sps:$4 sm:$0xff]   ;;  %v5935_v10 = vld [vmem:[%s9373_s1 + $0x3cc] ss:$16 sps:$4 sm:$0xff]  }
  0xdf   :  { %9507 = vst [vmem:[#allocation42_spill] sm:$0xff] %v7327_v38  ;;  %v122_v28 = vld [vmem:[%s9374_s0 + $0x298] sm:$0xff]  ;;  %v128_v0 = vld [vmem:[%s9374_s0 + $0x2c8] sm:$0xff] }
  0xe0   :  { %2409 = vmatpush1.bf16.msra.mxu0 %v5918_v58  ;;  %v5930_v58 = vld [vmem:[%s9373_s1 + $0x1c8] ss:$16 sps:$4 sm:$0xff]  }
  0xe1   :  { %2602 = vmatpush1.bf16.msra.mxu1 %v5921_v14  ;;  %2410 = vmatprep.subr.bf16.mxu0 %v5926_v15  ;;  %v120_v15 = vld [vmem:[%s9374_s0 + $0x288] sm:$0xff] }
  0xe2   :  { %2603 = vmatprep.subr.bf16.mxu1 %v5929_v42  ;;  %2081 = vmatmul.mubr.bf16.gmra.mxu0 %v7325_v12  ;;  %v115_v42 = vld [vmem:[%s9374_s0 + $0x260] sm:$0xff]  ;;  %v5933_v14 = vld [vmem:[%s9373_s1 + $0x3c8] ss:$16 sps:$4 sm:$0xff]   ;;  %v7382_v12 = vpack.c.bf16 %v135_v9, %v128_v0  ;;  %v149_v9 = vld [vmem:[%s9374_s0 + $0x370] sm:$0xff] }
  0xe3   :  { %5345 = vmatmul.mubr.msk.bf16.gmra.mxu1 %vm1573_vm0, %v7327_v38  ;;  %2090 = vmatprep.mubr.bf16.mxu0 %v7329_v59  ;;  %v5938_v59 = vld [vmem:[%s9373_s1 + $0x1ac] ss:$16 sps:$4 sm:$0xff]  }
  0xe4   :  { %2283 = vmatprep.mubr.bf16.mxu1 %v9496_v13  ;;  %2411 = vmatpush2.bf16.msra.mxu0 %v5924_v47  ;;  %v5941_v38 = vld [vmem:[%s9373_s1 + $0x3ac] ss:$16 sps:$4 sm:$0xff]   ;;  %v7378_v47 = vpack.c.bf16 %v120_v15, %v113_v29  ;;  %9511 = vst [vmem:[#allocation46_spill] sm:$0xff] %v7382_v12 }
  0xe5   :  { %2604 = vmatpush2.bf16.msra.mxu1 %v5927_v39  ;;  %2412 = vmatprep.subr.bf16.mxu0 %v5932_v40  ;;  %v7380_v39 = vpack.c.bf16 %v122_v28, %v115_v42  ;;  %v5936_v40 = vld [vmem:[%s9373_s1 + $0x1a8] ss:$16 sps:$4 sm:$0xff]   ;;  %v5944_v29 = vld [vmem:[%s9373_s1 + $0x18c] ss:$16 sps:$4 sm:$0xff]   ;;  %v127_v42 = vld [vmem:[%s9374_s0 + $0x2c0] sm:$0xff] }
  0xe6   :  { %2605 = vmatprep.subr.bf16.mxu1 %v5935_v10  ;;  %9509 = vst [vmem:[#allocation44_spill] sm:$0xff] %v7378_v47  ;;  %v5939_v10 = vld [vmem:[%s9373_s1 + $0x3a8] ss:$16 sps:$4 sm:$0xff]   ;;  %v5947_v15 = vld [vmem:[%s9373_s1 + $0x38c] ss:$16 sps:$4 sm:$0xff]  }
  0xe7   :  { %9510 = vst [vmem:[#allocation45_spill] sm:$0xff] %v7380_v39  ;;  %v136_v28 = vld [vmem:[%s9374_s0 + $0x308] sm:$0xff]  ;;  %v142_v0 = vld [vmem:[%s9374_s0 + $0x338] sm:$0xff] }
  0xe8   :  { %2413 = vmatpush2.bf16.msra.mxu0 %v5930_v58  ;;  %v5942_v58 = vld [vmem:[%s9373_s1 + $0x188] ss:$16 sps:$4 sm:$0xff]  }
  0xe9   :  { %2606 = vmatpush2.bf16.msra.mxu1 %v5933_v14  ;;  %2414 = vmatprep.subr.bf16.mxu0 %v5938_v59  ;;  %v134_v59 = vld [vmem:[%s9374_s0 + $0x2f8] sm:$0xff] }
  0xea   :  { %2607 = vmatprep.subr.bf16.mxu1 %v5941_v38  ;;  %2091 = vmatmul.mubr.bf16.gmra.mxu0 %v7378_v47  ;;  %v129_v38 = vld [vmem:[%s9374_s0 + $0x2d0] sm:$0xff]  ;;  %v5945_v14 = vld [vmem:[%s9373_s1 + $0x388] ss:$16 sps:$4 sm:$0xff]   ;;  %v7435_v47 = vpack.c.bf16 %v149_v9, %v142_v0  ;;  %v573_v9 = vlaneseq }
  0xeb   :  { %5346 = vmatmul.mubr.msk.bf16.gmra.mxu1 %vm1573_vm0, %v7380_v39  ;;  %2100 = vmatprep.mubr.bf16.mxu0 %v7382_v12  ;;  %v5950_v12 = vld [vmem:[%s9373_s1 + $0x16c] ss:$16 sps:$4 sm:$0xff]  }
  0xec   :  { %2293 = vmatprep.mubr.bf16.mxu1 %v9496_v13  ;;  %2415 = vmatpush2.bf16.msra.mxu0 %v5936_v40  ;;  %v5953_v39 = vld [vmem:[%s9373_s1 + $0x36c] ss:$16 sps:$4 sm:$0xff]   ;;  %v7431_v40 = vpack.c.bf16 %v134_v59, %v127_v42  ;;  %9514 = vst [vmem:[#allocation49_spill] sm:$0xff] %v7435_v47  ;;  %v7490_v41 = vshrl.u32 %v573_v9, 7 }
  0xed   :  { %2608 = vmatpush2.bf16.msra.mxu1 %v5939_v10  ;;  %2416 = vmatprep.subr.bf16.mxu0 %v5944_v29  ;;  %v7433_v10 = vpack.c.bf16 %v136_v28, %v129_v38  ;;  %v5948_v29 = vld [vmem:[%s9373_s1 + $0x168] ss:$16 sps:$4 sm:$0xff]   ;;  %v5956_v42 = vld [vmem:[%s9373_s1 + $0x14c] ss:$16 sps:$4 sm:$0xff]   ;;  %v141_v38 = vld [vmem:[%s9374_s0 + $0x330] sm:$0xff] }
  0xee   :  { %2609 = vmatprep.subr.bf16.mxu1 %v5947_v15  ;;  %9512 = vst [vmem:[#allocation47_spill] sm:$0xff] %v7431_v40  ;;  %v5951_v15 = vld [vmem:[%s9373_s1 + $0x368] ss:$16 sps:$4 sm:$0xff]   ;;  %v5959_v59 = vld [vmem:[%s9373_s1 + $0x34c] ss:$16 sps:$4 sm:$0xff]   ;;  %9518 = vst [vmem:[#allocation53_spill] sm:$0xff] %v7490_v41 }
  0xef   :  { %9513 = vst [vmem:[#allocation48_spill] sm:$0xff] %v7433_v10  ;;  %v150_v28 = vld [vmem:[%s9374_s0 + $0x378] sm:$0xff]  ;;  %v156_v0 = vld [vmem:[%s9374_s0 + $0x3a8] sm:$0xff]  ;;  %v9521_v57 = vsub.s32 0, %v7490_v41 }
  0xf0   :  { %2417 = vmatpush2.bf16.msra.mxu0 %v5942_v58  ;;  %v163_v58 = vld [vmem:[%s9374_s0 + $0x3e0] sm:$0xff]  ;;  %v170_v9 = vld [vmem:[%s9374_s0 + $0x418] sm:$0xff] }
  0xf1   :  { %2610 = vmatpush2.bf16.msra.mxu1 %v5945_v14  ;;  %2418 = vmatprep.subr.bf16.mxu0 %v5950_v12  ;;  %v148_v12 = vld [vmem:[%s9374_s0 + $0x368] sm:$0xff]  ;;  %v7488_v11 = vpack.c.bf16 %v163_v58, %v156_v0  ;;  %v177_v58 = vld [vmem:[%s9374_s0 + $0x450] sm:$0xff] }
  0xf2   :  { %2611 = vmatprep.subr.bf16.mxu1 %v5953_v39  ;;  %2101 = vmatmul.mubr.bf16.gmra.mxu0 %v7431_v40  ;;  %v143_v39 = vld [vmem:[%s9374_s0 + $0x340] sm:$0xff]  ;;  %v5954_v14 = vld [vmem:[%s9373_s1 + $0x148] ss:$16 sps:$4 sm:$0xff]   ;;  %v5965_v40 = vld [vmem:[%s9373_s1 + $0x32c] ss:$16 sps:$4 sm:$0xff]   ;;  %v7552_v55 = vpack.c.bf16 %v177_v58, %v170_v9 }
  0xf3   :  { %5347 = vmatmul.mubr.msk.bf16.gmra.mxu1 %vm1573_vm0, %v7433_v10  ;;  %2110 = vmatprep.mubr.bf16.mxu0 %v7435_v47  ;;  %v5957_v47 = vld [vmem:[%s9373_s1 + $0x348] ss:$16 sps:$4 sm:$0xff]   ;;  %v5962_v10 = vld [vmem:[%s9373_s1 + $0x12c] ss:$16 sps:$4 sm:$0xff]   ;;  %9517 = vst [vmem:[#allocation52_spill] sm:$0xff] %v7488_v11  ;;  %v191_v9 = vld [vmem:[%s9374_s0 + $0x4c0] sm:$0xff] }
  0xf4   :  { %2303 = vmatprep.mubr.bf16.mxu1 %v9496_v13  ;;  %2419 = vmatpush2.bf16.msra.mxu0 %v5948_v29  ;;  %v7484_v29 = vpack.c.bf16 %v148_v12, %v141_v38  ;;  %v5968_v38 = vld [vmem:[%s9373_s1 + $0x10c] ss:$16 sps:$4 sm:$0xff]   ;;  %9522 = vst [vmem:[#allocation56_spill] sm:$0xff] %v7552_v55 }
  0xf5   :  { %2612 = vmatpush2.bf16.msra.mxu1 %v5951_v15  ;;  %2420 = vmatprep.subr.bf16.mxu0 %v5956_v42  ;;  %v7486_v15 = vpack.c.bf16 %v150_v28, %v143_v39  ;;  %v5960_v42 = vld [vmem:[%s9373_s1 + $0x128] ss:$16 sps:$4 sm:$0xff]   ;;  %v5971_v12 = vld [vmem:[%s9373_s1 + $0x30c] ss:$16 sps:$4 sm:$0xff]   ;;  %v157_v28 = vld [vmem:[%s9374_s0 + $0x3b0] sm:$0xff] }
  0xf6   :  { %2613 = vmatprep.subr.bf16.mxu1 %v5959_v59  ;;  %9515 = vst [vmem:[#allocation50_spill] sm:$0xff] %v7484_v29  ;;  %v5963_v59 = vld [vmem:[%s9373_s1 + $0x328] ss:$16 sps:$4 sm:$0xff]  }
  0xf7   :  { %9516 = vst [vmem:[#allocation51_spill] sm:$0xff] %v7486_v15  ;;  %v164_v0 = vld [vmem:[%s9374_s0 + $0x3e8] sm:$0xff] }
  0xf8   :  { %2421 = vmatpush2.bf16.msra.mxu0 %v5954_v14  ;;  %v5966_v14 = vld [vmem:[%s9373_s1 + $0x108] ss:$16 sps:$4 sm:$0xff]  }
  0xf9   :  { %2614 = vmatpush2.bf16.msra.mxu1 %v5957_v47  ;;  %2422 = vmatprep.subr.bf16.mxu0 %v5962_v10  ;;  %v571_v47 = vld [vmem:[%s9375_s2] sm:$0xf]  ;;  %v162_v10 = vld [vmem:[%s9374_s0 + $0x3d8] sm:$0xff] }
  0xfa   :  { %2615 = vmatprep.subr.bf16.mxu1 %v5965_v40  ;;  %2111 = vmatmul.mubr.bf16.gmra.mxu0 %v7484_v29  ;;  %v155_v40 = vld [vmem:[%s9374_s0 + $0x3a0] sm:$0xff]  ;;  %v5969_v39 = vld [vmem:[%s9373_s1 + $0x308] ss:$16 sps:$4 sm:$0xff]   ;;  %v7546_v29 = vpack.c.bf16 %v164_v0, %v157_v28  ;;  %v7550_v56 = vrot.slane %v571_v47, %v9521_v57  ;;  %v169_v57 = vld [vmem:[%s9374_s0 + $0x410] sm:$0xff] }
  0xfb   :  { %5348 = vmatmul.mubr.msk.bf16.gmra.mxu1 %vm1573_vm0, %v7486_v15  ;;  %2120 = vmatprep.mubr.bf16.mxu0 %v7488_v11  ;;  %v9434_v11 = vsub.s32 1, %v7490_v41  ;;  %v5974_v15 = vld [vmem:[%s9373_s1 + $0x4ec] ss:$16 sps:$4 sm:$0xff]  }
  0xfc   :  { %2313 = vmatprep.mubr.bf16.mxu1 %v9496_v13  ;;  %2423 = vmatpush2.bf16.msra.mxu0 %v5960_v42  ;;  %v5977_v42 = vld [vmem:[%s9373_s1 + $0x60c] ss:$16 sps:$4 sm:$0xff]   ;;  %9520 = vst [vmem:[#allocation55_spill] sm:$0xff] %v7546_v29 }
  0xfd   :  { %2616 = vmatpush2.bf16.msra.mxu1 %v5963_v59  ;;  %2424 = vmatprep.subr.bf16.mxu0 %v5968_v38  ;;  %v7544_v59 = vpack.c.bf16 %v162_v10, %v155_v40  ;;  %v7556_v38 = vrot.slane %v571_v47, %v9434_v11  ;;  %v171_v47 = vld [vmem:[%s9374_s0 + $0x420] sm:$0xff]  ;;  %v178_v10 = vld [vmem:[%s9374_s0 + $0x458] sm:$0xff]  ;;  %v184_v0 = vld [vmem:[%s9374_s0 + $0x488] sm:$0xff] }
  0xfe   :  { %2617 = vmatprep.subr.bf16.mxu1 %v5971_v12  ;;  %v7592_v41 = vpack.c.bf16 %v191_v9, %v184_v0  ;;  %v198_v0 = vld [vmem:[%s9374_s0 + $0x4f8] sm:$0xff]  ;;  %v205_v9 = vld [vmem:[%s9374_s0 + $0x530] sm:$0xff] }
  0xff   :  { %9519 = vst [vmem:[#allocation54_spill] sm:$0xff] %v7544_v59  ;;  %v7633_v18 = vpack.c.bf16 %v205_v9, %v198_v0  ;;  %v212_v0 = vld [vmem:[%s9374_s0 + $0x568] sm:$0xff]  ;;  %v219_v9 = vld [vmem:[%s9374_s0 + $0x5a0] sm:$0xff] }
 0x100   :  { %2425 = vmatpush2.bf16.msra.mxu0 %v5966_v14  ;;  %9526 = vst [vmem:[#allocation60_spill] sm:$0xff] %v7592_v41 }
 0x101   :  { %2618 = vmatpush2.bf16.msra.mxu1 %v5969_v39  ;;  %2780 = vmatprep.subr.bf16.mxu0 %v5974_v15  ;;  %v176_v15 = vld [vmem:[%s9374_s0 + $0x448] sm:$0xff]  ;;  %9533 = vst [vmem:[#allocation67_spill] sm:$0xff] %v7633_v18 }
 0x102   :  { %2987 = vmatprep.subr.bf16.mxu1 %v5977_v42  ;;  %v1656_v12 = vpop.f32.mrf.mxu0  ;;  %2121 = vmatmul.mubr.bf16.gmra.mxu0 %v7544_v59  ;;  %v7585_v11 = vpack.c.bf16 %v176_v15, %v169_v57  ;;  %v183_v57 = vld [vmem:[%s9374_s0 + $0x480] sm:$0xff] }
 0x103   :  { %v1849_v48 = vpop.f32.mrf.mxu1  ;;  %5349 = vmatmul.mubr.msk.bf16.gmra.mxu1 %vm1573_vm0, %v7546_v29  ;;  %v1657_v40 = vadd.f32 %v1656_v12, %v7550_v56  ;;  %2130 = vmatprep.mubr.bf16.mxu0 %v7552_v55  ;;  %v7587_v55 = vpack.c.bf16 %v178_v10, %v171_v47  ;;  %v192_v10 = vld [vmem:[%s9374_s0 + $0x4c8] sm:$0xff] }
 0x104   :  { %2323 = vmatprep.mubr.bf16.mxu1 %v9496_v13  ;;  %v1658_v39 = vpop.f32.mrf.mxu0  ;;  %9523 = vst [vmem:[#allocation57_spill] sm:$0xff] %v7585_v11 }
 0x105   :  { %v1851_v28 = vpop.f32.mrf.mxu1  ;;  %v7582_v58 = vadd.f32 %v1849_v48, %v1657_v40  ;;  %v1659_v14 = vadd.f32 %v1658_v39, %v7556_v38  ;;  %9524 = vst [vmem:[#allocation58_spill] sm:$0xff] %v7587_v55 }
 0x106   :  { %v1660_v42 = vpop.f32.mrf.mxu0 }
 0x107   :  { %v1853_v12 = vpop.f32.mrf.mxu1  ;;  %v7589_v29 = vadd.f32 %v1851_v28, %v1659_v14  ;;  %v1661_v59 = vadd.f32 %v1660_v42, %v7550_v56 }
 0x108   :  { %v1662_v27 = vpop.f32.mrf.mxu0 }
 0x109   :  { %9525 = vst [vmem:[#allocation59_spill] sm:$0xff] %v7589_v29  ;;  %v1855_v22 = vpop.f32.mrf.mxu1  ;;  %v7594_v19 = vadd.f32 %v1853_v12, %v1661_v59  ;;  %v1663_v48 = vadd.f32 %v1662_v27, %v7556_v38  ;;  %v190_v27 = vld [vmem:[%s9374_s0 + $0x4b8] sm:$0xff]  ;;  %v185_v59 = vld [vmem:[%s9374_s0 + $0x490] sm:$0xff] }
 0x10a   :  { %v1666_v40 = vpop.f32.mrf.mxu0  ;;  %2131 = vmatmul.mubr.bf16.gmra.mxu0 %v7585_v11 }
 0x10b   :  { %9527 = vst [vmem:[#allocation61_spill] sm:$0xff] %v7594_v19  ;;  %v1859_v39 = vpop.f32.mrf.mxu1  ;;  %5350 = vmatmul.mubr.msk.bf16.gmra.mxu1 %vm1573_vm0, %v7587_v55  ;;  %v7603_v15 = vadd.f32 %v1855_v22, %v1663_v48  ;;  %v1667_v47 = vadd.f32 %v1666_v40, %v7550_v56  ;;  %2140 = vmatprep.mubr.bf16.mxu0 %v7592_v41 }
 0x10c   :  { %2333 = vmatprep.mubr.bf16.mxu1 %v9496_v13  ;;  %v1668_v22 = vpop.f32.mrf.mxu0  ;;  %v7626_v40 = vpack.c.bf16 %v190_v27, %v183_v57  ;;  %v7628_v41 = vpack.c.bf16 %v192_v10, %v185_v59  ;;  %v197_v57 = vld [vmem:[%s9374_s0 + $0x4f0] sm:$0xff]  ;;  %v206_v10 = vld [vmem:[%s9374_s0 + $0x538] sm:$0xff] }
 0x10d   :  { %9528 = vst [vmem:[#allocation62_spill] sm:$0xff] %v7603_v15  ;;  %v1861_v28 = vpop.f32.mrf.mxu1  ;;  %v7623_v14 = vadd.f32 %v1859_v39, %v1667_v47  ;;  %v1669_v42 = vadd.f32 %v1668_v22, %v7556_v38 }
 0x10e   :  { %v1670_v12 = vpop.f32.mrf.mxu0  ;;  %9530 = vst [vmem:[#allocation64_spill] sm:$0xff] %v7626_v40  ;;  %9531 = vst [vmem:[#allocation65_spill] sm:$0xff] %v7628_v41 }
 0x10f   :  { %9529 = vst [vmem:[#allocation63_spill] sm:$0xff] %v7623_v14  ;;  %v1863_v48 = vpop.f32.mrf.mxu1  ;;  %v7630_v55 = vadd.f32 %v1861_v28, %v1669_v42  ;;  %v1671_v11 = vadd.f32 %v1670_v12, %v7550_v56 }
 0x110   :  { %v1672_v15 = vpop.f32.mrf.mxu0 }
 0x111   :  { %9532 = vst [vmem:[#allocation66_spill] sm:$0xff] %v7630_v55  ;;  %v1865_v19 = vpop.f32.mrf.mxu1  ;;  %v7635_v29 = vadd.f32 %v1863_v48, %v1671_v11  ;;  %v1673_v39 = vadd.f32 %v1672_v15, %v7556_v38  ;;  %v204_v11 = vld [vmem:[%s9374_s0 + $0x528] sm:$0xff]  ;;  %v199_v15 = vld [vmem:[%s9374_s0 + $0x500] sm:$0xff] }
 0x112   :  { %v1676_v47 = vpop.f32.mrf.mxu0  ;;  %2141 = vmatmul.mubr.bf16.gmra.mxu0 %v7626_v40 }
 0x113   :  { %9534 = vst [vmem:[#allocation68_spill] sm:$0xff] %v7635_v29  ;;  %v1869_v22 = vpop.f32.mrf.mxu1  ;;  %5351 = vmatmul.mubr.msk.bf16.gmra.mxu1 %vm1573_vm0, %v7628_v41  ;;  %v7644_v27 = vadd.f32 %v1865_v19, %v1673_v39  ;;  %v1677_v59 = vadd.f32 %v1676_v47, %v7550_v56  ;;  %2150 = vmatprep.mubr.bf16.mxu0 %v7633_v18 }
 0x114   :  { %2343 = vmatprep.mubr.bf16.mxu1 %v9496_v13  ;;  %v1678_v19 = vpop.f32.mrf.mxu0  ;;  %v7667_v47 = vpack.c.bf16 %v204_v11, %v197_v57  ;;  %v7669_v18 = vpack.c.bf16 %v206_v10, %v199_v15  ;;  %v211_v57 = vld [vmem:[%s9374_s0 + $0x560] sm:$0xff]  ;;  %v220_v10 = vld [vmem:[%s9374_s0 + $0x5a8] sm:$0xff] }
 0x115   :  { %9535 = vst [vmem:[#allocation69_spill] sm:$0xff] %v7644_v27  ;;  %v1871_v28 = vpop.f32.mrf.mxu1  ;;  %v7664_v42 = vadd.f32 %v1869_v22, %v1677_v59  ;;  %v1679_v12 = vadd.f32 %v1678_v19, %v7556_v38  ;;  %v7674_v27 = vpack.c.bf16 %v219_v9, %v212_v0  ;;  %v226_v0 = vld [vmem:[%s9374_s0 + $0x5d8] sm:$0xff]  ;;  %v233_v9 = vld [vmem:[%s9374_s0 + $0x610] sm:$0xff] }
 0x116   :  { %v1680_v48 = vpop.f32.mrf.mxu0  ;;  %9537 = vst [vmem:[#allocation71_spill] sm:$0xff] %v7667_v47  ;;  %9538 = vst [vmem:[#allocation72_spill] sm:$0xff] %v7669_v18 }
 0x117   :  { %9536 = vst [vmem:[#allocation70_spill] sm:$0xff] %v7664_v42  ;;  %v1873_v39 = vpop.f32.mrf.mxu1  ;;  %v7671_v41 = vadd.f32 %v1871_v28, %v1679_v12  ;;  %v1681_v40 = vadd.f32 %v1680_v48, %v7550_v56  ;;  %9540 = vst [vmem:[#allocation74_spill] sm:$0xff] %v7674_v27 }
 0x118   :  { %v1682_v29 = vpop.f32.mrf.mxu0 }
 0x119   :  { %9539 = vst [vmem:[#allocation73_spill] sm:$0xff] %v7671_v41  ;;  %v1875_v55 = vpop.f32.mrf.mxu1  ;;  %v7676_v14 = vadd.f32 %v1873_v39, %v1681_v40  ;;  %v1683_v22 = vadd.f32 %v1682_v29, %v7556_v38  ;;  %v218_v29 = vld [vmem:[%s9374_s0 + $0x598] sm:$0xff]  ;;  %v213_v40 = vld [vmem:[%s9374_s0 + $0x570] sm:$0xff] }
 0x11a   :  { %v1686_v59 = vpop.f32.mrf.mxu0  ;;  %2151 = vmatmul.mubr.bf16.gmra.mxu0 %v7667_v47 }
 0x11b   :  { %9541 = vst [vmem:[#allocation75_spill] sm:$0xff] %v7676_v14  ;;  %v1879_v19 = vpop.f32.mrf.mxu1  ;;  %5352 = vmatmul.mubr.msk.bf16.gmra.mxu1 %vm1573_vm0, %v7669_v18  ;;  %v7685_v11 = vadd.f32 %v1875_v55, %v1683_v22  ;;  %v1687_v15 = vadd.f32 %v1686_v59, %v7550_v56  ;;  %2160 = vmatprep.mubr.bf16.mxu0 %v7674_v27 }
 0x11c   :  { %2353 = vmatprep.mubr.bf16.mxu1 %v9496_v13  ;;  %v1688_v55 = vpop.f32.mrf.mxu0  ;;  %v7708_v59 = vpack.c.bf16 %v218_v29, %v211_v57  ;;  %v7710_v27 = vpack.c.bf16 %v220_v10, %v213_v40  ;;  %v225_v57 = vld [vmem:[%s9374_s0 + $0x5d0] sm:$0xff]  ;;  %v234_v10 = vld [vmem:[%s9374_s0 + $0x618] sm:$0xff] }
 0x11d   :  { %9542 = vst [vmem:[#allocation76_spill] sm:$0xff] %v7685_v11  ;;  %v1881_v28 = vpop.f32.mrf.mxu1  ;;  %v7705_v12 = vadd.f32 %v1879_v19, %v1687_v15  ;;  %v1689_v48 = vadd.f32 %v1688_v55, %v7556_v38  ;;  %v7715_v11 = vpack.c.bf16 %v233_v9, %v226_v0  ;;  %v240_v0 = vld [vmem:[%s9374_s0 + $0x648] sm:$0xff]  ;;  %v247_v9 = vld [vmem:[%s9374_s0 + $0x680] sm:$0xff] }
 0x11e   :  { %v1690_v39 = vpop.f32.mrf.mxu0  ;;  %9544 = vst [vmem:[#allocation78_spill] sm:$0xff] %v7708_v59  ;;  %9545 = vst [vmem:[#allocation79_spill] sm:$0xff] %v7710_v27 }
 0x11f   :  { %9543 = vst [vmem:[#allocation77_spill] sm:$0xff] %v7705_v12  ;;  %v1883_v22 = vpop.f32.mrf.mxu1  ;;  %v7712_v18 = vadd.f32 %v1881_v28, %v1689_v48  ;;  %v1691_v47 = vadd.f32 %v1690_v39, %v7550_v56  ;;  %9547 = vst [vmem:[#allocation81_spill] sm:$0xff] %v7715_v11 }
 0x120   :  { %v1692_v14 = vpop.f32.mrf.mxu0 }
 0x121   :  { %9546 = vst [vmem:[#allocation80_spill] sm:$0xff] %v7712_v18  ;;  %v1885_v41 = vpop.f32.mrf.mxu1  ;;  %v7717_v42 = vadd.f32 %v1883_v22, %v1691_v47  ;;  %v1693_v19 = vadd.f32 %v1692_v14, %v7556_v38  ;;  %v232_v14 = vld [vmem:[%s9374_s0 + $0x608] sm:$0xff]  ;;  %v227_v47 = vld [vmem:[%s9374_s0 + $0x5e0] sm:$0xff] }
 0x122   :  { %v1696_v15 = vpop.f32.mrf.mxu0  ;;  %2161 = vmatmul.mubr.bf16.gmra.mxu0 %v7708_v59 }
 0x123   :  { %9548 = vst [vmem:[#allocation82_spill] sm:$0xff] %v7717_v42  ;;  %v1889_v55 = vpop.f32.mrf.mxu1  ;;  %5353 = vmatmul.mubr.msk.bf16.gmra.mxu1 %vm1573_vm0, %v7710_v27  ;;  %v7726_v29 = vadd.f32 %v1885_v41, %v1693_v19  ;;  %v1697_v40 = vadd.f32 %v1696_v15, %v7550_v56  ;;  %2170 = vmatprep.mubr.bf16.mxu0 %v7715_v11 }
 0x124   :  { %2363 = vmatprep.mubr.bf16.mxu1 %v9496_v13  ;;  %v1698_v41 = vpop.f32.mrf.mxu0  ;;  %v7749_v15 = vpack.c.bf16 %v232_v14, %v225_v57  ;;  %v7751_v11 = vpack.c.bf16 %v234_v10, %v227_v47  ;;  %v239_v57 = vld [vmem:[%s9374_s0 + $0x640] sm:$0xff]  ;;  %v248_v10 = vld [vmem:[%s9374_s0 + $0x688] sm:$0xff] }
 0x125   :  { %9549 = vst [vmem:[#allocation83_spill] sm:$0xff] %v7726_v29  ;;  %v1891_v28 = vpop.f32.mrf.mxu1  ;;  %v7746_v48 = vadd.f32 %v1889_v55, %v1697_v40  ;;  %v1699_v39 = vadd.f32 %v1698_v41, %v7556_v38  ;;  %v7756_v29 = vpack.c.bf16 %v247_v9, %v240_v0  ;;  %v254_v0 = vld [vmem:[%s9374_s0 + $0x6b8] sm:$0xff]  ;;  %v261_v9 = vld [vmem:[%s9374_s0 + $0x6f0] sm:$0xff] }
 0x126   :  { %v1700_v22 = vpop.f32.mrf.mxu0  ;;  %9551 = vst [vmem:[#allocation85_spill] sm:$0xff] %v7749_v15  ;;  %9552 = vst [vmem:[#allocation86_spill] sm:$0xff] %v7751_v11 }
 0x127   :  { %9550 = vst [vmem:[#allocation84_spill] sm:$0xff] %v7746_v48  ;;  %v1893_v19 = vpop.f32.mrf.mxu1  ;;  %v7753_v27 = vadd.f32 %v1891_v28, %v1699_v39  ;;  %v1701_v59 = vadd.f32 %v1700_v22, %v7550_v56  ;;  %9554 = vst [vmem:[#allocation88_spill] sm:$0xff] %v7756_v29 }
 0x128   :  { %v1702_v42 = vpop.f32.mrf.mxu0 }
 0x129   :  { %9553 = vst [vmem:[#allocation87_spill] sm:$0xff] %v7753_v27  ;;  %v1895_v18 = vpop.f32.mrf.mxu1  ;;  %v7758_v12 = vadd.f32 %v1893_v19, %v1701_v59  ;;  %v1703_v55 = vadd.f32 %v1702_v42, %v7556_v38  ;;  %v246_v42 = vld [vmem:[%s9374_s0 + $0x678] sm:$0xff]  ;;  %v241_v59 = vld [vmem:[%s9374_s0 + $0x650] sm:$0xff] }
 0x12a   :  { %v1706_v40 = vpop.f32.mrf.mxu0  ;;  %2171 = vmatmul.mubr.bf16.gmra.mxu0 %v7749_v15 }
 0x12b   :  { %9555 = vst [vmem:[#allocation89_spill] sm:$0xff] %v7758_v12  ;;  %v1899_v41 = vpop.f32.mrf.mxu1  ;;  %5354 = vmatmul.mubr.msk.bf16.gmra.mxu1 %vm1573_vm0, %v7751_v11  ;;  %v7767_v14 = vadd.f32 %v1895_v18, %v1703_v55  ;;  %v1707_v47 = vadd.f32 %v1706_v40, %v7550_v56  ;;  %2180 = vmatprep.mubr.bf16.mxu0 %v7756_v29 }
 0x12c   :  { %2373 = vmatprep.mubr.bf16.mxu1 %v9496_v13  ;;  %v1708_v18 = vpop.f32.mrf.mxu0  ;;  %v7790_v40 = vpack.c.bf16 %v246_v42, %v239_v57  ;;  %v7792_v29 = vpack.c.bf16 %v248_v10, %v241_v59  ;;  %v253_v57 = vld [vmem:[%s9374_s0 + $0x6b0] sm:$0xff]  ;;  %v262_v10 = vld [vmem:[%s9374_s0 + $0x6f8] sm:$0xff] }
 0x12d   :  { %9556 = vst [vmem:[#allocation90_spill] sm:$0xff] %v7767_v14  ;;  %v1901_v28 = vpop.f32.mrf.mxu1  ;;  %v7787_v39 = vadd.f32 %v1899_v41, %v1707_v47  ;;  %v1709_v22 = vadd.f32 %v1708_v18, %v7556_v38  ;;  %v7797_v14 = vpack.c.bf16 %v261_v9, %v254_v0 }
 0x12e   :  { %v1710_v19 = vpop.f32.mrf.mxu0  ;;  %9557 = vst [vmem:[#allocation91_spill] sm:$0xff] %v7790_v40  ;;  %9558 = vst [vmem:[#allocation92_spill] sm:$0xff] %v7792_v29 }
 0x12f   :  { %v1903_v55 = vpop.f32.mrf.mxu1  ;;  %v7794_v11 = vadd.f32 %v1901_v28, %v1709_v22  ;;  %v1711_v15 = vadd.f32 %v1710_v19, %v7550_v56  ;;  %9559 = vst [vmem:[#allocation93_spill] sm:$0xff] %v7797_v14 }
 0x130   :  { %v1712_v12 = vpop.f32.mrf.mxu0 }
 0x131   :  { %v1905_v27 = vpop.f32.mrf.mxu1  ;;  %v7799_v48 = vadd.f32 %v1903_v55, %v1711_v15  ;;  %v1713_v41 = vadd.f32 %v1712_v12, %v7556_v38  ;;  %v260_v12 = vld [vmem:[%s9374_s0 + $0x6e8] sm:$0xff]  ;;  %v255_v15 = vld [vmem:[%s9374_s0 + $0x6c0] sm:$0xff] }
 0x132   :  { %v1716_v47 = vpop.f32.mrf.mxu0  ;;  %2181 = vmatmul.mubr.bf16.gmra.mxu0 %v7790_v40  ;;  %v7825_v55 = vpack.c.bf16 %v260_v12, %v253_v57 }
 0x133   :  { %v1909_v18 = vpop.f32.mrf.mxu1  ;;  %5355 = vmatmul.mubr.msk.bf16.gmra.mxu1 %vm1573_vm0, %v7792_v29  ;;  %v7808_v42 = vadd.f32 %v1905_v27, %v1713_v41  ;;  %v1717_v59 = vadd.f32 %v1716_v47, %v7550_v56  ;;  %2190 = vmatprep.mubr.bf16.mxu0 %v7797_v14  ;;  %v7827_v41 = vpack.c.bf16 %v262_v10, %v255_v15 }
 0x134   :  { %2383 = vmatprep.mubr.bf16.mxu1 %v9496_v13  ;;  %v1718_v27 = vpop.f32.mrf.mxu0  ;;  %9561 = vst [vmem:[#allocation95_spill] sm:$0xff] %v7825_v55 }
 0x135   :  { %9560 = vst [vmem:[#allocation94_spill] sm:$0xff] %v7808_v42  ;;  %v1911_v28 = vpop.f32.mrf.mxu1  ;;  %v7822_v0 = vadd.f32 %v1909_v18, %v1717_v59  ;;  %v1719_v9 = vadd.f32 %v1718_v27, %v7556_v38  ;;  %9562 = vst [vmem:[#allocation96_spill] sm:$0xff] %v7827_v41 }
 0x136   :  { %v1720_v22 = vpop.f32.mrf.mxu0 }
 0x137   :  { %v1913_v19 = vpop.f32.mrf.mxu1  ;;  %v7829_v47 = vadd.f32 %v1911_v28, %v1719_v9  ;;  %v1721_v14 = vadd.f32 %v1720_v22, %v7550_v56 }
 0x138   :  { %v1722_v29 = vpop.f32.mrf.mxu0 }
 0x139   :  { %v1915_v40 = vpop.f32.mrf.mxu1  ;;  %v7832_v13 = vadd.f32 %v1913_v19, %v1721_v14  ;;  %v1723_v42 = vadd.f32 %v1722_v29, %v7556_v38 }
 0x13a   :  { %v1726_v18 = vpop.f32.mrf.mxu0  ;;  %2191 = vmatmul.mubr.bf16.gmra.mxu0 %v7825_v55  ;;  %v9570_v55 = vld [vmem:[#allocation62_spill] sm:$0xff] }
 0x13b   :  { %v1919_v59 = vpop.f32.mrf.mxu1  ;;  %5356 = vmatmul.mubr.msk.bf16.gmra.mxu1 %vm1573_vm0, %v7827_v41  ;;  %v7838_v57 = vadd.f32 %v1915_v40, %v1723_v42  ;;  %v1727_v12 = vadd.f32 %v1726_v18, %v7550_v56  ;;  %2426 = vmatprep.mubr.bf16.mxu0 %v6368_v53  ;;  %v5972_v40 = vld [vmem:[%s9373_s1 + $0x4e8] ss:$16 sps:$4 sm:$0xff]  }
 0x13c   :  { %2619 = vmatprep.mubr.bf16.mxu1 %v6370_v54  ;;  %v1728_v15 = vpop.f32.mrf.mxu0  ;;  %v5975_v53 = vld [vmem:[%s9373_s1 + $0x608] ss:$16 sps:$4 sm:$0xff]  }
 0x13d   :  { %v1921_v14 = vpop.f32.mrf.mxu1  ;;  %v7843_v10 = vadd.f32 %v1919_v59, %v1727_v12  ;;  %v1729_v29 = vadd.f32 %v1728_v15, %v7556_v38  ;;  %v5980_v59 = vld [vmem:[%s9373_s1 + $0x4cc] ss:$16 sps:$4 sm:$0xff]  }
 0x13e   :  { %v1730_v27 = vpop.f32.mrf.mxu0 }
 0x13f   :  { %v1923_v28 = vpop.f32.mrf.mxu1  ;;  %v7846_v9 = vadd.f32 %v1921_v14, %v1729_v29  ;;  %v1731_v22 = vadd.f32 %v1730_v27, %v7550_v56  ;;  %v5978_v27 = vld [vmem:[%s9373_s1 + $0x4c8] ss:$16 sps:$4 sm:$0xff]  }
 0x140   :  { %v1732_v54 = vpop.f32.mrf.mxu0 }
 0x141   :  { %v1925_v42 = vpop.f32.mrf.mxu1  ;;  %v7855_v19 = vadd.f32 %v1923_v28, %v1731_v22  ;;  %v1733_v18 = vadd.f32 %v1732_v54, %v7556_v38 }
 0x142   :  { %v1736_v12 = vpop.f32.mrf.mxu0  ;;  %2427 = vmatmul.mubr.bf16.vlgmr.msra.gmra.mxu0 %v6449_v16  ;;  %v5983_v16 = vld [vmem:[%s9373_s1 + $0x4ac] ss:$16 sps:$4 sm:$0xff]  }
 0x143   :  { %v1929_v15 = vpop.f32.mrf.mxu1  ;;  %2620 = vmatmul.mubr.bf16.vlgmr.msra.gmra.mxu1 %v6451_v17  ;;  %v7863_v14 = vadd.f32 %v1925_v42, %v1733_v18  ;;  %v1737_v29 = vadd.f32 %v1736_v12, %v7550_v56  ;;  %2781 = vmatpush1.bf16.msra.mxu0 %v5972_v40 }
 0x144   :  { %2988 = vmatpush1.bf16.msra.mxu1 %v5975_v53  ;;  %v1738_v28 = vpop.f32.mrf.mxu0  ;;  %2436 = vmatprep.mubr.bf16.mxu0 %v6459_v20 }
 0x145   :  { %v1931_v22 = vpop.f32.mrf.mxu1  ;;  %2629 = vmatprep.mubr.bf16.mxu1 %v6461_v21  ;;  %v7874_v17 = vadd.f32 %v1929_v15, %v1737_v29  ;;  %v1739_v54 = vadd.f32 %v1738_v28, %v7556_v38  ;;  %2782 = vmatprep.subr.bf16.mxu0 %v5980_v59  ;;  %v5981_v21 = vld [vmem:[%s9373_s1 + $0x4a8] ss:$16 sps:$4 sm:$0xff]   ;;  %v5986_v59 = vld [vmem:[%s9373_s1 + $0x48c] ss:$16 sps:$4 sm:$0xff]  }
 0x146   :  { %v1740_v40 = vpop.f32.mrf.mxu0 }
 0x147   :  { %v1933_v53 = vpop.f32.mrf.mxu1  ;;  %v7877_v42 = vadd.f32 %v1931_v22, %v1739_v54  ;;  %v1741_v18 = vadd.f32 %v1740_v40, %v7550_v56  ;;  %2783 = vmatpush1.bf16.msra.mxu0 %v5978_v27  ;;  %v5984_v40 = vld [vmem:[%s9373_s1 + $0x488] ss:$16 sps:$4 sm:$0xff]  }
 0x148   :  { %v1742_v12 = vpop.f32.mrf.mxu0  ;;  %2784 = vmatprep.subr.bf16.mxu0 %v5983_v16 }
 0x149   :  { %v1935_v20 = vpop.f32.mrf.mxu1  ;;  %v7883_v41 = vadd.f32 %v1933_v53, %v1741_v18  ;;  %v1743_v15 = vadd.f32 %v1742_v12, %v7556_v38 }
 0x14a   :  { %v1746_v29 = vpop.f32.mrf.mxu0  ;;  %2437 = vmatmul.mubr.bf16.gmra.mxu0 %v6500_v33 }
 0x14b   :  { %v1939_v28 = vpop.f32.mrf.mxu1  ;;  %2630 = vmatmul.mubr.bf16.gmra.mxu1 %v6502_v34  ;;  %v7891_v27 = vadd.f32 %v1935_v20, %v1743_v15  ;;  %v1747_v22 = vadd.f32 %v1746_v29, %v7550_v56  ;;  %2446 = vmatprep.mubr.bf16.mxu0 %v6504_v35  ;;  %v5989_v34 = vld [vmem:[%s9373_s1 + $0x46c] ss:$16 sps:$4 sm:$0xff]   ;;  %v5987_v15 = vld [vmem:[%s9373_s1 + $0x468] ss:$16 sps:$4 sm:$0xff]  }
 0x14c   :  { %2639 = vmatprep.mubr.bf16.mxu1 %v6506_v36  ;;  %v1748_v16 = vpop.f32.mrf.mxu0  ;;  %2785 = vmatpush1.bf16.msra.mxu0 %v5981_v21 }
 0x14d   :  { %v1941_v54 = vpop.f32.mrf.mxu1  ;;  %v7899_v53 = vadd.f32 %v1939_v28, %v1747_v22  ;;  %v1749_v33 = vadd.f32 %v1748_v16, %v7556_v38  ;;  %2786 = vmatprep.subr.bf16.mxu0 %v5986_v59  ;;  %v5992_v28 = vld [vmem:[%s9373_s1 + $0x44c] ss:$16 sps:$4 sm:$0xff]  }
 0x14e   :  { %v1750_v18 = vpop.f32.mrf.mxu0 }
 0x14f   :  { %v1943_v35 = vpop.f32.mrf.mxu1  ;;  %v7905_v12 = vadd.f32 %v1941_v54, %v1749_v33  ;;  %v1751_v36 = vadd.f32 %v1750_v18, %v7550_v56  ;;  %v5990_v18 = vld [vmem:[%s9373_s1 + $0x448] ss:$16 sps:$4 sm:$0xff]  }
 0x150   :  { %v1752_v20 = vpop.f32.mrf.mxu0  ;;  %2787 = vmatpush1.bf16.msra.mxu0 %v5984_v40 }
 0x151   :  { %v1945_v21 = vpop.f32.mrf.mxu1  ;;  %v7911_v29 = vadd.f32 %v1943_v35, %v1751_v36  ;;  %v1753_v59 = vadd.f32 %v1752_v20, %v7556_v38  ;;  %2788 = vmatprep.subr.bf16.mxu0 %v5989_v34 }
 0x152   :  { %v1756_v22 = vpop.f32.mrf.mxu0  ;;  %2447 = vmatmul.mubr.bf16.gmra.mxu0 %v6548_v49 }
 0x153   :  { %v1949_v16 = vpop.f32.mrf.mxu1  ;;  %2640 = vmatmul.mubr.bf16.gmra.mxu1 %v6550_v50  ;;  %v7919_v54 = vadd.f32 %v1945_v21, %v1753_v59  ;;  %v1757_v40 = vadd.f32 %v1756_v22, %v7550_v56  ;;  %2456 = vmatprep.mubr.bf16.mxu0 %v6552_v51  ;;  %v5995_v50 = vld [vmem:[%s9373_s1 + $0x42c] ss:$16 sps:$4 sm:$0xff]   ;;  %v5993_v59 = vld [vmem:[%s9373_s1 + $0x428] ss:$16 sps:$4 sm:$0xff]  }
 0x154   :  { %2649 = vmatprep.mubr.bf16.mxu1 %v6554_v52  ;;  %v1758_v33 = vpop.f32.mrf.mxu0  ;;  %2789 = vmatpush1.bf16.msra.mxu0 %v5987_v15 }
 0x155   :  { %v1951_v34 = vpop.f32.mrf.mxu1  ;;  %v7927_v35 = vadd.f32 %v1949_v16, %v1757_v40  ;;  %v1759_v49 = vadd.f32 %v1758_v33, %v7556_v38  ;;  %2790 = vmatprep.subr.bf16.mxu0 %v5992_v28  ;;  %v5998_v16 = vld [vmem:[%s9373_s1 + $0x40c] ss:$16 sps:$4 sm:$0xff]  }
 0x156   :  { %v1760_v36 = vpop.f32.mrf.mxu0 }
 0x157   :  { %v1953_v51 = vpop.f32.mrf.mxu1  ;;  %v7933_v20 = vadd.f32 %v1951_v34, %v1759_v49  ;;  %v1761_v52 = vadd.f32 %v1760_v36, %v7550_v56  ;;  %v5996_v36 = vld [vmem:[%s9373_s1 + $0x408] ss:$16 sps:$4 sm:$0xff]  }
 0x158   :  { %v1762_v21 = vpop.f32.mrf.mxu0  ;;  %2791 = vmatpush1.bf16.msra.mxu0 %v5990_v18 }
 0x159   :  { %v1955_v15 = vpop.f32.mrf.mxu1  ;;  %v7939_v22 = vadd.f32 %v1953_v51, %v1761_v52  ;;  %v1763_v28 = vadd.f32 %v1762_v21, %v7556_v38  ;;  %2792 = vmatprep.subr.bf16.mxu0 %v5995_v50 }
 0x15a   :  { %v1766_v40 = vpop.f32.mrf.mxu0  ;;  %2457 = vmatmul.mubr.bf16.gmra.mxu0 %v6596_v3 }
 0x15b   :  { %v1959_v33 = vpop.f32.mrf.mxu1  ;;  %2650 = vmatmul.mubr.bf16.gmra.mxu1 %v6598_v4  ;;  %v7947_v34 = vadd.f32 %v1955_v15, %v1763_v28  ;;  %v1767_v18 = vadd.f32 %v1766_v40, %v7550_v56  ;;  %2466 = vmatprep.mubr.bf16.mxu0 %v6600_v5  ;;  %v6001_v4 = vld [vmem:[%s9373_s1 + $0x5ec] ss:$16 sps:$4 sm:$0xff]   ;;  %v5999_v28 = vld [vmem:[%s9373_s1 + $0x5e8] ss:$16 sps:$4 sm:$0xff]  }
 0x15c   :  { %2659 = vmatprep.mubr.bf16.mxu1 %v6602_v6  ;;  %v1768_v49 = vpop.f32.mrf.mxu0  ;;  %2793 = vmatpush1.bf16.msra.mxu0 %v5993_v59 }
 0x15d   :  { %v1961_v50 = vpop.f32.mrf.mxu1  ;;  %v7955_v51 = vadd.f32 %v1959_v33, %v1767_v18  ;;  %v1769_v3 = vadd.f32 %v1768_v49, %v7556_v38  ;;  %2794 = vmatprep.subr.bf16.mxu0 %v5998_v16  ;;  %v6004_v33 = vld [vmem:[%s9373_s1 + $0x5cc] ss:$16 sps:$4 sm:$0xff]  }
 0x15e   :  { %v1770_v52 = vpop.f32.mrf.mxu0 }
 0x15f   :  { %v1963_v5 = vpop.f32.mrf.mxu1  ;;  %v7961_v21 = vadd.f32 %v1961_v50, %v1769_v3  ;;  %v1771_v6 = vadd.f32 %v1770_v52, %v7550_v56  ;;  %v6002_v52 = vld [vmem:[%s9373_s1 + $0x5c8] ss:$16 sps:$4 sm:$0xff]  }
 0x160   :  { %v1772_v15 = vpop.f32.mrf.mxu0  ;;  %2795 = vmatpush1.bf16.msra.mxu0 %v5996_v36 }
 0x161   :  { %v1965_v59 = vpop.f32.mrf.mxu1  ;;  %v7967_v40 = vadd.f32 %v1963_v5, %v1771_v6  ;;  %v1773_v16 = vadd.f32 %v1772_v15, %v7556_v38  ;;  %2796 = vmatprep.subr.bf16.mxu0 %v6001_v4 }
 0x162   :  { %v1776_v18 = vpop.f32.mrf.mxu0  ;;  %2467 = vmatmul.mubr.bf16.gmra.mxu0 %v6644_v23 }
 0x163   :  { %v1969_v49 = vpop.f32.mrf.mxu1  ;;  %2660 = vmatmul.mubr.bf16.gmra.mxu1 %v6646_v24  ;;  %v7975_v50 = vadd.f32 %v1965_v59, %v1773_v16  ;;  %v1777_v36 = vadd.f32 %v1776_v18, %v7550_v56  ;;  %2476 = vmatprep.mubr.bf16.mxu0 %v6648_v25  ;;  %v6007_v24 = vld [vmem:[%s9373_s1 + $0x5ac] ss:$16 sps:$4 sm:$0xff]   ;;  %v6005_v16 = vld [vmem:[%s9373_s1 + $0x5a8] ss:$16 sps:$4 sm:$0xff]  }
 0x164   :  { %2669 = vmatprep.mubr.bf16.mxu1 %v6650_v26  ;;  %v1778_v3 = vpop.f32.mrf.mxu0  ;;  %2797 = vmatpush2.bf16.msra.mxu0 %v5999_v28 }
 0x165   :  { %v1971_v4 = vpop.f32.mrf.mxu1  ;;  %v7983_v5 = vadd.f32 %v1969_v49, %v1777_v36  ;;  %v1779_v23 = vadd.f32 %v1778_v3, %v7556_v38  ;;  %2798 = vmatprep.subr.bf16.mxu0 %v6004_v33  ;;  %v6010_v49 = vld [vmem:[%s9373_s1 + $0x58c] ss:$16 sps:$4 sm:$0xff]  }
 0x166   :  { %v1780_v6 = vpop.f32.mrf.mxu0 }
 0x167   :  { %v1973_v25 = vpop.f32.mrf.mxu1  ;;  %v7989_v15 = vadd.f32 %v1971_v4, %v1779_v23  ;;  %v1781_v26 = vadd.f32 %v1780_v6, %v7550_v56  ;;  %v6008_v6 = vld [vmem:[%s9373_s1 + $0x588] ss:$16 sps:$4 sm:$0xff]  }
 0x168   :  { %v1782_v59 = vpop.f32.mrf.mxu0  ;;  %2799 = vmatpush2.bf16.msra.mxu0 %v6002_v52 }
 0x169   :  { %v1975_v28 = vpop.f32.mrf.mxu1  ;;  %v7995_v18 = vadd.f32 %v1973_v25, %v1781_v26  ;;  %v1783_v33 = vadd.f32 %v1782_v59, %v7556_v38  ;;  %2800 = vmatprep.subr.bf16.mxu0 %v6007_v24 }
 0x16a   :  { %v1786_v36 = vpop.f32.mrf.mxu0  ;;  %2477 = vmatmul.mubr.bf16.gmra.mxu0 %v6692_v43 }
 0x16b   :  { %v1979_v3 = vpop.f32.mrf.mxu1  ;;  %2670 = vmatmul.mubr.bf16.gmra.mxu1 %v6694_v44  ;;  %v8003_v4 = vadd.f32 %v1975_v28, %v1783_v33  ;;  %v1787_v52 = vadd.f32 %v1786_v36, %v7550_v56  ;;  %2486 = vmatprep.mubr.bf16.mxu0 %v6696_v45  ;;  %v6013_v44 = vld [vmem:[%s9373_s1 + $0x56c] ss:$16 sps:$4 sm:$0xff]   ;;  %v6011_v33 = vld [vmem:[%s9373_s1 + $0x568] ss:$16 sps:$4 sm:$0xff]  }
 0x16c   :  { %2679 = vmatprep.mubr.bf16.mxu1 %v6698_v46  ;;  %v1788_v23 = vpop.f32.mrf.mxu0  ;;  %2801 = vmatpush2.bf16.msra.mxu0 %v6005_v16 }
 0x16d   :  { %v1981_v24 = vpop.f32.mrf.mxu1  ;;  %v8011_v25 = vadd.f32 %v1979_v3, %v1787_v52  ;;  %v1789_v43 = vadd.f32 %v1788_v23, %v7556_v38  ;;  %2802 = vmatprep.subr.bf16.mxu0 %v6010_v49  ;;  %v6016_v3 = vld [vmem:[%s9373_s1 + $0x54c] ss:$16 sps:$4 sm:$0xff]  }
 0x16e   :  { %v1790_v26 = vpop.f32.mrf.mxu0 }
 0x16f   :  { %v1983_v45 = vpop.f32.mrf.mxu1  ;;  %v8017_v59 = vadd.f32 %v1981_v24, %v1789_v43  ;;  %v1791_v46 = vadd.f32 %v1790_v26, %v7550_v56  ;;  %v6014_v26 = vld [vmem:[%s9373_s1 + $0x548] ss:$16 sps:$4 sm:$0xff]  }
 0x170   :  { %v1792_v28 = vpop.f32.mrf.mxu0  ;;  %2803 = vmatpush2.bf16.msra.mxu0 %v6008_v6 }
 0x171   :  { %v1985_v16 = vpop.f32.mrf.mxu1  ;;  %v8023_v36 = vadd.f32 %v1983_v45, %v1791_v46  ;;  %v1793_v49 = vadd.f32 %v1792_v28, %v7556_v38  ;;  %2804 = vmatprep.subr.bf16.mxu0 %v6013_v44 }
 0x172   :  { %v1796_v52 = vpop.f32.mrf.mxu0  ;;  %2487 = vmatmul.mubr.bf16.gmra.mxu0 %v6740_v1 }
 0x173   :  { %v1989_v23 = vpop.f32.mrf.mxu1  ;;  %2680 = vmatmul.mubr.bf16.gmra.mxu1 %v6742_v2  ;;  %v8031_v24 = vadd.f32 %v1985_v16, %v1793_v49  ;;  %v1797_v6 = vadd.f32 %v1796_v52, %v7550_v56  ;;  %2496 = vmatprep.mubr.bf16.mxu0 %v6744_v7  ;;  %v6019_v2 = vld [vmem:[%s9373_s1 + $0x52c] ss:$16 sps:$4 sm:$0xff]   ;;  %v6017_v49 = vld [vmem:[%s9373_s1 + $0x528] ss:$16 sps:$4 sm:$0xff]  }
 0x174   :  { %2689 = vmatprep.mubr.bf16.mxu1 %v6746_v8  ;;  %v1798_v43 = vpop.f32.mrf.mxu0  ;;  %2805 = vmatpush2.bf16.msra.mxu0 %v6011_v33 }
 0x175   :  { %v1991_v44 = vpop.f32.mrf.mxu1  ;;  %v8039_v45 = vadd.f32 %v1989_v23, %v1797_v6  ;;  %v1799_v1 = vadd.f32 %v1798_v43, %v7556_v38  ;;  %2806 = vmatprep.subr.bf16.mxu0 %v6016_v3  ;;  %v6022_v23 = vld [vmem:[%s9373_s1 + $0x50c] ss:$16 sps:$4 sm:$0xff]  }
 0x176   :  { %v1800_v46 = vpop.f32.mrf.mxu0 }
 0x177   :  { %v1993_v7 = vpop.f32.mrf.mxu1  ;;  %v8045_v28 = vadd.f32 %v1991_v44, %v1799_v1  ;;  %v1801_v8 = vadd.f32 %v1800_v46, %v7550_v56  ;;  %v6020_v46 = vld [vmem:[%s9373_s1 + $0x508] ss:$16 sps:$4 sm:$0xff]  }
 0x178   :  { %v1802_v16 = vpop.f32.mrf.mxu0  ;;  %2807 = vmatpush2.bf16.msra.mxu0 %v6014_v26 }
 0x179   :  { %v1995_v33 = vpop.f32.mrf.mxu1  ;;  %v8051_v52 = vadd.f32 %v1993_v7, %v1801_v8  ;;  %v1803_v3 = vadd.f32 %v1802_v16, %v7556_v38  ;;  %2808 = vmatprep.subr.bf16.mxu0 %v6019_v2 }
 0x17a   :  { %v1806_v6 = vpop.f32.mrf.mxu0  ;;  %2497 = vmatmul.mubr.bf16.gmra.mxu0 %v6791_v30 }
 0x17b   :  { %v1999_v43 = vpop.f32.mrf.mxu1  ;;  %2690 = vmatmul.mubr.bf16.gmra.mxu1 %v6793_v31  ;;  %v8059_v44 = vadd.f32 %v1995_v33, %v1803_v3  ;;  %v1807_v26 = vadd.f32 %v1806_v6, %v7550_v56  ;;  %2506 = vmatprep.mubr.bf16.mxu0 %v6795_v32 }
 0x17c   :  { %2699 = vmatprep.mubr.bf16.mxu1 %v6797_v37  ;;  %v1808_v1 = vpop.f32.mrf.mxu0  ;;  %2809 = vmatpush2.bf16.msra.mxu0 %v6017_v49  ;;  %v6025_v49 = vld [vmem:[%s9376_s3 + $0x74] ss:$8 sps:$4 sm:$0xff]  }
 0x17d   :  { %9563 = vst [vmem:[#allocation97_spill] sm:$0xff] %v8059_v44  ;;  %v2001_v2 = vpop.f32.mrf.mxu1  ;;  %v8067_v7 = vadd.f32 %v1999_v43, %v1807_v26  ;;  %v1809_v30 = vadd.f32 %v1808_v1, %v7556_v38  ;;  %2810 = vmatprep.subr.bf16.mxu0 %v6022_v23 }
 0x17e   :  { %v1810_v31 = vpop.f32.mrf.mxu0 }
 0x17f   :  { %9564 = vst [vmem:[#allocation98_spill] sm:$0xff] %v8067_v7  ;;  %v2003_v8 = vpop.f32.mrf.mxu1  ;;  %v8070_v16 = vadd.f32 %v2001_v2, %v1809_v30  ;;  %v1811_v32 = vadd.f32 %v1810_v31, %v7550_v56  ;;  %v9568_v30 = vld [vmem:[#allocation59_spill] sm:$0xff] }
 0x180   :  { %v1812_v33 = vpop.f32.mrf.mxu0  ;;  %2811 = vmatpush2.bf16.msra.mxu0 %v6020_v46 }
 0x181   :  { %9565 = vst [vmem:[#allocation99_spill] sm:$0xff] %v8070_v16  ;;  %v2005_v37 = vpop.f32.mrf.mxu1  ;;  %v8076_v3 = vadd.f32 %v2003_v8, %v1811_v32  ;;  %v1813_v6 = vadd.f32 %v1812_v33, %v7556_v38  ;;  %3754 = vmatprep.subr.bf16.mxu0 %v6025_v49 }
 0x182   :  { %v2042_v43 = vpop.f32.mrf.mxu0  ;;  %2507 = vmatmul.mubr.bf16.gmra.mxu0 %v6839_v60  ;;  %v9569_v60 = vld [vmem:[#allocation61_spill] sm:$0xff] }
 0x183   :  { %9566 = vst [vmem:[#allocation100_spill] sm:$0xff] %v8076_v3  ;;  %v2235_v26 = vpop.f32.mrf.mxu1  ;;  %2700 = vmatmul.mubr.bf16.gmra.mxu1 %v6841_v61  ;;  %v8081_v23 = vadd.f32 %v2005_v37, %v1813_v6  ;;  %v2043_v56 = vadd.f32 %v2042_v43, %v7582_v58  ;;  %2516 = vmatprep.mubr.bf16.mxu0 %v6843_v62  ;;  %v9574_v3 = vld [vmem:[#allocation4_spill] sm:$0xff] }
 0x184   :  { %2709 = vmatprep.mubr.bf16.mxu1 %v6845_v63  ;;  %v2044_v1 = vpop.f32.mrf.mxu0  ;;  %v9572_v63 = vld [vmem:[#allocation3_spill] sm:$0xff] }
 0x185   :  { %9567 = vst [vmem:[#allocation101_spill] sm:$0xff] %v8081_v23  ;;  %v2237_v2 = vpop.f32.mrf.mxu1  ;;  %v2236_v46 = vadd.f32 %v2235_v26, %v2043_v56  ;;  %v2045_v38 = vadd.f32 %v2044_v1, %v9568_v30  ;;  %v9571_v23 = vld [vmem:[#allocation2_spill] sm:$0xff]  ;;  %v9573_v1 = vld [vmem:[#allocation63_spill] sm:$0xff] }
 0x186   :  { %v2046_v31 = vpop.f32.mrf.mxu0 }
 0x187   :  { %v2239_v8 = vpop.f32.mrf.mxu1  ;;  %v2238_v32 = vadd.f32 %v2237_v2, %v2045_v38  ;;  %v2047_v33 = vadd.f32 %v2046_v31, %v9569_v60  ;;  %v3166_v49 = vmax.f32 %v2236_v46, 0.0  ;;  %v9575_v2 = vld [vmem:[#allocation5_spill] sm:$0xff] }
 0x188   :  { %v2048_v61 = vpop.f32.mrf.mxu0 }
 0x189   :  { %v2241_v37 = vpop.f32.mrf.mxu1  ;;  %v2240_v6 = vadd.f32 %v2239_v8, %v2047_v33  ;;  %v2049_v58 = vadd.f32 %v2048_v61, %v9570_v55  ;;  %v3167_v38 = vmax.f32 %v2238_v32, 0.0  ;;  %v9577_v61 = vld [vmem:[#allocation66_spill] sm:$0xff] }
 0x18a   :  { %v2052_v43 = vpop.f32.mrf.mxu0  ;;  %2517 = vmatmul.mubr.bf16.gmra.mxu0 %v9571_v23 }
 0x18b   :  { %v2245_v62 = vpop.f32.mrf.mxu1  ;;  %2710 = vmatmul.mubr.bf16.gmra.mxu1 %v9572_v63  ;;  %v3170_v26 = vmax.f32 %v2240_v6, 0.0  ;;  %v2242_v56 = vadd.f32 %v2241_v37, %v2049_v58  ;;  %v2053_v30 = vadd.f32 %v2052_v43, %v9573_v1  ;;  %2526 = vmatprep.mubr.bf16.mxu0 %v9574_v3  ;;  %v9578_v6 = vld [vmem:[#allocation68_spill] sm:$0xff] }
 0x18c   :  { %2719 = vmatprep.mubr.bf16.mxu1 %v9575_v2  ;;  %v2054_v31 = vpop.f32.mrf.mxu0  ;;  %v9580_v2 = vld [vmem:[#allocation69_spill] sm:$0xff] }
 0x18d   :  { %v2247_v8 = vpop.f32.mrf.mxu1  ;;  %v8094_v60 = vpack.c.bf16 %v3170_v26, %v3166_v49  ;;  %v3171_v55 = vmax.f32 %v2242_v56, 0.0  ;;  %v2246_v33 = vadd.f32 %v2245_v62, %v2053_v30  ;;  %v2055_v23 = vadd.f32 %v2054_v31, %v9577_v61  ;;  %v9581_v49 = vld [vmem:[#allocation6_spill] sm:$0xff]  ;;  %v9582_v26 = vld [vmem:[#allocation7_spill] sm:$0xff]  ;;  %v9584_v61 = vld [vmem:[#allocation8_spill] sm:$0xff] }
 0x18e   :  { %v2056_v16 = vpop.f32.mrf.mxu0  ;;  %v9583_v31 = vld [vmem:[#allocation70_spill] sm:$0xff] }
 0x18f   :  { %9576 = vst [vmem:[#allocation59_spill] sm:$0xff] %v8094_v60  ;;  %v2249_v63 = vpop.f32.mrf.mxu1  ;;  %v2248_v46 = vadd.f32 %v2247_v8, %v2055_v23  ;;  %v2057_v37 = vadd.f32 %v2056_v16, %v9578_v6  ;;  %v8098_v58 = vpack.c.bf16 %v3171_v55, %v3167_v38  ;;  %v3174_v62 = vmax.f32 %v2246_v33, 0.0  ;;  %v9585_v16 = vld [vmem:[#allocation9_spill] sm:$0xff] }
 0x190   :  { %v2058_v43 = vpop.f32.mrf.mxu0  ;;  %v6040_v33 = vld [vmem:[%s9376_s3 + $0x174] ss:$8 sps:$4 sm:$0xff]  }
 0x191   :  { %9579 = vst [vmem:[#allocation61_spill] sm:$0xff] %v8098_v58  ;;  %v2251_v3 = vpop.f32.mrf.mxu1  ;;  %v2250_v1 = vadd.f32 %v2249_v63, %v2057_v37  ;;  %v2059_v32 = vadd.f32 %v2058_v43, %v9580_v2  ;;  %v3175_v38 = vmax.f32 %v2248_v46, 0.0  ;;  %v9587_v43 = vld [vmem:[#allocation73_spill] sm:$0xff]  ;;  %3947 = vmatprep.subr.bf16.mxu1 %v6040_v33 }
 0x192   :  { %v2062_v7 = vpop.f32.mrf.mxu0  ;;  %2527 = vmatmul.mubr.bf16.gmra.mxu0 %v9581_v49 }
 0x193   :  { %v2255_v44 = vpop.f32.mrf.mxu1  ;;  %2720 = vmatmul.mubr.bf16.gmra.mxu1 %v9582_v26  ;;  %v3178_v56 = vmax.f32 %v2250_v1, 0.0  ;;  %v2252_v30 = vadd.f32 %v2251_v3, %v2059_v32  ;;  %v2063_v8 = vadd.f32 %v2062_v7, %v9583_v31  ;;  %2536 = vmatprep.mubr.bf16.mxu0 %v9584_v61  ;;  %v9588_v32 = vld [vmem:[#allocation75_spill] sm:$0xff]  ;;  %v9591_v61 = vld [vmem:[#allocation10_spill] sm:$0xff] }
 0x194   :  { %2729 = vmatprep.mubr.bf16.mxu1 %v9585_v16  ;;  %v2064_v55 = vpop.f32.mrf.mxu0  ;;  %v9592_v16 = vld [vmem:[#allocation11_spill] sm:$0xff] }
 0x195   :  { %v2257_v23 = vpop.f32.mrf.mxu1  ;;  %v8106_v63 = vpack.c.bf16 %v3178_v56, %v3174_v62  ;;  %v3179_v6 = vmax.f32 %v2252_v30, 0.0  ;;  %v2256_v37 = vadd.f32 %v2255_v44, %v2063_v8  ;;  %v2065_v2 = vadd.f32 %v2064_v55, %v9587_v43  ;;  %v9590_v56 = vld [vmem:[#allocation76_spill] sm:$0xff] }
 0x196   :  { %v2066_v3 = vpop.f32.mrf.mxu0 }
 0x197   :  { %9586 = vst [vmem:[#allocation62_spill] sm:$0xff] %v8106_v63  ;;  %v2259_v1 = vpop.f32.mrf.mxu1  ;;  %v2258_v7 = vadd.f32 %v2257_v23, %v2065_v2  ;;  %v2067_v49 = vadd.f32 %v2066_v3, %v9588_v32  ;;  %v8113_v26 = vpack.c.bf16 %v3179_v6, %v3175_v38  ;;  %v3182_v55 = vmax.f32 %v2256_v37, 0.0  ;;  %v9593_v23 = vld [vmem:[#allocation77_spill] sm:$0xff]  ;;  %v9594_v3 = vld [vmem:[#allocation12_spill] sm:$0xff] }
 0x198   :  { %v2068_v46 = vpop.f32.mrf.mxu0  ;;  %v9595_v38 = vld [vmem:[#allocation13_spill] sm:$0xff] }
 0x199   :  { %9589 = vst [vmem:[#allocation2_spill] sm:$0xff] %v8113_v26  ;;  %v2261_v31 = vpop.f32.mrf.mxu1  ;;  %v2260_v62 = vadd.f32 %v2259_v1, %v2067_v49  ;;  %v2069_v30 = vadd.f32 %v2068_v46, %v9590_v56  ;;  %v3183_v6 = vmax.f32 %v2258_v7, 0.0  ;;  %v9597_v56 = vld [vmem:[#allocation80_spill] sm:$0xff] }
 0x19a   :  { %v2072_v44 = vpop.f32.mrf.mxu0  ;;  %2537 = vmatmul.mubr.bf16.gmra.mxu0 %v9591_v61 }
 0x19b   :  { %v2265_v8 = vpop.f32.mrf.mxu1  ;;  %2730 = vmatmul.mubr.bf16.gmra.mxu1 %v9592_v16  ;;  %v3186_v43 = vmax.f32 %v2260_v62, 0.0  ;;  %v2262_v63 = vadd.f32 %v2261_v31, %v2069_v30  ;;  %v2073_v2 = vadd.f32 %v2072_v44, %v9593_v23  ;;  %2546 = vmatprep.mubr.bf16.mxu0 %v9594_v3  ;;  %v9598_v62 = vld [vmem:[#allocation82_spill] sm:$0xff] }
 0x19c   :  { %2739 = vmatprep.mubr.bf16.mxu1 %v9595_v38  ;;  %v2074_v33 = vpop.f32.mrf.mxu0  ;;  %v9600_v38 = vld [vmem:[#allocation83_spill] sm:$0xff] }
 0x19d   :  { %v2267_v1 = vpop.f32.mrf.mxu1  ;;  %v8121_v32 = vpack.c.bf16 %v3186_v43, %v3182_v55  ;;  %v3187_v49 = vmax.f32 %v2262_v63, 0.0  ;;  %v2266_v46 = vadd.f32 %v2265_v8, %v2073_v2  ;;  %v2075_v61 = vadd.f32 %v2074_v33, %v9597_v56  ;;  %v9601_v55 = vld [vmem:[#allocation14_spill] sm:$0xff]  ;;  %v9602_v63 = vld [vmem:[#allocation15_spill] sm:$0xff]  ;;  %v9603_v33 = vld [vmem:[#allocation84_spill] sm:$0xff] }
 0x19e   :  { %v2076_v26 = vpop.f32.mrf.mxu0  ;;  %v9604_v56 = vld [vmem:[#allocation16_spill] sm:$0xff] }
 0x19f   :  { %9596 = vst [vmem:[#allocation3_spill] sm:$0xff] %v8121_v32  ;;  %v2269_v16 = vpop.f32.mrf.mxu1  ;;  %v2268_v37 = vadd.f32 %v2267_v1, %v2075_v61  ;;  %v2077_v31 = vadd.f32 %v2076_v26, %v9598_v62  ;;  %v8125_v30 = vpack.c.bf16 %v3187_v49, %v3183_v6  ;;  %v3190_v8 = vmax.f32 %v2266_v46, 0.0  ;;  %v9605_v26 = vld [vmem:[#allocation17_spill] sm:$0xff] }
 0x1a0   :  { %v2078_v44 = vpop.f32.mrf.mxu0 }
 0x1a1   :  { %9599 = vst [vmem:[#allocation63_spill] sm:$0xff] %v8125_v30  ;;  %v2271_v23 = vpop.f32.mrf.mxu1  ;;  %v2270_v3 = vadd.f32 %v2269_v16, %v2077_v31  ;;  %v2079_v7 = vadd.f32 %v2078_v44, %v9600_v38  ;;  %v3191_v6 = vmax.f32 %v2268_v37, 0.0  ;;  %v9606_v44 = vld [vmem:[#allocation87_spill] sm:$0xff] }
 0x1a2   :  { %v2082_v60 = vpop.f32.mrf.mxu0  ;;  %2547 = vmatmul.mubr.bf16.gmra.mxu0 %v9601_v55 }
 0x1a3   :  { %v2275_v58 = vpop.f32.mrf.mxu1  ;;  %2740 = vmatmul.mubr.bf16.gmra.mxu1 %v9602_v63  ;;  %v3194_v43 = vmax.f32 %v2270_v3, 0.0  ;;  %v2272_v2 = vadd.f32 %v2271_v23, %v2079_v7  ;;  %v2083_v1 = vadd.f32 %v2082_v60, %v9603_v33  ;;  %2556 = vmatprep.mubr.bf16.mxu0 %v9604_v56  ;;  %v9607_v3 = vld [vmem:[#allocation89_spill] sm:$0xff] }
 0x1a4   :  { %2749 = vmatprep.mubr.bf16.mxu1 %v9605_v26  ;;  %v2084_v49 = vpop.f32.mrf.mxu0  ;;  %v9608_v26 = vld [vmem:[#allocation90_spill] sm:$0xff] }
 0x1a5   :  { %v2277_v61 = vpop.f32.mrf.mxu1  ;;  %v8133_v16 = vpack.c.bf16 %v3194_v43, %v3190_v8  ;;  %v3195_v62 = vmax.f32 %v2272_v2, 0.0  ;;  %v2276_v31 = vadd.f32 %v2275_v58, %v2083_v1  ;;  %v2085_v38 = vadd.f32 %v2084_v49, %v9606_v44  ;;  %v9609_v8 = vld [vmem:[#allocation18_spill] sm:$0xff]  ;;  %v9610_v43 = vld [vmem:[#allocation19_spill] sm:$0xff] }
 0x1a6   :  { %v2086_v55 = vpop.f32.mrf.mxu0 }
 0x1a7   :  { %v2279_v63 = vpop.f32.mrf.mxu1  ;;  %v2278_v46 = vadd.f32 %v2277_v61, %v2085_v38  ;;  %v2087_v23 = vadd.f32 %v2086_v55, %v9607_v3  ;;  %v8137_v7 = vpack.c.bf16 %v3195_v62, %v3191_v6  ;;  %v3198_v58 = vmax.f32 %v2276_v31, 0.0  ;;  %v9611_v61 = vld [vmem:[#allocation20_spill] sm:$0xff]  ;;  %v9612_v6 = vld [vmem:[#allocation21_spill] sm:$0xff] }
 0x1a8   :  { %v2088_v60 = vpop.f32.mrf.mxu0 }
 0x1a9   :  { %v2281_v33 = vpop.f32.mrf.mxu1  ;;  %v2280_v56 = vadd.f32 %v2279_v63, %v2087_v23  ;;  %v2089_v37 = vadd.f32 %v2088_v60, %v9608_v26  ;;  %v3199_v62 = vmax.f32 %v2278_v46, 0.0 }
 0x1aa   :  { %v2092_v32 = vpop.f32.mrf.mxu0  ;;  %2557 = vmatmul.mubr.bf16.gmra.mxu0 %v9609_v8  ;;  %v9613_v8 = vld [vmem:[#allocation94_spill] sm:$0xff] }
 0x1ab   :  { %v2285_v30 = vpop.f32.mrf.mxu1  ;;  %2750 = vmatmul.mubr.bf16.gmra.mxu1 %v9610_v43  ;;  %v3202_v2 = vmax.f32 %v2280_v56, 0.0  ;;  %v2282_v1 = vadd.f32 %v2281_v33, %v2089_v37  ;;  %v2093_v49 = vadd.f32 %v2092_v32, %v7787_v39  ;;  %2566 = vmatprep.mubr.bf16.mxu0 %v9611_v61 }
 0x1ac   :  { %2759 = vmatprep.mubr.bf16.mxu1 %v9612_v6  ;;  %v2094_v44 = vpop.f32.mrf.mxu0  ;;  %v9616_v6 = vld [vmem:[#allocation24_spill] sm:$0xff] }
 0x1ad   :  { %v2287_v38 = vpop.f32.mrf.mxu1  ;;  %v8145_v55 = vpack.c.bf16 %v3202_v2, %v3198_v58  ;;  %v3203_v63 = vmax.f32 %v2282_v1, 0.0  ;;  %v2286_v3 = vadd.f32 %v2285_v30, %v2093_v49  ;;  %v2095_v23 = vadd.f32 %v2094_v44, %v7794_v11  ;;  %v9614_v58 = vld [vmem:[#allocation22_spill] sm:$0xff]  ;;  %v9615_v2 = vld [vmem:[#allocation23_spill] sm:$0xff] }
 0x1ae   :  { %v2096_v60 = vpop.f32.mrf.mxu0 }
 0x1af   :  { %v2289_v26 = vpop.f32.mrf.mxu1  ;;  %v2288_v31 = vadd.f32 %v2287_v38, %v2095_v23  ;;  %v2097_v33 = vadd.f32 %v2096_v60, %v7799_v48  ;;  %v8149_v56 = vpack.c.bf16 %v3203_v63, %v3199_v62  ;;  %v3206_v30 = vmax.f32 %v2286_v3, 0.0  ;;  %v9617_v48 = vld [vmem:[#allocation25_spill] sm:$0xff] }
 0x1b0   :  { %v2098_v39 = vpop.f32.mrf.mxu0 }
 0x1b1   :  { %v2291_v32 = vpop.f32.mrf.mxu1  ;;  %v2290_v37 = vadd.f32 %v2289_v26, %v2097_v33  ;;  %v2099_v46 = vadd.f32 %v2098_v39, %v9613_v8  ;;  %v3207_v62 = vmax.f32 %v2288_v31, 0.0 }
 0x1b2   :  { %v2102_v43 = vpop.f32.mrf.mxu0  ;;  %2567 = vmatmul.mubr.bf16.gmra.mxu0 %v9614_v58 }
 0x1b3   :  { %v2295_v61 = vpop.f32.mrf.mxu1  ;;  %2760 = vmatmul.mubr.bf16.gmra.mxu1 %v9615_v2  ;;  %v3210_v11 = vmax.f32 %v2290_v37, 0.0  ;;  %v2292_v1 = vadd.f32 %v2291_v32, %v2099_v46  ;;  %v2103_v49 = vadd.f32 %v2102_v43, %v7822_v0  ;;  %2576 = vmatprep.mubr.bf16.mxu0 %v9616_v6  ;;  %v9618_v2 = vld [vmem:[#allocation26_spill] sm:$0xff] }
 0x1b4   :  { %2769 = vmatprep.mubr.bf16.mxu1 %v9617_v48  ;;  %v2104_v44 = vpop.f32.mrf.mxu0 }
 0x1b5   :  { %v2297_v38 = vpop.f32.mrf.mxu1  ;;  %v8157_v63 = vpack.c.bf16 %v3210_v11, %v3206_v30  ;;  %v3211_v23 = vmax.f32 %v2292_v1, 0.0  ;;  %v2296_v60 = vadd.f32 %v2295_v61, %v2103_v49  ;;  %v2105_v26 = vadd.f32 %v2104_v44, %v7829_v47  ;;  %v9619_v30 = vld [vmem:[#allocation27_spill] sm:$0xff]  ;;  %v9620_v49 = vld [vmem:[#allocation28_spill] sm:$0xff] }
 0x1b6   :  { %v2106_v33 = vpop.f32.mrf.mxu0 }
 0x1b7   :  { %v2299_v39 = vpop.f32.mrf.mxu1  ;;  %v2298_v3 = vadd.f32 %v2297_v38, %v2105_v26  ;;  %v2107_v32 = vadd.f32 %v2106_v33, %v7832_v13  ;;  %v8161_v37 = vpack.c.bf16 %v3211_v23, %v3207_v62  ;;  %v3214_v61 = vmax.f32 %v2296_v60, 0.0 }
 0x1b8   :  { %v2108_v0 = vpop.f32.mrf.mxu0  ;;  %v9621_v13 = vmov 0  }
 0x1b9   :  { %v2301_v8 = vpop.f32.mrf.mxu1  ;;  %v2300_v46 = vadd.f32 %v2299_v39, %v2107_v32  ;;  %v2109_v31 = vadd.f32 %v2108_v0, %v7838_v57  ;;  %v3215_v6 = vmax.f32 %v2298_v3, 0.0  ;;  %v6023_v3 = vld [vmem:[%s9376_s3 + $0x70] ss:$8 sps:$4 sm:$0xff]  }
 0x1ba   :  { %v2112_v43 = vpop.f32.mrf.mxu0  ;;  %2577 = vmatmul.mubr.bf16.gmra.mxu0 %v9618_v2  ;;  %v9622_v2 = vld [vmem:[#allocation29_spill] sm:$0xff] }
 0x1bb   :  { %v2305_v58 = vpop.f32.mrf.mxu1  ;;  %2770 = vmatmul.mubr.bf16.gmra.mxu1 %v9619_v30  ;;  %v3218_v47 = vmax.f32 %v2300_v46, 0.0  ;;  %v2302_v11 = vadd.f32 %v2301_v8, %v2109_v31  ;;  %v2113_v1 = vadd.f32 %v2112_v43, %v7843_v10  ;;  %2812 = vmatprep.mubr.bf16.mxu0 %v9620_v49  ;;  %v6038_v8 = vld [vmem:[%s9376_s3 + $0x170] ss:$8 sps:$4 sm:$0xff]   ;;  %v6028_v31 = vld [vmem:[%s9376_s3 + $0x64] ss:$8 sps:$4 sm:$0xff]  }
 0x1bc   :  { %3005 = vmatprep.mubr.bf16.mxu1 %v9621_v13  ;;  %v2114_v48 = vpop.f32.mrf.mxu0  ;;  %v9623_v30 = vld [vmem:[#allocation30_spill] sm:$0xff] }
 0x1bd   :  { %v2307_v62 = vpop.f32.mrf.mxu1  ;;  %v8169_v44 = vpack.c.bf16 %v3218_v47, %v3214_v61  ;;  %v3219_v57 = vmax.f32 %v2302_v11, 0.0  ;;  %v2306_v38 = vadd.f32 %v2305_v58, %v2113_v1  ;;  %v2115_v23 = vadd.f32 %v2114_v48, %v7846_v9  ;;  %v9624_v1 = vld [vmem:[#allocation31_spill] sm:$0xff] }
 0x1be   :  { %v2116_v26 = vpop.f32.mrf.mxu0 }
 0x1bf   :  { %v2309_v33 = vpop.f32.mrf.mxu1  ;;  %v2308_v60 = vadd.f32 %v2307_v62, %v2115_v23  ;;  %v2117_v39 = vadd.f32 %v2116_v26, %v7855_v19  ;;  %v8173_v32 = vpack.c.bf16 %v3219_v57, %v3215_v6  ;;  %v6049_v19 = vld [vmem:[%s9376_s3 + $0x164] ss:$8 sps:$4 sm:$0xff]   ;;  %v3222_v61 = vmax.f32 %v2306_v38, 0.0  ;;  %v6026_v62 = vld [vmem:[%s9376_s3 + $0x60] ss:$8 sps:$4 sm:$0xff]  }
 0x1c0   :  { %v2118_v10 = vpop.f32.mrf.mxu0  ;;  %v6047_v57 = vld [vmem:[%s9376_s3 + $0x160] ss:$8 sps:$4 sm:$0xff]  }
 0x1c1   :  { %v2311_v0 = vpop.f32.mrf.mxu1  ;;  %v2310_v46 = vadd.f32 %v2309_v33, %v2117_v39  ;;  %v2119_v9 = vadd.f32 %v2118_v10, %v7863_v14  ;;  %v3223_v49 = vmax.f32 %v2308_v60, 0.0  ;;  %v6031_v33 = vld [vmem:[%s9376_s3 + $0x54] ss:$8 sps:$4 sm:$0xff]  }
 0x1c2   :  { %v2122_v43 = vpop.f32.mrf.mxu0  ;;  %2813 = vmatmul.mubr.bf16.vlgmr.msra.gmra.mxu0 %v9622_v2  ;;  %v6058_v60 = vld [vmem:[%s9376_s3 + $0x154] ss:$8 sps:$4 sm:$0xff]  }
 0x1c3   :  { %v2315_v58 = vpop.f32.mrf.mxu1  ;;  %5357 = vmatmul.mubr.msk.bf16.vlgmr.msra.gmra.mxu1 %vm1573_vm0, %v9623_v30  ;;  %v3226_v47 = vmax.f32 %v2310_v46, 0.0  ;;  %v2312_v11 = vadd.f32 %v2311_v0, %v2119_v9  ;;  %v2123_v14 = vadd.f32 %v2122_v43, %v7874_v17  ;;  %2822 = vmatprep.mubr.bf16.mxu0 %v9624_v1 }
 0x1c4   :  { %3015 = vmatprep.mubr.bf16.mxu1 %v9621_v13  ;;  %v2124_v6 = vpop.f32.mrf.mxu0  ;;  %3755 = vmatpush1.bf16.msra.mxu0 %v6023_v3 }
 0x1c5   :  { %v2317_v48 = vpop.f32.mrf.mxu1  ;;  %3948 = vmatpush1.bf16.msra.mxu1 %v6038_v8  ;;  %v8200_v38 = vpack.c.bf16 %v3226_v47, %v3222_v61  ;;  %v3227_v17 = vmax.f32 %v2312_v11, 0.0  ;;  %v2316_v23 = vadd.f32 %v2315_v58, %v2123_v14  ;;  %v2125_v26 = vadd.f32 %v2124_v6, %v7877_v42  ;;  %3756 = vmatprep.subr.bf16.mxu0 %v6028_v31  ;;  %v6029_v42 = vld [vmem:[%s9376_s3 + $0x50] ss:$8 sps:$4 sm:$0xff]   ;;  %v6067_v58 = vld [vmem:[%s9376_s3 + $0x144] ss:$8 sps:$4 sm:$0xff]  }
 0x1c6   :  { %3949 = vmatprep.subr.bf16.mxu1 %v6049_v19  ;;  %v2126_v39 = vpop.f32.mrf.mxu0  ;;  %v6056_v31 = vld [vmem:[%s9376_s3 + $0x150] ss:$8 sps:$4 sm:$0xff]  }
 0x1c7   :  { %v2319_v10 = vpop.f32.mrf.mxu1  ;;  %v2318_v0 = vadd.f32 %v2317_v48, %v2125_v26  ;;  %v2127_v3 = vadd.f32 %v2126_v39, %v7883_v41  ;;  %v8210_v8 = vpack.c.bf16 %v3227_v17, %v3223_v49  ;;  %v6034_v41 = vld [vmem:[%s9376_s3 + $0x44] ss:$8 sps:$4 sm:$0xff]   ;;  %v9625_v61 = vld [vmem:[#allocation32_spill] sm:$0xff]  ;;  %v9626_v47 = vld [vmem:[#allocation33_spill] sm:$0xff]  ;;  %v3230_v11 = vmax.f32 %v2316_v23, 0.0 }
 0x1c8   :  { %v2128_v46 = vpop.f32.mrf.mxu0  ;;  %3757 = vmatpush1.bf16.msra.mxu0 %v6026_v62  ;;  %v9627_v49 = vld [vmem:[#allocation34_spill] sm:$0xff]  ;;  %v6076_v39 = vld [vmem:[%s9376_s3 + $0x134] ss:$8 sps:$4 sm:$0xff]  }
 0x1c9   :  { %v2321_v9 = vpop.f32.mrf.mxu1  ;;  %3950 = vmatpush1.bf16.msra.mxu1 %v6047_v57  ;;  %v2320_v19 = vadd.f32 %v2319_v10, %v2127_v3  ;;  %v2129_v43 = vadd.f32 %v2128_v46, %v7891_v27  ;;  %3758 = vmatprep.subr.bf16.mxu0 %v6031_v33  ;;  %v3231_v6 = vmax.f32 %v2318_v0, 0.0  ;;  %v6032_v57 = vld [vmem:[%s9376_s3 + $0x40] ss:$8 sps:$4 sm:$0xff]  }
 0x1ca   :  { %3951 = vmatprep.subr.bf16.mxu1 %v6058_v60  ;;  %v2132_v2 = vpop.f32.mrf.mxu0  ;;  %2823 = vmatmul.mubr.bf16.gmra.mxu0 %v9625_v61  ;;  %v6065_v17 = vld [vmem:[%s9376_s3 + $0x140] ss:$8 sps:$4 sm:$0xff]   ;;  %v6037_v60 = vld [vmem:[%s9376_s3 + $0x34] ss:$8 sps:$4 sm:$0xff]  }
 0x1cb   :  { %v2325_v30 = vpop.f32.mrf.mxu1  ;;  %5358 = vmatmul.mubr.msk.bf16.gmra.mxu1 %vm1573_vm0, %v9626_v47  ;;  %v3234_v14 = vmax.f32 %v2320_v19, 0.0  ;;  %v2322_v27 = vadd.f32 %v2321_v9, %v2129_v43  ;;  %v2133_v1 = vadd.f32 %v2132_v2, %v7899_v53  ;;  %2832 = vmatprep.mubr.bf16.mxu0 %v9627_v49  ;;  %v6074_v19 = vld [vmem:[%s9376_s3 + $0x130] ss:$8 sps:$4 sm:$0xff]   ;;  %v9628_v61 = vld [vmem:[#allocation35_spill] sm:$0xff] }
 0x1cc   :  { %3025 = vmatprep.mubr.bf16.mxu1 %v9621_v13  ;;  %v2134_v48 = vpop.f32.mrf.mxu0  ;;  %3759 = vmatpush1.bf16.msra.mxu0 %v6029_v42  ;;  %v9629_v47 = vld [vmem:[#allocation36_spill] sm:$0xff] }
 0x1cd   :  { %v2327_v62 = vpop.f32.mrf.mxu1  ;;  %3952 = vmatpush1.bf16.msra.mxu1 %v6056_v31  ;;  %v8237_v23 = vpack.c.bf16 %v3234_v14, %v3230_v11  ;;  %v3235_v53 = vmax.f32 %v2322_v27, 0.0  ;;  %v2326_v26 = vadd.f32 %v2325_v30, %v2133_v1  ;;  %v2135_v33 = vadd.f32 %v2134_v48, %v7905_v12  ;;  %3760 = vmatprep.subr.bf16.mxu0 %v6034_v41  ;;  %v6035_v12 = vld [vmem:[%s9376_s3 + $0x30] ss:$8 sps:$4 sm:$0xff]  }
 0x1ce   :  { %3953 = vmatprep.subr.bf16.mxu1 %v6067_v58  ;;  %v2136_v10 = vpop.f32.mrf.mxu0  ;;  %v6085_v58 = vld [vmem:[%s9376_s3 + $0x124] ss:$8 sps:$4 sm:$0xff]   ;;  %v9630_v1 = vld [vmem:[#allocation37_spill] sm:$0xff] }
 0x1cf   :  { %v2329_v0 = vpop.f32.mrf.mxu1  ;;  %v2328_v3 = vadd.f32 %v2327_v62, %v2135_v33  ;;  %v2137_v46 = vadd.f32 %v2136_v10, %v7911_v29  ;;  %v8247_v9 = vpack.c.bf16 %v3235_v53, %v3231_v6  ;;  %v6043_v29 = vld [vmem:[%s9376_s3 + $0x24] ss:$8 sps:$4 sm:$0xff]   ;;  %v3238_v11 = vmax.f32 %v2326_v26, 0.0  ;;  %v6041_v62 = vld [vmem:[%s9376_s3 + $0x20] ss:$8 sps:$4 sm:$0xff]  }
 0x1d0   :  { %v2138_v42 = vpop.f32.mrf.mxu0  ;;  %3761 = vmatpush1.bf16.msra.mxu0 %v6032_v57  ;;  %v6083_v57 = vld [vmem:[%s9376_s3 + $0x120] ss:$8 sps:$4 sm:$0xff]   ;;  %v6046_v33 = vld [vmem:[%s9376_s3 + $0x14] ss:$8 sps:$4 sm:$0xff]  }
 0x1d1   :  { %v2331_v31 = vpop.f32.mrf.mxu1  ;;  %3954 = vmatpush1.bf16.msra.mxu1 %v6065_v17  ;;  %v2330_v43 = vadd.f32 %v2329_v0, %v2137_v46  ;;  %v2139_v41 = vadd.f32 %v2138_v42, %v7919_v54  ;;  %3762 = vmatprep.subr.bf16.mxu0 %v6037_v60  ;;  %v3239_v49 = vmax.f32 %v2328_v3, 0.0  ;;  %v6091_v60 = vld [vmem:[%s9376_s3 + $0x114] ss:$8 sps:$4 sm:$0xff]  }
 0x1d2   :  { %3955 = vmatprep.subr.bf16.mxu1 %v6076_v39  ;;  %v2142_v2 = vpop.f32.mrf.mxu0  ;;  %2833 = vmatmul.mubr.bf16.gmra.mxu0 %v9628_v61 }
 0x1d3   :  { %v2335_v30 = vpop.f32.mrf.mxu1  ;;  %5359 = vmatmul.mubr.msk.bf16.gmra.mxu1 %vm1573_vm0, %v9629_v47  ;;  %v3242_v14 = vmax.f32 %v2330_v43, 0.0  ;;  %v2332_v54 = vadd.f32 %v2331_v31, %v2139_v41  ;;  %v2143_v27 = vadd.f32 %v2142_v2, %v7927_v35  ;;  %2842 = vmatprep.mubr.bf16.mxu0 %v9630_v1  ;;  %v6094_v41 = vld [vmem:[%s9376_s3 + $0x104] ss:$8 sps:$4 sm:$0xff]  }
 0x1d4   :  { %3035 = vmatprep.mubr.bf16.mxu1 %v9621_v13  ;;  %v2144_v6 = vpop.f32.mrf.mxu0  ;;  %3763 = vmatpush1.bf16.msra.mxu0 %v6035_v12  ;;  %v6089_v12 = vld [vmem:[%s9376_s3 + $0x110] ss:$8 sps:$4 sm:$0xff]   ;;  %v9631_v2 = vld [vmem:[#allocation38_spill] sm:$0xff] }
 0x1d5   :  { %v2337_v48 = vpop.f32.mrf.mxu1  ;;  %3956 = vmatpush1.bf16.msra.mxu1 %v6074_v19  ;;  %v8274_v17 = vpack.c.bf16 %v3242_v14, %v3238_v11  ;;  %v3243_v35 = vmax.f32 %v2332_v54, 0.0  ;;  %v2336_v53 = vadd.f32 %v2335_v30, %v2143_v27  ;;  %v2145_v26 = vadd.f32 %v2144_v6, %v7933_v20  ;;  %3764 = vmatprep.subr.bf16.mxu0 %v6043_v29  ;;  %v6044_v20 = vld [vmem:[%s9376_s3 + $0x10] ss:$8 sps:$4 sm:$0xff]   ;;  %v9632_v30 = vld [vmem:[#allocation39_spill] sm:$0xff] }
 0x1d6   :  { %3957 = vmatprep.subr.bf16.mxu1 %v6085_v58  ;;  %v2146_v39 = vpop.f32.mrf.mxu0  ;;  %v9633_v14 = vld [vmem:[#allocation40_spill] sm:$0xff]  ;;  %v6092_v6 = vld [vmem:[%s9376_s3 + $0x100] ss:$8 sps:$4 sm:$0xff]  }
 0x1d7   :  { %v2339_v10 = vpop.f32.mrf.mxu1  ;;  %v2338_v0 = vadd.f32 %v2337_v48, %v2145_v26  ;;  %v2147_v3 = vadd.f32 %v2146_v39, %v7939_v22  ;;  %v8284_v46 = vpack.c.bf16 %v3243_v35, %v3239_v49  ;;  %v6052_v22 = vld [vmem:[%s9376_s3 + $0x4] ss:$8 sps:$4 sm:$0xff]   ;;  %v3246_v61 = vmax.f32 %v2336_v53, 0.0  ;;  %v6050_v49 = vld [vmem:[%s9376_s3] ss:$8 sps:$4 sm:$0xff]  }
 0x1d8   :  { %v2148_v42 = vpop.f32.mrf.mxu0  ;;  %3765 = vmatpush1.bf16.msra.mxu0 %v6041_v62  ;;  %v6055_v35 = vld [vmem:[%s9376_s3 + $0xf4] ss:$8 sps:$4 sm:$0xff]  }
 0x1d9   :  { %v2341_v31 = vpop.f32.mrf.mxu1  ;;  %3958 = vmatpush1.bf16.msra.mxu1 %v6083_v57  ;;  %v2340_v19 = vadd.f32 %v2339_v10, %v2147_v3  ;;  %v2149_v43 = vadd.f32 %v2148_v42, %v7947_v34  ;;  %3766 = vmatprep.subr.bf16.mxu0 %v6046_v33  ;;  %v3247_v54 = vmax.f32 %v2338_v0, 0.0  ;;  %v6097_v53 = vld [vmem:[%s9376_s3 + $0x1f4] ss:$8 sps:$4 sm:$0xff]   ;;  %v6095_v42 = vld [vmem:[%s9376_s3 + $0x1f0] ss:$8 sps:$4 sm:$0xff]  }
 0x1da   :  { %3959 = vmatprep.subr.bf16.mxu1 %v6091_v60  ;;  %v2152_v29 = vpop.f32.mrf.mxu0  ;;  %2843 = vmatmul.mubr.bf16.gmra.mxu0 %v9631_v2 }
 0x1db   :  { %v2345_v58 = vpop.f32.mrf.mxu1  ;;  %5360 = vmatmul.mubr.msk.bf16.gmra.mxu1 %vm1573_vm0, %v9632_v30  ;;  %v3250_v47 = vmax.f32 %v2340_v19, 0.0  ;;  %v2342_v34 = vadd.f32 %v2341_v31, %v2149_v43  ;;  %v2153_v11 = vadd.f32 %v2152_v29, %v7955_v51  ;;  %2852 = vmatprep.mubr.bf16.mxu0 %v9633_v14  ;;  %v9636_v30 = vld [vmem:[#allocation43_spill] sm:$0xff] }
 0x1dc   :  { %3045 = vmatprep.mubr.bf16.mxu1 %v9621_v13  ;;  %v2154_v27 = vpop.f32.mrf.mxu0  ;;  %3767 = vmatpush1.bf16.msra.mxu0 %v6044_v20  ;;  %v6098_v14 = vld [vmem:[%s9376_s3 + $0x1e0] ss:$8 sps:$4 sm:$0xff]  }
 0x1dd   :  { %v2347_v1 = vpop.f32.mrf.mxu1  ;;  %3960 = vmatpush1.bf16.msra.mxu1 %v6089_v12  ;;  %v8311_v48 = vpack.c.bf16 %v3250_v47, %v3246_v61  ;;  %v3251_v51 = vmax.f32 %v2342_v34, 0.0  ;;  %v2346_v62 = vadd.f32 %v2345_v58, %v2153_v11  ;;  %v2155_v57 = vadd.f32 %v2154_v27, %v7961_v21  ;;  %3768 = vmatprep.subr.bf16.mxu0 %v6052_v22  ;;  %v6053_v21 = vld [vmem:[%s9376_s3 + $0xf0] ss:$8 sps:$4 sm:$0xff]   ;;  %v6100_v12 = vld [vmem:[%s9376_s3 + $0x1e4] ss:$8 sps:$4 sm:$0xff]  }
 0x1de   :  { %3961 = vmatprep.subr.bf16.mxu1 %v6094_v41  ;;  %v2156_v26 = vpop.f32.mrf.mxu0  ;;  %v9634_v22 = vld [vmem:[#allocation41_spill] sm:$0xff]  ;;  %v9635_v41 = vld [vmem:[#allocation42_spill] sm:$0xff] }
 0x1df   :  { %v2349_v33 = vpop.f32.mrf.mxu1  ;;  %v2348_v60 = vadd.f32 %v2347_v1, %v2155_v57  ;;  %v2157_v39 = vadd.f32 %v2156_v26, %v7967_v40  ;;  %v8321_v10 = vpack.c.bf16 %v3251_v51, %v3247_v54  ;;  %v6061_v40 = vld [vmem:[%s9376_s3 + $0xe4] ss:$8 sps:$4 sm:$0xff]   ;;  %v3254_v29 = vmax.f32 %v2346_v62, 0.0  ;;  %v6059_v11 = vld [vmem:[%s9376_s3 + $0xe0] ss:$8 sps:$4 sm:$0xff]  }
 0x1e0   :  { %v2158_v0 = vpop.f32.mrf.mxu0  ;;  %3769 = vmatpush1.bf16.msra.mxu0 %v6050_v49  ;;  %v6064_v49 = vld [vmem:[%s9376_s3 + $0xd4] ss:$8 sps:$4 sm:$0xff]  }
 0x1e1   :  { %v2351_v3 = vpop.f32.mrf.mxu1  ;;  %3962 = vmatpush1.bf16.msra.mxu1 %v6092_v6  ;;  %v2350_v31 = vadd.f32 %v2349_v33, %v2157_v39  ;;  %v2159_v20 = vadd.f32 %v2158_v0, %v7975_v50  ;;  %3770 = vmatprep.subr.bf16.mxu0 %v6055_v35  ;;  %v3255_v61 = vmax.f32 %v2348_v60, 0.0  ;;  %v6103_v6 = vld [vmem:[%s9376_s3 + $0x1d4] ss:$8 sps:$4 sm:$0xff]   ;;  %v6101_v60 = vld [vmem:[%s9376_s3 + $0x1d0] ss:$8 sps:$4 sm:$0xff]  }
 0x1e2   :  { %3963 = vmatprep.subr.bf16.mxu1 %v6097_v53  ;;  %v2162_v19 = vpop.f32.mrf.mxu0  ;;  %2853 = vmatmul.mubr.bf16.gmra.mxu0 %v9634_v22 }
 0x1e3   :  { %v2355_v43 = vpop.f32.mrf.mxu1  ;;  %5361 = vmatmul.mubr.msk.bf16.gmra.mxu1 %vm1573_vm0, %v9635_v41  ;;  %v3258_v58 = vmax.f32 %v2350_v31, 0.0  ;;  %v2352_v50 = vadd.f32 %v2351_v3, %v2159_v20  ;;  %v2163_v2 = vadd.f32 %v2162_v19, %v7983_v5  ;;  %2862 = vmatprep.mubr.bf16.mxu0 %v9636_v30  ;;  %v9638_v31 = vld [vmem:[#allocation45_spill] sm:$0xff] }
 0x1e4   :  { %3055 = vmatprep.mubr.bf16.mxu1 %v9621_v13  ;;  %v2164_v47 = vpop.f32.mrf.mxu0  ;;  %3771 = vmatpush2.bf16.msra.mxu0 %v6053_v21 }
 0x1e5   :  { %v2357_v34 = vpop.f32.mrf.mxu1  ;;  %3964 = vmatpush2.bf16.msra.mxu1 %v6095_v42  ;;  %v8348_v54 = vpack.c.bf16 %v3258_v58, %v3254_v29  ;;  %v3259_v5 = vmax.f32 %v2352_v50, 0.0  ;;  %v2356_v27 = vadd.f32 %v2355_v43, %v2163_v2  ;;  %v2165_v1 = vadd.f32 %v2164_v47, %v7989_v15  ;;  %3772 = vmatprep.subr.bf16.mxu0 %v6061_v40  ;;  %v6062_v15 = vld [vmem:[%s9376_s3 + $0xd0] ss:$8 sps:$4 sm:$0xff]   ;;  %v9639_v43 = vld [vmem:[#allocation46_spill] sm:$0xff]  ;;  %v6073_v58 = vld [vmem:[%s9376_s3 + $0xb4] ss:$8 sps:$4 sm:$0xff]  }
 0x1e6   :  { %3965 = vmatprep.subr.bf16.mxu1 %v6100_v12  ;;  %v2166_v51 = vpop.f32.mrf.mxu0  ;;  %v9637_v42 = vld [vmem:[#allocation44_spill] sm:$0xff]  ;;  %v6068_v29 = vld [vmem:[%s9376_s3 + $0xc0] ss:$8 sps:$4 sm:$0xff]   ;;  %v6106_v47 = vld [vmem:[%s9376_s3 + $0x1c4] ss:$8 sps:$4 sm:$0xff]  }
 0x1e7   :  { %v2359_v62 = vpop.f32.mrf.mxu1  ;;  %v2358_v57 = vadd.f32 %v2357_v34, %v2165_v1  ;;  %v2167_v35 = vadd.f32 %v2166_v51, %v7995_v18  ;;  %v8358_v53 = vpack.c.bf16 %v3259_v5, %v3255_v61  ;;  %v6070_v18 = vld [vmem:[%s9376_s3 + $0xc4] ss:$8 sps:$4 sm:$0xff]   ;;  %v3262_v20 = vmax.f32 %v2356_v27, 0.0  ;;  %v6104_v61 = vld [vmem:[%s9376_s3 + $0x1c0] ss:$8 sps:$4 sm:$0xff]  }
 0x1e8   :  { %v2168_v26 = vpop.f32.mrf.mxu0  ;;  %3773 = vmatpush2.bf16.msra.mxu0 %v6059_v11 }
 0x1e9   :  { %v2361_v33 = vpop.f32.mrf.mxu1  ;;  %3966 = vmatpush2.bf16.msra.mxu1 %v6098_v14  ;;  %v2360_v39 = vadd.f32 %v2359_v62, %v2167_v35  ;;  %v2169_v0 = vadd.f32 %v2168_v26, %v8003_v4  ;;  %3774 = vmatprep.subr.bf16.mxu0 %v6064_v49  ;;  %v3263_v4 = vmax.f32 %v2358_v57, 0.0  ;;  %v6079_v62 = vld [vmem:[%s9376_s3 + $0xa4] ss:$8 sps:$4 sm:$0xff]   ;;  %v9641_v26 = vld [vmem:[#allocation48_spill] sm:$0xff] }
 0x1ea   :  { %3967 = vmatprep.subr.bf16.mxu1 %v6103_v6  ;;  %v2172_v3 = vpop.f32.mrf.mxu0  ;;  %2863 = vmatmul.mubr.bf16.gmra.mxu0 %v9637_v42  ;;  %v9640_v35 = vld [vmem:[#allocation47_spill] sm:$0xff]  ;;  %v6082_v42 = vld [vmem:[%s9376_s3 + $0x94] ss:$8 sps:$4 sm:$0xff]  }
 0x1eb   :  { %v2365_v21 = vpop.f32.mrf.mxu1  ;;  %5362 = vmatmul.mubr.msk.bf16.gmra.mxu1 %vm1573_vm0, %v9638_v31  ;;  %v3266_v40 = vmax.f32 %v2360_v39, 0.0  ;;  %v2362_v12 = vadd.f32 %v2361_v33, %v2169_v0  ;;  %v2173_v19 = vadd.f32 %v2172_v3, %v8011_v25  ;;  %2872 = vmatprep.mubr.bf16.mxu0 %v9639_v43  ;;  %v9642_v0 = vld [vmem:[#allocation49_spill] sm:$0xff] }
 0x1ec   :  { %3065 = vmatprep.mubr.bf16.mxu1 %v9621_v13  ;;  %v2174_v22 = vpop.f32.mrf.mxu0  ;;  %3775 = vmatpush2.bf16.msra.mxu0 %v6062_v15 }
 0x1ed   :  { %v2367_v41 = vpop.f32.mrf.mxu1  ;;  %3968 = vmatpush2.bf16.msra.mxu1 %v6101_v60  ;;  %v8382_v50 = vpack.c.bf16 %v3266_v40, %v3262_v20  ;;  %v3267_v25 = vmax.f32 %v2362_v12, 0.0  ;;  %v2366_v2 = vadd.f32 %v2365_v21, %v2173_v19  ;;  %v2175_v30 = vadd.f32 %v2174_v22, %v8017_v59  ;;  %3776 = vmatprep.subr.bf16.mxu0 %v6070_v18  ;;  %v6071_v59 = vld [vmem:[%s9376_s3 + $0xb0] ss:$8 sps:$4 sm:$0xff]   ;;  %v6077_v21 = vld [vmem:[%s9376_s3 + $0xa0] ss:$8 sps:$4 sm:$0xff]  }
 0x1ee   :  { %v2176_v34 = vpop.f32.mrf.mxu0  ;;  %3969 = vmatprep.subr.bf16.mxu1 %v6106_v47  ;;  %v6107_v12 = vld [vmem:[%s9376_s3 + $0x1b0] ss:$8 sps:$4 sm:$0xff]   ;;  %v6109_v19 = vld [vmem:[%s9376_s3 + $0x1b4] ss:$8 sps:$4 sm:$0xff]   ;;  %v6088_v47 = vld [vmem:[%s9376_s3 + $0x84] ss:$8 sps:$4 sm:$0xff]  }
 0x1ef   :  { %v2369_v11 = vpop.f32.mrf.mxu1  ;;  %v2368_v14 = vadd.f32 %v2367_v41, %v2175_v30  ;;  %v2177_v5 = vadd.f32 %v2176_v34, %v8023_v36  ;;  %v8392_v27 = vpack.c.bf16 %v3267_v25, %v3263_v4  ;;  %v3270_v33 = vmax.f32 %v2366_v2, 0.0  ;;  %v9643_v30 = vld [vmem:[#allocation97_spill] sm:$0xff] }
 0x1f0   :  { %v2178_v1 = vpop.f32.mrf.mxu0  ;;  %3777 = vmatpush2.bf16.msra.mxu0 %v6068_v29 }
 0x1f1   :  { %v2371_v49 = vpop.f32.mrf.mxu1  ;;  %3970 = vmatpush2.bf16.msra.mxu1 %v6104_v61  ;;  %v2370_v6 = vadd.f32 %v2369_v11, %v2177_v5  ;;  %v2179_v51 = vadd.f32 %v2178_v1, %v8031_v24  ;;  %3778 = vmatprep.subr.bf16.mxu0 %v6073_v58  ;;  %v3271_v24 = vmax.f32 %v2368_v14, 0.0  ;;  %v9644_v11 = vld [vmem:[#allocation50_spill] sm:$0xff]  ;;  %v9645_v14 = vld [vmem:[#allocation51_spill] sm:$0xff]  ;;  %v9646_v5 = vld [vmem:[#allocation53_spill] sm:$0xff] }
 0x1f2   :  { %v2182_v36 = vpop.f32.mrf.mxu0  ;;  %2873 = vmatmul.mubr.bf16.gmra.mxu0 %v9640_v35  ;;  %3971 = vmatprep.subr.bf16.mxu1 %v6109_v19  ;;  %v583_v1 = vsub.s32 2, %v9646_v5  ;;  %v6147_v19 = vld [vmem:[%s9375_s2] sm:$0xf] }
 0x1f3   :  { %v2375_v57 = vpop.f32.mrf.mxu1  ;;  %5363 = vmatmul.mubr.msk.bf16.gmra.mxu1 %vm1573_vm0, %v9641_v26  ;;  %v3274_v15 = vmax.f32 %v2370_v6, 0.0  ;;  %v2372_v60 = vadd.f32 %v2371_v49, %v2179_v51  ;;  %v2183_v39 = vadd.f32 %v2182_v36, %v8039_v45  ;;  %2882 = vmatprep.mubr.bf16.mxu0 %v9642_v0  ;;  %v9647_v51 = vld [vmem:[#allocation98_spill] sm:$0xff]  ;;  %v9648_v36 = vld [vmem:[#allocation52_spill] sm:$0xff] }
 0x1f4   :  { %3075 = vmatprep.mubr.bf16.mxu1 %v9621_v13  ;;  %v2184_v18 = vpop.f32.mrf.mxu0  ;;  %3779 = vmatpush2.bf16.msra.mxu0 %v6071_v59 }
 0x1f5   :  { %v2377_v3 = vpop.f32.mrf.mxu1  ;;  %v8413_v31 = vpack.c.bf16 %v3274_v15, %v3270_v33  ;;  %v3275_v20 = vmax.f32 %v2372_v60, 0.0  ;;  %v2376_v45 = vadd.f32 %v2375_v57, %v2183_v39  ;;  %v2185_v40 = vadd.f32 %v2184_v18, %v8045_v28  ;;  %3780 = vmatprep.subr.bf16.mxu0 %v6079_v62  ;;  %v6080_v28 = vld [vmem:[%s9376_s3 + $0x90] ss:$8 sps:$4 sm:$0xff]   ;;  %3972 = vmatpush2.bf16.msra.mxu1 %v6107_v12  ;;  %v6086_v15 = vld [vmem:[%s9376_s3 + $0x80] ss:$8 sps:$4 sm:$0xff]  }
 0x1f6   :  { %v2186_v43 = vpop.f32.mrf.mxu0  ;;  %v587_v33 = vsub.s32 3, %v9646_v5 }
 0x1f7   :  { %v2379_v4 = vpop.f32.mrf.mxu1  ;;  %v2378_v22 = vadd.f32 %v2377_v3, %v2185_v40  ;;  %v2187_v41 = vadd.f32 %v2186_v43, %v8051_v52  ;;  %v8423_v29 = vpack.c.bf16 %v3275_v20, %v3271_v24  ;;  %v3278_v49 = vmax.f32 %v2376_v45, 0.0  ;;  %v9650_v24 = vld [vmem:[#allocation99_spill] sm:$0xff]  ;;  %v9651_v40 = vld [vmem:[#allocation100_spill] sm:$0xff] }
 0x1f8   :  { %v2188_v58 = vpop.f32.mrf.mxu0  ;;  %3781 = vmatpush2.bf16.msra.mxu0 %v6077_v21  ;;  %v6110_v3 = vld [vmem:[%s9376_s3 + $0x1a0] ss:$8 sps:$4 sm:$0xff]   ;;  %v6112_v21 = vld [vmem:[%s9376_s3 + $0x1a4] ss:$8 sps:$4 sm:$0xff]   ;;  %v8456_v43 = vrot.slane %v6147_v19, %v583_v1 }
 0x1f9   :  { %v2381_v25 = vpop.f32.mrf.mxu1  ;;  %v2380_v2 = vadd.f32 %v2379_v4, %v2187_v41  ;;  %v2189_v61 = vadd.f32 %v2188_v58, %v9643_v30  ;;  %3782 = vmatprep.subr.bf16.mxu0 %v6082_v42  ;;  %v3279_v57 = vmax.f32 %v2378_v22, 0.0  ;;  %3973 = vmatprep.subr.bf16.mxu1 %v6112_v21  ;;  %v6113_v21 = vld [vmem:[%s9376_s3 + $0x190] ss:$8 sps:$4 sm:$0xff]  }
 0x1fa   :  { %v2192_v52 = vpop.f32.mrf.mxu0  ;;  %2883 = vmatmul.mubr.bf16.gmra.mxu0 %v9644_v11  ;;  %3974 = vmatpush2.bf16.msra.mxu1 %v6110_v3 }
 0x1fb   :  { %v2385_v34 = vpop.f32.mrf.mxu1  ;;  %5364 = vmatmul.mubr.msk.bf16.gmra.mxu1 %vm1573_vm0, %v9645_v14  ;;  %v3282_v59 = vmax.f32 %v2380_v2, 0.0  ;;  %v2382_v6 = vadd.f32 %v2381_v25, %v2189_v61  ;;  %v2193_v62 = vadd.f32 %v2192_v52, %v9647_v51  ;;  %2892 = vmatprep.mubr.bf16.mxu0 %v9648_v36  ;;  %v9652_v25 = vld [vmem:[#allocation101_spill] sm:$0xff]  ;;  %v8461_v2 = vrot.slane %v6147_v19, %v587_v33  ;;  %v9654_v52 = vld [vmem:[#allocation55_spill] sm:$0xff]  ;;  %v9659_v19 = vld [vmem:[#allocation58_spill] sm:$0xff] }
 0x1fc   :  { %3085 = vmatprep.mubr.bf16.mxu1 %v9621_v13  ;;  %v2194_v35 = vpop.f32.mrf.mxu0  ;;  %3783 = vmatpush2.bf16.msra.mxu0 %v6080_v28 }
 0x1fd   :  { %v2387_v26 = vpop.f32.mrf.mxu1  ;;  %v8443_v60 = vpack.c.bf16 %v3282_v59, %v3278_v49  ;;  %v3283_v39 = vmax.f32 %v2382_v6, 0.0  ;;  %v2386_v0 = vadd.f32 %v2385_v34, %v2193_v62  ;;  %v2195_v18 = vadd.f32 %v2194_v35, %v9650_v24  ;;  %3784 = vmatprep.subr.bf16.mxu0 %v6088_v47  ;;  %v9653_v47 = vld [vmem:[#allocation54_spill] sm:$0xff]  ;;  %v9655_v49 = vld [vmem:[#allocation56_spill] sm:$0xff] }
 0x1fe   :  { %v2196_v42 = vpop.f32.mrf.mxu0 }
 0x1ff   :  { %9649 = vst [vmem:[#allocation4_spill] sm:$0xff] %v8443_v60  ;;  %v2389_v20 = vpop.f32.mrf.mxu1  ;;  %v2388_v45 = vadd.f32 %v2387_v26, %v2195_v18  ;;  %v2197_v12 = vadd.f32 %v2196_v42, %v9651_v40  ;;  %v8458_v4 = vpack.c.bf16 %v3283_v39, %v3279_v57  ;;  %v3286_v34 = vmax.f32 %v2386_v0, 0.0  ;;  %v6115_v0 = vld [vmem:[%s9376_s3 + $0x194] ss:$8 sps:$4 sm:$0xff]  }
 0x200   :  { %v2198_v22 = vpop.f32.mrf.mxu0  ;;  %3785 = vmatpush2.bf16.msra.mxu0 %v6086_v15  ;;  %3975 = vmatprep.subr.bf16.mxu1 %v6115_v0 }
 0x201   :  { %v2391_v41 = vpop.f32.mrf.mxu1  ;;  %v2390_v58 = vadd.f32 %v2389_v20, %v2197_v12  ;;  %v2199_v28 = vadd.f32 %v2198_v22, %v9652_v25  ;;  %v3287_v59 = vmax.f32 %v2388_v45, 0.0  ;;  %v9658_v12 = vld [vmem:[#allocation57_spill] sm:$0xff]  ;;  %3976 = vmatpush2.bf16.msra.mxu1 %v6113_v21 }
 0x202   :  { %v2428_v30 = vpop.f32.mrf.mxu0  ;;  %2893 = vmatmul.mubr.bf16.gmra.mxu0 %v9653_v47 }
 0x203   :  { %v2621_v61 = vpop.f32.mrf.mxu1  ;;  %5365 = vmatmul.mubr.msk.bf16.gmra.mxu1 %vm1573_vm0, %v9654_v52  ;;  %v3290_v11 = vmax.f32 %v2390_v58, 0.0  ;;  %v2392_v14 = vadd.f32 %v2391_v41, %v2199_v28  ;;  %v2429_v1 = vadd.f32 %v2428_v30, %v8456_v43  ;;  %2902 = vmatprep.mubr.bf16.mxu0 %v9655_v49  ;;  %v9660_v58 = vld [vmem:[#allocation60_spill] sm:$0xff]  ;;  %v6118_v30 = vld [vmem:[%s9376_s3 + $0x184] ss:$8 sps:$4 sm:$0xff]   ;;  %v6116_v52 = vld [vmem:[%s9376_s3 + $0x180] ss:$8 sps:$4 sm:$0xff]  }
 0x204   :  { %3095 = vmatprep.mubr.bf16.mxu1 %v9621_v13  ;;  %v2430_v6 = vpop.f32.mrf.mxu0  ;;  %3977 = vmatprep.subr.bf16.mxu1 %v6118_v30 }
 0x205   :  { %v2623_v51 = vpop.f32.mrf.mxu1  ;;  %v8469_v62 = vpack.c.bf16 %v3290_v11, %v3286_v34  ;;  %v3291_v36 = vmax.f32 %v2392_v14, 0.0  ;;  %v8471_v57 = vadd.f32 %v2621_v61, %v2429_v1  ;;  %v2431_v35 = vadd.f32 %v2430_v6, %v8461_v2  ;;  %3978 = vmatpush2.bf16.msra.mxu1 %v6116_v52 }
 0x206   :  { %v2432_v26 = vpop.f32.mrf.mxu0 }
 0x207   :  { %9656 = vst [vmem:[#allocation5_spill] sm:$0xff] %v8469_v62  ;;  %v2625_v33 = vpop.f32.mrf.mxu1  ;;  %v8474_v15 = vadd.f32 %v2623_v51, %v2431_v35  ;;  %v2433_v39 = vadd.f32 %v2432_v26, %v8456_v43  ;;  %v8480_v24 = vpack.c.bf16 %v3291_v36, %v3287_v59  ;;  %v9661_v26 = vld [vmem:[#allocation64_spill] sm:$0xff] }
 0x208   :  { %v2434_v18 = vpop.f32.mrf.mxu0 }
 0x209   :  { %9657 = vst [vmem:[#allocation66_spill] sm:$0xff] %v8480_v24  ;;  %v2627_v3 = vpop.f32.mrf.mxu1  ;;  %v8485_v42 = vadd.f32 %v2625_v33, %v2433_v39  ;;  %v2435_v20 = vadd.f32 %v2434_v18, %v8461_v2  ;;  %v9662_v33 = vld [vmem:[#allocation65_spill] sm:$0xff]  ;;  %v9663_v18 = vld [vmem:[#allocation67_spill] sm:$0xff] }
 0x20a   :  { %v2438_v45 = vpop.f32.mrf.mxu0  ;;  %2903 = vmatmul.mubr.bf16.gmra.mxu0 %v9658_v12  ;;  %v9676_v24 = vld [vmem:[#allocation91_spill] sm:$0xff] }
 0x20b   :  { %v2631_v40 = vpop.f32.mrf.mxu1  ;;  %5366 = vmatmul.mubr.msk.bf16.gmra.mxu1 %vm1573_vm0, %v9659_v19  ;;  %v8491_v22 = vadd.f32 %v2627_v3, %v2435_v20  ;;  %v2439_v41 = vadd.f32 %v2438_v45, %v8456_v43  ;;  %2912 = vmatprep.mubr.bf16.mxu0 %v9660_v58 }
 0x20c   :  { %3105 = vmatprep.mubr.bf16.mxu1 %v9621_v13  ;;  %v2440_v25 = vpop.f32.mrf.mxu0 }
 0x20d   :  { %v2633_v28 = vpop.f32.mrf.mxu1  ;;  %v8499_v61 = vadd.f32 %v2631_v40, %v2439_v41  ;;  %v2441_v47 = vadd.f32 %v2440_v25, %v8461_v2 }
 0x20e   :  { %v2442_v34 = vpop.f32.mrf.mxu0 }
 0x20f   :  { %v2635_v11 = vpop.f32.mrf.mxu1  ;;  %v8505_v14 = vadd.f32 %v2633_v28, %v2441_v47  ;;  %v2443_v1 = vadd.f32 %v2442_v34, %v8456_v43  ;;  %v9664_v34 = vld [vmem:[#allocation71_spill] sm:$0xff] }
 0x210   :  { %v2444_v49 = vpop.f32.mrf.mxu0 }
 0x211   :  { %v2637_v59 = vpop.f32.mrf.mxu1  ;;  %v8508_v6 = vadd.f32 %v2635_v11, %v2443_v1  ;;  %v2445_v51 = vadd.f32 %v2444_v49, %v8461_v2  ;;  %v9665_v11 = vld [vmem:[#allocation72_spill] sm:$0xff] }
 0x212   :  { %v2448_v36 = vpop.f32.mrf.mxu0  ;;  %2913 = vmatmul.mubr.bf16.gmra.mxu0 %v9661_v26 }
 0x213   :  { %v2641_v35 = vpop.f32.mrf.mxu1  ;;  %5367 = vmatmul.mubr.msk.bf16.gmra.mxu1 %vm1573_vm0, %v9662_v33  ;;  %v8514_v39 = vadd.f32 %v2637_v59, %v2445_v51  ;;  %v2449_v0 = vadd.f32 %v2448_v36, %v8456_v43  ;;  %2922 = vmatprep.mubr.bf16.mxu0 %v9663_v18  ;;  %v9666_v59 = vld [vmem:[#allocation74_spill] sm:$0xff] }
 0x214   :  { %3115 = vmatprep.mubr.bf16.mxu1 %v9621_v13  ;;  %v2450_v3 = vpop.f32.mrf.mxu0 }
 0x215   :  { %v2643_v21 = vpop.f32.mrf.mxu1  ;;  %v8519_v20 = vadd.f32 %v2641_v35, %v2449_v0  ;;  %v2451_v45 = vadd.f32 %v2450_v3, %v8461_v2 }
 0x216   :  { %v2452_v40 = vpop.f32.mrf.mxu0 }
 0x217   :  { %v2645_v12 = vpop.f32.mrf.mxu1  ;;  %v8522_v19 = vadd.f32 %v2643_v21, %v2451_v45  ;;  %v2453_v41 = vadd.f32 %v2452_v40, %v8456_v43 }
 0x218   :  { %v2454_v58 = vpop.f32.mrf.mxu0 }
 0x219   :  { %v2647_v25 = vpop.f32.mrf.mxu1  ;;  %v8525_v28 = vadd.f32 %v2645_v12, %v2453_v41  ;;  %v2455_v30 = vadd.f32 %v2454_v58, %v8461_v2 }
 0x21a   :  { %v2458_v47 = vpop.f32.mrf.mxu0  ;;  %2923 = vmatmul.mubr.bf16.gmra.mxu0 %v9664_v34  ;;  %v9669_v34 = vld [vmem:[#allocation81_spill] sm:$0xff] }
 0x21b   :  { %v2651_v52 = vpop.f32.mrf.mxu1  ;;  %5368 = vmatmul.mubr.msk.bf16.gmra.mxu1 %vm1573_vm0, %v9665_v11  ;;  %v8531_v1 = vadd.f32 %v2647_v25, %v2455_v30  ;;  %v2459_v49 = vadd.f32 %v2458_v47, %v8456_v43  ;;  %2932 = vmatprep.mubr.bf16.mxu0 %v9666_v59  ;;  %v9667_v25 = vld [vmem:[#allocation78_spill] sm:$0xff]  ;;  %v9668_v30 = vld [vmem:[#allocation79_spill] sm:$0xff] }
 0x21c   :  { %3125 = vmatprep.mubr.bf16.mxu1 %v9621_v13  ;;  %v2460_v51 = vpop.f32.mrf.mxu0 }
 0x21d   :  { %v2653_v36 = vpop.f32.mrf.mxu1  ;;  %v8536_v35 = vadd.f32 %v2651_v52, %v2459_v49  ;;  %v2461_v26 = vadd.f32 %v2460_v51, %v8461_v2 }
 0x21e   :  { %v2462_v33 = vpop.f32.mrf.mxu0 }
 0x21f   :  { %v2655_v0 = vpop.f32.mrf.mxu1  ;;  %v8539_v18 = vadd.f32 %v2653_v36, %v2461_v26  ;;  %v2463_v3 = vadd.f32 %v2462_v33, %v8456_v43 }
 0x220   :  { %v2464_v21 = vpop.f32.mrf.mxu0 }
 0x221   :  { %v2657_v45 = vpop.f32.mrf.mxu1  ;;  %v8542_v40 = vadd.f32 %v2655_v0, %v2463_v3  ;;  %v2465_v12 = vadd.f32 %v2464_v21, %v8461_v2 }
 0x222   :  { %v2468_v41 = vpop.f32.mrf.mxu0  ;;  %2933 = vmatmul.mubr.bf16.gmra.mxu0 %v9667_v25  ;;  %v9670_v25 = vld [vmem:[#allocation85_spill] sm:$0xff] }
 0x223   :  { %v2661_v58 = vpop.f32.mrf.mxu1  ;;  %5369 = vmatmul.mubr.msk.bf16.gmra.mxu1 %vm1573_vm0, %v9668_v30  ;;  %v8548_v47 = vadd.f32 %v2657_v45, %v2465_v12  ;;  %v2469_v52 = vadd.f32 %v2468_v41, %v8456_v43  ;;  %2942 = vmatprep.mubr.bf16.mxu0 %v9669_v34 }
 0x224   :  { %3135 = vmatprep.mubr.bf16.mxu1 %v9621_v13  ;;  %v2470_v11 = vpop.f32.mrf.mxu0 }
 0x225   :  { %v2663_v49 = vpop.f32.mrf.mxu1  ;;  %v8553_v59 = vadd.f32 %v2661_v58, %v2469_v52  ;;  %v2471_v51 = vadd.f32 %v2470_v11, %v8461_v2  ;;  %v9671_v58 = vld [vmem:[#allocation86_spill] sm:$0xff]  ;;  %v9672_v52 = vld [vmem:[#allocation88_spill] sm:$0xff] }
 0x226   :  { %v2472_v36 = vpop.f32.mrf.mxu0 }
 0x227   :  { %v2665_v26 = vpop.f32.mrf.mxu1  ;;  %v8556_v33 = vadd.f32 %v2663_v49, %v2471_v51  ;;  %v2473_v0 = vadd.f32 %v2472_v36, %v8456_v43 }
 0x228   :  { %v8559_v3 = vpop.f32.mrf.mxu0 }
 0x229   :  { %v8561_v21 = vpop.f32.mrf.mxu1  ;;  %v8563_v45 = vadd.f32 %v2665_v26, %v2473_v0 }
 0x22a   :  { %v2478_v12 = vpop.f32.mrf.mxu0  ;;  %2943 = vmatmul.mubr.bf16.gmra.mxu0 %v9670_v25 }
 0x22b   :  { %v2671_v41 = vpop.f32.mrf.mxu1  ;;  %5370 = vmatmul.mubr.msk.bf16.gmra.mxu1 %vm1573_vm0, %v9671_v58  ;;  %v2479_v30 = vadd.f32 %v2478_v12, %v8456_v43  ;;  %2952 = vmatprep.mubr.bf16.mxu0 %v9672_v52 }
 0x22c   :  { %3145 = vmatprep.mubr.bf16.mxu1 %v9621_v13  ;;  %v2480_v34 = vpop.f32.mrf.mxu0 }
 0x22d   :  { %v2673_v11 = vpop.f32.mrf.mxu1  ;;  %v8571_v49 = vadd.f32 %v2671_v41, %v2479_v30  ;;  %v2481_v51 = vadd.f32 %v2480_v34, %v8461_v2  ;;  %v9677_v41 = vld [vmem:[#allocation92_spill] sm:$0xff]  ;;  %v9678_v34 = vld [vmem:[#allocation93_spill] sm:$0xff] }
 0x22e   :  { %v2482_v36 = vpop.f32.mrf.mxu0 }
 0x22f   :  { %v2675_v26 = vpop.f32.mrf.mxu1  ;;  %v8574_v0 = vadd.f32 %v2673_v11, %v2481_v51  ;;  %v2483_v25 = vadd.f32 %v2482_v36, %v8456_v43 }
 0x230   :  { %v8577_v5 = vpop.f32.mrf.mxu0 }
 0x231   :  { %9673 = vst [vmem:[#allocation68_spill] sm:$0xff] %v8574_v0  ;;  %v8579_v58 = vpop.f32.mrf.mxu1  ;;  %v8581_v12 = vadd.f32 %v2675_v26, %v2483_v25  ;;  %v9684_v0 = vld [vmem:[#allocation95_spill] sm:$0xff] }
 0x232   :  { %9674 = vst [vmem:[#allocation69_spill] sm:$0xff] %v8579_v58  ;;  %v2488_v52 = vpop.f32.mrf.mxu0  ;;  %2953 = vmatmul.mubr.bf16.gmra.mxu0 %v9676_v24 }
 0x233   :  { %9675 = vst [vmem:[#allocation6_spill] sm:$0xff] %v8581_v12  ;;  %v2681_v62 = vpop.f32.mrf.mxu1  ;;  %5371 = vmatmul.mubr.msk.bf16.gmra.mxu1 %vm1573_vm0, %v9677_v41  ;;  %v2489_v30 = vadd.f32 %v2488_v52, %v8456_v43  ;;  %2962 = vmatprep.mubr.bf16.mxu0 %v9678_v34 }
 0x234   :  { %3155 = vmatprep.mubr.bf16.mxu1 %v9621_v13  ;;  %v2490_v11 = vpop.f32.mrf.mxu0 }
 0x235   :  { %v2683_v51 = vpop.f32.mrf.mxu1  ;;  %v8589_v36 = vadd.f32 %v2681_v62, %v2489_v30  ;;  %v2491_v26 = vadd.f32 %v2490_v11, %v8461_v2  ;;  %v9685_v62 = vld [vmem:[#allocation96_spill] sm:$0xff]  ;;  %v9686_v11 = vld [vmem:[#allocation61_spill] sm:$0xff] }
 0x236   :  { %v2492_v25 = vpop.f32.mrf.mxu0 }
 0x237   :  { %9679 = vst [vmem:[#allocation7_spill] sm:$0xff] %v8589_v36  ;;  %v2685_v60 = vpop.f32.mrf.mxu1  ;;  %v8592_v12 = vadd.f32 %v2683_v51, %v2491_v26  ;;  %v2493_v24 = vadd.f32 %v2492_v25, %v8456_v43 }
 0x238   :  { %v8595_v58 = vpop.f32.mrf.mxu0 }
 0x239   :  { %9680 = vst [vmem:[#allocation70_spill] sm:$0xff] %v8592_v12  ;;  %9681 = vst [vmem:[#allocation8_spill] sm:$0xff] %v8595_v58  ;;  %v8597_v41 = vpop.f32.mrf.mxu1  ;;  %v8599_v52 = vadd.f32 %v2685_v60, %v2493_v24  ;;  %v9692_v58 = vld [vmem:[#allocation59_spill] sm:$0xff] }
 0x23a   :  { %9682 = vst [vmem:[#allocation9_spill] sm:$0xff] %v8597_v41  ;;  %v2498_v34 = vpop.f32.mrf.mxu0  ;;  %2963 = vmatmul.mubr.bf16.gmra.mxu0 %v9684_v0 }
 0x23b   :  { %9683 = vst [vmem:[#allocation73_spill] sm:$0xff] %v8599_v52  ;;  %v2691_v13 = vpop.f32.mrf.mxu1  ;;  %5372 = vmatmul.mubr.msk.bf16.gmra.mxu1 %vm1573_vm0, %v9685_v62  ;;  %v2499_v30 = vadd.f32 %v2498_v34, %v8456_v43  ;;  %3786 = vmatprep.mubr.bf16.mxu0 %v9686_v11 }
 0x23c   :  { %v2500_v51 = vpop.f32.mrf.mxu0 }
 0x23d   :  { %v2693_v26 = vpop.f32.mrf.mxu1  ;;  %v8606_v25 = vadd.f32 %v2691_v13, %v2499_v30  ;;  %v2501_v12 = vadd.f32 %v2500_v51, %v8461_v2  ;;  %v9693_v30 = vld [vmem:[#allocation2_spill] sm:$0xff] }
 0x23e   :  { %v2502_v41 = vpop.f32.mrf.mxu0 }
 0x23f   :  { %9687 = vst [vmem:[#allocation75_spill] sm:$0xff] %v8606_v25  ;;  %v2695_v60 = vpop.f32.mrf.mxu1  ;;  %v8609_v24 = vadd.f32 %v2693_v26, %v2501_v12  ;;  %v2503_v52 = vadd.f32 %v2502_v41, %v8456_v43 }
 0x240   :  { %v8612_v0 = vpop.f32.mrf.mxu0 }
 0x241   :  { %9688 = vst [vmem:[#allocation76_spill] sm:$0xff] %v8609_v24  ;;  %9689 = vst [vmem:[#allocation10_spill] sm:$0xff] %v8612_v0  ;;  %v8614_v36 = vpop.f32.mrf.mxu1  ;;  %v8616_v62 = vadd.f32 %v2695_v60, %v2503_v52 }
 0x242   :  { %9690 = vst [vmem:[#allocation11_spill] sm:$0xff] %v8614_v36  ;;  %v2508_v34 = vpop.f32.mrf.mxu0  ;;  %3787 = vmatmul.mubr.bf16.vlgmr.msra.gmra.mxu0 %v9692_v58  ;;  %v9699_v36 = vld [vmem:[#allocation62_spill] sm:$0xff] }
 0x243   :  { %9691 = vst [vmem:[#allocation77_spill] sm:$0xff] %v8616_v62  ;;  %v2701_v11 = vpop.f32.mrf.mxu1  ;;  %v2509_v13 = vadd.f32 %v2508_v34, %v8456_v43  ;;  %3796 = vmatprep.mubr.bf16.mxu0 %v9693_v30 }
 0x244   :  { %v2510_v51 = vpop.f32.mrf.mxu0 }
 0x245   :  { %v2703_v25 = vpop.f32.mrf.mxu1  ;;  %v8621_v12 = vadd.f32 %v2701_v11, %v2509_v13  ;;  %v2511_v41 = vadd.f32 %v2510_v51, %v8461_v2  ;;  %v9700_v13 = vld [vmem:[#allocation63_spill] sm:$0xff] }
 0x246   :  { %v2512_v26 = vpop.f32.mrf.mxu0 }
 0x247   :  { %9694 = vst [vmem:[#allocation12_spill] sm:$0xff] %v8621_v12  ;;  %v2705_v24 = vpop.f32.mrf.mxu1  ;;  %v8624_v0 = vadd.f32 %v2703_v25, %v2511_v41  ;;  %v2513_v52 = vadd.f32 %v2512_v26, %v8456_v43 }
 0x248   :  { %v8627_v60 = vpop.f32.mrf.mxu0 }
 0x249   :  { %9695 = vst [vmem:[#allocation13_spill] sm:$0xff] %v8624_v0  ;;  %9696 = vst [vmem:[#allocation80_spill] sm:$0xff] %v8627_v60  ;;  %v8629_v62 = vpop.f32.mrf.mxu1  ;;  %v8631_v58 = vadd.f32 %v2705_v24, %v2513_v52 }
 0x24a   :  { %9697 = vst [vmem:[#allocation82_spill] sm:$0xff] %v8629_v62  ;;  %v2518_v34 = vpop.f32.mrf.mxu0  ;;  %3797 = vmatmul.mubr.bf16.gmra.mxu0 %v9699_v36  ;;  %v9704_v62 = vld [vmem:[#allocation3_spill] sm:$0xff] }
 0x24b   :  { %9698 = vst [vmem:[#allocation83_spill] sm:$0xff] %v8631_v58  ;;  %v2711_v30 = vpop.f32.mrf.mxu1  ;;  %v2519_v11 = vadd.f32 %v2518_v34, %v8456_v43  ;;  %3806 = vmatprep.mubr.bf16.mxu0 %v9700_v13 }
 0x24c   :  { %v2520_v51 = vpop.f32.mrf.mxu0 }
 0x24d   :  { %v2713_v12 = vpop.f32.mrf.mxu1  ;;  %v8636_v25 = vadd.f32 %v2711_v30, %v2519_v11  ;;  %v2521_v41 = vadd.f32 %v2520_v51, %v8461_v2 }
 0x24e   :  { %v2522_v26 = vpop.f32.mrf.mxu0 }
 0x24f   :  { %9701 = vst [vmem:[#allocation14_spill] sm:$0xff] %v8636_v25  ;;  %v2715_v0 = vpop.f32.mrf.mxu1  ;;  %v8639_v60 = vadd.f32 %v2713_v12, %v2521_v41  ;;  %v2523_v24 = vadd.f32 %v2522_v26, %v8456_v43 }
 0x250   :  { %v8642_v52 = vpop.f32.mrf.mxu0 }
 0x251   :  { %9702 = vst [vmem:[#allocation15_spill] sm:$0xff] %v8639_v60  ;;  %v8644_v58 = vpop.f32.mrf.mxu1  ;;  %v8646_v36 = vadd.f32 %v2715_v0, %v2523_v24 }
 0x252   :  { %v2528_v34 = vpop.f32.mrf.mxu0  ;;  %3807 = vmatmul.mubr.bf16.gmra.mxu0 %v9704_v62 }
 0x253   :  { %9703 = vst [vmem:[#allocation84_spill] sm:$0xff] %v8646_v36  ;;  %v2721_v13 = vpop.f32.mrf.mxu1  ;;  %v2529_v30 = vadd.f32 %v2528_v34, %v8456_v43  ;;  %3816 = vmatprep.mubr.bf16.mxu0 %v8137_v7 }
 0x254   :  { %v2530_v11 = vpop.f32.mrf.mxu0 }
 0x255   :  { %v2723_v51 = vpop.f32.mrf.mxu1  ;;  %v8651_v12 = vadd.f32 %v2721_v13, %v2529_v30  ;;  %v2531_v41 = vadd.f32 %v2530_v11, %v8461_v2 }
 0x256   :  { %v2532_v26 = vpop.f32.mrf.mxu0 }
 0x257   :  { %9705 = vst [vmem:[#allocation16_spill] sm:$0xff] %v8651_v12  ;;  %v2725_v60 = vpop.f32.mrf.mxu1  ;;  %v8654_v25 = vadd.f32 %v2723_v51, %v2531_v41  ;;  %v2533_v0 = vadd.f32 %v2532_v26, %v8456_v43 }
 0x258   :  { %v8657_v24 = vpop.f32.mrf.mxu0 }
 0x259   :  { %9706 = vst [vmem:[#allocation17_spill] sm:$0xff] %v8654_v25  ;;  %v8659_v36 = vpop.f32.mrf.mxu1  ;;  %v8661_v62 = vadd.f32 %v2725_v60, %v2533_v0 }
 0x25a   :  { %v2538_v34 = vpop.f32.mrf.mxu0  ;;  %3817 = vmatmul.mubr.bf16.gmra.mxu0 %v8133_v16 }
 0x25b   :  { %9707 = vst [vmem:[#allocation87_spill] sm:$0xff] %v8661_v62  ;;  %v2731_v7 = vpop.f32.mrf.mxu1  ;;  %v2539_v13 = vadd.f32 %v2538_v34, %v8456_v43  ;;  %3826 = vmatprep.mubr.bf16.mxu0 %v8149_v56 }
 0x25c   :  { %v2540_v30 = vpop.f32.mrf.mxu0 }
 0x25d   :  { %v2733_v11 = vpop.f32.mrf.mxu1  ;;  %v8666_v51 = vadd.f32 %v2731_v7, %v2539_v13  ;;  %v2541_v41 = vadd.f32 %v2540_v30, %v8461_v2 }
 0x25e   :  { %v2542_v26 = vpop.f32.mrf.mxu0 }
 0x25f   :  { %v2735_v25 = vpop.f32.mrf.mxu1  ;;  %v8669_v12 = vadd.f32 %v2733_v11, %v2541_v41  ;;  %v2543_v60 = vadd.f32 %v2542_v26, %v8456_v43 }
 0x260   :  { %v8672_v0 = vpop.f32.mrf.mxu0 }
 0x261   :  { %9708 = vst [vmem:[#allocation89_spill] sm:$0xff] %v8669_v12  ;;  %v8674_v62 = vpop.f32.mrf.mxu1  ;;  %v8676_v16 = vadd.f32 %v2735_v25, %v2543_v60  ;;  %v6119_v25 = vld [vmem:[%s9377_s5 + $0x78] sm:$0xff]  }
 0x262   :  { %v2548_v34 = vpop.f32.mrf.mxu0  ;;  %3827 = vmatmul.mubr.bf16.gmra.mxu0 %v8145_v55  ;;  %5484 = vmatprep.subr.bf16.mxu0 %v6119_v25 }
 0x263   :  { %9709 = vst [vmem:[#allocation90_spill] sm:$0xff] %v8676_v16  ;;  %v2741_v56 = vpop.f32.mrf.mxu1  ;;  %v2549_v7 = vadd.f32 %v2548_v34, %v8456_v43  ;;  %3836 = vmatprep.mubr.bf16.mxu0 %v8161_v37  ;;  %v6120_v37 = vld [vmem:[%s9377_s5 + $0x38] sm:$0xff]  }
 0x264   :  { %v2550_v13 = vpop.f32.mrf.mxu0  ;;  %5485 = vmatpush3.bf16.msra.mxu0 %v6120_v37 }
 0x265   :  { %v2743_v30 = vpop.f32.mrf.mxu1  ;;  %v8681_v11 = vadd.f32 %v2741_v56, %v2549_v7  ;;  %v2551_v41 = vadd.f32 %v2550_v13, %v8461_v2 }
 0x266   :  { %v2552_v26 = vpop.f32.mrf.mxu0 }
 0x267   :  { %9710 = vst [vmem:[#allocation18_spill] sm:$0xff] %v8681_v11  ;;  %v2745_v12 = vpop.f32.mrf.mxu1  ;;  %v8687_v60 = vadd.f32 %v2743_v30, %v2551_v41  ;;  %v2553_v55 = vadd.f32 %v2552_v26, %v8456_v43 }
 0x268   :  { %v8693_v34 = vpop.f32.mrf.mxu0 }
 0x269   :  { %9711 = vst [vmem:[#allocation19_spill] sm:$0xff] %v8687_v60  ;;  %9712 = vst [vmem:[#allocation20_spill] sm:$0xff] %v8693_v34  ;;  %v8695_v56 = vpop.f32.mrf.mxu1  ;;  %v8697_v7 = vadd.f32 %v2745_v12, %v2553_v55 }
 0x26a   :  { %9713 = vst [vmem:[#allocation21_spill] sm:$0xff] %v8695_v56  ;;  %v2558_v13 = vpop.f32.mrf.mxu0  ;;  %3837 = vmatmul.mubr.bf16.gmra.mxu0 %v8157_v63 }
 0x26b   :  { %v2751_v11 = vpop.f32.mrf.mxu1  ;;  %v2559_v30 = vadd.f32 %v2558_v13, %v8456_v43  ;;  %3846 = vmatprep.mubr.bf16.mxu0 %v8173_v32 }
 0x26c   :  { %v2560_v41 = vpop.f32.mrf.mxu0 }
 0x26d   :  { %v2753_v26 = vpop.f32.mrf.mxu1  ;;  %v8702_v60 = vadd.f32 %v2751_v11, %v2559_v30  ;;  %v2561_v34 = vadd.f32 %v2560_v41, %v8461_v2 }
 0x26e   :  { %v2562_v16 = vpop.f32.mrf.mxu0 }
 0x26f   :  { %v2755_v56 = vpop.f32.mrf.mxu1  ;;  %v8705_v25 = vadd.f32 %v2753_v26, %v2561_v34  ;;  %v2563_v12 = vadd.f32 %v2562_v16, %v8456_v43  ;;  %v6121_v26 = vld [vmem:[%s9377_s5 + $0x70] sm:$0xff]  }
 0x270   :  { %v8708_v55 = vpop.f32.mrf.mxu0  ;;  %5486 = vmatprep.subr.bf16.mxu0 %v6121_v26 }
 0x271   :  { %v8710_v37 = vpop.f32.mrf.mxu1  ;;  %v8712_v63 = vadd.f32 %v2755_v56, %v2563_v12  ;;  %v6122_v56 = vld [vmem:[%s9377_s5 + $0x30] sm:$0xff]  }
 0x272   :  { %9714 = vst [vmem:[#allocation94_spill] sm:$0xff] %v8710_v37  ;;  %v2568_v13 = vpop.f32.mrf.mxu0  ;;  %3847 = vmatmul.mubr.bf16.gmra.mxu0 %v8169_v44 }
 0x273   :  { %9715 = vst [vmem:[#allocation22_spill] sm:$0xff] %v8712_v63  ;;  %v2761_v32 = vpop.f32.mrf.mxu1  ;;  %v2569_v11 = vadd.f32 %v2568_v13, %v8456_v43  ;;  %3856 = vmatprep.mubr.bf16.mxu0 %v8210_v8  ;;  %5487 = vmatpush3.bf16.msra.mxu0 %v6122_v56 }
 0x274   :  { %v2570_v30 = vpop.f32.mrf.mxu0 }
 0x275   :  { %v2763_v41 = vpop.f32.mrf.mxu1  ;;  %v8717_v34 = vadd.f32 %v2761_v32, %v2569_v11  ;;  %v2571_v16 = vadd.f32 %v2570_v30, %v8461_v2 }
 0x276   :  { %v2572_v12 = vpop.f32.mrf.mxu0 }
 0x277   :  { %9716 = vst [vmem:[#allocation23_spill] sm:$0xff] %v8717_v34  ;;  %v2765_v44 = vpop.f32.mrf.mxu1  ;;  %v8726_v63 = vadd.f32 %v2763_v41, %v2571_v16  ;;  %v2573_v8 = vadd.f32 %v2572_v12, %v8456_v43 }
 0x278   :  { %v8729_v13 = vpop.f32.mrf.mxu0 }
 0x279   :  { %9717 = vst [vmem:[#allocation24_spill] sm:$0xff] %v8726_v63  ;;  %9718 = vst [vmem:[#allocation25_spill] sm:$0xff] %v8729_v13  ;;  %v8731_v32 = vpop.f32.mrf.mxu1  ;;  %v8733_v11 = vadd.f32 %v2765_v44, %v2573_v8 }
 0x27a   :  { %9719 = vst [vmem:[#allocation26_spill] sm:$0xff] %v8731_v32  ;;  %v2578_v30 = vpop.f32.mrf.mxu0  ;;  %3857 = vmatmul.mubr.bf16.gmra.mxu0 %v8200_v38 }
 0x27b   :  { %9720 = vst [vmem:[#allocation27_spill] sm:$0xff] %v8733_v11  ;;  %v2771_v34 = vpop.f32.mrf.mxu1  ;;  %v2579_v37 = vadd.f32 %v2578_v30, %v8456_v43  ;;  %3866 = vmatprep.mubr.bf16.mxu0 %v8247_v9 }
 0x27c   :  { %v2580_v41 = vpop.f32.mrf.mxu0 }
 0x27d   :  { %v2773_v16 = vpop.f32.mrf.mxu1  ;;  %v8738_v63 = vadd.f32 %v2771_v34, %v2579_v37  ;;  %v2581_v26 = vadd.f32 %v2580_v41, %v8461_v2 }
 0x27e   :  { %v2582_v12 = vpop.f32.mrf.mxu0 }
 0x27f   :  { %9721 = vst [vmem:[#allocation28_spill] sm:$0xff] %v8738_v63  ;;  %v2775_v13 = vpop.f32.mrf.mxu1  ;;  %v8741_v32 = vadd.f32 %v2773_v16, %v2581_v26  ;;  %v2583_v56 = vadd.f32 %v2582_v12, %v8456_v43  ;;  %v6123_v43 = vld [vmem:[%s9377_s5 + $0x68] sm:$0xff]  }
 0x280   :  { %v8744_v44 = vpop.f32.mrf.mxu0  ;;  %5488 = vmatprep.subr.bf16.mxu0 %v6123_v43 }
 0x281   :  { %9722 = vst [vmem:[#allocation29_spill] sm:$0xff] %v8741_v32  ;;  %9723 = vst [vmem:[#allocation30_spill] sm:$0xff] %v8744_v44  ;;  %v8746_v8 = vpop.f32.mrf.mxu1  ;;  %v8748_v38 = vadd.f32 %v2775_v13, %v2583_v56  ;;  %v6124_v13 = vld [vmem:[%s9377_s5 + $0x28] sm:$0xff]  }
 0x282   :  { %9724 = vst [vmem:[#allocation31_spill] sm:$0xff] %v8746_v8  ;;  %v2814_v30 = vpop.f32.mrf.mxu0  ;;  %3867 = vmatmul.mubr.bf16.gmra.mxu0 %v8237_v23 }
 0x283   :  { %9725 = vst [vmem:[#allocation32_spill] sm:$0xff] %v8748_v38  ;;  %v3007_v9 = vpop.f32.mrf.mxu1  ;;  %v2815_v37 = vadd.f32 %v2814_v30, %v8471_v57  ;;  %3876 = vmatprep.mubr.bf16.mxu0 %v8284_v46  ;;  %5489 = vmatpush3.bf16.msra.mxu0 %v6124_v13 }
 0x284   :  { %v2816_v34 = vpop.f32.mrf.mxu0 }
 0x285   :  { %v3009_v41 = vpop.f32.mrf.mxu1  ;;  %v2817_v16 = vadd.f32 %v2816_v34, %v8474_v15  ;;  %v3008_v56 = vadd.f32 %v3007_v9, %v2815_v37 }
 0x286   :  { %v2818_v26 = vpop.f32.mrf.mxu0 }
 0x287   :  { %v3011_v12 = vpop.f32.mrf.mxu1  ;;  %v2819_v23 = vadd.f32 %v2818_v26, %v8485_v42  ;;  %v3010_v30 = vadd.f32 %v3009_v41, %v2817_v16  ;;  %v3168_v32 = vmax.f32 %v3008_v56, 0.0 }
 0x288   :  { %v2820_v57 = vpop.f32.mrf.mxu0 }
 0x289   :  { %v3013_v46 = vpop.f32.mrf.mxu1  ;;  %v3012_v38 = vadd.f32 %v3011_v12, %v2819_v23  ;;  %v2821_v15 = vadd.f32 %v2820_v57, %v8491_v22  ;;  %v3169_v37 = vmax.f32 %v3010_v30, 0.0 }
 0x28a   :  { %v2824_v34 = vpop.f32.mrf.mxu0  ;;  %3877 = vmatmul.mubr.bf16.gmra.mxu0 %v8274_v17 }
 0x28b   :  { %v3017_v8 = vpop.f32.mrf.mxu1  ;;  %v3172_v63 = vmax.f32 %v3012_v38, 0.0  ;;  %v3014_v44 = vadd.f32 %v3013_v46, %v2821_v15  ;;  %v2825_v11 = vadd.f32 %v2824_v34, %v8499_v61  ;;  %3886 = vmatprep.mubr.bf16.mxu0 %v8321_v10  ;;  %v6125_v10 = vld [vmem:[%s9377_s5 + $0x60] sm:$0xff]  }
 0x28c   :  { %v2826_v42 = vpop.f32.mrf.mxu0  ;;  %5490 = vmatprep.subr.bf16.mxu0 %v6125_v10 }
 0x28d   :  { %v3019_v9 = vpop.f32.mrf.mxu1  ;;  %v3296_v43 = vpack.c.bf16 %v3172_v63, %v3168_v32  ;;  %v3173_v13 = vmax.f32 %v3014_v44, 0.0  ;;  %v2827_v41 = vadd.f32 %v2826_v42, %v8505_v14  ;;  %v3018_v26 = vadd.f32 %v3017_v8, %v2825_v11  ;;  %v6126_v14 = vld [vmem:[%s9377_s5 + $0x20] sm:$0xff]  }
 0x28e   :  { %v2828_v16 = vpop.f32.mrf.mxu0  ;;  %5491 = vmatpush3.bf16.msra.mxu0 %v6126_v14 }
 0x28f   :  { %v3021_v22 = vpop.f32.mrf.mxu1  ;;  %v2829_v12 = vadd.f32 %v2828_v16, %v8508_v6  ;;  %v3297_v17 = vpack.c.bf16 %v3173_v13, %v3169_v37  ;;  %v3020_v23 = vadd.f32 %v3019_v9, %v2827_v41  ;;  %v3176_v6 = vmax.f32 %v3018_v26, 0.0 }
 0x290   :  { %v2830_v56 = vpop.f32.mrf.mxu0 }
 0x291   :  { %v3023_v38 = vpop.f32.mrf.mxu1  ;;  %v3022_v57 = vadd.f32 %v3021_v22, %v2829_v12  ;;  %v2831_v61 = vadd.f32 %v2830_v56, %v8514_v39  ;;  %3979 = vmatprep.mubr.bf16.mxu1 %v3297_v17  ;;  %v3177_v30 = vmax.f32 %v3020_v23, 0.0 }
 0x292   :  { %v2834_v63 = vpop.f32.mrf.mxu0  ;;  %3887 = vmatmul.mubr.bf16.gmra.mxu0 %v8311_v48  ;;  %3980 = vmatmul.mubr.bf16.vlgmr.msra.gmra.mxu1 %v3296_v43 }
 0x293   :  { %v3027_v32 = vpop.f32.mrf.mxu1  ;;  %v3180_v11 = vmax.f32 %v3022_v57, 0.0  ;;  %v3024_v44 = vadd.f32 %v3023_v38, %v2831_v61  ;;  %v2835_v8 = vadd.f32 %v2834_v63, %v8519_v20  ;;  %3896 = vmatprep.mubr.bf16.mxu0 %v8358_v53 }
 0x294   :  { %v2836_v39 = vpop.f32.mrf.mxu0 }
 0x295   :  { %v3029_v46 = vpop.f32.mrf.mxu1  ;;  %v3300_v15 = vpack.c.bf16 %v3180_v11, %v3176_v6  ;;  %v3181_v34 = vmax.f32 %v3024_v44, 0.0  ;;  %v2837_v42 = vadd.f32 %v2836_v39, %v8522_v19  ;;  %v3028_v48 = vadd.f32 %v3027_v32, %v2835_v8 }
 0x296   :  { %v2838_v9 = vpop.f32.mrf.mxu0 }
 0x297   :  { %v3031_v37 = vpop.f32.mrf.mxu1  ;;  %v2839_v43 = vadd.f32 %v2838_v9, %v8525_v28  ;;  %v3301_v13 = vpack.c.bf16 %v3181_v34, %v3177_v30  ;;  %v3030_v20 = vadd.f32 %v3029_v46, %v2837_v42  ;;  %v3184_v17 = vmax.f32 %v3028_v48, 0.0 }
 0x298   :  { %v2840_v41 = vpop.f32.mrf.mxu0  ;;  %v2475_v46 = vadd.f32 %v8559_v3, %v8461_v2 }
 0x299   :  { %v3033_v16 = vpop.f32.mrf.mxu1  ;;  %v3032_v22 = vadd.f32 %v3031_v37, %v2839_v43  ;;  %v2841_v53 = vadd.f32 %v2840_v41, %v8531_v1  ;;  %3989 = vmatprep.mubr.bf16.mxu1 %v3301_v13  ;;  %v3185_v57 = vmax.f32 %v3030_v20, 0.0 }
 0x29a   :  { %v2844_v26 = vpop.f32.mrf.mxu0  ;;  %3897 = vmatmul.mubr.bf16.gmra.mxu0 %v8348_v54  ;;  %3990 = vmatmul.mubr.bf16.gmra.mxu1 %v3300_v15 }
 0x29b   :  { %v3037_v12 = vpop.f32.mrf.mxu1  ;;  %v3188_v19 = vmax.f32 %v3032_v22, 0.0  ;;  %v3034_v56 = vadd.f32 %v3033_v16, %v2841_v53  ;;  %v2845_v38 = vadd.f32 %v2844_v26, %v8536_v35  ;;  %3906 = vmatprep.mubr.bf16.mxu0 %v8392_v27  ;;  %v6127_v27 = vld [vmem:[%s9377_s5 + $0x58] sm:$0xff]  }
 0x29c   :  { %v2846_v28 = vpop.f32.mrf.mxu0  ;;  %5492 = vmatprep.subr.bf16.mxu0 %v6127_v27 }
 0x29d   :  { %v3039_v23 = vpop.f32.mrf.mxu1  ;;  %v3304_v61 = vpack.c.bf16 %v3188_v19, %v3184_v17  ;;  %v3189_v10 = vmax.f32 %v3034_v56, 0.0  ;;  %v2847_v1 = vadd.f32 %v2846_v28, %v8539_v18  ;;  %v3038_v32 = vadd.f32 %v3037_v12, %v2845_v38  ;;  %v6128_v18 = vld [vmem:[%s9377_s5 + $0x18] sm:$0xff]  }
 0x29e   :  { %v2848_v14 = vpop.f32.mrf.mxu0  ;;  %5493 = vmatpush3.bf16.msra.mxu0 %v6128_v18  ;;  %v2485_v19 = vadd.f32 %v8577_v5, %v8461_v2  ;;  %v6129_v18 = vld [vmem:[%s9377_s5 + $0x50] sm:$0xff]  }
 0x29f   :  { %v3041_v63 = vpop.f32.mrf.mxu1  ;;  %v2849_v54 = vadd.f32 %v2848_v14, %v8542_v40  ;;  %v3305_v6 = vpack.c.bf16 %v3189_v10, %v3185_v57  ;;  %v3040_v8 = vadd.f32 %v3039_v23, %v2847_v1  ;;  %v3192_v15 = vmax.f32 %v3038_v32, 0.0  ;;  %v9726_v14 = vld [vmem:[#allocation68_spill] sm:$0xff]  ;;  %5494 = vmatprep.subr.bf16.mxu0 %v6129_v18  ;;  %v9740_v18 = vld [vmem:[#allocation11_spill] sm:$0xff] }
 0x2a0   :  { %v2850_v11 = vpop.f32.mrf.mxu0 }
 0x2a1   :  { %v3043_v44 = vpop.f32.mrf.mxu1  ;;  %v3042_v39 = vadd.f32 %v3041_v63, %v2849_v54  ;;  %v2851_v35 = vadd.f32 %v2850_v11, %v8548_v47  ;;  %3999 = vmatprep.mubr.bf16.mxu1 %v3305_v6  ;;  %v3193_v48 = vmax.f32 %v3040_v8, 0.0  ;;  %v9727_v54 = vld [vmem:[#allocation69_spill] sm:$0xff]  ;;  %v9728_v11 = vld [vmem:[#allocation6_spill] sm:$0xff] }
 0x2a2   :  { %v2854_v40 = vpop.f32.mrf.mxu0  ;;  %3907 = vmatmul.mubr.bf16.gmra.mxu0 %v8382_v50  ;;  %4000 = vmatmul.mubr.bf16.gmra.mxu1 %v3304_v61  ;;  %v2668_v50 = vadd.f32 %v8561_v21, %v2475_v46  ;;  %v2678_v6 = vadd.f32 %v9727_v54, %v2485_v19  ;;  %v6130_v46 = vld [vmem:[%s9377_s5 + $0x10] sm:$0xff]   ;;  %v9735_v19 = vld [vmem:[#allocation73_spill] sm:$0xff]  ;;  %v9738_v54 = vld [vmem:[#allocation75_spill] sm:$0xff] }
 0x2a3   :  { %v3047_v30 = vpop.f32.mrf.mxu1  ;;  %v3196_v34 = vmax.f32 %v3042_v39, 0.0  ;;  %v3044_v47 = vadd.f32 %v3043_v44, %v2851_v35  ;;  %v2855_v42 = vadd.f32 %v2854_v40, %v8553_v59  ;;  %3916 = vmatprep.mubr.bf16.mxu0 %v8423_v29  ;;  %v9729_v40 = vld [vmem:[#allocation8_spill] sm:$0xff]  ;;  %5495 = vmatpush3.bf16.msra.mxu0 %v6130_v46 }
 0x2a4   :  { %v2856_v9 = vpop.f32.mrf.mxu0 }
 0x2a5   :  { %v3049_v37 = vpop.f32.mrf.mxu1  ;;  %v3308_v43 = vpack.c.bf16 %v3196_v34, %v3192_v15  ;;  %v3197_v13 = vmax.f32 %v3044_v47, 0.0  ;;  %v2857_v3 = vadd.f32 %v2856_v9, %v8556_v33  ;;  %v3048_v20 = vadd.f32 %v3047_v30, %v2855_v42  ;;  %v9730_v47 = vld [vmem:[#allocation4_spill] sm:$0xff] }
 0x2a6   :  { %v2858_v41 = vpop.f32.mrf.mxu0  ;;  %v2495_v30 = vadd.f32 %v9729_v40, %v8461_v2 }
 0x2a7   :  { %v3051_v16 = vpop.f32.mrf.mxu1  ;;  %v2859_v22 = vadd.f32 %v2858_v41, %v8563_v45  ;;  %v3309_v53 = vpack.c.bf16 %v3197_v13, %v3193_v48  ;;  %v3050_v29 = vadd.f32 %v3049_v37, %v2857_v3  ;;  %v3200_v33 = vmax.f32 %v3048_v20, 0.0  ;;  %v9731_v48 = vld [vmem:[#allocation7_spill] sm:$0xff]  ;;  %v9732_v13 = vld [vmem:[#allocation66_spill] sm:$0xff] }
 0x2a8   :  { %v2860_v59 = vpop.f32.mrf.mxu0 }
 0x2a9   :  { %v3053_v26 = vpop.f32.mrf.mxu1  ;;  %v3052_v12 = vadd.f32 %v3051_v16, %v2859_v22  ;;  %v2861_v17 = vadd.f32 %v2860_v59, %v2668_v50  ;;  %4009 = vmatprep.mubr.bf16.mxu1 %v3309_v53  ;;  %v3201_v61 = vmax.f32 %v3050_v29, 0.0  ;;  %v9733_v22 = vld [vmem:[#allocation70_spill] sm:$0xff]  ;;  %v9734_v29 = vld [vmem:[#allocation9_spill] sm:$0xff] }
 0x2aa   :  { %v2864_v56 = vpop.f32.mrf.mxu0  ;;  %3917 = vmatmul.mubr.bf16.gmra.mxu0 %v8413_v31  ;;  %4010 = vmatmul.mubr.bf16.gmra.mxu1 %v3308_v43 }
 0x2ab   :  { %v3057_v38 = vpop.f32.mrf.mxu1  ;;  %v3204_v21 = vmax.f32 %v3052_v12, 0.0  ;;  %v3054_v28 = vadd.f32 %v3053_v26, %v2861_v17  ;;  %v2865_v45 = vadd.f32 %v2864_v56, %v8571_v49  ;;  %3926 = vmatprep.mubr.bf16.mxu0 %v8458_v4  ;;  %v2688_v12 = vadd.f32 %v9734_v29, %v2495_v30  ;;  %v9741_v30 = vld [vmem:[#allocation77_spill] sm:$0xff] }
 0x2ac   :  { %v2866_v23 = vpop.f32.mrf.mxu0 }
 0x2ad   :  { %v3059_v57 = vpop.f32.mrf.mxu1  ;;  %v3312_v10 = vpack.c.bf16 %v3204_v21, %v3200_v33  ;;  %v3205_v1 = vmax.f32 %v3054_v28, 0.0  ;;  %v2867_v63 = vadd.f32 %v2866_v23, %v9726_v14  ;;  %v3058_v31 = vadd.f32 %v3057_v38, %v2865_v45  ;;  %v9737_v14 = vld [vmem:[#allocation5_spill] sm:$0xff] }
 0x2ae   :  { %v2868_v5 = vpop.f32.mrf.mxu0 }
 0x2af   :  { %v3061_v32 = vpop.f32.mrf.mxu1  ;;  %v2869_v44 = vadd.f32 %v2868_v5, %v9728_v11  ;;  %v3313_v8 = vpack.c.bf16 %v3205_v1, %v3201_v61  ;;  %v3060_v49 = vadd.f32 %v3059_v57, %v2867_v63  ;;  %v3208_v42 = vmax.f32 %v3058_v31, 0.0  ;;  %v9736_v57 = vld [vmem:[#allocation10_spill] sm:$0xff] }
 0x2b0   :  { %v2870_v39 = vpop.f32.mrf.mxu0  ;;  %v2505_v61 = vadd.f32 %v9736_v57, %v8461_v2 }
 0x2b1   :  { %v3063_v35 = vpop.f32.mrf.mxu1  ;;  %v3062_v27 = vadd.f32 %v3061_v32, %v2869_v44  ;;  %v2871_v4 = vadd.f32 %v2870_v39, %v2678_v6  ;;  %4019 = vmatprep.mubr.bf16.mxu1 %v3313_v8  ;;  %v3209_v16 = vmax.f32 %v3060_v49, 0.0 }
 0x2b2   :  { %v2874_v15 = vpop.f32.mrf.mxu0  ;;  %3927 = vmatmul.mubr.bf16.gmra.mxu0 %v9730_v47  ;;  %4020 = vmatmul.mubr.bf16.gmra.mxu1 %v3312_v10  ;;  %v2698_v46 = vadd.f32 %v9740_v18, %v2505_v61  ;;  %v9746_v61 = vld [vmem:[#allocation83_spill] sm:$0xff] }
 0x2b3   :  { %v3067_v34 = vpop.f32.mrf.mxu1  ;;  %v3212_v9 = vmax.f32 %v3062_v27, 0.0  ;;  %v3064_v37 = vadd.f32 %v3063_v35, %v2871_v4  ;;  %v2875_v43 = vadd.f32 %v2874_v15, %v9731_v48  ;;  %3936 = vmatprep.mubr.bf16.mxu0 %v9732_v13  ;;  %v9739_v35 = vld [vmem:[#allocation76_spill] sm:$0xff]  ;;  %v6132_v13 = vld [vmem:[%s9377_s5 + $0x8] sm:$0xff]  }
 0x2b4   :  { %v2876_v3 = vpop.f32.mrf.mxu0 }
 0x2b5   :  { %v3069_v41 = vpop.f32.mrf.mxu1  ;;  %v3316_v50 = vpack.c.bf16 %v3212_v9, %v3208_v42  ;;  %v3213_v20 = vmax.f32 %v3064_v37, 0.0  ;;  %v2877_v53 = vadd.f32 %v2876_v3, %v9733_v22  ;;  %v3068_v17 = vadd.f32 %v3067_v34, %v2875_v43  ;;  %v6131_v43 = vld [vmem:[%s9377_s5 + $0x48] sm:$0xff]   ;;  %v9742_v3 = vld [vmem:[#allocation80_spill] sm:$0xff] }
 0x2b6   :  { %v2878_v59 = vpop.f32.mrf.mxu0  ;;  %5496 = vmatprep.subr.bf16.mxu0 %v6131_v43 }
 0x2b7   :  { %v3071_v26 = vpop.f32.mrf.mxu1  ;;  %v2879_v56 = vadd.f32 %v2878_v59, %v9735_v19  ;;  %v3317_v38 = vpack.c.bf16 %v3213_v20, %v3209_v16  ;;  %v3070_v28 = vadd.f32 %v3069_v41, %v2877_v53  ;;  %v3216_v63 = vmax.f32 %v3068_v17, 0.0  ;;  %v9743_v59 = vld [vmem:[#allocation12_spill] sm:$0xff]  ;;  %5497 = vmatpush3.bf16.msra.mxu0 %v6132_v13 }
 0x2b8   :  { %v2880_v33 = vpop.f32.mrf.mxu0  ;;  %v2515_v41 = vadd.f32 %v9742_v3, %v8461_v2 }
 0x2b9   :  { %v3073_v21 = vpop.f32.mrf.mxu1  ;;  %v3072_v45 = vadd.f32 %v3071_v26, %v2879_v56  ;;  %v2881_v23 = vadd.f32 %v2880_v33, %v2688_v12  ;;  %4029 = vmatprep.mubr.bf16.mxu1 %v3317_v38  ;;  %v3217_v44 = vmax.f32 %v3070_v28, 0.0  ;;  %v9744_v38 = vld [vmem:[#allocation13_spill] sm:$0xff] }
 0x2ba   :  { %v2884_v10 = vpop.f32.mrf.mxu0  ;;  %3937 = vmatmul.mubr.bf16.gmra.mxu0 %v9737_v14  ;;  %4030 = vmatmul.mubr.bf16.gmra.mxu1 %v3316_v50 }
 0x2bb   :  { %v3077_v1 = vpop.f32.mrf.mxu1  ;;  %v3220_v5 = vmax.f32 %v3072_v45, 0.0  ;;  %v3074_v32 = vadd.f32 %v3073_v21, %v2881_v23  ;;  %v2885_v6 = vadd.f32 %v2884_v10, %v9738_v54  ;;  %v9745_v45 = vld [vmem:[#allocation82_spill] sm:$0xff] }
 0x2bc   :  { %v2886_v31 = vpop.f32.mrf.mxu0  ;;  %v2708_v23 = vadd.f32 %v9745_v45, %v2515_v41 }
 0x2bd   :  { %v3079_v11 = vpop.f32.mrf.mxu1  ;;  %v3320_v8 = vpack.c.bf16 %v3220_v5, %v3216_v63  ;;  %v3221_v39 = vmax.f32 %v3074_v32, 0.0  ;;  %v2887_v49 = vadd.f32 %v2886_v31, %v9739_v35  ;;  %v3078_v40 = vadd.f32 %v3077_v1, %v2885_v6  ;;  %v9747_v35 = vld [vmem:[#allocation14_spill] sm:$0xff] }
 0x2be   :  { %v2888_v27 = vpop.f32.mrf.mxu0  ;;  %v2525_v6 = vadd.f32 %v8642_v52, %v8461_v2 }
 0x2bf   :  { %v3081_v4 = vpop.f32.mrf.mxu1  ;;  %v2889_v15 = vadd.f32 %v2888_v27, %v9741_v30  ;;  %v3321_v34 = vpack.c.bf16 %v3221_v39, %v3217_v44  ;;  %v3080_v9 = vadd.f32 %v3079_v11, %v2887_v49  ;;  %v3224_v20 = vmax.f32 %v3078_v40, 0.0  ;;  %v9748_v30 = vld [vmem:[#allocation15_spill] sm:$0xff] }
 0x2c0   :  { %v2890_v47 = vpop.f32.mrf.mxu0 }
 0x2c1   :  { %v3083_v42 = vpop.f32.mrf.mxu1  ;;  %v3082_v37 = vadd.f32 %v3081_v4, %v2889_v15  ;;  %v2891_v48 = vadd.f32 %v2890_v47, %v2698_v46  ;;  %4039 = vmatprep.mubr.bf16.mxu1 %v3321_v34  ;;  %v3225_v17 = vmax.f32 %v3080_v9, 0.0  ;;  %v9749_v9 = vld [vmem:[#allocation84_spill] sm:$0xff] }
 0x2c2   :  { %v2894_v16 = vpop.f32.mrf.mxu0  ;;  %4040 = vmatmul.mubr.bf16.gmra.mxu1 %v3320_v8 }
 0x2c3   :  { %v3087_v50 = vpop.f32.mrf.mxu1  ;;  %v3228_v22 = vmax.f32 %v3082_v37, 0.0  ;;  %v3084_v53 = vadd.f32 %v3083_v42, %v2891_v48  ;;  %v2895_v26 = vadd.f32 %v2894_v16, %v9743_v59  ;;  %v2718_v42 = vadd.f32 %v8644_v58, %v2525_v6 }
 0x2c4   :  { %v2896_v29 = vpop.f32.mrf.mxu0  ;;  %v2535_v58 = vadd.f32 %v8657_v24, %v8461_v2 }
 0x2c5   :  { %v3089_v12 = vpop.f32.mrf.mxu1  ;;  %v3324_v19 = vpack.c.bf16 %v3228_v22, %v3224_v20  ;;  %v3229_v56 = vmax.f32 %v3084_v53, 0.0  ;;  %v2897_v33 = vadd.f32 %v2896_v29, %v9744_v38  ;;  %v3088_v57 = vadd.f32 %v3087_v50, %v2895_v26  ;;  %v6133_v50 = vld [vmem:[%s9377_s5 + $0x40] sm:$0xff]  }
 0x2c6   :  { %v2898_v21 = vpop.f32.mrf.mxu0  ;;  %v6134_v20 = vld [vmem:[%s9377_s5] sm:$0xff]   ;;  %5498 = vmatprep.subr.bf16.mxu0 %v6133_v50  ;;  %v2728_v24 = vadd.f32 %v8659_v36, %v2535_v58 }
 0x2c7   :  { %v3091_v28 = vpop.f32.mrf.mxu1  ;;  %v2899_v10 = vadd.f32 %v2898_v21, %v9746_v61  ;;  %v3325_v1 = vpack.c.bf16 %v3229_v56, %v3225_v17  ;;  %v3090_v5 = vadd.f32 %v3089_v12, %v2897_v33  ;;  %v3232_v44 = vmax.f32 %v3088_v57, 0.0  ;;  %v9750_v12 = vld [vmem:[#allocation16_spill] sm:$0xff]  ;;  %5499 = vmatpush3.bf16.msra.mxu0 %v6134_v20 }
 0x2c8   :  { %v2900_v14 = vpop.f32.mrf.mxu0 }
 0x2c9   :  { %v3093_v63 = vpop.f32.mrf.mxu1  ;;  %v3092_v32 = vadd.f32 %v3091_v28, %v2899_v10  ;;  %v2901_v54 = vadd.f32 %v2900_v14, %v2708_v23  ;;  %4049 = vmatprep.mubr.bf16.mxu1 %v3325_v1  ;;  %v3233_v18 = vmax.f32 %v3090_v5, 0.0  ;;  %v9751_v28 = vld [vmem:[#allocation17_spill] sm:$0xff]  ;;  %v9752_v10 = vld [vmem:[#allocation87_spill] sm:$0xff] }
 0x2ca   :  { %v2904_v31 = vpop.f32.mrf.mxu0  ;;  %4050 = vmatmul.mubr.bf16.gmra.mxu1 %v3324_v19 }
 0x2cb   :  { %v3097_v11 = vpop.f32.mrf.mxu1  ;;  %v3236_v8 = vmax.f32 %v3092_v32, 0.0  ;;  %v3094_v39 = vadd.f32 %v3093_v63, %v2901_v54  ;;  %v2905_v49 = vadd.f32 %v2904_v31, %v9747_v35  ;;  %v2545_v31 = vadd.f32 %v8672_v0, %v8461_v2 }
 0x2cc   :  { %v2906_v27 = vpop.f32.mrf.mxu0 }
 0x2cd   :  { %v3099_v4 = vpop.f32.mrf.mxu1  ;;  %v3328_v46 = vpack.c.bf16 %v3236_v8, %v3232_v44  ;;  %v3237_v40 = vmax.f32 %v3094_v39, 0.0  ;;  %v2907_v15 = vadd.f32 %v2906_v27, %v9748_v30  ;;  %v3098_v52 = vadd.f32 %v3097_v11, %v2905_v49 }
 0x2ce   :  { %v2908_v34 = vpop.f32.mrf.mxu0 }
 0x2cf   :  { %v3101_v47 = vpop.f32.mrf.mxu1  ;;  %v2909_v37 = vadd.f32 %v2908_v34, %v9749_v9  ;;  %v3329_v48 = vpack.c.bf16 %v3237_v40, %v3233_v18  ;;  %v3100_v3 = vadd.f32 %v3099_v4, %v2907_v15  ;;  %v3240_v59 = vmax.f32 %v3098_v52, 0.0  ;;  %v9753_v40 = vld [vmem:[#allocation89_spill] sm:$0xff] }
 0x2d0   :  { %v2910_v43 = vpop.f32.mrf.mxu0 }
 0x2d1   :  { %v3103_v13 = vpop.f32.mrf.mxu1  ;;  %v3102_v41 = vadd.f32 %v3101_v47, %v2909_v37  ;;  %v2911_v16 = vadd.f32 %v2910_v43, %v2718_v42  ;;  %4059 = vmatprep.mubr.bf16.mxu1 %v3329_v48  ;;  %v3241_v38 = vmax.f32 %v3100_v3, 0.0  ;;  %v2738_v47 = vadd.f32 %v8674_v62, %v2545_v31  ;;  %v9754_v42 = vld [vmem:[#allocation90_spill] sm:$0xff]  ;;  %v9755_v3 = vld [vmem:[#allocation20_spill] sm:$0xff] }
 0x2d2   :  { %v2914_v22 = vpop.f32.mrf.mxu0  ;;  %4060 = vmatmul.mubr.bf16.gmra.mxu1 %v3328_v46  ;;  %v9756_v62 = vld [vmem:[#allocation18_spill] sm:$0xff] }
 0x2d3   :  { %v3107_v53 = vpop.f32.mrf.mxu1  ;;  %v3244_v26 = vmax.f32 %v3102_v41, 0.0  ;;  %v3104_v29 = vadd.f32 %v3103_v13, %v2911_v16  ;;  %v2915_v17 = vadd.f32 %v2914_v22, %v9750_v12  ;;  %v2555_v41 = vadd.f32 %v9755_v3, %v8461_v2 }
 0x2d4   :  { %v2916_v19 = vpop.f32.mrf.mxu0 }
 0x2d5   :  { %v3109_v56 = vpop.f32.mrf.mxu1  ;;  %v3332_v33 = vpack.c.bf16 %v3244_v26, %v3240_v59  ;;  %v3245_v21 = vmax.f32 %v3104_v29, 0.0  ;;  %v2917_v45 = vadd.f32 %v2916_v19, %v9751_v28  ;;  %v3108_v61 = vadd.f32 %v3107_v53, %v2915_v17  ;;  %v9757_v19 = vld [vmem:[#allocation19_spill] sm:$0xff] }
 0x2d6   :  { %v2918_v23 = vpop.f32.mrf.mxu0 }
 0x2d7   :  { %v3111_v57 = vpop.f32.mrf.mxu1  ;;  %v2919_v1 = vadd.f32 %v2918_v23, %v9752_v10  ;;  %v3333_v14 = vpack.c.bf16 %v3245_v21, %v3241_v38  ;;  %v3110_v32 = vadd.f32 %v3109_v56, %v2917_v45  ;;  %v3248_v8 = vmax.f32 %v3108_v61, 0.0  ;;  %v9758_v21 = vld [vmem:[#allocation21_spill] sm:$0xff] }
 0x2d8   :  { %v2920_v63 = vpop.f32.mrf.mxu0  ;;  %v2748_v28 = vadd.f32 %v9758_v21, %v2555_v41 }
 0x2d9   :  { %v3113_v5 = vpop.f32.mrf.mxu1  ;;  %v3112_v54 = vadd.f32 %v3111_v57, %v2919_v1  ;;  %v2921_v6 = vadd.f32 %v2920_v63, %v2728_v24  ;;  %4069 = vmatprep.mubr.bf16.mxu1 %v3333_v14  ;;  %v3249_v4 = vmax.f32 %v3110_v32, 0.0  ;;  %v2565_v63 = vadd.f32 %v8708_v55, %v8461_v2 }
 0x2da   :  { %v2924_v11 = vpop.f32.mrf.mxu0  ;;  %4070 = vmatmul.mubr.bf16.gmra.mxu1 %v3332_v33 }
 0x2db   :  { %v3117_v44 = vpop.f32.mrf.mxu1  ;;  %v3252_v39 = vmax.f32 %v3112_v54, 0.0  ;;  %v3114_v35 = vadd.f32 %v3113_v5, %v2921_v6  ;;  %v2925_v36 = vadd.f32 %v2924_v11, %v8666_v51 }
 0x2dc   :  { %v2926_v49 = vpop.f32.mrf.mxu0 }
 0x2dd   :  { %v3119_v27 = vpop.f32.mrf.mxu1  ;;  %v3336_v18 = vpack.c.bf16 %v3252_v39, %v3248_v8  ;;  %v3253_v46 = vmax.f32 %v3114_v35, 0.0  ;;  %v2927_v30 = vadd.f32 %v2926_v49, %v9753_v40  ;;  %v3118_v0 = vadd.f32 %v3117_v44, %v2925_v36 }
 0x2de   :  { %v2928_v15 = vpop.f32.mrf.mxu0 }
 0x2df   :  { %v3121_v34 = vpop.f32.mrf.mxu1  ;;  %v2929_v52 = vadd.f32 %v2928_v15, %v9754_v42  ;;  %v3337_v9 = vpack.c.bf16 %v3253_v46, %v3249_v4  ;;  %v3120_v43 = vadd.f32 %v3119_v27, %v2927_v30  ;;  %v3256_v20 = vmax.f32 %v3118_v0, 0.0  ;;  %v9759_v4 = vld [vmem:[#allocation94_spill] sm:$0xff]  ;;  %v9761_v42 = vld [vmem:[#allocation25_spill] sm:$0xff] }
 0x2e0   :  { %v2930_v37 = vpop.f32.mrf.mxu0  ;;  %v9760_v46 = vld [vmem:[#allocation22_spill] sm:$0xff] }
 0x2e1   :  { %v3123_v48 = vpop.f32.mrf.mxu1  ;;  %v3122_v13 = vadd.f32 %v3121_v34, %v2929_v52  ;;  %v2931_v51 = vadd.f32 %v2930_v37, %v2738_v47  ;;  %4079 = vmatprep.mubr.bf16.mxu1 %v3337_v9  ;;  %v3257_v29 = vmax.f32 %v3120_v43, 0.0  ;;  %v2575_v52 = vadd.f32 %v9761_v42, %v8461_v2 }
 0x2e2   :  { %v2934_v16 = vpop.f32.mrf.mxu0  ;;  %4080 = vmatmul.mubr.bf16.gmra.mxu1 %v3336_v18  ;;  %v2758_v18 = vadd.f32 %v9759_v4, %v2565_v63 }
 0x2e3   :  { %v3127_v50 = vpop.f32.mrf.mxu1  ;;  %v3260_v58 = vmax.f32 %v3122_v13, 0.0  ;;  %v3124_v22 = vadd.f32 %v3123_v48, %v2931_v51  ;;  %v2935_v53 = vadd.f32 %v2934_v16, %v9756_v62  ;;  %v9762_v13 = vld [vmem:[#allocation23_spill] sm:$0xff] }
 0x2e4   :  { %v2936_v59 = vpop.f32.mrf.mxu0 }
 0x2e5   :  { %v3129_v26 = vpop.f32.mrf.mxu1  ;;  %v3340_v12 = vpack.c.bf16 %v3260_v58, %v3256_v20  ;;  %v3261_v17 = vmax.f32 %v3124_v22, 0.0  ;;  %v2937_v56 = vadd.f32 %v2936_v59, %v9757_v19  ;;  %v3128_v45 = vadd.f32 %v3127_v50, %v2935_v53  ;;  %v9763_v58 = vld [vmem:[#allocation24_spill] sm:$0xff]  ;;  %v9764_v59 = vld [vmem:[#allocation26_spill] sm:$0xff] }
 0x2e6   :  { %v2938_v38 = vpop.f32.mrf.mxu0 }
 0x2e7   :  { %v3131_v33 = vpop.f32.mrf.mxu1  ;;  %v2939_v23 = vadd.f32 %v2938_v38, %v8697_v7  ;;  %v3341_v57 = vpack.c.bf16 %v3261_v17, %v3257_v29  ;;  %v3130_v10 = vadd.f32 %v3129_v26, %v2937_v56  ;;  %v3264_v54 = vmax.f32 %v3128_v45, 0.0  ;;  %v9766_v45 = vld [vmem:[#allocation30_spill] sm:$0xff] }
 0x2e8   :  { %v2940_v24 = vpop.f32.mrf.mxu0  ;;  %v2768_v26 = vadd.f32 %v9764_v59, %v2575_v52 }
 0x2e9   :  { %v3133_v61 = vpop.f32.mrf.mxu1  ;;  %v3132_v1 = vadd.f32 %v3131_v33, %v2939_v23  ;;  %v2941_v14 = vadd.f32 %v2940_v24, %v2748_v28  ;;  %4089 = vmatprep.mubr.bf16.mxu1 %v3341_v57  ;;  %v3265_v8 = vmax.f32 %v3130_v10, 0.0  ;;  %v2585_v23 = vadd.f32 %v9766_v45, %v8461_v2 }
 0x2ea   :  { %v2944_v5 = vpop.f32.mrf.mxu0  ;;  %4090 = vmatmul.mubr.bf16.gmra.mxu1 %v3340_v12  ;;  %v9765_v12 = vld [vmem:[#allocation27_spill] sm:$0xff] }
 0x2eb   :  { %v3137_v32 = vpop.f32.mrf.mxu1  ;;  %v3268_v6 = vmax.f32 %v3132_v1, 0.0  ;;  %v3134_v31 = vadd.f32 %v3133_v61, %v2941_v14  ;;  %v2945_v11 = vadd.f32 %v2944_v5, %v8702_v60  ;;  %v9767_v14 = vld [vmem:[#allocation28_spill] sm:$0xff] }
 0x2ec   :  { %v2946_v44 = vpop.f32.mrf.mxu0 }
 0x2ed   :  { %v3139_v7 = vpop.f32.mrf.mxu1  ;;  %v3344_v39 = vpack.c.bf16 %v3268_v6, %v3264_v54  ;;  %v3269_v35 = vmax.f32 %v3134_v31, 0.0  ;;  %v2947_v36 = vadd.f32 %v2946_v44, %v8705_v25  ;;  %v3138_v55 = vadd.f32 %v3137_v32, %v2945_v11  ;;  %v9768_v11 = vld [vmem:[#allocation29_spill] sm:$0xff] }
 0x2ee   :  { %v2948_v49 = vpop.f32.mrf.mxu0 }
 0x2ef   :  { %v3141_v27 = vpop.f32.mrf.mxu1  ;;  %v2949_v40 = vadd.f32 %v2948_v49, %v9760_v46  ;;  %v3345_v30 = vpack.c.bf16 %v3269_v35, %v3265_v8  ;;  %v3140_v47 = vadd.f32 %v3139_v7, %v2947_v36  ;;  %v3272_v25 = vmax.f32 %v3138_v55, 0.0  ;;  %v9770_v36 = vld [vmem:[#allocation32_spill] sm:$0xff] }
 0x2f0   :  { %v2950_v15 = vpop.f32.mrf.mxu0 }
 0x2f1   :  { %v3143_v34 = vpop.f32.mrf.mxu1  ;;  %v3142_v0 = vadd.f32 %v3141_v27, %v2949_v40  ;;  %v2951_v60 = vadd.f32 %v2950_v15, %v2758_v18  ;;  %4099 = vmatprep.mubr.bf16.mxu1 %v3345_v30  ;;  %v3273_v16 = vmax.f32 %v3140_v47, 0.0 }
 0x2f2   :  { %v2954_v9 = vpop.f32.mrf.mxu0  ;;  %4100 = vmatmul.mubr.bf16.gmra.mxu1 %v3344_v39  ;;  %v9769_v39 = vld [vmem:[#allocation31_spill] sm:$0xff] }
 0x2f3   :  { %v3147_v37 = vpop.f32.mrf.mxu1  ;;  %v3276_v48 = vmax.f32 %v3142_v0, 0.0  ;;  %v3144_v43 = vadd.f32 %v3143_v34, %v2951_v60  ;;  %v2955_v51 = vadd.f32 %v2954_v9, %v9762_v13  ;;  %v2778_v35 = vadd.f32 %v9769_v39, %v2585_v23 }
 0x2f4   :  { %v2956_v3 = vpop.f32.mrf.mxu0 }
 0x2f5   :  { %v3149_v41 = vpop.f32.mrf.mxu1  ;;  %v3348_v50 = vpack.c.bf16 %v3276_v48, %v3272_v25  ;;  %v3277_v20 = vmax.f32 %v3144_v43, 0.0  ;;  %v2957_v22 = vadd.f32 %v2956_v3, %v9763_v58  ;;  %v3148_v29 = vadd.f32 %v3147_v37, %v2955_v51 }
 0x2f6   :  { %v2958_v62 = vpop.f32.mrf.mxu0 }
 0x2f7   :  { %v3151_v53 = vpop.f32.mrf.mxu1  ;;  %v2959_v17 = vadd.f32 %v2958_v62, %v9765_v12  ;;  %v3349_v19 = vpack.c.bf16 %v3277_v20, %v3273_v16  ;;  %v3150_v33 = vadd.f32 %v3149_v41, %v2957_v22  ;;  %v3280_v61 = vmax.f32 %v3148_v29, 0.0 }
 0x2f8   :  { %v2960_v56 = vpop.f32.mrf.mxu0 }
 0x2f9   :  { %v3153_v38 = vpop.f32.mrf.mxu1  ;;  %v3152_v21 = vadd.f32 %v3151_v53, %v2959_v17  ;;  %v2961_v28 = vadd.f32 %v2960_v56, %v2768_v26  ;;  %4109 = vmatprep.mubr.bf16.mxu1 %v3349_v19  ;;  %v3281_v54 = vmax.f32 %v3150_v33, 0.0 }
 0x2fa   :  { %v2964_v57 = vpop.f32.mrf.mxu0  ;;  %4110 = vmatmul.mubr.bf16.gmra.mxu1 %v3348_v50 }
 0x2fb   :  { %v3157_v24 = vpop.f32.mrf.mxu1  ;;  %v3284_v10 = vmax.f32 %v3152_v21, 0.0  ;;  %v3154_v1 = vadd.f32 %v3153_v38, %v2961_v28  ;;  %v2965_v63 = vadd.f32 %v2964_v57, %v9767_v14 }
 0x2fc   :  { %v2966_v5 = vpop.f32.mrf.mxu0 }
 0x2fd   :  { %v3159_v32 = vpop.f32.mrf.mxu1  ;;  %v3352_v6 = vpack.c.bf16 %v3284_v10, %v3280_v61  ;;  %v3285_v31 = vmax.f32 %v3154_v1, 0.0  ;;  %v2967_v44 = vadd.f32 %v2966_v5, %v9768_v11  ;;  %v3158_v2 = vadd.f32 %v3157_v24, %v2965_v63  ;;  %v3422_v61 = vld [vmem:[%s9378_s4] sm:$0x3]  ;;  %v9771_v1 = vld [vmem:[#allocation53_spill] sm:$0xff] }
 0x2fe   :  { %v2968_v7 = vpop.f32.mrf.mxu0  ;;  %v9772_v14 = vsub.s32 1, %v9771_v1  ;;  %v9773_v5 = vsub.s32 0, %v9771_v1 }
 0x2ff   :  { %v3161_v8 = vpop.f32.mrf.mxu1  ;;  %v2969_v49 = vadd.f32 %v2968_v7, %v9770_v36  ;;  %v3353_v27 = vpack.c.bf16 %v3285_v31, %v3281_v54  ;;  %v3160_v18 = vadd.f32 %v3159_v32, %v2967_v44  ;;  %v3288_v15 = vmax.f32 %v3158_v2, 0.0 }
 0x300   :  { %v2970_v4 = vpop.f32.mrf.mxu0  ;;  %v8948_v63 = vrot.slane %v3422_v61, %v9772_v14  ;;  %v8952_v32 = vrot.slane %v3422_v61, %v9773_v5 }
 0x301   :  { %v3162_v55 = vadd.f32 %v3161_v8, %v2969_v49  ;;  %v2971_v46 = vadd.f32 %v2970_v4, %v2778_v35  ;;  %4119 = vmatprep.mubr.bf16.mxu1 %v3353_v27  ;;  %v3163_v40 = vpop.f32.mrf.mxu1  ;;  %v3289_v60 = vmax.f32 %v3160_v18, 0.0  ;;  %v6135_v18 = vld [vmem:[%s9379_s7 + $0x38] sm:$0xff]  }
 0x302   :  { %v3788_v30 = vpop.f32.mrf.mxu0  ;;  %4120 = vmatmul.mubr.bf16.gmra.mxu1 %v3352_v6  ;;  %5640 = vmatprep.subr.bf16.mxu1 %v6135_v18 }
 0x303   :  { %v3292_v34 = vmax.f32 %v3162_v55, 0.0  ;;  %v3164_v47 = vadd.f32 %v3163_v40, %v2971_v46  ;;  %v3789_v7 = vadd.f32 %v3788_v30, %v8952_v32  ;;  %v6136_v40 = vld [vmem:[%s9379_s7 + $0x30] sm:$0xff]   ;;  %5641 = vmatpush3.bf16.msra.mxu1 %v6135_v18 }
 0x304   :  { %v3790_v0 = vpop.f32.mrf.mxu0  ;;  %5642 = vmatprep.subr.bf16.mxu1 %v6136_v40 }
 0x305   :  { %v3356_v42 = vpack.c.bf16 %v3292_v34, %v3288_v15  ;;  %v3293_v52 = vmax.f32 %v3164_v47, 0.0  ;;  %v3791_v11 = vadd.f32 %v3790_v0, %v8948_v63 }
 0x306   :  { %v3792_v9 = vpop.f32.mrf.mxu0 }
 0x307   :  { %v3357_v37 = vpack.c.bf16 %v3293_v52, %v3289_v60  ;;  %v3793_v44 = vadd.f32 %v3792_v9, %v8952_v32  ;;  %v6137_v9 = vld [vmem:[%s9379_s7 + $0x28] sm:$0xff]   ;;  %5643 = vmatpush3.bf16.msra.mxu1 %v6136_v40 }
 0x308   :  { %v3794_v25 = vpop.f32.mrf.mxu0  ;;  %5644 = vmatprep.subr.bf16.mxu1 %v6137_v9 }
 0x309   :  { %4129 = vmatprep.mubr.bf16.mxu1 %v3357_v37  ;;  %v3795_v39 = vadd.f32 %v3794_v25, %v8948_v63 }
 0x30a   :  { %v8889_v48 = vpop.f32.mrf.mxu0  ;;  %4130 = vmatmul.mubr.bf16.gmra.mxu1 %v3356_v42 }
 0x30b   :  { %v3799_v37 = vadd.f32 %v8889_v48, %v8952_v32  ;;  %v6138_v48 = vld [vmem:[%s9379_s7 + $0x20] sm:$0xff]   ;;  %5645 = vmatpush3.bf16.msra.mxu1 %v6137_v9 }
 0x30c   :  { %v3800_v43 = vpop.f32.mrf.mxu0  ;;  %5646 = vmatprep.subr.bf16.mxu1 %v6138_v48 }
 0x30d   :  { %v3801_v60 = vadd.f32 %v3800_v43, %v8948_v63 }
 0x30e   :  { %v3802_v13 = vpop.f32.mrf.mxu0 }
 0x30f   :  { %v3803_v42 = vadd.f32 %v3802_v13, %v8952_v32  ;;  %5647 = vmatpush3.bf16.msra.mxu1 %v6138_v48 }
 0x310   :  { %v8891_v51 = vpop.f32.mrf.mxu0 }
 0x311   :  { %v3805_v1 = vadd.f32 %v8891_v51, %v8948_v63 }
 0x312   :  { %v8893_v3 = vpop.f32.mrf.mxu0 }
 0x314   :  { %v8895_v41 = vpop.f32.mrf.mxu0 }
 0x316   :  { %v8897_v16 = vpop.f32.mrf.mxu0 }
 0x318   :  { %v8899_v50 = vpop.f32.mrf.mxu0 }
 0x31a   :  { %v8901_v20 = vpop.f32.mrf.mxu0 }
 0x31c   :  { %v8903_v58 = vpop.f32.mrf.mxu0 }
 0x31e   :  { %v8905_v22 = vpop.f32.mrf.mxu0 }
 0x320   :  { %v8907_v62 = vpop.f32.mrf.mxu0 }
 0x322   :  { %v8909_v53 = vpop.f32.mrf.mxu0 }
 0x324   :  { %v8911_v59 = vpop.f32.mrf.mxu0 }
 0x326   :  { %v8913_v26 = vpop.f32.mrf.mxu0 }
 0x328   :  { %v8915_v29 = vpop.f32.mrf.mxu0 }
 0x32a   :  { %v8917_v12 = vpop.f32.mrf.mxu0 }
 0x32c   :  { %v8919_v17 = vpop.f32.mrf.mxu0 }
 0x32e   :  { %v8921_v19 = vpop.f32.mrf.mxu0 }
 0x330   :  { %v8923_v56 = vpop.f32.mrf.mxu0 }
 0x332   :  { %v8925_v38 = vpop.f32.mrf.mxu0 }
 0x334   :  { %v8927_v33 = vpop.f32.mrf.mxu0 }
 0x336   :  { %v8929_v21 = vpop.f32.mrf.mxu0 }
 0x338   :  { %v8931_v28 = vpop.f32.mrf.mxu0 }
 0x33a   :  { %v8933_v45 = vpop.f32.mrf.mxu0 }
 0x33c   :  { %v8935_v23 = vpop.f32.mrf.mxu0 }
 0x33e   :  { %v8937_v57 = vpop.f32.mrf.mxu0 }
 0x340   :  { %v8939_v24 = vpop.f32.mrf.mxu0 }
 0x342   :  { %v8944_v10 = vpop.f32.mrf.mxu0 }
 0x344   :  { %v8954_v6 = vpop.f32.mrf.mxu0 }
 0x346   :  { %v8960_v36 = vpop.f32.mrf.mxu0 }
 0x348   :  { %v8968_v34 = vpop.f32.mrf.mxu0 }
 0x34a   :  { %v8979_v43 = vpop.f32.mrf.mxu0 }
 0x34c   :  { %v8984_v51 = vpop.f32.mrf.mxu0 }
 0x352   :  { %v3981_v54 = vpop.f32.mrf.mxu1 }
 0x353   :  { %v3982_v49 = vadd.f32 %v3981_v54, %v3789_v7 }
 0x354   :  { %v3983_v31 = vpop.f32.mrf.mxu1 }
 0x355   :  { %v3984_v35 = vadd.f32 %v3983_v31, %v3791_v11  ;;  %v4140_v47 = vmax.f32 %v3982_v49, 0.0  ;;  %v3813_v49 = vadd.f32 %v8897_v16, %v8952_v32 }
 0x356   :  { %v3985_v8 = vpop.f32.mrf.mxu1 }
 0x357   :  { %v3986_v2 = vadd.f32 %v3985_v8, %v3793_v44  ;;  %v4141_v30 = vmax.f32 %v3984_v35, 0.0 }
 0x358   :  { %v3987_v27 = vpop.f32.mrf.mxu1 }
 0x359   :  { %v3988_v4 = vadd.f32 %v3987_v27, %v3795_v39  ;;  %v4142_v55 = vmax.f32 %v3986_v2, 0.0  ;;  %v3811_v2 = vadd.f32 %v8895_v41, %v8948_v63 }
 0x35a   :  { %v3991_v46 = vpop.f32.mrf.mxu1 }
 0x35b   :  { %v4143_v15 = vmax.f32 %v3988_v4, 0.0  ;;  %v4204_v25 = vpack.c.bf16 %v4142_v55, %v4140_v47  ;;  %v3992_v13 = vadd.f32 %v3991_v46, %v3799_v37  ;;  %v3809_v4 = vadd.f32 %v8893_v3, %v8952_v32 }
 0x35c   :  { %v3993_v0 = vpop.f32.mrf.mxu1  ;;  %v3815_v46 = vadd.f32 %v8899_v50, %v8948_v63  ;;  %v3821_v50 = vadd.f32 %v8903_v58, %v8948_v63 }
 0x35d   :  { %v4205_v52 = vpack.c.bf16 %v4143_v15, %v4141_v30  ;;  %v3994_v14 = vadd.f32 %v3993_v0, %v3801_v60  ;;  %v4144_v39 = vmax.f32 %v3992_v13, 0.0  ;;  %v8994_v15 = vpop.f32.mrf.mxu0  ;;  %v3825_v13 = vadd.f32 %v8907_v62, %v8948_v63 }
 0x35e   :  { %v3995_v61 = vpop.f32.mrf.mxu1  ;;  %v3831_v62 = vadd.f32 %v8911_v59, %v8948_v63 }
 0x35f   :  { %v3996_v5 = vadd.f32 %v3995_v61, %v3803_v42  ;;  %4403 = vmatprep.mubr.bf16.mxu0 %v4205_v52  ;;  %v4145_v7 = vmax.f32 %v3994_v14, 0.0  ;;  %v8996_v3 = vpop.f32.mrf.mxu0 }
 0x360   :  { %v3997_v54 = vpop.f32.mrf.mxu1  ;;  %4404 = vmatmul.mubr.bf16.vlgmr.msra.gmra.mxu0 %v4204_v25  ;;  %v3823_v25 = vadd.f32 %v8905_v22, %v8952_v32 }
 0x361   :  { %v3998_v31 = vadd.f32 %v3997_v54, %v3805_v1  ;;  %v4146_v11 = vmax.f32 %v3996_v5, 0.0  ;;  %v3819_v1 = vadd.f32 %v8901_v20, %v8952_v32  ;;  %v9006_v48 = vpop.f32.mrf.mxu0 }
 0x362   :  { %v4001_v44 = vpop.f32.mrf.mxu1 }
 0x363   :  { %v4147_v8 = vmax.f32 %v3998_v31, 0.0  ;;  %v4206_v18 = vpack.c.bf16 %v4146_v11, %v4144_v39  ;;  %v4002_v47 = vadd.f32 %v4001_v44, %v3809_v4  ;;  %v3829_v4 = vadd.f32 %v8909_v53, %v8952_v32 }
 0x364   :  { %v4003_v35 = vpop.f32.mrf.mxu1 }
 0x365   :  { %v4207_v27 = vpack.c.bf16 %v4147_v8, %v4145_v7  ;;  %v4004_v40 = vadd.f32 %v4003_v35, %v3811_v2  ;;  %v4148_v9 = vmax.f32 %v4002_v47, 0.0  ;;  %v9008_v35 = vpop.f32.mrf.mxu0 }
 0x366   :  { %v4005_v55 = vpop.f32.mrf.mxu1 }
 0x367   :  { %v4006_v30 = vadd.f32 %v4005_v55, %v3813_v49  ;;  %4411 = vmatprep.mubr.bf16.mxu0 %v4207_v27  ;;  %v4149_v42 = vmax.f32 %v4004_v40, 0.0  ;;  %v3833_v49 = vadd.f32 %v8913_v26, %v8952_v32  ;;  %v9018_v47 = vpop.f32.mrf.mxu0 }
 0x368   :  { %v4007_v41 = vpop.f32.mrf.mxu1  ;;  %4412 = vmatmul.mubr.bf16.gmra.mxu0 %v4206_v18 }
 0x369   :  { %v4008_v16 = vadd.f32 %v4007_v41, %v3815_v46  ;;  %v4150_v0 = vmax.f32 %v4006_v30, 0.0  ;;  %v3835_v46 = vadd.f32 %v8915_v29, %v8948_v63  ;;  %v3841_v29 = vadd.f32 %v8919_v17, %v8948_v63 }
 0x36a   :  { %v4011_v60 = vpop.f32.mrf.mxu1 }
 0x36b   :  { %v4151_v52 = vmax.f32 %v4008_v16, 0.0  ;;  %v4208_v14 = vpack.c.bf16 %v4150_v0, %v4148_v9  ;;  %v4012_v11 = vadd.f32 %v4011_v60, %v3819_v1 }
 0x36c   :  { %v4013_v37 = vpop.f32.mrf.mxu1 }
 0x36d   :  { %v4209_v61 = vpack.c.bf16 %v4151_v52, %v4149_v42  ;;  %v4014_v54 = vadd.f32 %v4013_v37, %v3821_v50  ;;  %v4152_v20 = vmax.f32 %v4012_v11, 0.0  ;;  %v9020_v52 = vpop.f32.mrf.mxu0  ;;  %v3843_v37 = vadd.f32 %v8921_v19, %v8952_v32 }
 0x36e   :  { %v4015_v5 = vpop.f32.mrf.mxu1 }
 0x36f   :  { %v4016_v31 = vadd.f32 %v4015_v5, %v3823_v25  ;;  %4419 = vmatprep.mubr.bf16.mxu0 %v4209_v61  ;;  %v4153_v8 = vmax.f32 %v4014_v54, 0.0  ;;  %v3839_v25 = vadd.f32 %v8917_v12, %v8952_v32  ;;  %v9030_v54 = vpop.f32.mrf.mxu0 }
 0x370   :  { %v4017_v44 = vpop.f32.mrf.mxu1  ;;  %4420 = vmatmul.mubr.bf16.gmra.mxu0 %v4208_v14  ;;  %v3845_v14 = vadd.f32 %v8923_v56, %v8948_v63  ;;  %v3851_v56 = vadd.f32 %v8927_v33, %v8948_v63 }
 0x371   :  { %v4018_v58 = vadd.f32 %v4017_v44, %v3825_v13  ;;  %v4154_v7 = vmax.f32 %v4016_v31, 0.0 }
 0x372   :  { %v4021_v22 = vpop.f32.mrf.mxu1 }
 0x373   :  { %v4155_v39 = vmax.f32 %v4018_v58, 0.0  ;;  %v4210_v18 = vpack.c.bf16 %v4154_v7, %v4152_v20  ;;  %v4022_v41 = vadd.f32 %v4021_v22, %v3829_v4  ;;  %v9032_v22 = vpop.f32.mrf.mxu0 }
 0x374   :  { %v4023_v2 = vpop.f32.mrf.mxu1 }
 0x375   :  { %v4211_v27 = vpack.c.bf16 %v4155_v39, %v4153_v8  ;;  %v4024_v40 = vadd.f32 %v4023_v2, %v3831_v62  ;;  %v4156_v53 = vmax.f32 %v4022_v41, 0.0  ;;  %v3853_v39 = vadd.f32 %v8929_v21, %v8952_v32 }
 0x376   :  { %v4025_v55 = vpop.f32.mrf.mxu1  ;;  %v3849_v2 = vadd.f32 %v8925_v38, %v8952_v32 }
 0x377   :  { %v4026_v30 = vadd.f32 %v4025_v55, %v3833_v49  ;;  %4427 = vmatprep.mubr.bf16.mxu0 %v4211_v27  ;;  %v4157_v60 = vmax.f32 %v4024_v40, 0.0  ;;  %v3855_v27 = vadd.f32 %v8931_v28, %v8948_v63  ;;  %v9042_v55 = vpop.f32.mrf.mxu0  ;;  %v3861_v28 = vadd.f32 %v8935_v23, %v8948_v63 }
 0x378   :  { %v4027_v16 = vpop.f32.mrf.mxu1  ;;  %4428 = vmatmul.mubr.bf16.gmra.mxu0 %v4210_v18 }
 0x379   :  { %v4028_v59 = vadd.f32 %v4027_v16, %v3835_v46  ;;  %v4158_v0 = vmax.f32 %v4026_v30, 0.0 }
 0x37a   :  { %v4031_v26 = vpop.f32.mrf.mxu1 }
 0x37b   :  { %v4159_v42 = vmax.f32 %v4028_v59, 0.0  ;;  %v4212_v61 = vpack.c.bf16 %v4158_v0, %v4156_v53  ;;  %v4032_v31 = vadd.f32 %v4031_v26, %v3839_v25  ;;  %v9044_v59 = vpop.f32.mrf.mxu0  ;;  %v3863_v26 = vadd.f32 %v8937_v57, %v8952_v32 }
 0x37c   :  { %v4033_v9 = vpop.f32.mrf.mxu1 }
 0x37d   :  { %v4213_v50 = vpack.c.bf16 %v4159_v42, %v4157_v60  ;;  %v4034_v5 = vadd.f32 %v4033_v9, %v3841_v29  ;;  %v4160_v12 = vmax.f32 %v4032_v31, 0.0  ;;  %v3859_v42 = vadd.f32 %v8933_v45, %v8952_v32  ;;  %v9054_v25 = vpop.f32.mrf.mxu0 }
 0x37e   :  { %v4035_v1 = vpop.f32.mrf.mxu1  ;;  %v3865_v29 = vadd.f32 %v8939_v24, %v8948_v63  ;;  %v3871_v24 = vadd.f32 %v8954_v6, %v8948_v63 }
 0x37f   :  { %v4036_v13 = vadd.f32 %v4035_v1, %v3843_v37  ;;  %4435 = vmatprep.mubr.bf16.mxu0 %v4213_v50  ;;  %v4161_v58 = vmax.f32 %v4034_v5, 0.0  ;;  %v9056_v31 = vpop.f32.mrf.mxu0 }
 0x380   :  { %v4037_v11 = vpop.f32.mrf.mxu1  ;;  %4436 = vmatmul.mubr.bf16.gmra.mxu0 %v4212_v61 }
 0x381   :  { %v4038_v17 = vadd.f32 %v4037_v11, %v3845_v14  ;;  %v4162_v44 = vmax.f32 %v4036_v13, 0.0 }
 0x382   :  { %v4041_v19 = vpop.f32.mrf.mxu1 }
 0x383   :  { %v4163_v7 = vmax.f32 %v4038_v17, 0.0  ;;  %v4214_v62 = vpack.c.bf16 %v4162_v44, %v4160_v12  ;;  %v4042_v46 = vadd.f32 %v4041_v19, %v3849_v2  ;;  %v3873_v17 = vadd.f32 %v8960_v36, %v8952_v32 }
 0x384   :  { %v4043_v8 = vpop.f32.mrf.mxu1  ;;  %v3869_v19 = vadd.f32 %v8944_v10, %v8952_v32  ;;  %v3875_v12 = vadd.f32 %v8968_v34, %v8948_v63  ;;  %v3881_v34 = vadd.f32 %v8984_v51, %v8948_v63 }
 0x385   :  { %v4215_v20 = vpack.c.bf16 %v4163_v7, %v4161_v58  ;;  %v4044_v4 = vadd.f32 %v4043_v8, %v3851_v56  ;;  %v4164_v38 = vmax.f32 %v4042_v46, 0.0  ;;  %v3883_v46 = vadd.f32 %v8994_v15, %v8952_v32 }
 0x386   :  { %v4045_v49 = vpop.f32.mrf.mxu1 }
 0x387   :  { %v4046_v18 = vadd.f32 %v4045_v49, %v3853_v39  ;;  %4443 = vmatprep.mubr.bf16.mxu0 %v4215_v20  ;;  %v4165_v41 = vmax.f32 %v4044_v4, 0.0  ;;  %v9066_v39 = vpop.f32.mrf.mxu0 }
 0x388   :  { %v4047_v40 = vpop.f32.mrf.mxu1  ;;  %4444 = vmatmul.mubr.bf16.gmra.mxu0 %v4214_v62 }
 0x389   :  { %v4048_v33 = vadd.f32 %v4047_v40, %v3855_v27  ;;  %v4166_v30 = vmax.f32 %v4046_v18, 0.0  ;;  %v9068_v4 = vpop.f32.mrf.mxu0 }
 0x38a   :  { %v4051_v21 = vpop.f32.mrf.mxu1 }
 0x38b   :  { %v4167_v16 = vmax.f32 %v4048_v33, 0.0  ;;  %v4216_v53 = vpack.c.bf16 %v4166_v30, %v4164_v38  ;;  %v4052_v61 = vadd.f32 %v4051_v21, %v3859_v42  ;;  %v3879_v33 = vadd.f32 %v8979_v43, %v8952_v32 }
 0x38c   :  { %v4053_v0 = vpop.f32.mrf.mxu1 }
 0x38d   :  { %v4217_v60 = vpack.c.bf16 %v4167_v16, %v4165_v41  ;;  %v4054_v37 = vadd.f32 %v4053_v0, %v3861_v28  ;;  %v4168_v45 = vmax.f32 %v4052_v61, 0.0  ;;  %v3885_v41 = vadd.f32 %v8996_v3, %v8948_v63  ;;  %v9078_v0 = vpop.f32.mrf.mxu0  ;;  %v6139_v61 = vld [vmem:[%s9379_s7 + $0x18] sm:$0xff]  }
 0x38e   :  { %v4055_v9 = vpop.f32.mrf.mxu1  ;;  %v3891_v3 = vadd.f32 %v9008_v35, %v8948_v63  ;;  %5648 = vmatprep.subr.bf16.mxu1 %v6139_v61 }
 0x38f   :  { %v4056_v50 = vadd.f32 %v4055_v9, %v3863_v26  ;;  %4451 = vmatprep.mubr.bf16.mxu0 %v4217_v60  ;;  %v4169_v5 = vmax.f32 %v4054_v37, 0.0  ;;  %v9080_v9 = vpop.f32.mrf.mxu0  ;;  %v3893_v37 = vadd.f32 %v9018_v47, %v8952_v32  ;;  %5649 = vmatpush3.bf16.msra.mxu1 %v6139_v61 }
 0x390   :  { %v4057_v1 = vpop.f32.mrf.mxu1  ;;  %4452 = vmatmul.mubr.bf16.gmra.mxu0 %v4216_v53 }
 0x391   :  { %v4058_v23 = vadd.f32 %v4057_v1, %v3865_v29  ;;  %v4170_v14 = vmax.f32 %v4056_v50, 0.0  ;;  %v3889_v1 = vadd.f32 %v9006_v48, %v8952_v32  ;;  %v9093_v35 = vpop.f32.mrf.mxu0  ;;  %v6140_v48 = vld [vmem:[%s9379_s7 + $0x10] sm:$0xff]  }
 0x392   :  { %v4061_v57 = vpop.f32.mrf.mxu1  ;;  %5650 = vmatprep.subr.bf16.mxu1 %v6140_v48 }
 0x393   :  { %v4171_v13 = vmax.f32 %v4058_v23, 0.0  ;;  %v4218_v58 = vpack.c.bf16 %v4170_v14, %v4168_v45  ;;  %v4062_v20 = vadd.f32 %v4061_v57, %v3869_v19  ;;  %v3895_v57 = vadd.f32 %v9020_v52, %v8948_v63  ;;  %v3924_v52 = vpop.f32.mrf.mxu0  ;;  %5651 = vmatpush3.bf16.msra.mxu1 %v6140_v48 }
 0x394   :  { %v4063_v11 = vpop.f32.mrf.mxu1 }
 0x395   :  { %v4219_v44 = vpack.c.bf16 %v4171_v13, %v4169_v5  ;;  %v4064_v8 = vadd.f32 %v4063_v11, %v3871_v24  ;;  %v4172_v10 = vmax.f32 %v4062_v20, 0.0  ;;  %v6141_v20 = vld [vmem:[%s9379_s7 + $0x8] sm:$0xff]  }
 0x396   :  { %v4065_v7 = vpop.f32.mrf.mxu1  ;;  %5652 = vmatprep.subr.bf16.mxu1 %v6141_v20 }
 0x397   :  { %v4066_v56 = vadd.f32 %v4065_v7, %v3873_v17  ;;  %4459 = vmatprep.mubr.bf16.mxu0 %v4219_v44  ;;  %v4173_v49 = vmax.f32 %v4064_v8, 0.0  ;;  %v3903_v8 = vadd.f32 %v9042_v55, %v8952_v32  ;;  %5653 = vmatpush3.bf16.msra.mxu1 %v6141_v20 }
 0x398   :  { %v4067_v2 = vpop.f32.mrf.mxu1  ;;  %4460 = vmatmul.mubr.bf16.gmra.mxu0 %v4218_v58 }
 0x399   :  { %v4068_v6 = vadd.f32 %v4067_v2, %v3875_v12  ;;  %v4174_v62 = vmax.f32 %v4066_v56, 0.0  ;;  %v3901_v12 = vadd.f32 %v9032_v22, %v8948_v63  ;;  %v3899_v2 = vadd.f32 %v9030_v54, %v8952_v32  ;;  %v9109_v22 = vpop.f32.mrf.mxu0  ;;  %v6142_v54 = vld [vmem:[%s9379_s7] sm:$0xff]  }
 0x39a   :  { %v4071_v36 = vpop.f32.mrf.mxu1  ;;  %5654 = vmatprep.subr.bf16.mxu1 %v6142_v54  ;;  %v3929_v20 = vadd.f32 %v9109_v22, %v8952_v32 }
 0x39b   :  { %v4175_v27 = vmax.f32 %v4068_v6, 0.0  ;;  %v4220_v30 = vpack.c.bf16 %v4174_v62, %v4172_v10  ;;  %v4072_v28 = vadd.f32 %v4071_v36, %v3879_v33  ;;  %v3905_v36 = vadd.f32 %v9044_v59, %v8948_v63  ;;  %v3930_v59 = vpop.f32.mrf.mxu0  ;;  %5655 = vmatpush3.bf16.msra.mxu1 %v6142_v54 }
 0x39c   :  { %v4073_v18 = vpop.f32.mrf.mxu1 }
 0x39d   :  { %v4221_v40 = vpack.c.bf16 %v4175_v27, %v4173_v49  ;;  %v4074_v16 = vadd.f32 %v4073_v18, %v3881_v34  ;;  %v4176_v43 = vmax.f32 %v4072_v28, 0.0  ;;  %v3909_v28 = vadd.f32 %v9054_v25, %v8952_v32 }
 0x39e   :  { %v4075_v21 = vpop.f32.mrf.mxu1 }
 0x39f   :  { %v4076_v38 = vadd.f32 %v4075_v21, %v3883_v46  ;;  %4467 = vmatprep.mubr.bf16.mxu0 %v4221_v40  ;;  %v4177_v42 = vmax.f32 %v4074_v16, 0.0  ;;  %v3913_v16 = vadd.f32 %v9066_v39, %v8952_v32 }
 0x3a0   :  { %v4077_v26 = vpop.f32.mrf.mxu1  ;;  %4468 = vmatmul.mubr.bf16.gmra.mxu0 %v4220_v30 }
 0x3a1   :  { %v4078_v51 = vadd.f32 %v4077_v26, %v3885_v41  ;;  %v4178_v60 = vmax.f32 %v4076_v38, 0.0  ;;  %v3911_v41 = vadd.f32 %v9056_v31, %v8948_v63 }
 0x3a2   :  { %v4081_v15 = vpop.f32.mrf.mxu1 }
 0x3a3   :  { %v4179_v53 = vmax.f32 %v4078_v51, 0.0  ;;  %v4222_v23 = vpack.c.bf16 %v4178_v60, %v4176_v43  ;;  %v4082_v47 = vadd.f32 %v4081_v15, %v3889_v1  ;;  %v3915_v60 = vadd.f32 %v9068_v4, %v8948_v63 }
 0x3a4   :  { %v4083_v29 = vpop.f32.mrf.mxu1  ;;  %v3923_v4 = vadd.f32 %v9093_v35, %v8952_v32 }
 0x3a5   :  { %v4223_v50 = vpack.c.bf16 %v4179_v53, %v4177_v42  ;;  %v4084_v5 = vadd.f32 %v4083_v29, %v3891_v3  ;;  %v4180_v58 = vmax.f32 %v4082_v47, 0.0  ;;  %v3932_v53 = vpop.f32.mrf.mxu0  ;;  %v3925_v47 = vadd.f32 %v3924_v52, %v8948_v63 }
 0x3a6   :  { %v4085_v14 = vpop.f32.mrf.mxu1 }
 0x3a7   :  { %v4086_v13 = vadd.f32 %v4085_v14, %v3893_v37  ;;  %4475 = vmatprep.mubr.bf16.mxu0 %v4223_v50  ;;  %v4181_v44 = vmax.f32 %v4084_v5, 0.0  ;;  %v3934_v61 = vpop.f32.mrf.mxu0 }
 0x3a8   :  { %v4087_v45 = vpop.f32.mrf.mxu1  ;;  %4476 = vmatmul.mubr.bf16.gmra.mxu0 %v4222_v23  ;;  %v3921_v23 = vadd.f32 %v9080_v9, %v8948_v63 }
 0x3a9   :  { %v4088_v11 = vadd.f32 %v4087_v45, %v3895_v57  ;;  %v4182_v24 = vmax.f32 %v4086_v13, 0.0  ;;  %v3919_v57 = vadd.f32 %v9078_v0, %v8952_v32  ;;  %v3938_v48 = vpop.f32.mrf.mxu0  ;;  %v3931_v0 = vadd.f32 %v3930_v59, %v8948_v63 }
 0x3aa   :  { %v4091_v17 = vpop.f32.mrf.mxu1 }
 0x3ab   :  { %v4183_v19 = vmax.f32 %v4088_v11, 0.0  ;;  %v4224_v6 = vpack.c.bf16 %v4182_v24, %v4180_v58  ;;  %v4092_v55 = vadd.f32 %v4091_v17, %v3899_v2 }
 0x3ac   :  { %v4093_v7 = vpop.f32.mrf.mxu1 }
 0x3ad   :  { %v4225_v56 = vpack.c.bf16 %v4183_v19, %v4181_v44  ;;  %v4094_v49 = vadd.f32 %v4093_v7, %v3901_v12  ;;  %v4184_v30 = vmax.f32 %v4092_v55, 0.0  ;;  %v3940_v7 = vpop.f32.mrf.mxu0 }
 0x3ae   :  { %v4095_v62 = vpop.f32.mrf.mxu1  ;;  %v3941_v22 = vadd.f32 %v3940_v7, %v8948_v63 }
 0x3af   :  { %v4096_v27 = vadd.f32 %v4095_v62, %v3903_v8  ;;  %4483 = vmatprep.mubr.bf16.mxu0 %v4225_v56  ;;  %v4185_v40 = vmax.f32 %v4094_v49, 0.0  ;;  %v3933_v56 = vadd.f32 %v3932_v53, %v8952_v32  ;;  %v3935_v62 = vadd.f32 %v3934_v61, %v8948_v63 }
 0x3b0   :  { %v4097_v10 = vpop.f32.mrf.mxu1  ;;  %4484 = vmatmul.mubr.bf16.gmra.mxu0 %v4224_v6 }
 0x3b1   :  { %v4098_v18 = vadd.f32 %v4097_v10, %v3905_v36  ;;  %v4186_v34 = vmax.f32 %v4096_v27, 0.0  ;;  %v3942_v27 = vpop.f32.mrf.mxu0 }
 0x3b2   :  { %v4101_v46 = vpop.f32.mrf.mxu1 }
 0x3b3   :  { %v4187_v33 = vmax.f32 %v4098_v18, 0.0  ;;  %v4226_v26 = vpack.c.bf16 %v4186_v34, %v4184_v30  ;;  %v4102_v43 = vadd.f32 %v4101_v46, %v3909_v28 }
 0x3b4   :  { %v4103_v21 = vpop.f32.mrf.mxu1 }
 0x3b5   :  { %v4227_v38 = vpack.c.bf16 %v4187_v33, %v4185_v40  ;;  %v4104_v15 = vadd.f32 %v4103_v21, %v3911_v41  ;;  %v4188_v1 = vmax.f32 %v4102_v43, 0.0  ;;  %v3944_v33 = vpop.f32.mrf.mxu0  ;;  %v3943_v21 = vadd.f32 %v3942_v27, %v8952_v32 }
 0x3b6   :  { %v4105_v51 = vpop.f32.mrf.mxu1 }
 0x3b7   :  { %v4106_v42 = vadd.f32 %v4105_v51, %v3913_v16  ;;  %4491 = vmatprep.mubr.bf16.mxu0 %v4227_v38  ;;  %v4189_v39 = vmax.f32 %v4104_v15, 0.0  ;;  %v3939_v16 = vadd.f32 %v3938_v48, %v8952_v32 }
 0x3b8   :  { %v4107_v29 = vpop.f32.mrf.mxu1  ;;  %4492 = vmatmul.mubr.bf16.gmra.mxu0 %v4226_v26  ;;  %v3945_v26 = vadd.f32 %v3944_v33, %v8948_v63  ;;  %v9141_v63 = vld [vmem:[%s9380_s6] ss:$0 sm:$0xff] }
 0x3b9   :  { %v4108_v31 = vadd.f32 %v4107_v29, %v3915_v60  ;;  %v4190_v3 = vmax.f32 %v4106_v42, 0.0 }
 0x3ba   :  { %v4111_v37 = vpop.f32.mrf.mxu1 }
 0x3bb   :  { %v4191_v50 = vmax.f32 %v4108_v31, 0.0  ;;  %v4228_v5 = vpack.c.bf16 %v4190_v3, %v4188_v1  ;;  %v4112_v24 = vadd.f32 %v4111_v37, %v3919_v57  ;;  %v6143_v57 = vld [vmem:[%s9381_s9 + $0x18] sm:$0xff]  }
 0x3bc   :  { %v4113_v25 = vpop.f32.mrf.mxu1  ;;  %5688 = vmatprep.subr.bf16.mxu1 %v6143_v57 }
 0x3bd   :  { %v4229_v14 = vpack.c.bf16 %v4191_v50, %v4189_v39  ;;  %v4114_v45 = vadd.f32 %v4113_v25, %v3921_v23  ;;  %v4192_v12 = vmax.f32 %v4112_v24, 0.0 }
 0x3be   :  { %v4115_v13 = vpop.f32.mrf.mxu1 }
 0x3bf   :  { %v4116_v11 = vadd.f32 %v4115_v13, %v3923_v4  ;;  %4499 = vmatprep.mubr.bf16.mxu0 %v4229_v14  ;;  %v4193_v58 = vmax.f32 %v4114_v45, 0.0 }
 0x3c0   :  { %v4117_v17 = vpop.f32.mrf.mxu1  ;;  %4500 = vmatmul.mubr.bf16.gmra.mxu0 %v4228_v5 }
 0x3c1   :  { %v4118_v44 = vadd.f32 %v4117_v17, %v3925_v47  ;;  %v4194_v9 = vmax.f32 %v4116_v11, 0.0 }
 0x3c2   :  { %v4121_v19 = vpop.f32.mrf.mxu1 }
 0x3c3   :  { %v4195_v35 = vmax.f32 %v4118_v44, 0.0  ;;  %v4230_v2 = vpack.c.bf16 %v4194_v9, %v4192_v12  ;;  %v4122_v55 = vadd.f32 %v4121_v19, %v3929_v20 }
 0x3c4   :  { %v4123_v8 = vpop.f32.mrf.mxu1 }
 0x3c5   :  { %v4231_v52 = vpack.c.bf16 %v4195_v35, %v4193_v58  ;;  %v4124_v36 = vadd.f32 %v4123_v8, %v3931_v0  ;;  %v4196_v59 = vmax.f32 %v4122_v55, 0.0 }
 0x3c6   :  { %v4125_v6 = vpop.f32.mrf.mxu1 }
 0x3c7   :  { %v4126_v49 = vadd.f32 %v4125_v6, %v3933_v56  ;;  %4507 = vmatprep.mubr.bf16.mxu0 %v4231_v52  ;;  %v4197_v46 = vmax.f32 %v4124_v36, 0.0 }
 0x3c8   :  { %v4127_v10 = vpop.f32.mrf.mxu1  ;;  %4508 = vmatmul.mubr.bf16.gmra.mxu0 %v4230_v2 }
 0x3c9   :  { %v4128_v18 = vadd.f32 %v4127_v10, %v3935_v62  ;;  %v4198_v54 = vmax.f32 %v4126_v49, 0.0 }
 0x3ca   :  { %v4131_v34 = vpop.f32.mrf.mxu1 }
 0x3cb   :  { %v4199_v40 = vmax.f32 %v4128_v18, 0.0  ;;  %v4232_v38 = vpack.c.bf16 %v4198_v54, %v4196_v59  ;;  %v4132_v15 = vadd.f32 %v4131_v34, %v3939_v16 }
 0x3cc   :  { %v4133_v30 = vpop.f32.mrf.mxu1 }
 0x3cd   :  { %v4233_v41 = vpack.c.bf16 %v4199_v40, %v4197_v46  ;;  %v4134_v51 = vadd.f32 %v4133_v30, %v3941_v22  ;;  %v4200_v3 = vmax.f32 %v4132_v15, 0.0 }
 0x3ce   :  { %v4135_v28 = vpop.f32.mrf.mxu1 }
 0x3cf   :  { %v4136_v60 = vadd.f32 %v4135_v28, %v3943_v21  ;;  %4515 = vmatprep.mubr.bf16.mxu0 %v4233_v41  ;;  %v4201_v29 = vmax.f32 %v4134_v51, 0.0 }
 0x3d0   :  { %v4137_v42 = vpop.f32.mrf.mxu1  ;;  %4516 = vmatmul.mubr.bf16.gmra.mxu0 %v4232_v38 }
 0x3d1   :  { %v4138_v53 = vadd.f32 %v4137_v42, %v3945_v26  ;;  %v4202_v43 = vmax.f32 %v4136_v60, 0.0 }
 0x3d3   :  { %v4203_v31 = vmax.f32 %v4138_v53, 0.0  ;;  %v4234_v39 = vpack.c.bf16 %v4202_v43, %v4200_v3 }
 0x3d5   :  { %v4235_v37 = vpack.c.bf16 %v4203_v31, %v4201_v29 }
 0x3d7   :  { %4523 = vmatprep.mubr.bf16.mxu0 %v4235_v37 }
 0x3d8   :  { %4524 = vmatmul.mubr.bf16.gmra.mxu0 %v4234_v39 }
 0x420   :  { %v5500_v32 = vpop.f32.mrf.mxu0 }
 0x422   :  { %v5501_v50 = vpop.f32.mrf.mxu0 }
 0x423   :  { %v5502_v61 = vadd.f32 %v5501_v50, %v5500_v32 }
 0x424   :  { %v5503_v1 = vpop.f32.mrf.mxu0 }
 0x425   :  { %v4406_v23 = vadd.f32 %v5502_v61, %v9141_v63 }
 0x426   :  { %v5504_v25 = vpop.f32.mrf.mxu0 }
 0x427   :  { %v5505_v4 = vadd.f32 %v5504_v25, %v5503_v1  ;;  %v4532_v47 = vmax.f32 %v4406_v23, 0.0 }
 0x428   :  { %v5506_v14 = vpop.f32.mrf.mxu0 }
 0x429   :  { %v4409_v5 = vadd.f32 %v5505_v4, %v9141_v63 }
 0x42a   :  { %v5507_v13 = vpop.f32.mrf.mxu0 }
 0x42b   :  { %v4533_v45 = vmax.f32 %v4409_v5, 0.0  ;;  %v5508_v11 = vadd.f32 %v5507_v13, %v5506_v14 }
 0x42c   :  { %v5509_v48 = vpop.f32.mrf.mxu0 }
 0x42d   :  { %v4564_v24 = vpack.c.bf16 %v4533_v45, %v4532_v47  ;;  %v4414_v44 = vadd.f32 %v5508_v11, %v9141_v63 }
 0x42e   :  { %v5510_v17 = vpop.f32.mrf.mxu0 }
 0x42f   :  { %v5511_v9 = vadd.f32 %v5510_v17, %v5509_v48  ;;  %5656 = vmatprep.mubr.bf16.mxu1 %v4564_v24  ;;  %v4534_v7 = vmax.f32 %v4414_v44, 0.0 }
 0x430   :  { %v5512_v19 = vpop.f32.mrf.mxu0 }
 0x431   :  { %v4417_v58 = vadd.f32 %v5511_v9, %v9141_v63 }
 0x432   :  { %v5513_v35 = vpop.f32.mrf.mxu0 }
 0x433   :  { %v4535_v12 = vmax.f32 %v4417_v58, 0.0  ;;  %v5514_v8 = vadd.f32 %v5513_v35, %v5512_v19 }
 0x434   :  { %v5515_v0 = vpop.f32.mrf.mxu0 }
 0x435   :  { %v4565_v56 = vpack.c.bf16 %v4535_v12, %v4534_v7  ;;  %v4422_v20 = vadd.f32 %v5514_v8, %v9141_v63 }
 0x436   :  { %v5516_v52 = vpop.f32.mrf.mxu0 }
 0x437   :  { %v5517_v2 = vadd.f32 %v5516_v52, %v5515_v0  ;;  %5657 = vmatmul.mubr.bf16.vlgmr.msra.gmra.mxu1 %v4565_v56  ;;  %v4536_v49 = vmax.f32 %v4422_v20, 0.0 }
 0x438   :  { %v5518_v6 = vpop.f32.mrf.mxu0  ;;  %5689 = vmatpush3.bf16.msra.mxu1 %v6143_v57 }
 0x439   :  { %v4425_v62 = vadd.f32 %v5517_v2, %v9141_v63 }
 0x43a   :  { %v5519_v36 = vpop.f32.mrf.mxu0 }
 0x43b   :  { %v4537_v27 = vmax.f32 %v4425_v62, 0.0  ;;  %v5520_v55 = vadd.f32 %v5519_v36, %v5518_v6 }
 0x43c   :  { %v5521_v10 = vpop.f32.mrf.mxu0 }
 0x43d   :  { %v4566_v18 = vpack.c.bf16 %v4537_v27, %v4536_v49  ;;  %v4430_v34 = vadd.f32 %v5520_v55, %v9141_v63 }
 0x43e   :  { %v5522_v54 = vpop.f32.mrf.mxu0 }
 0x43f   :  { %v5523_v46 = vadd.f32 %v5522_v54, %v5521_v10  ;;  %5660 = vmatprep.mubr.bf16.mxu1 %v4566_v18  ;;  %v4538_v30 = vmax.f32 %v4430_v34, 0.0 }
 0x440   :  { %v5524_v40 = vpop.f32.mrf.mxu0 }
 0x441   :  { %v4433_v33 = vadd.f32 %v5523_v46, %v9141_v63 }
 0x442   :  { %v5525_v59 = vpop.f32.mrf.mxu0 }
 0x443   :  { %v4539_v22 = vmax.f32 %v4433_v33, 0.0  ;;  %v5526_v21 = vadd.f32 %v5525_v59, %v5524_v40 }
 0x444   :  { %v5527_v41 = vpop.f32.mrf.mxu0 }
 0x445   :  { %v4567_v16 = vpack.c.bf16 %v4539_v22, %v4538_v30  ;;  %v4438_v28 = vadd.f32 %v5526_v21, %v9141_v63 }
 0x446   :  { %v5528_v38 = vpop.f32.mrf.mxu0 }
 0x447   :  { %v5529_v26 = vadd.f32 %v5528_v38, %v5527_v41  ;;  %5661 = vmatmul.mubr.bf16.gmra.mxu1 %v4567_v16  ;;  %v4540_v42 = vmax.f32 %v4438_v28, 0.0 }
 0x448   :  { %v5530_v51 = vpop.f32.mrf.mxu0 }
 0x449   :  { %v4441_v60 = vadd.f32 %v5529_v26, %v9141_v63 }
 0x44a   :  { %v5531_v15 = vpop.f32.mrf.mxu0 }
 0x44b   :  { %v4541_v53 = vmax.f32 %v4441_v60, 0.0  ;;  %v5532_v43 = vadd.f32 %v5531_v15, %v5530_v51 }
 0x44c   :  { %v5533_v29 = vpop.f32.mrf.mxu0 }
 0x44d   :  { %v4568_v31 = vpack.c.bf16 %v4541_v53, %v4540_v42  ;;  %v4446_v37 = vadd.f32 %v5532_v43, %v9141_v63  ;;  %v6144_v42 = vld [vmem:[%s9381_s9 + $0x10] sm:$0xff]  }
 0x44e   :  { %v5534_v3 = vpop.f32.mrf.mxu0  ;;  %5690 = vmatprep.subr.bf16.mxu1 %v6144_v42 }
 0x44f   :  { %v5535_v39 = vadd.f32 %v5534_v3, %v5533_v29  ;;  %5664 = vmatprep.mubr.bf16.mxu1 %v4568_v31  ;;  %v4542_v1 = vmax.f32 %v4446_v37, 0.0  ;;  %5691 = vmatpush3.bf16.msra.mxu1 %v6144_v42 }
 0x450   :  { %v5536_v32 = vpop.f32.mrf.mxu0 }
 0x451   :  { %v4449_v50 = vadd.f32 %v5535_v39, %v9141_v63  ;;  %v6145_v39 = vld [vmem:[%s9381_s9 + $0x8] sm:$0xff]  }
 0x452   :  { %v5537_v61 = vpop.f32.mrf.mxu0  ;;  %5692 = vmatprep.subr.bf16.mxu1 %v6145_v39 }
 0x453   :  { %v4543_v25 = vmax.f32 %v4449_v50, 0.0  ;;  %v5538_v23 = vadd.f32 %v5537_v61, %v5536_v32  ;;  %5693 = vmatpush3.bf16.msra.mxu1 %v6145_v39 }
 0x454   :  { %v5539_v4 = vpop.f32.mrf.mxu0 }
 0x455   :  { %v4569_v14 = vpack.c.bf16 %v4543_v25, %v4542_v1  ;;  %v4454_v5 = vadd.f32 %v5538_v23, %v9141_v63  ;;  %v6146_v23 = vld [vmem:[%s9381_s9] sm:$0xff]  }
 0x456   :  { %v5540_v57 = vpop.f32.mrf.mxu0  ;;  %5694 = vmatprep.subr.bf16.mxu1 %v6146_v23 }
 0x457   :  { %v5541_v13 = vadd.f32 %v5540_v57, %v5539_v4  ;;  %5665 = vmatmul.mubr.bf16.gmra.mxu1 %v4569_v14  ;;  %v4544_v48 = vmax.f32 %v4454_v5, 0.0 }
 0x458   :  { %v5542_v47 = vpop.f32.mrf.mxu0  ;;  %5695 = vmatpush3.bf16.msra.mxu1 %v6146_v23 }
 0x459   :  { %v4457_v45 = vadd.f32 %v5541_v13, %v9141_v63 }
 0x45a   :  { %v5543_v11 = vpop.f32.mrf.mxu0 }
 0x45b   :  { %v4545_v24 = vmax.f32 %v4457_v45, 0.0  ;;  %v5544_v17 = vadd.f32 %v5543_v11, %v5542_v47 }
 0x45c   :  { %v5545_v44 = vpop.f32.mrf.mxu0 }
 0x45d   :  { %v4570_v9 = vpack.c.bf16 %v4545_v24, %v4544_v48  ;;  %v4462_v58 = vadd.f32 %v5544_v17, %v9141_v63 }
 0x45e   :  { %v5546_v19 = vpop.f32.mrf.mxu0 }
 0x45f   :  { %v5547_v35 = vadd.f32 %v5546_v19, %v5545_v44  ;;  %5668 = vmatprep.mubr.bf16.mxu1 %v4570_v9  ;;  %v4546_v0 = vmax.f32 %v4462_v58, 0.0 }
 0x460   :  { %v5548_v7 = vpop.f32.mrf.mxu0 }
 0x461   :  { %v4465_v12 = vadd.f32 %v5547_v35, %v9141_v63 }
 0x462   :  { %v5549_v8 = vpop.f32.mrf.mxu0 }
 0x463   :  { %v4547_v56 = vmax.f32 %v4465_v12, 0.0  ;;  %v5550_v52 = vadd.f32 %v5549_v8, %v5548_v7 }
 0x464   :  { %v5551_v20 = vpop.f32.mrf.mxu0 }
 0x465   :  { %v4571_v2 = vpack.c.bf16 %v4547_v56, %v4546_v0  ;;  %v4470_v62 = vadd.f32 %v5550_v52, %v9141_v63 }
 0x466   :  { %v5552_v6 = vpop.f32.mrf.mxu0 }
 0x467   :  { %v5553_v36 = vadd.f32 %v5552_v6, %v5551_v20  ;;  %5669 = vmatmul.mubr.bf16.gmra.mxu1 %v4571_v2  ;;  %v4548_v10 = vmax.f32 %v4470_v62, 0.0 }
 0x468   :  { %v5554_v49 = vpop.f32.mrf.mxu0 }
 0x469   :  { %v4473_v27 = vadd.f32 %v5553_v36, %v9141_v63 }
 0x46a   :  { %v5555_v55 = vpop.f32.mrf.mxu0 }
 0x46b   :  { %v4549_v18 = vmax.f32 %v4473_v27, 0.0  ;;  %v5556_v54 = vadd.f32 %v5555_v55, %v5554_v49 }
 0x46c   :  { %v5557_v34 = vpop.f32.mrf.mxu0 }
 0x46d   :  { %v4572_v46 = vpack.c.bf16 %v4549_v18, %v4548_v10  ;;  %v4478_v33 = vadd.f32 %v5556_v54, %v9141_v63 }
 0x46e   :  { %v5558_v40 = vpop.f32.mrf.mxu0 }
 0x46f   :  { %v5559_v59 = vadd.f32 %v5558_v40, %v5557_v34  ;;  %5672 = vmatprep.mubr.bf16.mxu1 %v4572_v46  ;;  %v4550_v41 = vmax.f32 %v4478_v33, 0.0 }
 0x470   :  { %v5560_v30 = vpop.f32.mrf.mxu0 }
 0x471   :  { %v4481_v22 = vadd.f32 %v5559_v59, %v9141_v63 }
 0x472   :  { %v5561_v21 = vpop.f32.mrf.mxu0 }
 0x473   :  { %v4551_v16 = vmax.f32 %v4481_v22, 0.0  ;;  %v5562_v38 = vadd.f32 %v5561_v21, %v5560_v30 }
 0x474   :  { %v5563_v28 = vpop.f32.mrf.mxu0 }
 0x475   :  { %v4573_v26 = vpack.c.bf16 %v4551_v16, %v4550_v41  ;;  %v4486_v60 = vadd.f32 %v5562_v38, %v9141_v63 }
 0x476   :  { %v5564_v51 = vpop.f32.mrf.mxu0 }
 0x477   :  { %v5565_v15 = vadd.f32 %v5564_v51, %v5563_v28  ;;  %5673 = vmatmul.mubr.bf16.gmra.mxu1 %v4573_v26  ;;  %v4552_v31 = vmax.f32 %v4486_v60, 0.0 }
 0x478   :  { %v5566_v53 = vpop.f32.mrf.mxu0 }
 0x479   :  { %v4489_v43 = vadd.f32 %v5565_v15, %v9141_v63 }
 0x47a   :  { %v5567_v29 = vpop.f32.mrf.mxu0 }
 0x47b   :  { %v4553_v3 = vmax.f32 %v4489_v43, 0.0  ;;  %v5568_v37 = vadd.f32 %v5567_v29, %v5566_v53  ;;  %v9190_v53 = vld [vmem:[%s9382_s8] ss:$0 sm:$0xff] }
 0x47c   :  { %v5569_v32 = vpop.f32.mrf.mxu0 }
 0x47d   :  { %v4574_v50 = vpack.c.bf16 %v4553_v3, %v4552_v31  ;;  %v4494_v1 = vadd.f32 %v5568_v37, %v9141_v63 }
 0x47e   :  { %v5570_v61 = vpop.f32.mrf.mxu0 }
 0x47f   :  { %v5571_v25 = vadd.f32 %v5570_v61, %v5569_v32  ;;  %5676 = vmatprep.mubr.bf16.mxu1 %v4574_v50  ;;  %v4554_v5 = vmax.f32 %v4494_v1, 0.0 }
 0x480   :  { %v5572_v4 = vpop.f32.mrf.mxu0 }
 0x481   :  { %v4497_v14 = vadd.f32 %v5571_v25, %v9141_v63 }
 0x482   :  { %v5573_v57 = vpop.f32.mrf.mxu0 }
 0x483   :  { %v4555_v13 = vmax.f32 %v4497_v14, 0.0  ;;  %v5574_v47 = vadd.f32 %v5573_v57, %v5572_v4 }
 0x484   :  { %v5575_v45 = vpop.f32.mrf.mxu0 }
 0x485   :  { %v4575_v11 = vpack.c.bf16 %v4555_v13, %v4554_v5  ;;  %v4502_v24 = vadd.f32 %v5574_v47, %v9141_v63 }
 0x486   :  { %v5576_v48 = vpop.f32.mrf.mxu0 }
 0x487   :  { %v5577_v17 = vadd.f32 %v5576_v48, %v5575_v45  ;;  %5677 = vmatmul.mubr.bf16.gmra.mxu1 %v4575_v11  ;;  %v4556_v58 = vmax.f32 %v4502_v24, 0.0 }
 0x488   :  { %v5578_v44 = vpop.f32.mrf.mxu0 }
 0x489   :  { %v4505_v9 = vadd.f32 %v5577_v17, %v9141_v63 }
 0x48a   :  { %v5579_v19 = vpop.f32.mrf.mxu0 }
 0x48b   :  { %v4557_v35 = vmax.f32 %v4505_v9, 0.0  ;;  %v5580_v7 = vadd.f32 %v5579_v19, %v5578_v44 }
 0x48c   :  { %v5581_v12 = vpop.f32.mrf.mxu0 }
 0x48d   :  { %v4576_v8 = vpack.c.bf16 %v4557_v35, %v4556_v58  ;;  %v4510_v56 = vadd.f32 %v5580_v7, %v9141_v63 }
 0x48e   :  { %v5582_v0 = vpop.f32.mrf.mxu0 }
 0x48f   :  { %v5583_v52 = vadd.f32 %v5582_v0, %v5581_v12  ;;  %5680 = vmatprep.mubr.bf16.mxu1 %v4576_v8  ;;  %v4558_v62 = vmax.f32 %v4510_v56, 0.0 }
 0x490   :  { %v5584_v20 = vpop.f32.mrf.mxu0 }
 0x491   :  { %v4513_v2 = vadd.f32 %v5583_v52, %v9141_v63 }
 0x492   :  { %v5585_v6 = vpop.f32.mrf.mxu0 }
 0x493   :  { %v4559_v36 = vmax.f32 %v4513_v2, 0.0  ;;  %v5586_v49 = vadd.f32 %v5585_v6, %v5584_v20 }
 0x494   :  { %v5587_v27 = vpop.f32.mrf.mxu0 }
 0x495   :  { %v4577_v55 = vpack.c.bf16 %v4559_v36, %v4558_v62  ;;  %v4518_v18 = vadd.f32 %v5586_v49, %v9141_v63 }
 0x496   :  { %v5588_v10 = vpop.f32.mrf.mxu0 }
 0x497   :  { %v5589_v54 = vadd.f32 %v5588_v10, %v5587_v27  ;;  %5681 = vmatmul.mubr.bf16.gmra.mxu1 %v4577_v55  ;;  %v4560_v33 = vmax.f32 %v4518_v18, 0.0 }
 0x498   :  { %v5590_v34 = vpop.f32.mrf.mxu0 }
 0x499   :  { %v4521_v46 = vadd.f32 %v5589_v54, %v9141_v63 }
 0x49a   :  { %v5591_v40 = vpop.f32.mrf.mxu0 }
 0x49b   :  { %v4561_v59 = vmax.f32 %v4521_v46, 0.0  ;;  %v5592_v30 = vadd.f32 %v5591_v40, %v5590_v34 }
 0x49c   :  { %v5593_v22 = vpop.f32.mrf.mxu0 }
 0x49d   :  { %v4578_v21 = vpack.c.bf16 %v4561_v59, %v4560_v33  ;;  %v4526_v16 = vadd.f32 %v5592_v30, %v9141_v63 }
 0x49e   :  { %v5594_v41 = vpop.f32.mrf.mxu0 }
 0x49f   :  { %v5595_v38 = vadd.f32 %v5594_v41, %v5593_v22  ;;  %5684 = vmatprep.mubr.bf16.mxu1 %v4578_v21  ;;  %v4562_v26 = vmax.f32 %v4526_v16, 0.0 }
 0x4a1   :  { %v4529_v28 = vadd.f32 %v5595_v38, %v9141_v63 }
 0x4a3   :  { %v4563_v51 = vmax.f32 %v4529_v28, 0.0 }
 0x4a5   :  { %v4579_v60 = vpack.c.bf16 %v4563_v51, %v4562_v26 }
 0x4a7   :  { %5685 = vmatmul.mubr.bf16.gmra.mxu1 %v4579_v60 }
 0x4f7   :  { %v5658_v15 = vpop.f32.mrf.mxu1 }
 0x4f8   :  { %v4694_v3 = vadd.f32 %v5658_v15, %v9190_v53 }
 0x4f9   :  { %v4685_v42 = vpop.f32.mrf.mxu1 }
 0x4fa   :  { %v4686_v29 = vadd.f32 %v9190_v53, %v4685_v42  ;;  %v4814_v61 = vmax.f32 %v4694_v3, 0.0 }
 0x4fb   :  { %v5659_v43 = vpop.f32.mrf.mxu1 }
 0x4fc   :  { %v4697_v31 = vadd.f32 %v5659_v43, %v9190_v53  ;;  %v4812_v32 = vmax.f32 %v4686_v29, 0.0 }
 0x4fd   :  { %v4688_v37 = vpop.f32.mrf.mxu1 }
 0x4fe   :  { %v4689_v63 = vadd.f32 %v9190_v53, %v4688_v37  ;;  %v4815_v39 = vmax.f32 %v4697_v31, 0.0 }
 0x500   :  { %v4813_v50 = vmax.f32 %v4689_v63, 0.0  ;;  %v4845_v25 = vpack.c.bf16 %v4815_v39, %v4814_v61 }
 0x502   :  { %v4844_v1 = vpack.c.bf16 %v4813_v50, %v4812_v32 }
 0x504   :  { %5696 = vmatprep.mubr.msk.bf16.mxu1 %vm4899_vm1, %v4844_v1 }
 0x505   :  { %5697 = vmatmul.mubr.msk.bf16.vlgmr.msra.gmra.mxu1 %vm4899_vm1, %v4845_v25 }
 0x507   :  { %v5662_v23 = vpop.f32.mrf.mxu1 }
 0x508   :  { %v4710_v13 = vadd.f32 %v5662_v23, %v9190_v53 }
 0x509   :  { %v4701_v4 = vpop.f32.mrf.mxu1 }
 0x50a   :  { %v4702_v57 = vadd.f32 %v9190_v53, %v4701_v4  ;;  %v4818_v17 = vmax.f32 %v4710_v13, 0.0 }
 0x50b   :  { %v5663_v14 = vpop.f32.mrf.mxu1 }
 0x50c   :  { %v4713_v5 = vadd.f32 %v5663_v14, %v9190_v53  ;;  %v4816_v48 = vmax.f32 %v4702_v57, 0.0 }
 0x50d   :  { %v4704_v47 = vpop.f32.mrf.mxu1 }
 0x50e   :  { %v4705_v45 = vadd.f32 %v9190_v53, %v4704_v47  ;;  %v4819_v11 = vmax.f32 %v4713_v5, 0.0 }
 0x510   :  { %v4817_v24 = vmax.f32 %v4705_v45, 0.0  ;;  %v4847_v9 = vpack.c.bf16 %v4819_v11, %v4818_v17 }
 0x512   :  { %v4846_v44 = vpack.c.bf16 %v4817_v24, %v4816_v48 }
 0x514   :  { %5700 = vmatprep.mubr.msk.bf16.mxu1 %vm4899_vm1, %v4846_v44 }
 0x515   :  { %5701 = vmatmul.mubr.msk.bf16.gmra.mxu1 %vm4899_vm1, %v4847_v9 }
 0x517   :  { %v5666_v19 = vpop.f32.mrf.mxu1 }
 0x518   :  { %v4726_v8 = vadd.f32 %v5666_v19, %v9190_v53 }
 0x519   :  { %v4717_v58 = vpop.f32.mrf.mxu1 }
 0x51a   :  { %v4718_v7 = vadd.f32 %v9190_v53, %v4717_v58  ;;  %v4822_v6 = vmax.f32 %v4726_v8, 0.0 }
 0x51b   :  { %v5667_v35 = vpop.f32.mrf.mxu1 }
 0x51c   :  { %v4729_v12 = vadd.f32 %v5667_v35, %v9190_v53  ;;  %v4820_v20 = vmax.f32 %v4718_v7, 0.0 }
 0x51d   :  { %v4720_v0 = vpop.f32.mrf.mxu1 }
 0x51e   :  { %v4721_v56 = vadd.f32 %v9190_v53, %v4720_v0  ;;  %v4823_v52 = vmax.f32 %v4729_v12, 0.0 }
 0x520   :  { %v4821_v2 = vmax.f32 %v4721_v56, 0.0  ;;  %v4849_v36 = vpack.c.bf16 %v4823_v52, %v4822_v6 }
 0x522   :  { %v4848_v62 = vpack.c.bf16 %v4821_v2, %v4820_v20 }
 0x524   :  { %5704 = vmatprep.mubr.msk.bf16.mxu1 %vm4899_vm1, %v4848_v62 }
 0x525   :  { %5705 = vmatmul.mubr.msk.bf16.gmra.mxu1 %vm4899_vm1, %v4849_v36 }
 0x527   :  { %v5670_v49 = vpop.f32.mrf.mxu1 }
 0x528   :  { %v4742_v54 = vadd.f32 %v5670_v49, %v9190_v53 }
 0x529   :  { %v4733_v27 = vpop.f32.mrf.mxu1 }
 0x52a   :  { %v4734_v10 = vadd.f32 %v9190_v53, %v4733_v27  ;;  %v4826_v30 = vmax.f32 %v4742_v54, 0.0 }
 0x52b   :  { %v5671_v55 = vpop.f32.mrf.mxu1 }
 0x52c   :  { %v4745_v18 = vadd.f32 %v5671_v55, %v9190_v53  ;;  %v4824_v33 = vmax.f32 %v4734_v10, 0.0 }
 0x52d   :  { %v4736_v34 = vpop.f32.mrf.mxu1 }
 0x52e   :  { %v4737_v46 = vadd.f32 %v9190_v53, %v4736_v34  ;;  %v4827_v40 = vmax.f32 %v4745_v18, 0.0 }
 0x530   :  { %v4825_v59 = vmax.f32 %v4737_v46, 0.0  ;;  %v4851_v21 = vpack.c.bf16 %v4827_v40, %v4826_v30  ;;  %v9243_v46 = vld [vmem:[%s9383_s10] ss:$0 sm:$0xff] }
 0x532   :  { %v4850_v22 = vpack.c.bf16 %v4825_v59, %v4824_v33 }
 0x534   :  { %5708 = vmatprep.mubr.msk.bf16.mxu1 %vm4899_vm1, %v4850_v22 }
 0x535   :  { %5709 = vmatmul.mubr.msk.bf16.gmra.mxu1 %vm4899_vm1, %v4851_v21 }
 0x537   :  { %v5674_v41 = vpop.f32.mrf.mxu1 }
 0x538   :  { %v4758_v51 = vadd.f32 %v5674_v41, %v9190_v53 }
 0x539   :  { %v4749_v16 = vpop.f32.mrf.mxu1 }
 0x53a   :  { %v4750_v28 = vadd.f32 %v9190_v53, %v4749_v16  ;;  %v4830_v31 = vmax.f32 %v4758_v51, 0.0 }
 0x53b   :  { %v5675_v38 = vpop.f32.mrf.mxu1 }
 0x53c   :  { %v4761_v26 = vadd.f32 %v5675_v38, %v9190_v53  ;;  %v4828_v43 = vmax.f32 %v4750_v28, 0.0 }
 0x53d   :  { %v4752_v60 = vpop.f32.mrf.mxu1 }
 0x53e   :  { %v4753_v15 = vadd.f32 %v9190_v53, %v4752_v60  ;;  %v4831_v42 = vmax.f32 %v4761_v26, 0.0 }
 0x540   :  { %v4829_v29 = vmax.f32 %v4753_v15, 0.0  ;;  %v4853_v37 = vpack.c.bf16 %v4831_v42, %v4830_v31 }
 0x542   :  { %v4852_v3 = vpack.c.bf16 %v4829_v29, %v4828_v43 }
 0x544   :  { %5712 = vmatprep.mubr.msk.bf16.mxu1 %vm4899_vm1, %v4852_v3 }
 0x545   :  { %5713 = vmatmul.mubr.msk.bf16.gmra.mxu1 %vm4899_vm1, %v4853_v37 }
 0x547   :  { %v5678_v63 = vpop.f32.mrf.mxu1 }
 0x548   :  { %v4774_v1 = vadd.f32 %v5678_v63, %v9190_v53 }
 0x549   :  { %v4765_v39 = vpop.f32.mrf.mxu1 }
 0x54a   :  { %v4766_v50 = vadd.f32 %v9190_v53, %v4765_v39  ;;  %v4834_v5 = vmax.f32 %v4774_v1, 0.0 }
 0x54b   :  { %v5679_v32 = vpop.f32.mrf.mxu1 }
 0x54c   :  { %v4777_v61 = vadd.f32 %v5679_v32, %v9190_v53  ;;  %v4832_v14 = vmax.f32 %v4766_v50, 0.0 }
 0x54d   :  { %v4768_v25 = vpop.f32.mrf.mxu1 }
 0x54e   :  { %v4769_v23 = vadd.f32 %v9190_v53, %v4768_v25  ;;  %v4835_v4 = vmax.f32 %v4777_v61, 0.0 }
 0x550   :  { %v4833_v57 = vmax.f32 %v4769_v23, 0.0  ;;  %v4855_v47 = vpack.c.bf16 %v4835_v4, %v4834_v5 }
 0x552   :  { %v4854_v13 = vpack.c.bf16 %v4833_v57, %v4832_v14 }
 0x554   :  { %5716 = vmatprep.mubr.msk.bf16.mxu1 %vm4899_vm1, %v4854_v13 }
 0x555   :  { %5717 = vmatmul.mubr.msk.bf16.gmra.mxu1 %vm4899_vm1, %v4855_v47 }
 0x557   :  { %v5682_v45 = vpop.f32.mrf.mxu1 }
 0x558   :  { %v4790_v44 = vadd.f32 %v5682_v45, %v9190_v53 }
 0x559   :  { %v4781_v11 = vpop.f32.mrf.mxu1 }
 0x55a   :  { %v4782_v24 = vadd.f32 %v9190_v53, %v4781_v11  ;;  %v4838_v12 = vmax.f32 %v4790_v44, 0.0 }
 0x55b   :  { %v5683_v48 = vpop.f32.mrf.mxu1 }
 0x55c   :  { %v4793_v17 = vadd.f32 %v5683_v48, %v9190_v53  ;;  %v4836_v35 = vmax.f32 %v4782_v24, 0.0 }
 0x55d   :  { %v4784_v9 = vpop.f32.mrf.mxu1 }
 0x55e   :  { %v4785_v19 = vadd.f32 %v9190_v53, %v4784_v9  ;;  %v4839_v58 = vmax.f32 %v4793_v17, 0.0 }
 0x560   :  { %v4837_v7 = vmax.f32 %v4785_v19, 0.0  ;;  %v4857_v0 = vpack.c.bf16 %v4839_v58, %v4838_v12 }
 0x562   :  { %v4856_v8 = vpack.c.bf16 %v4837_v7, %v4836_v35 }
 0x564   :  { %5720 = vmatprep.mubr.msk.bf16.mxu1 %vm4899_vm1, %v4856_v8 }
 0x565   :  { %5721 = vmatmul.mubr.msk.bf16.gmra.mxu1 %vm4899_vm1, %v4857_v0 }
 0x567   :  { %v5686_v56 = vpop.f32.mrf.mxu1 }
 0x568   :  { %v4806_v62 = vadd.f32 %v5686_v56, %v9190_v53 }
 0x569   :  { %v4797_v52 = vpop.f32.mrf.mxu1 }
 0x56a   :  { %v4798_v2 = vadd.f32 %v9190_v53, %v4797_v52  ;;  %v4842_v18 = vmax.f32 %v4806_v62, 0.0 }
 0x56b   :  { %v5687_v20 = vpop.f32.mrf.mxu1 }
 0x56c   :  { %v4809_v6 = vadd.f32 %v5687_v20, %v9190_v53  ;;  %v4840_v55 = vmax.f32 %v4798_v2, 0.0 }
 0x56d   :  { %v4800_v36 = vpop.f32.mrf.mxu1 }
 0x56e   :  { %v4801_v49 = vadd.f32 %v9190_v53, %v4800_v36  ;;  %v4843_v27 = vmax.f32 %v4809_v6, 0.0 }
 0x570   :  { %v4841_v10 = vmax.f32 %v4801_v49, 0.0  ;;  %v4859_v34 = vpack.c.bf16 %v4843_v27, %v4842_v18 }
 0x572   :  { %v4858_v54 = vpack.c.bf16 %v4841_v10, %v4840_v55 }
 0x574   :  { %5724 = vmatprep.mubr.msk.bf16.mxu1 %vm4899_vm1, %v4858_v54 }
 0x575   :  { %5725 = vmatmul.mubr.msk.bf16.gmra.mxu1 %vm4899_vm1, %v4859_v34 }
 0x5c5   :  { %v5698_v40 = vpop.f32.mrf.mxu1 }
 0x5c6   :  { %v4991_v33 = vadd.f32 %v5698_v40, %v9243_v46 }
 0x5c7   :  { %v4982_v59 = vpop.f32.mrf.mxu1 }
 0x5c8   :  { %5111 = vst [vmem:[%s9384_s11 + $0x10] sm:$0xff] %v4991_v33  ;;  %v4983_v53 = vadd.f32 %v9243_v46, %v4982_v59 }
 0x5c9   :  { %v5699_v30 = vpop.f32.mrf.mxu1 }
 0x5ca   :  { %5109 = vst [vmem:[%s9384_s11] sm:$0xff] %v4983_v53  ;;  %v4994_v22 = vadd.f32 %v5699_v30, %v9243_v46 }
 0x5cb   :  { %v4985_v21 = vpop.f32.mrf.mxu1 }
 0x5cc   :  { %5112 = vst [vmem:[%s9384_s11 + $0x18] sm:$0xff] %v4994_v22  ;;  %v4986_v41 = vadd.f32 %v9243_v46, %v4985_v21 }
 0x5ce   :  { %5110 = vst [vmem:[%s9384_s11 + $0x8] sm:$0xff] %v4986_v41 }
 0x5d5   :  { %v5702_v16 = vpop.f32.mrf.mxu1 }
 0x5d6   :  { %v5007_v38 = vadd.f32 %v5702_v16, %v9243_v46 }
 0x5d7   :  { %v4998_v28 = vpop.f32.mrf.mxu1 }
 0x5d8   :  { %5115 = vst [vmem:[%s9384_s11 + $0x30] sm:$0xff] %v5007_v38  ;;  %v4999_v26 = vadd.f32 %v9243_v46, %v4998_v28 }
 0x5d9   :  { %v5703_v51 = vpop.f32.mrf.mxu1 }
 0x5da   :  { %5113 = vst [vmem:[%s9384_s11 + $0x20] sm:$0xff] %v4999_v26  ;;  %v5010_v60 = vadd.f32 %v5703_v51, %v9243_v46 }
 0x5db   :  { %v5001_v15 = vpop.f32.mrf.mxu1 }
 0x5dc   :  { %5116 = vst [vmem:[%s9384_s11 + $0x38] sm:$0xff] %v5010_v60  ;;  %v5002_v42 = vadd.f32 %v9243_v46, %v5001_v15 }
 0x5de   :  { %5114 = vst [vmem:[%s9384_s11 + $0x28] sm:$0xff] %v5002_v42 }
 0x5e5   :  { %v5706_v43 = vpop.f32.mrf.mxu1 }
 0x5e6   :  { %v5023_v29 = vadd.f32 %v5706_v43, %v9243_v46 }
 0x5e7   :  { %v5014_v31 = vpop.f32.mrf.mxu1 }
 0x5e8   :  { %5119 = vst [vmem:[%s9384_s11 + $0x50] sm:$0xff] %v5023_v29  ;;  %v5015_v3 = vadd.f32 %v9243_v46, %v5014_v31 }
 0x5e9   :  { %v5707_v37 = vpop.f32.mrf.mxu1 }
 0x5ea   :  { %5117 = vst [vmem:[%s9384_s11 + $0x40] sm:$0xff] %v5015_v3  ;;  %v5026_v63 = vadd.f32 %v5707_v37, %v9243_v46 }
 0x5eb   :  { %v5017_v39 = vpop.f32.mrf.mxu1 }
 0x5ec   :  { %5120 = vst [vmem:[%s9384_s11 + $0x58] sm:$0xff] %v5026_v63  ;;  %v5018_v32 = vadd.f32 %v9243_v46, %v5017_v39 }
 0x5ee   :  { %5118 = vst [vmem:[%s9384_s11 + $0x48] sm:$0xff] %v5018_v32 }
 0x5f5   :  { %v5710_v50 = vpop.f32.mrf.mxu1 }
 0x5f6   :  { %v5039_v61 = vadd.f32 %v5710_v50, %v9243_v46 }
 0x5f7   :  { %v5030_v1 = vpop.f32.mrf.mxu1 }
 0x5f8   :  { %5123 = vst [vmem:[%s9384_s11 + $0x70] sm:$0xff] %v5039_v61  ;;  %v5031_v25 = vadd.f32 %v9243_v46, %v5030_v1 }
 0x5f9   :  { %v5711_v23 = vpop.f32.mrf.mxu1 }
 0x5fa   :  { %5121 = vst [vmem:[%s9384_s11 + $0x60] sm:$0xff] %v5031_v25  ;;  %v5042_v4 = vadd.f32 %v5711_v23, %v9243_v46 }
 0x5fb   :  { %v5033_v14 = vpop.f32.mrf.mxu1 }
 0x5fc   :  { %5124 = vst [vmem:[%s9384_s11 + $0x78] sm:$0xff] %v5042_v4  ;;  %v5034_v57 = vadd.f32 %v9243_v46, %v5033_v14 }
 0x5fe   :  { %5122 = vst [vmem:[%s9384_s11 + $0x68] sm:$0xff] %v5034_v57 }
 0x605   :  { %v5714_v5 = vpop.f32.mrf.mxu1 }
 0x606   :  { %v5055_v13 = vadd.f32 %v5714_v5, %v9243_v46 }
 0x607   :  { %v5046_v47 = vpop.f32.mrf.mxu1 }
 0x608   :  { %5127 = vst [vmem:[%s9384_s11 + $0x90] sm:$0xff] %v5055_v13  ;;  %v5047_v45 = vadd.f32 %v9243_v46, %v5046_v47 }
 0x609   :  { %v5715_v11 = vpop.f32.mrf.mxu1 }
 0x60a   :  { %5125 = vst [vmem:[%s9384_s11 + $0x80] sm:$0xff] %v5047_v45  ;;  %v5058_v48 = vadd.f32 %v5715_v11, %v9243_v46 }
 0x60b   :  { %v5049_v24 = vpop.f32.mrf.mxu1 }
 0x60c   :  { %5128 = vst [vmem:[%s9384_s11 + $0x98] sm:$0xff] %v5058_v48  ;;  %v5050_v17 = vadd.f32 %v9243_v46, %v5049_v24 }
 0x60e   :  { %5126 = vst [vmem:[%s9384_s11 + $0x88] sm:$0xff] %v5050_v17 }
 0x615   :  { %v5718_v44 = vpop.f32.mrf.mxu1 }
 0x616   :  { %v5071_v9 = vadd.f32 %v5718_v44, %v9243_v46 }
 0x617   :  { %v5062_v19 = vpop.f32.mrf.mxu1 }
 0x618   :  { %5131 = vst [vmem:[%s9384_s11 + $0xb0] sm:$0xff] %v5071_v9  ;;  %v5063_v58 = vadd.f32 %v9243_v46, %v5062_v19 }
 0x619   :  { %v5719_v35 = vpop.f32.mrf.mxu1 }
 0x61a   :  { %5129 = vst [vmem:[%s9384_s11 + $0xa0] sm:$0xff] %v5063_v58  ;;  %v5074_v7 = vadd.f32 %v5719_v35, %v9243_v46 }
 0x61b   :  { %v5065_v12 = vpop.f32.mrf.mxu1 }
 0x61c   :  { %5132 = vst [vmem:[%s9384_s11 + $0xb8] sm:$0xff] %v5074_v7  ;;  %v5066_v8 = vadd.f32 %v9243_v46, %v5065_v12 }
 0x61e   :  { %5130 = vst [vmem:[%s9384_s11 + $0xa8] sm:$0xff] %v5066_v8 }
 0x625   :  { %v5722_v0 = vpop.f32.mrf.mxu1 }
 0x626   :  { %v5087_v56 = vadd.f32 %v5722_v0, %v9243_v46 }
 0x627   :  { %v5078_v52 = vpop.f32.mrf.mxu1 }
 0x628   :  { %5135 = vst [vmem:[%s9384_s11 + $0xd0] sm:$0xff] %v5087_v56  ;;  %v5079_v20 = vadd.f32 %v9243_v46, %v5078_v52 }
 0x629   :  { %v5723_v2 = vpop.f32.mrf.mxu1 }
 0x62a   :  { %5133 = vst [vmem:[%s9384_s11 + $0xc0] sm:$0xff] %v5079_v20  ;;  %v5090_v6 = vadd.f32 %v5723_v2, %v9243_v46 }
 0x62b   :  { %v5081_v62 = vpop.f32.mrf.mxu1 }
 0x62c   :  { %5136 = vst [vmem:[%s9384_s11 + $0xd8] sm:$0xff] %v5090_v6  ;;  %v5082_v36 = vadd.f32 %v9243_v46, %v5081_v62 }
 0x62e   :  { %5134 = vst [vmem:[%s9384_s11 + $0xc8] sm:$0xff] %v5082_v36 }
 0x635   :  { %v5726_v49 = vpop.f32.mrf.mxu1 }
 0x636   :  { %v5103_v27 = vadd.f32 %v5726_v49, %v9243_v46 }
 0x637   :  { %v5094_v55 = vpop.f32.mrf.mxu1 }
 0x638   :  { %5139 = vst [vmem:[%s9384_s11 + $0xf0] sm:$0xff] %v5103_v27  ;;  %v5095_v10 = vadd.f32 %v9243_v46, %v5094_v55 }
 0x639   :  { %v5727_v18 = vpop.f32.mrf.mxu1 }
 0x63a   :  { %5137 = vst [vmem:[%s9384_s11 + $0xe0] sm:$0xff] %v5095_v10  ;;  %v5106_v54 = vadd.f32 %v5727_v18, %v9243_v46 }
 0x63b   :  { %v5097_v34 = vpop.f32.mrf.mxu1 }
 0x63c   :  { %5140 = vst [vmem:[%s9384_s11 + $0xf8] sm:$0xff] %v5106_v54  ;;  %v5098_v40 = vadd.f32 %v9243_v46, %v5097_v34 }
 0x63e   :  { %5138 = vst [vmem:[%s9384_s11 + $0xe8] sm:$0xff] %v5098_v40 }

// kernel: _mnist_fc_forward.1
= control target key start
LH: loop header
LB: loop body
LE: loop exit
PB: predicated region body
PF: predicated region fallthrough
CT: control target
= control target key end

     0   :  { %vm1573_vm0 = vcmask 130048   ;;  %vm4899_vm1 = vcmask 523264   ;;  %s9373_s1 = inlined_call_operand.vmem [shape: bf16[784,512], index: 1, kind: input, shape index: {}]   ;;  %s9374_s0 = inlined_call_operand.vmem [shape: f32[256,784], index: 0, kind: input, shape index: {}]   ;;  %s9375_s2 = inlined_call_operand.vmem [shape: f32[1,512], index: 2, kind: input, shape index: {}]   ;;  %s9376_s3 = inlined_call_operand.vmem [shape: bf16[512,256], index: 3, kind: input, shape index: {}]   ;;  %s9377_s5 = inlined_call_operand.vmem [shape: bf16[256,128], index: 5, kind: input, shape index: {}]   ;;  %s9378_s4 = inlined_call_operand.vmem [shape: f32[1,256], index: 4, kind: input, shape index: {}]   ;;  %s9379_s7 = inlined_call_operand.vmem [shape: bf16[128,64], index: 7, kind: input, shape index: {}]   ;;  %s9380_s6 = inlined_call_operand.vmem [shape: f32[1,128], index: 6, kind: input, shape index: {}]   ;;  %s9381_s9 = inlined_call_operand.vmem [shape: bf16[64,128], index: 9, kind: input, shape index: {}]   ;;  %s9382_s8 = inlined_call_operand.vmem [shape: f32[1,64], index: 8, kind: input, shape index: {}]   ;;  %s9383_s10 = inlined_call_operand.vmem [shape: f32[1,128], index: 10, kind: input, shape index: {}]   ;;  %s9384_s11 = inlined_call_operand.vmem [shape: f32[256,128], index: 11, kind: output, shape index: {}]  }
   0x1   :  { %v5729_v0 = vld [vmem:[%s9373_s1 + $0xe4] ss:$16 sps:$4 sm:$0xff]   ;;  %v5733_v2 = vld [vmem:[%s9373_s1 + $0xe0] ss:$16 sps:$4 sm:$0xff]   ;;  %v40_v46 = vld [vmem:[%s9374_s0 + $0x8] sm:$0xff] }
   0x2   :  { %v5731_v1 = vld [vmem:[%s9373_s1 + $0x2e4] ss:$16 sps:$4 sm:$0xff]   ;;  %1622 = vmatprep.subr.bf16.mxu0 %v5729_v0  ;;  %v5734_v3 = vld [vmem:[%s9373_s1 + $0x2e0] ss:$16 sps:$4 sm:$0xff]   ;;  %v42_v48 = vld [vmem:[%s9374_s0 + $0x18] sm:$0xff] }
   0x3   :  { %1815 = vmatprep.subr.bf16.mxu1 %v5731_v1  ;;  %v5735_v4 = vld [vmem:[%s9373_s1 + $0xc4] ss:$16 sps:$4 sm:$0xff]   ;;  %1623 = vmatpush1.bf16.msra.mxu0 %v5733_v2  ;;  %v5739_v6 = vld [vmem:[%s9373_s1 + $0xc0] ss:$16 sps:$4 sm:$0xff]  }
   0x4   :  { %1816 = vmatpush1.bf16.msra.mxu1 %v5734_v3  ;;  %v5737_v5 = vld [vmem:[%s9373_s1 + $0x2c4] ss:$16 sps:$4 sm:$0xff]   ;;  %1624 = vmatprep.subr.bf16.mxu0 %v5735_v4  ;;  %v5740_v7 = vld [vmem:[%s9373_s1 + $0x2c0] ss:$16 sps:$4 sm:$0xff]  }
   0x5   :  { %1817 = vmatprep.subr.bf16.mxu1 %v5737_v5  ;;  %v5741_v8 = vld [vmem:[%s9373_s1 + $0xa4] ss:$16 sps:$4 sm:$0xff]   ;;  %v5745_v10 = vld [vmem:[%s9373_s1 + $0xa0] ss:$16 sps:$4 sm:$0xff]  }
   0x6   :  { %v5743_v9 = vld [vmem:[%s9373_s1 + $0x2a4] ss:$16 sps:$4 sm:$0xff]   ;;  %v5746_v11 = vld [vmem:[%s9373_s1 + $0x2a0] ss:$16 sps:$4 sm:$0xff]  }
   0x7   :  { %1625 = vmatpush1.bf16.msra.mxu0 %v5739_v6  ;;  %v5747_v12 = vld [vmem:[%s9373_s1 + $0x84] ss:$16 sps:$4 sm:$0xff]   ;;  %v5751_v14 = vld [vmem:[%s9373_s1 + $0x80] ss:$16 sps:$4 sm:$0xff]  }
   0x8   :  { %1818 = vmatpush1.bf16.msra.mxu1 %v5740_v7  ;;  %1626 = vmatprep.subr.bf16.mxu0 %v5741_v8  ;;  %v5749_v13 = vld [vmem:[%s9373_s1 + $0x284] ss:$16 sps:$4 sm:$0xff]   ;;  %v5752_v15 = vld [vmem:[%s9373_s1 + $0x280] ss:$16 sps:$4 sm:$0xff]   ;;  %v46_v7 = vld [vmem:[%s9374_s0 + $0x38] sm:$0xff] }
   0x9   :  { %1819 = vmatprep.subr.bf16.mxu1 %v5743_v9  ;;  %v5753_v16 = vld [vmem:[%s9373_s1 + $0x64] ss:$16 sps:$4 sm:$0xff]   ;;  %v5757_v18 = vld [vmem:[%s9373_s1 + $0x60] ss:$16 sps:$4 sm:$0xff]   ;;  %v48_v9 = vld [vmem:[%s9374_s0 + $0x48] sm:$0xff] }
   0xa   :  { %v5755_v17 = vld [vmem:[%s9373_s1 + $0x264] ss:$16 sps:$4 sm:$0xff]   ;;  %v5758_v19 = vld [vmem:[%s9373_s1 + $0x260] ss:$16 sps:$4 sm:$0xff]  }
   0xb   :  { %1627 = vmatpush1.bf16.msra.mxu0 %v5745_v10  ;;  %v5759_v20 = vld [vmem:[%s9373_s1 + $0x44] ss:$16 sps:$4 sm:$0xff]   ;;  %v5763_v22 = vld [vmem:[%s9373_s1 + $0x40] ss:$16 sps:$4 sm:$0xff]  }
   0xc   :  { %1820 = vmatpush1.bf16.msra.mxu1 %v5746_v11  ;;  %1628 = vmatprep.subr.bf16.mxu0 %v5747_v12  ;;  %v5761_v21 = vld [vmem:[%s9373_s1 + $0x244] ss:$16 sps:$4 sm:$0xff]   ;;  %v5764_v23 = vld [vmem:[%s9373_s1 + $0x240] ss:$16 sps:$4 sm:$0xff]   ;;  %v54_v12 = vld [vmem:[%s9374_s0 + $0x78] sm:$0xff] }
   0xd   :  { %1821 = vmatprep.subr.bf16.mxu1 %v5749_v13  ;;  %v5765_v24 = vld [vmem:[%s9373_s1 + $0x24] ss:$16 sps:$4 sm:$0xff]   ;;  %v5769_v26 = vld [vmem:[%s9373_s1 + $0x20] ss:$16 sps:$4 sm:$0xff]  }
   0xe   :  { %v5767_v25 = vld [vmem:[%s9373_s1 + $0x224] ss:$16 sps:$4 sm:$0xff]   ;;  %v5770_v27 = vld [vmem:[%s9373_s1 + $0x220] ss:$16 sps:$4 sm:$0xff]  }
   0xf   :  { %1629 = vmatpush1.bf16.msra.mxu0 %v5751_v14  ;;  %v5771_v28 = vld [vmem:[%s9373_s1 + $0x4] ss:$16 sps:$4 sm:$0xff]   ;;  %v5775_v30 = vld [vmem:[%s9373_s1] ss:$16 sps:$4 sm:$0xff]   ;;  %v56_v14 = vld [vmem:[%s9374_s0 + $0x88] sm:$0xff] }
  0x10   :  { %1822 = vmatpush1.bf16.msra.mxu1 %v5752_v15  ;;  %1630 = vmatprep.subr.bf16.mxu0 %v5753_v16  ;;  %v5773_v29 = vld [vmem:[%s9373_s1 + $0x204] ss:$16 sps:$4 sm:$0xff]   ;;  %v5776_v31 = vld [vmem:[%s9373_s1 + $0x200] ss:$16 sps:$4 sm:$0xff]  }
  0x11   :  { %1823 = vmatprep.subr.bf16.mxu1 %v5755_v17  ;;  %v5777_v32 = vld [vmem:[%s9373_s1 + $0x1e4] ss:$16 sps:$4 sm:$0xff]   ;;  %v5781_v34 = vld [vmem:[%s9373_s1 + $0x1e0] ss:$16 sps:$4 sm:$0xff]  }
  0x12   :  { %v5779_v33 = vld [vmem:[%s9373_s1 + $0x3e4] ss:$16 sps:$4 sm:$0xff]   ;;  %v5782_v35 = vld [vmem:[%s9373_s1 + $0x3e0] ss:$16 sps:$4 sm:$0xff]  }
  0x13   :  { %1631 = vmatpush1.bf16.msra.mxu0 %v5757_v18  ;;  %v5783_v36 = vld [vmem:[%s9373_s1 + $0x1c4] ss:$16 sps:$4 sm:$0xff]   ;;  %v5787_v38 = vld [vmem:[%s9373_s1 + $0x1c0] ss:$16 sps:$4 sm:$0xff]  }
  0x14   :  { %1824 = vmatpush1.bf16.msra.mxu1 %v5758_v19  ;;  %1632 = vmatprep.subr.bf16.mxu0 %v5759_v20  ;;  %v5785_v37 = vld [vmem:[%s9373_s1 + $0x3c4] ss:$16 sps:$4 sm:$0xff]   ;;  %v5788_v39 = vld [vmem:[%s9373_s1 + $0x3c0] ss:$16 sps:$4 sm:$0xff]  }
  0x15   :  { %1825 = vmatprep.subr.bf16.mxu1 %v5761_v21  ;;  %v5789_v40 = vld [vmem:[%s9373_s1 + $0x1a4] ss:$16 sps:$4 sm:$0xff]   ;;  %v5793_v42 = vld [vmem:[%s9373_s1 + $0x1a0] ss:$16 sps:$4 sm:$0xff]  }
  0x16   :  { %v5791_v41 = vld [vmem:[%s9373_s1 + $0x3a4] ss:$16 sps:$4 sm:$0xff]   ;;  %v5794_v43 = vld [vmem:[%s9373_s1 + $0x3a0] ss:$16 sps:$4 sm:$0xff]  }
  0x17   :  { %1633 = vmatpush1.bf16.msra.mxu0 %v5763_v22  ;;  %v5795_v44 = vld [vmem:[%s9373_s1 + $0x184] ss:$16 sps:$4 sm:$0xff]   ;;  %v5799_v50 = vld [vmem:[%s9373_s1 + $0x180] ss:$16 sps:$4 sm:$0xff]  }
  0x18   :  { %1826 = vmatpush1.bf16.msra.mxu1 %v5764_v23  ;;  %1634 = vmatprep.subr.bf16.mxu0 %v5765_v24  ;;  %v5797_v45 = vld [vmem:[%s9373_s1 + $0x384] ss:$16 sps:$4 sm:$0xff]   ;;  %v5800_v51 = vld [vmem:[%s9373_s1 + $0x380] ss:$16 sps:$4 sm:$0xff]   ;;  %v60_v23 = vld [vmem:[%s9374_s0 + $0xa8] sm:$0xff] }
  0x19   :  { %1827 = vmatprep.subr.bf16.mxu1 %v5767_v25  ;;  %v47_v47 = vld [vmem:[%s9374_s0 + $0x40] sm:$0xff]  ;;  %v49_v49 = vld [vmem:[%s9374_s0 + $0x50] sm:$0xff] }
  0x1a   :  { %v5801_v52 = vld [vmem:[%s9373_s1 + $0x164] ss:$16 sps:$4 sm:$0xff]   ;;  %v6368_v53 = vpack.c.bf16 %v47_v47, %v40_v46  ;;  %v6370_v54 = vpack.c.bf16 %v49_v49, %v42_v48  ;;  %v5805_v56 = vld [vmem:[%s9373_s1 + $0x160] ss:$16 sps:$4 sm:$0xff]  }
  0x1b   :  { %1635 = vmatpush1.bf16.msra.mxu0 %v5769_v26  ;;  %v5803_v55 = vld [vmem:[%s9373_s1 + $0x364] ss:$16 sps:$4 sm:$0xff]   ;;  %v5806_v57 = vld [vmem:[%s9373_s1 + $0x360] ss:$16 sps:$4 sm:$0xff]   ;;  %v62_v26 = vld [vmem:[%s9374_s0 + $0xb8] sm:$0xff] }
  0x1c   :  { %1828 = vmatpush1.bf16.msra.mxu1 %v5770_v27  ;;  %1636 = vmatprep.subr.bf16.mxu0 %v5771_v28  ;;  %v5807_v58 = vld [vmem:[%s9373_s1 + $0x144] ss:$16 sps:$4 sm:$0xff]   ;;  %v5811_v60 = vld [vmem:[%s9373_s1 + $0x140] ss:$16 sps:$4 sm:$0xff]   ;;  %v68_v28 = vld [vmem:[%s9374_s0 + $0xe8] sm:$0xff] }
  0x1d   :  { %1829 = vmatprep.subr.bf16.mxu1 %v5773_v29  ;;  %1654 = vmatprep.mubr.bf16.mxu0 %v6368_v53  ;;  %v5809_v59 = vld [vmem:[%s9373_s1 + $0x344] ss:$16 sps:$4 sm:$0xff]   ;;  %v5812_v61 = vld [vmem:[%s9373_s1 + $0x340] ss:$16 sps:$4 sm:$0xff]  }
  0x1e   :  { %1847 = vmatprep.mubr.bf16.mxu1 %v6370_v54  ;;  %v5813_v62 = vld [vmem:[%s9373_s1 + $0x124] ss:$16 sps:$4 sm:$0xff]   ;;  %v5817_v0 = vld [vmem:[%s9373_s1 + $0x120] ss:$16 sps:$4 sm:$0xff]  }
  0x1f   :  { %1637 = vmatpush1.bf16.msra.mxu0 %v5775_v30  ;;  %v5815_v63 = vld [vmem:[%s9373_s1 + $0x324] ss:$16 sps:$4 sm:$0xff]   ;;  %v5818_v1 = vld [vmem:[%s9373_s1 + $0x320] ss:$16 sps:$4 sm:$0xff]   ;;  %v70_v30 = vld [vmem:[%s9374_s0 + $0xf8] sm:$0xff] }
  0x20   :  { %1830 = vmatpush1.bf16.msra.mxu1 %v5776_v31  ;;  %1638 = vmatprep.subr.bf16.mxu0 %v5777_v32  ;;  %v5819_v2 = vld [vmem:[%s9373_s1 + $0x104] ss:$16 sps:$4 sm:$0xff]   ;;  %v5823_v4 = vld [vmem:[%s9373_s1 + $0x100] ss:$16 sps:$4 sm:$0xff]  }
  0x21   :  { %1831 = vmatprep.subr.bf16.mxu1 %v5779_v33  ;;  %v5821_v3 = vld [vmem:[%s9373_s1 + $0x304] ss:$16 sps:$4 sm:$0xff]   ;;  %v5824_v5 = vld [vmem:[%s9373_s1 + $0x300] ss:$16 sps:$4 sm:$0xff]  }
  0x22   :  { %v39_v6 = vld [vmem:[%s9374_s0] sm:$0xff]  ;;  %v41_v8 = vld [vmem:[%s9374_s0 + $0x10] sm:$0xff] }
  0x23   :  { %1639 = vmatpush2.bf16.msra.mxu0 %v5781_v34  ;;  %v5827_v10 = vld [vmem:[%s9373_s1 + $0x4e4] ss:$16 sps:$4 sm:$0xff]   ;;  %v6449_v16 = vpack.c.bf16 %v46_v7, %v39_v6  ;;  %v6451_v17 = vpack.c.bf16 %v48_v9, %v41_v8  ;;  %v5825_v18 = vld [vmem:[%s9373_s1 + $0x4e0] ss:$16 sps:$4 sm:$0xff]  }
  0x24   :  { %1832 = vmatpush2.bf16.msra.mxu1 %v5782_v35  ;;  %1640 = vmatprep.subr.bf16.mxu0 %v5783_v36  ;;  %v5830_v11 = vld [vmem:[%s9373_s1 + $0x604] ss:$16 sps:$4 sm:$0xff]   ;;  %v5828_v19 = vld [vmem:[%s9373_s1 + $0x600] ss:$16 sps:$4 sm:$0xff]  }
  0x25   :  { %1833 = vmatprep.subr.bf16.mxu1 %v5785_v37  ;;  %v61_v13 = vld [vmem:[%s9374_s0 + $0xb0] sm:$0xff]  ;;  %v63_v15 = vld [vmem:[%s9374_s0 + $0xc0] sm:$0xff] }
  0x26   :  { %v6459_v20 = vpack.c.bf16 %v61_v13, %v54_v12  ;;  %v6461_v21 = vpack.c.bf16 %v63_v15, %v56_v14  ;;  %v53_v22 = vld [vmem:[%s9374_s0 + $0x70] sm:$0xff]  ;;  %v55_v25 = vld [vmem:[%s9374_s0 + $0x80] sm:$0xff]  ;;  %v104_v12 = vld [vmem:[%s9374_s0 + $0x208] sm:$0xff] }
  0x27   :  { %1641 = vmatpush2.bf16.msra.mxu0 %v5787_v38  ;;  %v5833_v24 = vld [vmem:[%s9373_s1 + $0x4c4] ss:$16 sps:$4 sm:$0xff]   ;;  %v5831_v27 = vld [vmem:[%s9373_s1 + $0x4c0] ss:$16 sps:$4 sm:$0xff]   ;;  %v6500_v33 = vpack.c.bf16 %v60_v23, %v53_v22  ;;  %v6502_v34 = vpack.c.bf16 %v62_v26, %v55_v25  ;;  %v110_v13 = vld [vmem:[%s9374_s0 + $0x238] sm:$0xff] }
  0x28   :  { %1834 = vmatpush2.bf16.msra.mxu1 %v5788_v39  ;;  %1642 = vmatprep.subr.bf16.mxu0 %v5789_v40  ;;  %v75_v29 = vld [vmem:[%s9374_s0 + $0x120] sm:$0xff]  ;;  %v77_v31 = vld [vmem:[%s9374_s0 + $0x130] sm:$0xff]  ;;  %v74_v40 = vld [vmem:[%s9374_s0 + $0x118] sm:$0xff] }
  0x29   :  { %1835 = vmatprep.subr.bf16.mxu1 %v5791_v41  ;;  %v5836_v32 = vld [vmem:[%s9373_s1 + $0x4a4] ss:$16 sps:$4 sm:$0xff]   ;;  %v6504_v35 = vpack.c.bf16 %v75_v29, %v68_v28  ;;  %v6506_v36 = vpack.c.bf16 %v77_v31, %v70_v30  ;;  %v5834_v37 = vld [vmem:[%s9373_s1 + $0x4a0] ss:$16 sps:$4 sm:$0xff]   ;;  %v112_v15 = vld [vmem:[%s9374_s0 + $0x248] sm:$0xff] }
  0x2a   :  { %v67_v38 = vld [vmem:[%s9374_s0 + $0xe0] sm:$0xff]  ;;  %v69_v41 = vld [vmem:[%s9374_s0 + $0xf0] sm:$0xff]  ;;  %v116_v30 = vld [vmem:[%s9374_s0 + $0x268] sm:$0xff] }
  0x2b   :  { %1643 = vmatpush2.bf16.msra.mxu0 %v5793_v42  ;;  %v5839_v39 = vld [vmem:[%s9373_s1 + $0x484] ss:$16 sps:$4 sm:$0xff]   ;;  %v76_v42 = vld [vmem:[%s9374_s0 + $0x128] sm:$0xff]  ;;  %v5837_v47 = vld [vmem:[%s9373_s1 + $0x480] ss:$16 sps:$4 sm:$0xff]   ;;  %v6548_v49 = vpack.c.bf16 %v74_v40, %v67_v38 }
  0x2c   :  { %1836 = vmatpush2.bf16.msra.mxu1 %v5794_v43  ;;  %1644 = vmatprep.subr.bf16.mxu0 %v5795_v44  ;;  %v82_v43 = vld [vmem:[%s9374_s0 + $0x158] sm:$0xff]  ;;  %v89_v44 = vld [vmem:[%s9374_s0 + $0x190] sm:$0xff]  ;;  %v91_v46 = vld [vmem:[%s9374_s0 + $0x1a0] sm:$0xff] }
  0x2d   :  { %1837 = vmatprep.subr.bf16.mxu1 %v5797_v45  ;;  %v84_v45 = vld [vmem:[%s9374_s0 + $0x168] sm:$0xff]  ;;  %v5842_v48 = vld [vmem:[%s9373_s1 + $0x464] ss:$16 sps:$4 sm:$0xff]   ;;  %v5846_v7 = vld [vmem:[%s9373_s1 + $0x420] ss:$16 sps:$4 sm:$0xff]  }
  0x2e   :  { %v95_v8 = vld [vmem:[%s9374_s0 + $0x1c0] sm:$0xff]  ;;  %v117_v14 = vld [vmem:[%s9374_s0 + $0x270] sm:$0xff] }
  0x2f   :  { %1645 = vmatpush2.bf16.msra.mxu0 %v5799_v50  ;;  %v6550_v50 = vpack.c.bf16 %v76_v42, %v69_v41  ;;  %v5851_v9 = vld [vmem:[%s9373_s1 + $0x404] ss:$16 sps:$4 sm:$0xff]   ;;  %v6648_v25 = vpack.c.bf16 %v117_v14, %v110_v13  ;;  %v5855_v41 = vld [vmem:[%s9373_s1 + $0x5c0] ss:$16 sps:$4 sm:$0xff]  }
  0x30   :  { %1838 = vmatpush2.bf16.msra.mxu1 %v5800_v51  ;;  %1646 = vmatprep.subr.bf16.mxu0 %v5801_v52  ;;  %v6552_v51 = vpack.c.bf16 %v89_v44, %v82_v43  ;;  %v6554_v52 = vpack.c.bf16 %v91_v46, %v84_v45  ;;  %v5854_v22 = vld [vmem:[%s9373_s1 + $0x5e4] ss:$16 sps:$4 sm:$0xff]  }
  0x31   :  { %1839 = vmatprep.subr.bf16.mxu1 %v5803_v55  ;;  %v5840_v55 = vld [vmem:[%s9373_s1 + $0x460] ss:$16 sps:$4 sm:$0xff]   ;;  %v5857_v29 = vld [vmem:[%s9373_s1 + $0x5c4] ss:$16 sps:$4 sm:$0xff]  }
  0x32   :  { %v109_v28 = vld [vmem:[%s9374_s0 + $0x230] sm:$0xff]  ;;  %v111_v31 = vld [vmem:[%s9374_s0 + $0x240] sm:$0xff] }
  0x33   :  { %1647 = vmatpush2.bf16.msra.mxu0 %v5805_v56  ;;  %v81_v56 = vld [vmem:[%s9374_s0 + $0x150] sm:$0xff]  ;;  %v131_v38 = vld [vmem:[%s9374_s0 + $0x2e0] sm:$0xff]  ;;  %v6692_v43 = vpack.c.bf16 %v116_v30, %v109_v28 }
  0x34   :  { %1840 = vmatpush2.bf16.msra.mxu1 %v5806_v57  ;;  %1648 = vmatprep.subr.bf16.mxu0 %v5807_v58  ;;  %v5845_v57 = vld [vmem:[%s9373_s1 + $0x444] ss:$16 sps:$4 sm:$0xff]   ;;  %v88_v58 = vld [vmem:[%s9374_s0 + $0x188] sm:$0xff]  ;;  %v5867_v28 = vld [vmem:[%s9373_s1 + $0x540] ss:$16 sps:$4 sm:$0xff]  }
  0x35   :  { %1841 = vmatprep.subr.bf16.mxu1 %v5809_v59  ;;  %v83_v59 = vld [vmem:[%s9374_s0 + $0x160] sm:$0xff]  ;;  %v133_v40 = vld [vmem:[%s9374_s0 + $0x2f0] sm:$0xff] }
  0x36   :  { %v5860_v42 = vld [vmem:[%s9373_s1 + $0x5a4] ss:$16 sps:$4 sm:$0xff]  }
  0x37   :  { %1649 = vmatpush2.bf16.msra.mxu0 %v5811_v60  ;;  %v90_v60 = vld [vmem:[%s9374_s0 + $0x198] sm:$0xff]  ;;  %v139_v13 = vld [vmem:[%s9374_s0 + $0x320] sm:$0xff] }
  0x38   :  { %1842 = vmatpush2.bf16.msra.mxu1 %v5812_v61  ;;  %1650 = vmatprep.subr.bf16.mxu0 %v5813_v62  ;;  %v96_v61 = vld [vmem:[%s9374_s0 + $0x1c8] sm:$0xff]  ;;  %v103_v62 = vld [vmem:[%s9374_s0 + $0x200] sm:$0xff] }
  0x39   :  { %1843 = vmatprep.subr.bf16.mxu1 %v5815_v63  ;;  %v98_v63 = vld [vmem:[%s9374_s0 + $0x1d8] sm:$0xff]  ;;  %v5869_v14 = vld [vmem:[%s9373_s1 + $0x544] ss:$16 sps:$4 sm:$0xff]  }
  0x3b   :  { %1651 = vmatpush2.bf16.msra.mxu0 %v5817_v0  ;;  %v105_v0 = vld [vmem:[%s9374_s0 + $0x210] sm:$0xff] }
  0x3c   :  { %1844 = vmatpush2.bf16.msra.mxu1 %v5818_v1  ;;  %1652 = vmatprep.subr.bf16.mxu0 %v5819_v2  ;;  %v5843_v1 = vld [vmem:[%s9373_s1 + $0x440] ss:$16 sps:$4 sm:$0xff]   ;;  %v5848_v2 = vld [vmem:[%s9373_s1 + $0x424] ss:$16 sps:$4 sm:$0xff]   ;;  %v6602_v6 = vpack.c.bf16 %v105_v0, %v98_v63 }
  0x3d   :  { %1845 = vmatprep.subr.bf16.mxu1 %v5821_v3  ;;  %v6596_v3 = vpack.c.bf16 %v88_v58, %v81_v56  ;;  %v130_v56 = vld [vmem:[%s9374_s0 + $0x2d8] sm:$0xff]  ;;  %v132_v58 = vld [vmem:[%s9374_s0 + $0x2e8] sm:$0xff]  ;;  %v5861_v63 = vld [vmem:[%s9373_s1 + $0x580] ss:$16 sps:$4 sm:$0xff]  }
  0x3e   :  { %v5866_v0 = vld [vmem:[%s9373_s1 + $0x564] ss:$16 sps:$4 sm:$0xff]  }
  0x3f   :  { %1653 = vmatpush2.bf16.msra.mxu0 %v5823_v4  ;;  %v6598_v4 = vpack.c.bf16 %v90_v60, %v83_v59  ;;  %v138_v59 = vld [vmem:[%s9374_s0 + $0x318] sm:$0xff]  ;;  %v145_v60 = vld [vmem:[%s9374_s0 + $0x350] sm:$0xff] }
  0x40   :  { %1846 = vmatpush2.bf16.msra.mxu1 %v5824_v5  ;;  %2008 = vmatprep.subr.bf16.mxu0 %v5827_v10  ;;  %v6600_v5 = vpack.c.bf16 %v103_v62, %v96_v61  ;;  %v102_v10 = vld [vmem:[%s9374_s0 + $0x1f8] sm:$0xff]  ;;  %v140_v61 = vld [vmem:[%s9374_s0 + $0x328] sm:$0xff]  ;;  %v147_v62 = vld [vmem:[%s9374_s0 + $0x360] sm:$0xff] }
  0x41   :  { %2215 = vmatprep.subr.bf16.mxu1 %v5830_v11  ;;  %v97_v11 = vld [vmem:[%s9374_s0 + $0x1d0] sm:$0xff]  ;;  %v6644_v23 = vpack.c.bf16 %v102_v10, %v95_v8  ;;  %v6746_v8 = vpack.c.bf16 %v147_v62, %v140_v61 }
  0x42   :  { %1655 = vmatmul.mubr.bf16.vlgmr.msra.gmra.mxu0 %v6449_v16  ;;  %v5864_v10 = vld [vmem:[%s9373_s1 + $0x560] ss:$16 sps:$4 sm:$0xff]  }
  0x43   :  { %1848 = vmatmul.mubr.bf16.vlgmr.msra.gmra.mxu1 %v6451_v17  ;;  %2009 = vmatpush1.bf16.msra.mxu0 %v5825_v18  ;;  %v119_v18 = vld [vmem:[%s9374_s0 + $0x280] sm:$0xff] }
  0x44   :  { %2216 = vmatpush1.bf16.msra.mxu1 %v5828_v19  ;;  %1664 = vmatprep.mubr.bf16.mxu0 %v6459_v20  ;;  %v5849_v19 = vld [vmem:[%s9373_s1 + $0x400] ss:$16 sps:$4 sm:$0xff]   ;;  %v6650_v26 = vpack.c.bf16 %v119_v18, %v112_v15  ;;  %v146_v15 = vld [vmem:[%s9374_s0 + $0x358] sm:$0xff]  ;;  %v152_v18 = vld [vmem:[%s9374_s0 + $0x388] sm:$0xff] }
  0x45   :  { %1857 = vmatprep.mubr.bf16.mxu1 %v6461_v21  ;;  %2010 = vmatprep.subr.bf16.mxu0 %v5833_v24  ;;  %v6646_v24 = vpack.c.bf16 %v104_v12, %v97_v11  ;;  %v137_v11 = vld [vmem:[%s9374_s0 + $0x310] sm:$0xff]  ;;  %v144_v12 = vld [vmem:[%s9374_s0 + $0x348] sm:$0xff] }
  0x46   :  { %v6791_v30 = vpack.c.bf16 %v144_v12, %v137_v11  ;;  %v174_v11 = vld [vmem:[%s9374_s0 + $0x438] sm:$0xff]  ;;  %v180_v12 = vld [vmem:[%s9374_s0 + $0x468] sm:$0xff] }
  0x47   :  { %2011 = vmatpush1.bf16.msra.mxu0 %v5831_v27  ;;  %v5852_v27 = vld [vmem:[%s9373_s1 + $0x5e0] ss:$16 sps:$4 sm:$0xff]  }
  0x48   :  { %2012 = vmatprep.subr.bf16.mxu0 %v5836_v32  ;;  %v118_v32 = vld [vmem:[%s9374_s0 + $0x278] sm:$0xff] }
  0x49   :  { %v6694_v44 = vpack.c.bf16 %v118_v32, %v111_v31  ;;  %v6793_v31 = vpack.c.bf16 %v146_v15, %v139_v13  ;;  %v187_v13 = vld [vmem:[%s9374_s0 + $0x4a0] sm:$0xff]  ;;  %v189_v15 = vld [vmem:[%s9374_s0 + $0x4b0] sm:$0xff] }
  0x4a   :  { %1665 = vmatmul.mubr.bf16.gmra.mxu0 %v6500_v33 }
  0x4b   :  { %1858 = vmatmul.mubr.bf16.gmra.mxu1 %v6502_v34  ;;  %1674 = vmatprep.mubr.bf16.mxu0 %v6504_v35 }
  0x4c   :  { %1867 = vmatprep.mubr.bf16.mxu1 %v6506_v36  ;;  %2013 = vmatpush1.bf16.msra.mxu0 %v5834_v37  ;;  %v124_v37 = vld [vmem:[%s9374_s0 + $0x2a8] sm:$0xff] }
  0x4d   :  { %2014 = vmatprep.subr.bf16.mxu0 %v5839_v39  ;;  %v126_v39 = vld [vmem:[%s9374_s0 + $0x2b8] sm:$0xff]  ;;  %v6696_v45 = vpack.c.bf16 %v131_v38, %v124_v37  ;;  %v5870_v38 = vld [vmem:[%s9373_s1 + $0x520] ss:$16 sps:$4 sm:$0xff]  }
  0x4e   :  { %v6698_v46 = vpack.c.bf16 %v133_v40, %v126_v39  ;;  %v151_v39 = vld [vmem:[%s9374_s0 + $0x380] sm:$0xff]  ;;  %v158_v40 = vld [vmem:[%s9374_s0 + $0x3b8] sm:$0xff] }
  0x50   :  { %2015 = vmatpush1.bf16.msra.mxu0 %v5837_v47  ;;  %v5858_v47 = vld [vmem:[%s9373_s1 + $0x5a0] ss:$16 sps:$4 sm:$0xff]  }
  0x51   :  { %2016 = vmatprep.subr.bf16.mxu0 %v5842_v48  ;;  %v123_v48 = vld [vmem:[%s9374_s0 + $0x2a0] sm:$0xff] }
  0x52   :  { %1675 = vmatmul.mubr.bf16.gmra.mxu0 %v6548_v49 }
  0x53   :  { %1868 = vmatmul.mubr.bf16.gmra.mxu1 %v6550_v50  ;;  %1684 = vmatprep.mubr.bf16.mxu0 %v6552_v51 }
  0x54   :  { %1877 = vmatprep.mubr.bf16.mxu1 %v6554_v52  ;;  %2017 = vmatpush1.bf16.msra.mxu0 %v5840_v55  ;;  %v5863_v55 = vld [vmem:[%s9373_s1 + $0x584] ss:$16 sps:$4 sm:$0xff]  }
  0x55   :  { %2018 = vmatprep.subr.bf16.mxu0 %v5845_v57  ;;  %v125_v57 = vld [vmem:[%s9374_s0 + $0x2b0] sm:$0xff] }
  0x58   :  { %2019 = vmatpush1.bf16.msra.mxu0 %v5843_v1  ;;  %v6740_v1 = vpack.c.bf16 %v130_v56, %v123_v48  ;;  %v166_v48 = vld [vmem:[%s9374_s0 + $0x3f8] sm:$0xff]  ;;  %v168_v56 = vld [vmem:[%s9374_s0 + $0x408] sm:$0xff] }
  0x59   :  { %2020 = vmatprep.subr.bf16.mxu0 %v5848_v2  ;;  %v6742_v2 = vpack.c.bf16 %v132_v58, %v125_v57  ;;  %v175_v57 = vld [vmem:[%s9374_s0 + $0x440] sm:$0xff] }
  0x5a   :  { %1685 = vmatmul.mubr.bf16.gmra.mxu0 %v6596_v3  ;;  %v5873_v58 = vld [vmem:[%s9373_s1 + $0x500] ss:$16 sps:$4 sm:$0xff]  }
  0x5b   :  { %1878 = vmatmul.mubr.bf16.gmra.mxu1 %v6598_v4  ;;  %1694 = vmatprep.mubr.bf16.mxu0 %v6600_v5 }
  0x5c   :  { %1887 = vmatprep.mubr.bf16.mxu1 %v6602_v6  ;;  %2021 = vmatpush1.bf16.msra.mxu0 %v5846_v7  ;;  %v6744_v7 = vpack.c.bf16 %v145_v60, %v138_v59  ;;  %v5878_v59 = vld [vmem:[%s9373_s1 + $0xec] ss:$16 sps:$4 sm:$0xff]   ;;  %v6839_v60 = vpack.c.bf16 %v158_v40, %v151_v39 }
  0x5d   :  { %2022 = vmatprep.subr.bf16.mxu0 %v5851_v9  ;;  %v5881_v9 = vld [vmem:[%s9373_s1 + $0x2ec] ss:$16 sps:$4 sm:$0xff]  }
  0x5e   :  { %2587 = vmatprep.subr.bf16.mxu1 %v5881_v9  ;;  %v172_v9 = vld [vmem:[%s9374_s0 + $0x428] sm:$0xff]  ;;  %v194_v40 = vld [vmem:[%s9374_s0 + $0x4d8] sm:$0xff] }
  0x5f   :  { %v188_v39 = vld [vmem:[%s9374_s0 + $0x4a8] sm:$0xff] }
  0x60   :  { %2023 = vmatpush1.bf16.msra.mxu0 %v5849_v19  ;;  %v159_v19 = vld [vmem:[%s9374_s0 + $0x3c0] sm:$0xff] }
  0x61   :  { %2024 = vmatprep.subr.bf16.mxu0 %v5854_v22  ;;  %v154_v22 = vld [vmem:[%s9374_s0 + $0x398] sm:$0xff]  ;;  %v6795_v32 = vpack.c.bf16 %v159_v19, %v152_v18 }
  0x62   :  { %1695 = vmatmul.mubr.bf16.gmra.mxu0 %v6644_v23 }
  0x63   :  { %1888 = vmatmul.mubr.bf16.gmra.mxu1 %v6646_v24  ;;  %1704 = vmatprep.mubr.bf16.mxu0 %v6648_v25 }
  0x64   :  { %1897 = vmatprep.mubr.bf16.mxu1 %v6650_v26  ;;  %2025 = vmatpush2.bf16.msra.mxu0 %v5852_v27  ;;  %v161_v27 = vld [vmem:[%s9374_s0 + $0x3d0] sm:$0xff] }
  0x65   :  { %2026 = vmatprep.subr.bf16.mxu0 %v5857_v29  ;;  %v5872_v29 = vld [vmem:[%s9373_s1 + $0x524] ss:$16 sps:$4 sm:$0xff]   ;;  %v6797_v37 = vpack.c.bf16 %v161_v27, %v154_v22  ;;  %v6879_v22 = vpack.c.bf16 %v187_v13, %v180_v12  ;;  %v210_v12 = vld [vmem:[%s9374_s0 + $0x558] sm:$0xff] }
  0x66   :  { %v217_v13 = vld [vmem:[%s9374_s0 + $0x590] sm:$0xff] }
  0x67   :  { %9468 = vst [vmem:[#allocation4_spill] sm:$0xff] %v6879_v22 }
  0x68   :  { %2027 = vmatpush2.bf16.msra.mxu0 %v5855_v41  ;;  %v153_v41 = vld [vmem:[%s9374_s0 + $0x390] sm:$0xff] }
  0x69   :  { %2028 = vmatprep.subr.bf16.mxu0 %v5860_v42  ;;  %v160_v42 = vld [vmem:[%s9374_s0 + $0x3c8] sm:$0xff] }
  0x6a   :  { %1705 = vmatmul.mubr.bf16.gmra.mxu0 %v6692_v43  ;;  %v6841_v61 = vpack.c.bf16 %v160_v42, %v153_v41  ;;  %v201_v41 = vld [vmem:[%s9374_s0 + $0x510] sm:$0xff]  ;;  %v196_v42 = vld [vmem:[%s9374_s0 + $0x4e8] sm:$0xff] }
  0x6b   :  { %1898 = vmatmul.mubr.bf16.gmra.mxu1 %v6694_v44  ;;  %1714 = vmatprep.mubr.bf16.mxu0 %v6696_v45 }
  0x6c   :  { %1907 = vmatprep.mubr.bf16.mxu1 %v6698_v46  ;;  %2029 = vmatpush2.bf16.msra.mxu0 %v5858_v47  ;;  %v5875_v47 = vld [vmem:[%s9373_s1 + $0x504] ss:$16 sps:$4 sm:$0xff]  }
  0x6d   :  { %2030 = vmatprep.subr.bf16.mxu0 %v5863_v55  ;;  %v173_v55 = vld [vmem:[%s9374_s0 + $0x430] sm:$0xff] }
  0x6e   :  { %v6843_v62 = vpack.c.bf16 %v173_v55, %v166_v48 }
  0x70   :  { %2031 = vmatpush2.bf16.msra.mxu0 %v5861_v63  ;;  %v6845_v63 = vpack.c.bf16 %v175_v57, %v168_v56  ;;  %v6915_v56 = vpack.c.bf16 %v201_v41, %v194_v40  ;;  %v209_v40 = vld [vmem:[%s9374_s0 + $0x550] sm:$0xff]  ;;  %v216_v41 = vld [vmem:[%s9374_s0 + $0x588] sm:$0xff] }
  0x71   :  { %2032 = vmatprep.subr.bf16.mxu0 %v5866_v0  ;;  %v165_v0 = vld [vmem:[%s9374_s0 + $0x3f0] sm:$0xff] }
  0x72   :  { %1715 = vmatmul.mubr.bf16.gmra.mxu0 %v6740_v1  ;;  %v6875_v18 = vpack.c.bf16 %v172_v9, %v165_v0  ;;  %9472 = vst [vmem:[#allocation8_spill] sm:$0xff] %v6915_v56  ;;  %v195_v0 = vld [vmem:[%s9374_s0 + $0x4e0] sm:$0xff]  ;;  %v202_v9 = vld [vmem:[%s9374_s0 + $0x518] sm:$0xff] }
  0x73   :  { %1908 = vmatmul.mubr.bf16.gmra.mxu1 %v6742_v2  ;;  %1724 = vmatprep.mubr.bf16.mxu0 %v6744_v7 }
  0x74   :  { %1917 = vmatprep.mubr.bf16.mxu1 %v6746_v8  ;;  %2033 = vmatpush2.bf16.msra.mxu0 %v5864_v10  ;;  %v167_v10 = vld [vmem:[%s9374_s0 + $0x400] sm:$0xff]  ;;  %9466 = vst [vmem:[#allocation2_spill] sm:$0xff] %v6875_v18 }
  0x75   :  { %2034 = vmatprep.subr.bf16.mxu0 %v5869_v14  ;;  %v182_v14 = vld [vmem:[%s9374_s0 + $0x478] sm:$0xff]  ;;  %v6877_v19 = vpack.c.bf16 %v174_v11, %v167_v10  ;;  %v208_v10 = vld [vmem:[%s9374_s0 + $0x548] sm:$0xff]  ;;  %v215_v11 = vld [vmem:[%s9374_s0 + $0x580] sm:$0xff] }
  0x76   :  { %v6881_v27 = vpack.c.bf16 %v189_v15, %v182_v14  ;;  %v6949_v15 = vpack.c.bf16 %v202_v9, %v195_v0  ;;  %v6985_v9 = vpack.c.bf16 %v216_v41, %v209_v40  ;;  %v236_v40 = vld [vmem:[%s9374_s0 + $0x628] sm:$0xff]  ;;  %v243_v41 = vld [vmem:[%s9374_s0 + $0x660] sm:$0xff] }
  0x77   :  { %9467 = vst [vmem:[#allocation3_spill] sm:$0xff] %v6877_v19 }
  0x78   :  { %2035 = vmatpush2.bf16.msra.mxu0 %v5867_v28  ;;  %9469 = vst [vmem:[#allocation5_spill] sm:$0xff] %v6881_v27  ;;  %v179_v28 = vld [vmem:[%s9374_s0 + $0x460] sm:$0xff]  ;;  %9475 = vst [vmem:[#allocation11_spill] sm:$0xff] %v6949_v15 }
  0x79   :  { %2036 = vmatprep.subr.bf16.mxu0 %v5872_v29  ;;  %v186_v29 = vld [vmem:[%s9374_s0 + $0x498] sm:$0xff]  ;;  %9479 = vst [vmem:[#allocation15_spill] sm:$0xff] %v6985_v9 }
  0x7a   :  { %1725 = vmatmul.mubr.bf16.gmra.mxu0 %v6791_v30  ;;  %v6911_v48 = vpack.c.bf16 %v186_v29, %v179_v28  ;;  %v6951_v28 = vpack.c.bf16 %v215_v11, %v208_v10  ;;  %v6953_v29 = vpack.c.bf16 %v217_v13, %v210_v12  ;;  %v221_v12 = vld [vmem:[%s9374_s0 + $0x5b0] sm:$0xff]  ;;  %v228_v13 = vld [vmem:[%s9374_s0 + $0x5e8] sm:$0xff] }
  0x7b   :  { %1918 = vmatmul.mubr.bf16.gmra.mxu1 %v6793_v31  ;;  %1734 = vmatprep.mubr.bf16.mxu0 %v6795_v32 }
  0x7c   :  { %1927 = vmatprep.mubr.bf16.mxu1 %v6797_v37  ;;  %2037 = vmatpush2.bf16.msra.mxu0 %v5870_v38  ;;  %v181_v38 = vld [vmem:[%s9374_s0 + $0x470] sm:$0xff]  ;;  %9470 = vst [vmem:[#allocation6_spill] sm:$0xff] %v6911_v48  ;;  %9476 = vst [vmem:[#allocation12_spill] sm:$0xff] %v6951_v28 }
  0x7d   :  { %2038 = vmatprep.subr.bf16.mxu0 %v5875_v47  ;;  %v203_v47 = vld [vmem:[%s9374_s0 + $0x520] sm:$0xff]  ;;  %v6913_v55 = vpack.c.bf16 %v188_v39, %v181_v38  ;;  %9477 = vst [vmem:[#allocation13_spill] sm:$0xff] %v6953_v29  ;;  %v214_v39 = vld [vmem:[%s9374_s0 + $0x578] sm:$0xff] }
  0x7e   :  { %v6917_v57 = vpack.c.bf16 %v203_v47, %v196_v42  ;;  %v207_v38 = vld [vmem:[%s9374_s0 + $0x540] sm:$0xff]  ;;  %v222_v42 = vld [vmem:[%s9374_s0 + $0x5b8] sm:$0xff]  ;;  %v229_v47 = vld [vmem:[%s9374_s0 + $0x5f0] sm:$0xff] }
  0x7f   :  { %9471 = vst [vmem:[#allocation7_spill] sm:$0xff] %v6913_v55  ;;  %v6983_v0 = vpack.c.bf16 %v214_v39, %v207_v38  ;;  %v6987_v10 = vpack.c.bf16 %v229_v47, %v222_v42  ;;  %v223_v38 = vld [vmem:[%s9374_s0 + $0x5c0] sm:$0xff]  ;;  %v230_v39 = vld [vmem:[%s9374_s0 + $0x5f8] sm:$0xff]  ;;  %v245_v47 = vld [vmem:[%s9374_s0 + $0x670] sm:$0xff] }
  0x80   :  { %2039 = vmatpush2.bf16.msra.mxu0 %v5873_v58  ;;  %9473 = vst [vmem:[#allocation9_spill] sm:$0xff] %v6917_v57  ;;  %v193_v58 = vld [vmem:[%s9374_s0 + $0x4d0] sm:$0xff]  ;;  %v238_v42 = vld [vmem:[%s9374_s0 + $0x638] sm:$0xff] }
  0x81   :  { %2394 = vmatprep.subr.bf16.mxu0 %v5878_v59  ;;  %v200_v59 = vld [vmem:[%s9374_s0 + $0x508] sm:$0xff]  ;;  %9478 = vst [vmem:[#allocation14_spill] sm:$0xff] %v6983_v0  ;;  %9480 = vst [vmem:[#allocation16_spill] sm:$0xff] %v6987_v10 }
  0x82   :  { %1735 = vmatmul.mubr.bf16.gmra.mxu0 %v6839_v60  ;;  %v6947_v14 = vpack.c.bf16 %v200_v59, %v193_v58  ;;  %v224_v58 = vld [vmem:[%s9374_s0 + $0x5c8] sm:$0xff]  ;;  %v231_v59 = vld [vmem:[%s9374_s0 + $0x600] sm:$0xff] }
  0x83   :  { %1928 = vmatmul.mubr.bf16.gmra.mxu1 %v6841_v61  ;;  %1744 = vmatprep.mubr.bf16.mxu0 %v6843_v62  ;;  %v6989_v11 = vpack.c.bf16 %v231_v59, %v224_v58  ;;  %v7019_v58 = vpack.c.bf16 %v228_v13, %v221_v12  ;;  %v7021_v59 = vpack.c.bf16 %v230_v39, %v223_v38  ;;  %v244_v12 = vld [vmem:[%s9374_s0 + $0x668] sm:$0xff]  ;;  %v250_v13 = vld [vmem:[%s9374_s0 + $0x698] sm:$0xff]  ;;  %v257_v38 = vld [vmem:[%s9374_s0 + $0x6d0] sm:$0xff] }
  0x84   :  { %1937 = vmatprep.mubr.bf16.mxu1 %v6845_v63  ;;  %9474 = vst [vmem:[#allocation10_spill] sm:$0xff] %v6947_v14  ;;  %v252_v39 = vld [vmem:[%s9374_s0 + $0x6a8] sm:$0xff] }
  0x85   :  { %9481 = vst [vmem:[#allocation17_spill] sm:$0xff] %v6989_v11  ;;  %9482 = vst [vmem:[#allocation18_spill] sm:$0xff] %v7019_v58 }
  0x86   :  { %9483 = vst [vmem:[#allocation19_spill] sm:$0xff] %v7021_v59 }
  0x8a   :  { %1745 = vmatmul.mubr.bf16.gmra.mxu0 %v6875_v18 }
  0x8b   :  { %1938 = vmatmul.mubr.bf16.gmra.mxu1 %v6877_v19  ;;  %1754 = vmatprep.mubr.bf16.mxu0 %v6879_v22 }
  0x8c   :  { %1947 = vmatprep.mubr.bf16.mxu1 %v6881_v27 }
  0x92   :  { %1755 = vmatmul.mubr.bf16.gmra.mxu0 %v6911_v48 }
  0x93   :  { %1948 = vmatmul.mubr.bf16.gmra.mxu1 %v6913_v55  ;;  %1764 = vmatprep.mubr.bf16.mxu0 %v6915_v56 }
  0x94   :  { %1957 = vmatprep.mubr.bf16.mxu1 %v6917_v57 }
  0x9a   :  { %1765 = vmatmul.mubr.bf16.gmra.mxu0 %v6947_v14  ;;  %v5891_v14 = vld [vmem:[%s9373_s1 + $0x2a8] ss:$16 sps:$4 sm:$0xff]  }
  0x9b   :  { %1958 = vmatmul.mubr.bf16.gmra.mxu1 %v6949_v15  ;;  %1774 = vmatprep.mubr.bf16.mxu0 %v6951_v28  ;;  %v256_v28 = vld [vmem:[%s9374_s0 + $0x6c8] sm:$0xff] }
  0x9c   :  { %1967 = vmatprep.mubr.bf16.mxu1 %v6953_v29  ;;  %v237_v29 = vld [vmem:[%s9374_s0 + $0x630] sm:$0xff]  ;;  %v5888_v15 = vld [vmem:[%s9373_s1 + $0xa8] ss:$16 sps:$4 sm:$0xff]  }
  0xa2   :  { %1775 = vmatmul.mubr.bf16.gmra.mxu0 %v6983_v0  ;;  %v242_v0 = vld [vmem:[%s9374_s0 + $0x658] sm:$0xff] }
  0xa3   :  { %1968 = vmatmul.mubr.bf16.gmra.mxu1 %v6985_v9  ;;  %1784 = vmatprep.mubr.bf16.mxu0 %v6987_v10  ;;  %v7025_v10 = vpack.c.bf16 %v245_v47, %v238_v42  ;;  %v235_v9 = vld [vmem:[%s9374_s0 + $0x620] sm:$0xff]  ;;  %v7057_v42 = vpack.c.bf16 %v244_v12, %v237_v29  ;;  %v7059_v47 = vpack.c.bf16 %v257_v38, %v250_v13  ;;  %v258_v29 = vld [vmem:[%s9374_s0 + $0x6d8] sm:$0xff] }
  0xa4   :  { %1977 = vmatprep.mubr.bf16.mxu1 %v6989_v11  ;;  %v7023_v11 = vpack.c.bf16 %v243_v41, %v236_v40  ;;  %v259_v40 = vld [vmem:[%s9374_s0 + $0x6e0] sm:$0xff]  ;;  %v7055_v41 = vpack.c.bf16 %v242_v0, %v235_v9  ;;  %v44_v0 = vld [vmem:[%s9374_s0 + $0x28] sm:$0xff] }
  0xa5   :  { %9485 = vst [vmem:[#allocation21_spill] sm:$0xff] %v7025_v10  ;;  %9487 = vst [vmem:[#allocation23_spill] sm:$0xff] %v7057_v42  ;;  %v51_v9 = vld [vmem:[%s9374_s0 + $0x60] sm:$0xff] }
  0xa6   :  { %9484 = vst [vmem:[#allocation20_spill] sm:$0xff] %v7023_v11  ;;  %9486 = vst [vmem:[#allocation22_spill] sm:$0xff] %v7055_v41  ;;  %v7089_v38 = vpack.c.bf16 %v51_v9, %v44_v0  ;;  %v58_v0 = vld [vmem:[%s9374_s0 + $0x98] sm:$0xff]  ;;  %v65_v9 = vld [vmem:[%s9374_s0 + $0xd0] sm:$0xff] }
  0xa7   :  { %9488 = vst [vmem:[#allocation24_spill] sm:$0xff] %v7059_v47 }
  0xa8   :  { %9492 = vst [vmem:[#allocation28_spill] sm:$0xff] %v7089_v38 }
  0xaa   :  { %1785 = vmatmul.mubr.bf16.gmra.mxu0 %v7019_v58  ;;  %v249_v58 = vld [vmem:[%s9374_s0 + $0x690] sm:$0xff] }
  0xab   :  { %1978 = vmatmul.mubr.bf16.gmra.mxu1 %v7021_v59  ;;  %1794 = vmatprep.mubr.bf16.mxu0 %v7023_v11  ;;  %v7061_v59 = vpack.c.bf16 %v259_v40, %v252_v39  ;;  %v7085_v12 = vpack.c.bf16 %v256_v28, %v249_v58  ;;  %v43_v39 = vld [vmem:[%s9374_s0 + $0x20] sm:$0xff]  ;;  %v50_v40 = vld [vmem:[%s9374_s0 + $0x58] sm:$0xff]  ;;  %v52_v28 = vld [vmem:[%s9374_s0 + $0x68] sm:$0xff] }
  0xac   :  { %1987 = vmatprep.mubr.bf16.mxu1 %v7025_v10  ;;  %v251_v10 = vld [vmem:[%s9374_s0 + $0x6a0] sm:$0xff]  ;;  %v5876_v58 = vld [vmem:[%s9373_s1 + $0xe8] ss:$16 sps:$4 sm:$0xff]  }
  0xad   :  { %9489 = vst [vmem:[#allocation25_spill] sm:$0xff] %v7061_v59  ;;  %9490 = vst [vmem:[#allocation26_spill] sm:$0xff] %v7085_v12  ;;  %v7087_v13 = vpack.c.bf16 %v258_v29, %v251_v10  ;;  %v9397_v10 = vmov 0   ;;  %v5879_v29 = vld [vmem:[%s9373_s1 + $0x2e8] ss:$16 sps:$4 sm:$0xff]  }
  0xaf   :  { %9491 = vst [vmem:[#allocation27_spill] sm:$0xff] %v7087_v13 }
  0xb2   :  { %1795 = vmatmul.mubr.bf16.gmra.mxu0 %v7055_v41 }
  0xb3   :  { %1988 = vmatmul.mubr.bf16.gmra.mxu1 %v7057_v42  ;;  %1804 = vmatprep.mubr.bf16.mxu0 %v7059_v47  ;;  %v45_v47 = vld [vmem:[%s9374_s0 + $0x30] sm:$0xff]  ;;  %v5887_v42 = vld [vmem:[%s9373_s1 + $0x2cc] ss:$16 sps:$4 sm:$0xff]  }
  0xb4   :  { %1997 = vmatprep.mubr.bf16.mxu1 %v7061_v59  ;;  %v5884_v59 = vld [vmem:[%s9373_s1 + $0xcc] ss:$16 sps:$4 sm:$0xff]  }
  0xba   :  { %1805 = vmatmul.mubr.bf16.gmra.mxu0 %v7085_v12  ;;  %v57_v12 = vld [vmem:[%s9374_s0 + $0x90] sm:$0xff] }
  0xbb   :  { %1998 = vmatmul.mubr.bf16.gmra.mxu1 %v7087_v13  ;;  %2040 = vmatprep.mubr.bf16.mxu0 %v7089_v38  ;;  %v7119_v38 = vpack.c.bf16 %v50_v40, %v43_v39  ;;  %v7121_v13 = vpack.c.bf16 %v52_v28, %v45_v47  ;;  %v64_v47 = vld [vmem:[%s9374_s0 + $0xc8] sm:$0xff]  ;;  %v59_v39 = vld [vmem:[%s9374_s0 + $0xa0] sm:$0xff]  ;;  %v66_v40 = vld [vmem:[%s9374_s0 + $0xd8] sm:$0xff] }
  0xbc   :  { %2233 = vmatprep.mubr.bf16.mxu1 %v9397_v10  ;;  %v7123_v10 = vpack.c.bf16 %v65_v9, %v58_v0  ;;  %v5882_v28 = vld [vmem:[%s9373_s1 + $0xc8] ss:$16 sps:$4 sm:$0xff]   ;;  %v7166_v41 = vpack.c.bf16 %v64_v47, %v57_v12  ;;  %v7168_v11 = vpack.c.bf16 %v66_v40, %v59_v39  ;;  %v71_v12 = vld [vmem:[%s9374_s0 + $0x100] sm:$0xff]  ;;  %v73_v47 = vld [vmem:[%s9374_s0 + $0x110] sm:$0xff] }
  0xbd   :  { %9493 = vst [vmem:[#allocation29_spill] sm:$0xff] %v7119_v38  ;;  %9494 = vst [vmem:[#allocation30_spill] sm:$0xff] %v7121_v13  ;;  %v5885_v0 = vld [vmem:[%s9373_s1 + $0x2c8] ss:$16 sps:$4 sm:$0xff]  }
  0xbe   :  { %9495 = vst [vmem:[#allocation31_spill] sm:$0xff] %v7123_v10  ;;  %v72_v9 = vld [vmem:[%s9374_s0 + $0x108] sm:$0xff]  ;;  %9497 = vst [vmem:[#allocation32_spill] sm:$0xff] %v7166_v41  ;;  %v86_v40 = vld [vmem:[%s9374_s0 + $0x178] sm:$0xff] }
  0xbf   :  { %9498 = vst [vmem:[#allocation33_spill] sm:$0xff] %v7168_v11  ;;  %v80_v39 = vld [vmem:[%s9374_s0 + $0x148] sm:$0xff] }
  0xc2   :  { %2041 = vmatmul.mubr.bf16.vlgmr.msra.gmra.mxu0 %v7119_v38  ;;  %v5893_v38 = vld [vmem:[%s9373_s1 + $0x2ac] ss:$16 sps:$4 sm:$0xff]  }
  0xc3   :  { %5341 = vmatmul.mubr.msk.bf16.vlgmr.msra.gmra.mxu1 %vm1573_vm0, %v7121_v13  ;;  %2395 = vmatpush1.bf16.msra.mxu0 %v5876_v58  ;;  %v9496_v13 = vmov 0   ;;  %v79_v58 = vld [vmem:[%s9374_s0 + $0x140] sm:$0xff] }
  0xc4   :  { %2588 = vmatpush1.bf16.msra.mxu1 %v5879_v29  ;;  %2050 = vmatprep.mubr.bf16.mxu0 %v7123_v10  ;;  %v5890_v29 = vld [vmem:[%s9373_s1 + $0xac] ss:$16 sps:$4 sm:$0xff]   ;;  %v7170_v10 = vpack.c.bf16 %v79_v58, %v72_v9  ;;  %v5897_v9 = vld [vmem:[%s9373_s1 + $0x288] ss:$16 sps:$4 sm:$0xff]  }
  0xc5   :  { %2243 = vmatprep.mubr.bf16.mxu1 %v9496_v13  ;;  %2396 = vmatprep.subr.bf16.mxu0 %v5884_v59  ;;  %v5896_v59 = vld [vmem:[%s9373_s1 + $0x8c] ss:$16 sps:$4 sm:$0xff]  }
  0xc6   :  { %2589 = vmatprep.subr.bf16.mxu1 %v5887_v42  ;;  %9499 = vst [vmem:[#allocation34_spill] sm:$0xff] %v7170_v10  ;;  %v5899_v42 = vld [vmem:[%s9373_s1 + $0x28c] ss:$16 sps:$4 sm:$0xff]  }
  0xc7   :  { %2397 = vmatpush1.bf16.msra.mxu0 %v5882_v28  ;;  %v93_v28 = vld [vmem:[%s9374_s0 + $0x1b0] sm:$0xff]  ;;  %v5902_v58 = vld [vmem:[%s9373_s1 + $0x6c] ss:$16 sps:$4 sm:$0xff]  }
  0xc8   :  { %2590 = vmatpush1.bf16.msra.mxu1 %v5885_v0  ;;  %2398 = vmatprep.subr.bf16.mxu0 %v5890_v29  ;;  %v5894_v0 = vld [vmem:[%s9373_s1 + $0x88] ss:$16 sps:$4 sm:$0xff]   ;;  %v7221_v29 = vpack.c.bf16 %v80_v39, %v73_v47  ;;  %v85_v47 = vld [vmem:[%s9374_s0 + $0x170] sm:$0xff] }
  0xc9   :  { %2591 = vmatprep.subr.bf16.mxu1 %v5893_v38  ;;  %v78_v38 = vld [vmem:[%s9374_s0 + $0x138] sm:$0xff]  ;;  %v92_v39 = vld [vmem:[%s9374_s0 + $0x1a8] sm:$0xff] }
  0xca   :  { %2051 = vmatmul.mubr.bf16.gmra.mxu0 %v7166_v41  ;;  %9501 = vst [vmem:[#allocation36_spill] sm:$0xff] %v7221_v29 }
  0xcb   :  { %5342 = vmatmul.mubr.msk.bf16.gmra.mxu1 %vm1573_vm0, %v7168_v11  ;;  %2060 = vmatprep.mubr.bf16.mxu0 %v7170_v10  ;;  %v7223_v10 = vpack.c.bf16 %v93_v28, %v86_v40  ;;  %v87_v40 = vld [vmem:[%s9374_s0 + $0x180] sm:$0xff]  ;;  %v94_v28 = vld [vmem:[%s9374_s0 + $0x1b8] sm:$0xff] }
  0xcc   :  { %2253 = vmatprep.mubr.bf16.mxu1 %v9496_v13  ;;  %2399 = vmatpush1.bf16.msra.mxu0 %v5888_v15  ;;  %v7219_v15 = vpack.c.bf16 %v78_v38, %v71_v12  ;;  %v5908_v12 = vld [vmem:[%s9373_s1 + $0x4c] ss:$16 sps:$4 sm:$0xff]  }
  0xcd   :  { %2592 = vmatpush1.bf16.msra.mxu1 %v5891_v14  ;;  %2400 = vmatprep.subr.bf16.mxu0 %v5896_v59  ;;  %v5905_v14 = vld [vmem:[%s9373_s1 + $0x26c] ss:$16 sps:$4 sm:$0xff]   ;;  %9502 = vst [vmem:[#allocation37_spill] sm:$0xff] %v7223_v10  ;;  %v5900_v59 = vld [vmem:[%s9373_s1 + $0x68] ss:$16 sps:$4 sm:$0xff]  }
  0xce   :  { %2593 = vmatprep.subr.bf16.mxu1 %v5899_v42  ;;  %9500 = vst [vmem:[#allocation35_spill] sm:$0xff] %v7219_v15  ;;  %v5903_v42 = vld [vmem:[%s9373_s1 + $0x268] ss:$16 sps:$4 sm:$0xff]   ;;  %v5911_v38 = vld [vmem:[%s9373_s1 + $0x24c] ss:$16 sps:$4 sm:$0xff]  }
  0xd0   :  { %2401 = vmatpush1.bf16.msra.mxu0 %v5894_v0  ;;  %v100_v0 = vld [vmem:[%s9374_s0 + $0x1e8] sm:$0xff] }
  0xd1   :  { %2594 = vmatpush1.bf16.msra.mxu1 %v5897_v9  ;;  %2402 = vmatprep.subr.bf16.mxu0 %v5902_v58  ;;  %v107_v9 = vld [vmem:[%s9374_s0 + $0x220] sm:$0xff]  ;;  %v5906_v58 = vld [vmem:[%s9373_s1 + $0x48] ss:$16 sps:$4 sm:$0xff]  }
  0xd2   :  { %2595 = vmatprep.subr.bf16.mxu1 %v5905_v14  ;;  %2061 = vmatmul.mubr.bf16.gmra.mxu0 %v7219_v15  ;;  %v5909_v14 = vld [vmem:[%s9373_s1 + $0x248] ss:$16 sps:$4 sm:$0xff]   ;;  %v7276_v15 = vpack.c.bf16 %v107_v9, %v100_v0  ;;  %v121_v9 = vld [vmem:[%s9374_s0 + $0x290] sm:$0xff] }
  0xd3   :  { %5343 = vmatmul.mubr.msk.bf16.gmra.mxu1 %vm1573_vm0, %v7221_v29  ;;  %2070 = vmatprep.mubr.bf16.mxu0 %v7223_v10  ;;  %v5914_v10 = vld [vmem:[%s9373_s1 + $0x2c] ss:$16 sps:$4 sm:$0xff]  }
  0xd4   :  { %2263 = vmatprep.mubr.bf16.mxu1 %v9496_v13  ;;  %2403 = vmatpush1.bf16.msra.mxu0 %v5900_v59  ;;  %v5917_v29 = vld [vmem:[%s9373_s1 + $0x22c] ss:$16 sps:$4 sm:$0xff]   ;;  %v7272_v59 = vpack.c.bf16 %v92_v39, %v85_v47  ;;  %9505 = vst [vmem:[#allocation40_spill] sm:$0xff] %v7276_v15 }
  0xd5   :  { %2596 = vmatpush1.bf16.msra.mxu1 %v5903_v42  ;;  %2404 = vmatprep.subr.bf16.mxu0 %v5908_v12  ;;  %v7274_v42 = vpack.c.bf16 %v94_v28, %v87_v40  ;;  %v5912_v12 = vld [vmem:[%s9373_s1 + $0x28] ss:$16 sps:$4 sm:$0xff]   ;;  %v5920_v47 = vld [vmem:[%s9373_s1 + $0xc] ss:$16 sps:$4 sm:$0xff]   ;;  %v99_v40 = vld [vmem:[%s9374_s0 + $0x1e0] sm:$0xff] }
  0xd6   :  { %2597 = vmatprep.subr.bf16.mxu1 %v5911_v38  ;;  %9503 = vst [vmem:[#allocation38_spill] sm:$0xff] %v7272_v59  ;;  %v5915_v38 = vld [vmem:[%s9373_s1 + $0x228] ss:$16 sps:$4 sm:$0xff]   ;;  %v5923_v39 = vld [vmem:[%s9373_s1 + $0x20c] ss:$16 sps:$4 sm:$0xff]  }
  0xd7   :  { %9504 = vst [vmem:[#allocation39_spill] sm:$0xff] %v7274_v42  ;;  %v108_v28 = vld [vmem:[%s9374_s0 + $0x228] sm:$0xff]  ;;  %v114_v0 = vld [vmem:[%s9374_s0 + $0x258] sm:$0xff] }
  0xd8   :  { %2405 = vmatpush1.bf16.msra.mxu0 %v5906_v58  ;;  %v5918_v58 = vld [vmem:[%s9373_s1 + $0x8] ss:$16 sps:$4 sm:$0xff]  }
  0xd9   :  { %2598 = vmatpush1.bf16.msra.mxu1 %v5909_v14  ;;  %2406 = vmatprep.subr.bf16.mxu0 %v5914_v10  ;;  %v106_v10 = vld [vmem:[%s9374_s0 + $0x218] sm:$0xff] }
  0xda   :  { %2599 = vmatprep.subr.bf16.mxu1 %v5917_v29  ;;  %2071 = vmatmul.mubr.bf16.gmra.mxu0 %v7272_v59  ;;  %v101_v29 = vld [vmem:[%s9374_s0 + $0x1f0] sm:$0xff]  ;;  %v5921_v14 = vld [vmem:[%s9373_s1 + $0x208] ss:$16 sps:$4 sm:$0xff]   ;;  %v7329_v59 = vpack.c.bf16 %v121_v9, %v114_v0  ;;  %v135_v9 = vld [vmem:[%s9374_s0 + $0x300] sm:$0xff] }
  0xdb   :  { %5344 = vmatmul.mubr.msk.bf16.gmra.mxu1 %vm1573_vm0, %v7274_v42  ;;  %2080 = vmatprep.mubr.bf16.mxu0 %v7276_v15  ;;  %v5926_v15 = vld [vmem:[%s9373_s1 + $0x1ec] ss:$16 sps:$4 sm:$0xff]  }
  0xdc   :  { %2273 = vmatprep.mubr.bf16.mxu1 %v9496_v13  ;;  %2407 = vmatpush1.bf16.msra.mxu0 %v5912_v12  ;;  %v5929_v42 = vld [vmem:[%s9373_s1 + $0x3ec] ss:$16 sps:$4 sm:$0xff]   ;;  %v7325_v12 = vpack.c.bf16 %v106_v10, %v99_v40  ;;  %9508 = vst [vmem:[#allocation43_spill] sm:$0xff] %v7329_v59 }
  0xdd   :  { %2600 = vmatpush1.bf16.msra.mxu1 %v5915_v38  ;;  %2408 = vmatprep.subr.bf16.mxu0 %v5920_v47  ;;  %v7327_v38 = vpack.c.bf16 %v108_v28, %v101_v29  ;;  %v5924_v47 = vld [vmem:[%s9373_s1 + $0x1e8] ss:$16 sps:$4 sm:$0xff]   ;;  %v5932_v40 = vld [vmem:[%s9373_s1 + $0x1cc] ss:$16 sps:$4 sm:$0xff]   ;;  %v113_v29 = vld [vmem:[%s9374_s0 + $0x250] sm:$0xff] }
  0xde   :  { %2601 = vmatprep.subr.bf16.mxu1 %v5923_v39  ;;  %9506 = vst [vmem:[#allocation41_spill] sm:$0xff] %v7325_v12  ;;  %v5927_v39 = vld [vmem:[%s9373_s1 + $0x3e8] ss:$16 sps:$4 sm:$0xff]   ;;  %v5935_v10 = vld [vmem:[%s9373_s1 + $0x3cc] ss:$16 sps:$4 sm:$0xff]  }
  0xdf   :  { %9507 = vst [vmem:[#allocation42_spill] sm:$0xff] %v7327_v38  ;;  %v122_v28 = vld [vmem:[%s9374_s0 + $0x298] sm:$0xff]  ;;  %v128_v0 = vld [vmem:[%s9374_s0 + $0x2c8] sm:$0xff] }
  0xe0   :  { %2409 = vmatpush1.bf16.msra.mxu0 %v5918_v58  ;;  %v5930_v58 = vld [vmem:[%s9373_s1 + $0x1c8] ss:$16 sps:$4 sm:$0xff]  }
  0xe1   :  { %2602 = vmatpush1.bf16.msra.mxu1 %v5921_v14  ;;  %2410 = vmatprep.subr.bf16.mxu0 %v5926_v15  ;;  %v120_v15 = vld [vmem:[%s9374_s0 + $0x288] sm:$0xff] }
  0xe2   :  { %2603 = vmatprep.subr.bf16.mxu1 %v5929_v42  ;;  %2081 = vmatmul.mubr.bf16.gmra.mxu0 %v7325_v12  ;;  %v115_v42 = vld [vmem:[%s9374_s0 + $0x260] sm:$0xff]  ;;  %v5933_v14 = vld [vmem:[%s9373_s1 + $0x3c8] ss:$16 sps:$4 sm:$0xff]   ;;  %v7382_v12 = vpack.c.bf16 %v135_v9, %v128_v0  ;;  %v149_v9 = vld [vmem:[%s9374_s0 + $0x370] sm:$0xff] }
  0xe3   :  { %5345 = vmatmul.mubr.msk.bf16.gmra.mxu1 %vm1573_vm0, %v7327_v38  ;;  %2090 = vmatprep.mubr.bf16.mxu0 %v7329_v59  ;;  %v5938_v59 = vld [vmem:[%s9373_s1 + $0x1ac] ss:$16 sps:$4 sm:$0xff]  }
  0xe4   :  { %2283 = vmatprep.mubr.bf16.mxu1 %v9496_v13  ;;  %2411 = vmatpush2.bf16.msra.mxu0 %v5924_v47  ;;  %v5941_v38 = vld [vmem:[%s9373_s1 + $0x3ac] ss:$16 sps:$4 sm:$0xff]   ;;  %v7378_v47 = vpack.c.bf16 %v120_v15, %v113_v29  ;;  %9511 = vst [vmem:[#allocation46_spill] sm:$0xff] %v7382_v12 }
  0xe5   :  { %2604 = vmatpush2.bf16.msra.mxu1 %v5927_v39  ;;  %2412 = vmatprep.subr.bf16.mxu0 %v5932_v40  ;;  %v7380_v39 = vpack.c.bf16 %v122_v28, %v115_v42  ;;  %v5936_v40 = vld [vmem:[%s9373_s1 + $0x1a8] ss:$16 sps:$4 sm:$0xff]   ;;  %v5944_v29 = vld [vmem:[%s9373_s1 + $0x18c] ss:$16 sps:$4 sm:$0xff]   ;;  %v127_v42 = vld [vmem:[%s9374_s0 + $0x2c0] sm:$0xff] }
  0xe6   :  { %2605 = vmatprep.subr.bf16.mxu1 %v5935_v10  ;;  %9509 = vst [vmem:[#allocation44_spill] sm:$0xff] %v7378_v47  ;;  %v5939_v10 = vld [vmem:[%s9373_s1 + $0x3a8] ss:$16 sps:$4 sm:$0xff]   ;;  %v5947_v15 = vld [vmem:[%s9373_s1 + $0x38c] ss:$16 sps:$4 sm:$0xff]  }
  0xe7   :  { %9510 = vst [vmem:[#allocation45_spill] sm:$0xff] %v7380_v39  ;;  %v136_v28 = vld [vmem:[%s9374_s0 + $0x308] sm:$0xff]  ;;  %v142_v0 = vld [vmem:[%s9374_s0 + $0x338] sm:$0xff] }
  0xe8   :  { %2413 = vmatpush2.bf16.msra.mxu0 %v5930_v58  ;;  %v5942_v58 = vld [vmem:[%s9373_s1 + $0x188] ss:$16 sps:$4 sm:$0xff]  }
  0xe9   :  { %2606 = vmatpush2.bf16.msra.mxu1 %v5933_v14  ;;  %2414 = vmatprep.subr.bf16.mxu0 %v5938_v59  ;;  %v134_v59 = vld [vmem:[%s9374_s0 + $0x2f8] sm:$0xff] }
  0xea   :  { %2607 = vmatprep.subr.bf16.mxu1 %v5941_v38  ;;  %2091 = vmatmul.mubr.bf16.gmra.mxu0 %v7378_v47  ;;  %v129_v38 = vld [vmem:[%s9374_s0 + $0x2d0] sm:$0xff]  ;;  %v5945_v14 = vld [vmem:[%s9373_s1 + $0x388] ss:$16 sps:$4 sm:$0xff]   ;;  %v7435_v47 = vpack.c.bf16 %v149_v9, %v142_v0  ;;  %v573_v9 = vlaneseq }
  0xeb   :  { %5346 = vmatmul.mubr.msk.bf16.gmra.mxu1 %vm1573_vm0, %v7380_v39  ;;  %2100 = vmatprep.mubr.bf16.mxu0 %v7382_v12  ;;  %v5950_v12 = vld [vmem:[%s9373_s1 + $0x16c] ss:$16 sps:$4 sm:$0xff]  }
  0xec   :  { %2293 = vmatprep.mubr.bf16.mxu1 %v9496_v13  ;;  %2415 = vmatpush2.bf16.msra.mxu0 %v5936_v40  ;;  %v5953_v39 = vld [vmem:[%s9373_s1 + $0x36c] ss:$16 sps:$4 sm:$0xff]   ;;  %v7431_v40 = vpack.c.bf16 %v134_v59, %v127_v42  ;;  %9514 = vst [vmem:[#allocation49_spill] sm:$0xff] %v7435_v47  ;;  %v7490_v41 = vshrl.u32 %v573_v9, 7 }
  0xed   :  { %2608 = vmatpush2.bf16.msra.mxu1 %v5939_v10  ;;  %2416 = vmatprep.subr.bf16.mxu0 %v5944_v29  ;;  %v7433_v10 = vpack.c.bf16 %v136_v28, %v129_v38  ;;  %v5948_v29 = vld [vmem:[%s9373_s1 + $0x168] ss:$16 sps:$4 sm:$0xff]   ;;  %v5956_v42 = vld [vmem:[%s9373_s1 + $0x14c] ss:$16 sps:$4 sm:$0xff]   ;;  %v141_v38 = vld [vmem:[%s9374_s0 + $0x330] sm:$0xff] }
  0xee   :  { %2609 = vmatprep.subr.bf16.mxu1 %v5947_v15  ;;  %9512 = vst [vmem:[#allocation47_spill] sm:$0xff] %v7431_v40  ;;  %v5951_v15 = vld [vmem:[%s9373_s1 + $0x368] ss:$16 sps:$4 sm:$0xff]   ;;  %v5959_v59 = vld [vmem:[%s9373_s1 + $0x34c] ss:$16 sps:$4 sm:$0xff]   ;;  %9518 = vst [vmem:[#allocation53_spill] sm:$0xff] %v7490_v41 }
  0xef   :  { %9513 = vst [vmem:[#allocation48_spill] sm:$0xff] %v7433_v10  ;;  %v150_v28 = vld [vmem:[%s9374_s0 + $0x378] sm:$0xff]  ;;  %v156_v0 = vld [vmem:[%s9374_s0 + $0x3a8] sm:$0xff]  ;;  %v9521_v57 = vsub.s32 0, %v7490_v41 }
  0xf0   :  { %2417 = vmatpush2.bf16.msra.mxu0 %v5942_v58  ;;  %v163_v58 = vld [vmem:[%s9374_s0 + $0x3e0] sm:$0xff]  ;;  %v170_v9 = vld [vmem:[%s9374_s0 + $0x418] sm:$0xff] }
  0xf1   :  { %2610 = vmatpush2.bf16.msra.mxu1 %v5945_v14  ;;  %2418 = vmatprep.subr.bf16.mxu0 %v5950_v12  ;;  %v148_v12 = vld [vmem:[%s9374_s0 + $0x368] sm:$0xff]  ;;  %v7488_v11 = vpack.c.bf16 %v163_v58, %v156_v0  ;;  %v177_v58 = vld [vmem:[%s9374_s0 + $0x450] sm:$0xff] }
  0xf2   :  { %2611 = vmatprep.subr.bf16.mxu1 %v5953_v39  ;;  %2101 = vmatmul.mubr.bf16.gmra.mxu0 %v7431_v40  ;;  %v143_v39 = vld [vmem:[%s9374_s0 + $0x340] sm:$0xff]  ;;  %v5954_v14 = vld [vmem:[%s9373_s1 + $0x148] ss:$16 sps:$4 sm:$0xff]   ;;  %v5965_v40 = vld [vmem:[%s9373_s1 + $0x32c] ss:$16 sps:$4 sm:$0xff]   ;;  %v7552_v55 = vpack.c.bf16 %v177_v58, %v170_v9 }
  0xf3   :  { %5347 = vmatmul.mubr.msk.bf16.gmra.mxu1 %vm1573_vm0, %v7433_v10  ;;  %2110 = vmatprep.mubr.bf16.mxu0 %v7435_v47  ;;  %v5957_v47 = vld [vmem:[%s9373_s1 + $0x348] ss:$16 sps:$4 sm:$0xff]   ;;  %v5962_v10 = vld [vmem:[%s9373_s1 + $0x12c] ss:$16 sps:$4 sm:$0xff]   ;;  %9517 = vst [vmem:[#allocation52_spill] sm:$0xff] %v7488_v11  ;;  %v191_v9 = vld [vmem:[%s9374_s0 + $0x4c0] sm:$0xff] }
  0xf4   :  { %2303 = vmatprep.mubr.bf16.mxu1 %v9496_v13  ;;  %2419 = vmatpush2.bf16.msra.mxu0 %v5948_v29  ;;  %v7484_v29 = vpack.c.bf16 %v148_v12, %v141_v38  ;;  %v5968_v38 = vld [vmem:[%s9373_s1 + $0x10c] ss:$16 sps:$4 sm:$0xff]   ;;  %9522 = vst [vmem:[#allocation56_spill] sm:$0xff] %v7552_v55 }
  0xf5   :  { %2612 = vmatpush2.bf16.msra.mxu1 %v5951_v15  ;;  %2420 = vmatprep.subr.bf16.mxu0 %v5956_v42  ;;  %v7486_v15 = vpack.c.bf16 %v150_v28, %v143_v39  ;;  %v5960_v42 = vld [vmem:[%s9373_s1 + $0x128] ss:$16 sps:$4 sm:$0xff]   ;;  %v5971_v12 = vld [vmem:[%s9373_s1 + $0x30c] ss:$16 sps:$4 sm:$0xff]   ;;  %v157_v28 = vld [vmem:[%s9374_s0 + $0x3b0] sm:$0xff] }
  0xf6   :  { %2613 = vmatprep.subr.bf16.mxu1 %v5959_v59  ;;  %9515 = vst [vmem:[#allocation50_spill] sm:$0xff] %v7484_v29  ;;  %v5963_v59 = vld [vmem:[%s9373_s1 + $0x328] ss:$16 sps:$4 sm:$0xff]  }
  0xf7   :  { %9516 = vst [vmem:[#allocation51_spill] sm:$0xff] %v7486_v15  ;;  %v164_v0 = vld [vmem:[%s9374_s0 + $0x3e8] sm:$0xff] }
  0xf8   :  { %2421 = vmatpush2.bf16.msra.mxu0 %v5954_v14  ;;  %v5966_v14 = vld [vmem:[%s9373_s1 + $0x108] ss:$16 sps:$4 sm:$0xff]  }
  0xf9   :  { %2614 = vmatpush2.bf16.msra.mxu1 %v5957_v47  ;;  %2422 = vmatprep.subr.bf16.mxu0 %v5962_v10  ;;  %v571_v47 = vld [vmem:[%s9375_s2] sm:$0xf]  ;;  %v162_v10 = vld [vmem:[%s9374_s0 + $0x3d8] sm:$0xff] }
  0xfa   :  { %2615 = vmatprep.subr.bf16.mxu1 %v5965_v40  ;;  %2111 = vmatmul.mubr.bf16.gmra.mxu0 %v7484_v29  ;;  %v155_v40 = vld [vmem:[%s9374_s0 + $0x3a0] sm:$0xff]  ;;  %v5969_v39 = vld [vmem:[%s9373_s1 + $0x308] ss:$16 sps:$4 sm:$0xff]   ;;  %v7546_v29 = vpack.c.bf16 %v164_v0, %v157_v28  ;;  %v7550_v56 = vrot.slane %v571_v47, %v9521_v57  ;;  %v169_v57 = vld [vmem:[%s9374_s0 + $0x410] sm:$0xff] }
  0xfb   :  { %5348 = vmatmul.mubr.msk.bf16.gmra.mxu1 %vm1573_vm0, %v7486_v15  ;;  %2120 = vmatprep.mubr.bf16.mxu0 %v7488_v11  ;;  %v9434_v11 = vsub.s32 1, %v7490_v41  ;;  %v5974_v15 = vld [vmem:[%s9373_s1 + $0x4ec] ss:$16 sps:$4 sm:$0xff]  }
  0xfc   :  { %2313 = vmatprep.mubr.bf16.mxu1 %v9496_v13  ;;  %2423 = vmatpush2.bf16.msra.mxu0 %v5960_v42  ;;  %v5977_v42 = vld [vmem:[%s9373_s1 + $0x60c] ss:$16 sps:$4 sm:$0xff]   ;;  %9520 = vst [vmem:[#allocation55_spill] sm:$0xff] %v7546_v29 }
  0xfd   :  { %2616 = vmatpush2.bf16.msra.mxu1 %v5963_v59  ;;  %2424 = vmatprep.subr.bf16.mxu0 %v5968_v38  ;;  %v7544_v59 = vpack.c.bf16 %v162_v10, %v155_v40  ;;  %v7556_v38 = vrot.slane %v571_v47, %v9434_v11  ;;  %v171_v47 = vld [vmem:[%s9374_s0 + $0x420] sm:$0xff]  ;;  %v178_v10 = vld [vmem:[%s9374_s0 + $0x458] sm:$0xff]  ;;  %v184_v0 = vld [vmem:[%s9374_s0 + $0x488] sm:$0xff] }
  0xfe   :  { %2617 = vmatprep.subr.bf16.mxu1 %v5971_v12  ;;  %v7592_v41 = vpack.c.bf16 %v191_v9, %v184_v0  ;;  %v198_v0 = vld [vmem:[%s9374_s0 + $0x4f8] sm:$0xff]  ;;  %v205_v9 = vld [vmem:[%s9374_s0 + $0x530] sm:$0xff] }
  0xff   :  { %9519 = vst [vmem:[#allocation54_spill] sm:$0xff] %v7544_v59  ;;  %v7633_v18 = vpack.c.bf16 %v205_v9, %v198_v0  ;;  %v212_v0 = vld [vmem:[%s9374_s0 + $0x568] sm:$0xff]  ;;  %v219_v9 = vld [vmem:[%s9374_s0 + $0x5a0] sm:$0xff] }
 0x100   :  { %2425 = vmatpush2.bf16.msra.mxu0 %v5966_v14  ;;  %9526 = vst [vmem:[#allocation60_spill] sm:$0xff] %v7592_v41 }
 0x101   :  { %2618 = vmatpush2.bf16.msra.mxu1 %v5969_v39  ;;  %2780 = vmatprep.subr.bf16.mxu0 %v5974_v15  ;;  %v176_v15 = vld [vmem:[%s9374_s0 + $0x448] sm:$0xff]  ;;  %9533 = vst [vmem:[#allocation67_spill] sm:$0xff] %v7633_v18 }
 0x102   :  { %2987 = vmatprep.subr.bf16.mxu1 %v5977_v42  ;;  %v1656_v12 = vpop.f32.mrf.mxu0  ;;  %2121 = vmatmul.mubr.bf16.gmra.mxu0 %v7544_v59  ;;  %v7585_v11 = vpack.c.bf16 %v176_v15, %v169_v57  ;;  %v183_v57 = vld [vmem:[%s9374_s0 + $0x480] sm:$0xff] }
 0x103   :  { %v1849_v48 = vpop.f32.mrf.mxu1  ;;  %5349 = vmatmul.mubr.msk.bf16.gmra.mxu1 %vm1573_vm0, %v7546_v29  ;;  %v1657_v40 = vadd.f32 %v1656_v12, %v7550_v56  ;;  %2130 = vmatprep.mubr.bf16.mxu0 %v7552_v55  ;;  %v7587_v55 = vpack.c.bf16 %v178_v10, %v171_v47  ;;  %v192_v10 = vld [vmem:[%s9374_s0 + $0x4c8] sm:$0xff] }
 0x104   :  { %2323 = vmatprep.mubr.bf16.mxu1 %v9496_v13  ;;  %v1658_v39 = vpop.f32.mrf.mxu0  ;;  %9523 = vst [vmem:[#allocation57_spill] sm:$0xff] %v7585_v11 }
 0x105   :  { %v1851_v28 = vpop.f32.mrf.mxu1  ;;  %v7582_v58 = vadd.f32 %v1849_v48, %v1657_v40  ;;  %v1659_v14 = vadd.f32 %v1658_v39, %v7556_v38  ;;  %9524 = vst [vmem:[#allocation58_spill] sm:$0xff] %v7587_v55 }
 0x106   :  { %v1660_v42 = vpop.f32.mrf.mxu0 }
 0x107   :  { %v1853_v12 = vpop.f32.mrf.mxu1  ;;  %v7589_v29 = vadd.f32 %v1851_v28, %v1659_v14  ;;  %v1661_v59 = vadd.f32 %v1660_v42, %v7550_v56 }
 0x108   :  { %v1662_v27 = vpop.f32.mrf.mxu0 }
 0x109   :  { %9525 = vst [vmem:[#allocation59_spill] sm:$0xff] %v7589_v29  ;;  %v1855_v22 = vpop.f32.mrf.mxu1  ;;  %v7594_v19 = vadd.f32 %v1853_v12, %v1661_v59  ;;  %v1663_v48 = vadd.f32 %v1662_v27, %v7556_v38  ;;  %v190_v27 = vld [vmem:[%s9374_s0 + $0x4b8] sm:$0xff]  ;;  %v185_v59 = vld [vmem:[%s9374_s0 + $0x490] sm:$0xff] }
 0x10a   :  { %v1666_v40 = vpop.f32.mrf.mxu0  ;;  %2131 = vmatmul.mubr.bf16.gmra.mxu0 %v7585_v11 }
 0x10b   :  { %9527 = vst [vmem:[#allocation61_spill] sm:$0xff] %v7594_v19  ;;  %v1859_v39 = vpop.f32.mrf.mxu1  ;;  %5350 = vmatmul.mubr.msk.bf16.gmra.mxu1 %vm1573_vm0, %v7587_v55  ;;  %v7603_v15 = vadd.f32 %v1855_v22, %v1663_v48  ;;  %v1667_v47 = vadd.f32 %v1666_v40, %v7550_v56  ;;  %2140 = vmatprep.mubr.bf16.mxu0 %v7592_v41 }
 0x10c   :  { %2333 = vmatprep.mubr.bf16.mxu1 %v9496_v13  ;;  %v1668_v22 = vpop.f32.mrf.mxu0  ;;  %v7626_v40 = vpack.c.bf16 %v190_v27, %v183_v57  ;;  %v7628_v41 = vpack.c.bf16 %v192_v10, %v185_v59  ;;  %v197_v57 = vld [vmem:[%s9374_s0 + $0x4f0] sm:$0xff]  ;;  %v206_v10 = vld [vmem:[%s9374_s0 + $0x538] sm:$0xff] }
 0x10d   :  { %9528 = vst [vmem:[#allocation62_spill] sm:$0xff] %v7603_v15  ;;  %v1861_v28 = vpop.f32.mrf.mxu1  ;;  %v7623_v14 = vadd.f32 %v1859_v39, %v1667_v47  ;;  %v1669_v42 = vadd.f32 %v1668_v22, %v7556_v38 }
 0x10e   :  { %v1670_v12 = vpop.f32.mrf.mxu0  ;;  %9530 = vst [vmem:[#allocation64_spill] sm:$0xff] %v7626_v40  ;;  %9531 = vst [vmem:[#allocation65_spill] sm:$0xff] %v7628_v41 }
 0x10f   :  { %9529 = vst [vmem:[#allocation63_spill] sm:$0xff] %v7623_v14  ;;  %v1863_v48 = vpop.f32.mrf.mxu1  ;;  %v7630_v55 = vadd.f32 %v1861_v28, %v1669_v42  ;;  %v1671_v11 = vadd.f32 %v1670_v12, %v7550_v56 }
 0x110   :  { %v1672_v15 = vpop.f32.mrf.mxu0 }
 0x111   :  { %9532 = vst [vmem:[#allocation66_spill] sm:$0xff] %v7630_v55  ;;  %v1865_v19 = vpop.f32.mrf.mxu1  ;;  %v7635_v29 = vadd.f32 %v1863_v48, %v1671_v11  ;;  %v1673_v39 = vadd.f32 %v1672_v15, %v7556_v38  ;;  %v204_v11 = vld [vmem:[%s9374_s0 + $0x528] sm:$0xff]  ;;  %v199_v15 = vld [vmem:[%s9374_s0 + $0x500] sm:$0xff] }
 0x112   :  { %v1676_v47 = vpop.f32.mrf.mxu0  ;;  %2141 = vmatmul.mubr.bf16.gmra.mxu0 %v7626_v40 }
 0x113   :  { %9534 = vst [vmem:[#allocation68_spill] sm:$0xff] %v7635_v29  ;;  %v1869_v22 = vpop.f32.mrf.mxu1  ;;  %5351 = vmatmul.mubr.msk.bf16.gmra.mxu1 %vm1573_vm0, %v7628_v41  ;;  %v7644_v27 = vadd.f32 %v1865_v19, %v1673_v39  ;;  %v1677_v59 = vadd.f32 %v1676_v47, %v7550_v56  ;;  %2150 = vmatprep.mubr.bf16.mxu0 %v7633_v18 }
 0x114   :  { %2343 = vmatprep.mubr.bf16.mxu1 %v9496_v13  ;;  %v1678_v19 = vpop.f32.mrf.mxu0  ;;  %v7667_v47 = vpack.c.bf16 %v204_v11, %v197_v57  ;;  %v7669_v18 = vpack.c.bf16 %v206_v10, %v199_v15  ;;  %v211_v57 = vld [vmem:[%s9374_s0 + $0x560] sm:$0xff]  ;;  %v220_v10 = vld [vmem:[%s9374_s0 + $0x5a8] sm:$0xff] }
 0x115   :  { %9535 = vst [vmem:[#allocation69_spill] sm:$0xff] %v7644_v27  ;;  %v1871_v28 = vpop.f32.mrf.mxu1  ;;  %v7664_v42 = vadd.f32 %v1869_v22, %v1677_v59  ;;  %v1679_v12 = vadd.f32 %v1678_v19, %v7556_v38  ;;  %v7674_v27 = vpack.c.bf16 %v219_v9, %v212_v0  ;;  %v226_v0 = vld [vmem:[%s9374_s0 + $0x5d8] sm:$0xff]  ;;  %v233_v9 = vld [vmem:[%s9374_s0 + $0x610] sm:$0xff] }
 0x116   :  { %v1680_v48 = vpop.f32.mrf.mxu0  ;;  %9537 = vst [vmem:[#allocation71_spill] sm:$0xff] %v7667_v47  ;;  %9538 = vst [vmem:[#allocation72_spill] sm:$0xff] %v7669_v18 }
 0x117   :  { %9536 = vst [vmem:[#allocation70_spill] sm:$0xff] %v7664_v42  ;;  %v1873_v39 = vpop.f32.mrf.mxu1  ;;  %v7671_v41 = vadd.f32 %v1871_v28, %v1679_v12  ;;  %v1681_v40 = vadd.f32 %v1680_v48, %v7550_v56  ;;  %9540 = vst [vmem:[#allocation74_spill] sm:$0xff] %v7674_v27 }
 0x118   :  { %v1682_v29 = vpop.f32.mrf.mxu0 }
 0x119   :  { %9539 = vst [vmem:[#allocation73_spill] sm:$0xff] %v7671_v41  ;;  %v1875_v55 = vpop.f32.mrf.mxu1  ;;  %v7676_v14 = vadd.f32 %v1873_v39, %v1681_v40  ;;  %v1683_v22 = vadd.f32 %v1682_v29, %v7556_v38  ;;  %v218_v29 = vld [vmem:[%s9374_s0 + $0x598] sm:$0xff]  ;;  %v213_v40 = vld [vmem:[%s9374_s0 + $0x570] sm:$0xff] }
 0x11a   :  { %v1686_v59 = vpop.f32.mrf.mxu0  ;;  %2151 = vmatmul.mubr.bf16.gmra.mxu0 %v7667_v47 }
 0x11b   :  { %9541 = vst [vmem:[#allocation75_spill] sm:$0xff] %v7676_v14  ;;  %v1879_v19 = vpop.f32.mrf.mxu1  ;;  %5352 = vmatmul.mubr.msk.bf16.gmra.mxu1 %vm1573_vm0, %v7669_v18  ;;  %v7685_v11 = vadd.f32 %v1875_v55, %v1683_v22  ;;  %v1687_v15 = vadd.f32 %v1686_v59, %v7550_v56  ;;  %2160 = vmatprep.mubr.bf16.mxu0 %v7674_v27 }
 0x11c   :  { %2353 = vmatprep.mubr.bf16.mxu1 %v9496_v13  ;;  %v1688_v55 = vpop.f32.mrf.mxu0  ;;  %v7708_v59 = vpack.c.bf16 %v218_v29, %v211_v57  ;;  %v7710_v27 = vpack.c.bf16 %v220_v10, %v213_v40  ;;  %v225_v57 = vld [vmem:[%s9374_s0 + $0x5d0] sm:$0xff]  ;;  %v234_v10 = vld [vmem:[%s9374_s0 + $0x618] sm:$0xff] }
 0x11d   :  { %9542 = vst [vmem:[#allocation76_spill] sm:$0xff] %v7685_v11  ;;  %v1881_v28 = vpop.f32.mrf.mxu1  ;;  %v7705_v12 = vadd.f32 %v1879_v19, %v1687_v15  ;;  %v1689_v48 = vadd.f32 %v1688_v55, %v7556_v38  ;;  %v7715_v11 = vpack.c.bf16 %v233_v9, %v226_v0  ;;  %v240_v0 = vld [vmem:[%s9374_s0 + $0x648] sm:$0xff]  ;;  %v247_v9 = vld [vmem:[%s9374_s0 + $0x680] sm:$0xff] }
 0x11e   :  { %v1690_v39 = vpop.f32.mrf.mxu0  ;;  %9544 = vst [vmem:[#allocation78_spill] sm:$0xff] %v7708_v59  ;;  %9545 = vst [vmem:[#allocation79_spill] sm:$0xff] %v7710_v27 }
 0x11f   :  { %9543 = vst [vmem:[#allocation77_spill] sm:$0xff] %v7705_v12  ;;  %v1883_v22 = vpop.f32.mrf.mxu1  ;;  %v7712_v18 = vadd.f32 %v1881_v28, %v1689_v48  ;;  %v1691_v47 = vadd.f32 %v1690_v39, %v7550_v56  ;;  %9547 = vst [vmem:[#allocation81_spill] sm:$0xff] %v7715_v11 }
 0x120   :  { %v1692_v14 = vpop.f32.mrf.mxu0 }
 0x121   :  { %9546 = vst [vmem:[#allocation80_spill] sm:$0xff] %v7712_v18  ;;  %v1885_v41 = vpop.f32.mrf.mxu1  ;;  %v7717_v42 = vadd.f32 %v1883_v22, %v1691_v47  ;;  %v1693_v19 = vadd.f32 %v1692_v14, %v7556_v38  ;;  %v232_v14 = vld [vmem:[%s9374_s0 + $0x608] sm:$0xff]  ;;  %v227_v47 = vld [vmem:[%s9374_s0 + $0x5e0] sm:$0xff] }
 0x122   :  { %v1696_v15 = vpop.f32.mrf.mxu0  ;;  %2161 = vmatmul.mubr.bf16.gmra.mxu0 %v7708_v59 }
 0x123   :  { %9548 = vst [vmem:[#allocation82_spill] sm:$0xff] %v7717_v42  ;;  %v1889_v55 = vpop.f32.mrf.mxu1  ;;  %5353 = vmatmul.mubr.msk.bf16.gmra.mxu1 %vm1573_vm0, %v7710_v27  ;;  %v7726_v29 = vadd.f32 %v1885_v41, %v1693_v19  ;;  %v1697_v40 = vadd.f32 %v1696_v15, %v7550_v56  ;;  %2170 = vmatprep.mubr.bf16.mxu0 %v7715_v11 }
 0x124   :  { %2363 = vmatprep.mubr.bf16.mxu1 %v9496_v13  ;;  %v1698_v41 = vpop.f32.mrf.mxu0  ;;  %v7749_v15 = vpack.c.bf16 %v232_v14, %v225_v57  ;;  %v7751_v11 = vpack.c.bf16 %v234_v10, %v227_v47  ;;  %v239_v57 = vld [vmem:[%s9374_s0 + $0x640] sm:$0xff]  ;;  %v248_v10 = vld [vmem:[%s9374_s0 + $0x688] sm:$0xff] }
 0x125   :  { %9549 = vst [vmem:[#allocation83_spill] sm:$0xff] %v7726_v29  ;;  %v1891_v28 = vpop.f32.mrf.mxu1  ;;  %v7746_v48 = vadd.f32 %v1889_v55, %v1697_v40  ;;  %v1699_v39 = vadd.f32 %v1698_v41, %v7556_v38  ;;  %v7756_v29 = vpack.c.bf16 %v247_v9, %v240_v0  ;;  %v254_v0 = vld [vmem:[%s9374_s0 + $0x6b8] sm:$0xff]  ;;  %v261_v9 = vld [vmem:[%s9374_s0 + $0x6f0] sm:$0xff] }
 0x126   :  { %v1700_v22 = vpop.f32.mrf.mxu0  ;;  %9551 = vst [vmem:[#allocation85_spill] sm:$0xff] %v7749_v15  ;;  %9552 = vst [vmem:[#allocation86_spill] sm:$0xff] %v7751_v11 }
 0x127   :  { %9550 = vst [vmem:[#allocation84_spill] sm:$0xff] %v7746_v48  ;;  %v1893_v19 = vpop.f32.mrf.mxu1  ;;  %v7753_v27 = vadd.f32 %v1891_v28, %v1699_v39  ;;  %v1701_v59 = vadd.f32 %v1700_v22, %v7550_v56  ;;  %9554 = vst [vmem:[#allocation88_spill] sm:$0xff] %v7756_v29 }
 0x128   :  { %v1702_v42 = vpop.f32.mrf.mxu0 }
 0x129   :  { %9553 = vst [vmem:[#allocation87_spill] sm:$0xff] %v7753_v27  ;;  %v1895_v18 = vpop.f32.mrf.mxu1  ;;  %v7758_v12 = vadd.f32 %v1893_v19, %v1701_v59  ;;  %v1703_v55 = vadd.f32 %v1702_v42, %v7556_v38  ;;  %v246_v42 = vld [vmem:[%s9374_s0 + $0x678] sm:$0xff]  ;;  %v241_v59 = vld [vmem:[%s9374_s0 + $0x650] sm:$0xff] }
 0x12a   :  { %v1706_v40 = vpop.f32.mrf.mxu0  ;;  %2171 = vmatmul.mubr.bf16.gmra.mxu0 %v7749_v15 }
 0x12b   :  { %9555 = vst [vmem:[#allocation89_spill] sm:$0xff] %v7758_v12  ;;  %v1899_v41 = vpop.f32.mrf.mxu1  ;;  %5354 = vmatmul.mubr.msk.bf16.gmra.mxu1 %vm1573_vm0, %v7751_v11  ;;  %v7767_v14 = vadd.f32 %v1895_v18, %v1703_v55  ;;  %v1707_v47 = vadd.f32 %v1706_v40, %v7550_v56  ;;  %2180 = vmatprep.mubr.bf16.mxu0 %v7756_v29 }
 0x12c   :  { %2373 = vmatprep.mubr.bf16.mxu1 %v9496_v13  ;;  %v1708_v18 = vpop.f32.mrf.mxu0  ;;  %v7790_v40 = vpack.c.bf16 %v246_v42, %v239_v57  ;;  %v7792_v29 = vpack.c.bf16 %v248_v10, %v241_v59  ;;  %v253_v57 = vld [vmem:[%s9374_s0 + $0x6b0] sm:$0xff]  ;;  %v262_v10 = vld [vmem:[%s9374_s0 + $0x6f8] sm:$0xff] }
 0x12d   :  { %9556 = vst [vmem:[#allocation90_spill] sm:$0xff] %v7767_v14  ;;  %v1901_v28 = vpop.f32.mrf.mxu1  ;;  %v7787_v39 = vadd.f32 %v1899_v41, %v1707_v47  ;;  %v1709_v22 = vadd.f32 %v1708_v18, %v7556_v38  ;;  %v7797_v14 = vpack.c.bf16 %v261_v9, %v254_v0 }
 0x12e   :  { %v1710_v19 = vpop.f32.mrf.mxu0  ;;  %9557 = vst [vmem:[#allocation91_spill] sm:$0xff] %v7790_v40  ;;  %9558 = vst [vmem:[#allocation92_spill] sm:$0xff] %v7792_v29 }
 0x12f   :  { %v1903_v55 = vpop.f32.mrf.mxu1  ;;  %v7794_v11 = vadd.f32 %v1901_v28, %v1709_v22  ;;  %v1711_v15 = vadd.f32 %v1710_v19, %v7550_v56  ;;  %9559 = vst [vmem:[#allocation93_spill] sm:$0xff] %v7797_v14 }
 0x130   :  { %v1712_v12 = vpop.f32.mrf.mxu0 }
 0x131   :  { %v1905_v27 = vpop.f32.mrf.mxu1  ;;  %v7799_v48 = vadd.f32 %v1903_v55, %v1711_v15  ;;  %v1713_v41 = vadd.f32 %v1712_v12, %v7556_v38  ;;  %v260_v12 = vld [vmem:[%s9374_s0 + $0x6e8] sm:$0xff]  ;;  %v255_v15 = vld [vmem:[%s9374_s0 + $0x6c0] sm:$0xff] }
 0x132   :  { %v1716_v47 = vpop.f32.mrf.mxu0  ;;  %2181 = vmatmul.mubr.bf16.gmra.mxu0 %v7790_v40  ;;  %v7825_v55 = vpack.c.bf16 %v260_v12, %v253_v57 }
 0x133   :  { %v1909_v18 = vpop.f32.mrf.mxu1  ;;  %5355 = vmatmul.mubr.msk.bf16.gmra.mxu1 %vm1573_vm0, %v7792_v29  ;;  %v7808_v42 = vadd.f32 %v1905_v27, %v1713_v41  ;;  %v1717_v59 = vadd.f32 %v1716_v47, %v7550_v56  ;;  %2190 = vmatprep.mubr.bf16.mxu0 %v7797_v14  ;;  %v7827_v41 = vpack.c.bf16 %v262_v10, %v255_v15 }
 0x134   :  { %2383 = vmatprep.mubr.bf16.mxu1 %v9496_v13  ;;  %v1718_v27 = vpop.f32.mrf.mxu0  ;;  %9561 = vst [vmem:[#allocation95_spill] sm:$0xff] %v7825_v55 }
 0x135   :  { %9560 = vst [vmem:[#allocation94_spill] sm:$0xff] %v7808_v42  ;;  %v1911_v28 = vpop.f32.mrf.mxu1  ;;  %v7822_v0 = vadd.f32 %v1909_v18, %v1717_v59  ;;  %v1719_v9 = vadd.f32 %v1718_v27, %v7556_v38  ;;  %9562 = vst [vmem:[#allocation96_spill] sm:$0xff] %v7827_v41 }
 0x136   :  { %v1720_v22 = vpop.f32.mrf.mxu0 }
 0x137   :  { %v1913_v19 = vpop.f32.mrf.mxu1  ;;  %v7829_v47 = vadd.f32 %v1911_v28, %v1719_v9  ;;  %v1721_v14 = vadd.f32 %v1720_v22, %v7550_v56 }
 0x138   :  { %v1722_v29 = vpop.f32.mrf.mxu0 }
 0x139   :  { %v1915_v40 = vpop.f32.mrf.mxu1  ;;  %v7832_v13 = vadd.f32 %v1913_v19, %v1721_v14  ;;  %v1723_v42 = vadd.f32 %v1722_v29, %v7556_v38 }
 0x13a   :  { %v1726_v18 = vpop.f32.mrf.mxu0  ;;  %2191 = vmatmul.mubr.bf16.gmra.mxu0 %v7825_v55  ;;  %v9570_v55 = vld [vmem:[#allocation62_spill] sm:$0xff] }
 0x13b   :  { %v1919_v59 = vpop.f32.mrf.mxu1  ;;  %5356 = vmatmul.mubr.msk.bf16.gmra.mxu1 %vm1573_vm0, %v7827_v41  ;;  %v7838_v57 = vadd.f32 %v1915_v40, %v1723_v42  ;;  %v1727_v12 = vadd.f32 %v1726_v18, %v7550_v56  ;;  %2426 = vmatprep.mubr.bf16.mxu0 %v6368_v53  ;;  %v5972_v40 = vld [vmem:[%s9373_s1 + $0x4e8] ss:$16 sps:$4 sm:$0xff]  }
 0x13c   :  { %2619 = vmatprep.mubr.bf16.mxu1 %v6370_v54  ;;  %v1728_v15 = vpop.f32.mrf.mxu0  ;;  %v5975_v53 = vld [vmem:[%s9373_s1 + $0x608] ss:$16 sps:$4 sm:$0xff]  }
 0x13d   :  { %v1921_v14 = vpop.f32.mrf.mxu1  ;;  %v7843_v10 = vadd.f32 %v1919_v59, %v1727_v12  ;;  %v1729_v29 = vadd.f32 %v1728_v15, %v7556_v38  ;;  %v5980_v59 = vld [vmem:[%s9373_s1 + $0x4cc] ss:$16 sps:$4 sm:$0xff]  }
 0x13e   :  { %v1730_v27 = vpop.f32.mrf.mxu0 }
 0x13f   :  { %v1923_v28 = vpop.f32.mrf.mxu1  ;;  %v7846_v9 = vadd.f32 %v1921_v14, %v1729_v29  ;;  %v1731_v22 = vadd.f32 %v1730_v27, %v7550_v56  ;;  %v5978_v27 = vld [vmem:[%s9373_s1 + $0x4c8] ss:$16 sps:$4 sm:$0xff]  }
 0x140   :  { %v1732_v54 = vpop.f32.mrf.mxu0 }
 0x141   :  { %v1925_v42 = vpop.f32.mrf.mxu1  ;;  %v7855_v19 = vadd.f32 %v1923_v28, %v1731_v22  ;;  %v1733_v18 = vadd.f32 %v1732_v54, %v7556_v38 }
 0x142   :  { %v1736_v12 = vpop.f32.mrf.mxu0  ;;  %2427 = vmatmul.mubr.bf16.vlgmr.msra.gmra.mxu0 %v6449_v16  ;;  %v5983_v16 = vld [vmem:[%s9373_s1 + $0x4ac] ss:$16 sps:$4 sm:$0xff]  }
 0x143   :  { %v1929_v15 = vpop.f32.mrf.mxu1  ;;  %2620 = vmatmul.mubr.bf16.vlgmr.msra.gmra.mxu1 %v6451_v17  ;;  %v7863_v14 = vadd.f32 %v1925_v42, %v1733_v18  ;;  %v1737_v29 = vadd.f32 %v1736_v12, %v7550_v56  ;;  %2781 = vmatpush1.bf16.msra.mxu0 %v5972_v40 }
 0x144   :  { %2988 = vmatpush1.bf16.msra.mxu1 %v5975_v53  ;;  %v1738_v28 = vpop.f32.mrf.mxu0  ;;  %2436 = vmatprep.mubr.bf16.mxu0 %v6459_v20 }
 0x145   :  { %v1931_v22 = vpop.f32.mrf.mxu1  ;;  %2629 = vmatprep.mubr.bf16.mxu1 %v6461_v21  ;;  %v7874_v17 = vadd.f32 %v1929_v15, %v1737_v29  ;;  %v1739_v54 = vadd.f32 %v1738_v28, %v7556_v38  ;;  %2782 = vmatprep.subr.bf16.mxu0 %v5980_v59  ;;  %v5981_v21 = vld [vmem:[%s9373_s1 + $0x4a8] ss:$16 sps:$4 sm:$0xff]   ;;  %v5986_v59 = vld [vmem:[%s9373_s1 + $0x48c] ss:$16 sps:$4 sm:$0xff]  }
 0x146   :  { %v1740_v40 = vpop.f32.mrf.mxu0 }
 0x147   :  { %v1933_v53 = vpop.f32.mrf.mxu1  ;;  %v7877_v42 = vadd.f32 %v1931_v22, %v1739_v54  ;;  %v1741_v18 = vadd.f32 %v1740_v40, %v7550_v56  ;;  %2783 = vmatpush1.bf16.msra.mxu0 %v5978_v27  ;;  %v5984_v40 = vld [vmem:[%s9373_s1 + $0x488] ss:$16 sps:$4 sm:$0xff]  }
 0x148   :  { %v1742_v12 = vpop.f32.mrf.mxu0  ;;  %2784 = vmatprep.subr.bf16.mxu0 %v5983_v16 }
 0x149   :  { %v1935_v20 = vpop.f32.mrf.mxu1  ;;  %v7883_v41 = vadd.f32 %v1933_v53, %v1741_v18  ;;  %v1743_v15 = vadd.f32 %v1742_v12, %v7556_v38 }
 0x14a   :  { %v1746_v29 = vpop.f32.mrf.mxu0  ;;  %2437 = vmatmul.mubr.bf16.gmra.mxu0 %v6500_v33 }
 0x14b   :  { %v1939_v28 = vpop.f32.mrf.mxu1  ;;  %2630 = vmatmul.mubr.bf16.gmra.mxu1 %v6502_v34  ;;  %v7891_v27 = vadd.f32 %v1935_v20, %v1743_v15  ;;  %v1747_v22 = vadd.f32 %v1746_v29, %v7550_v56  ;;  %2446 = vmatprep.mubr.bf16.mxu0 %v6504_v35  ;;  %v5989_v34 = vld [vmem:[%s9373_s1 + $0x46c] ss:$16 sps:$4 sm:$0xff]   ;;  %v5987_v15 = vld [vmem:[%s9373_s1 + $0x468] ss:$16 sps:$4 sm:$0xff]  }
 0x14c   :  { %2639 = vmatprep.mubr.bf16.mxu1 %v6506_v36  ;;  %v1748_v16 = vpop.f32.mrf.mxu0  ;;  %2785 = vmatpush1.bf16.msra.mxu0 %v5981_v21 }
 0x14d   :  { %v1941_v54 = vpop.f32.mrf.mxu1  ;;  %v7899_v53 = vadd.f32 %v1939_v28, %v1747_v22  ;;  %v1749_v33 = vadd.f32 %v1748_v16, %v7556_v38  ;;  %2786 = vmatprep.subr.bf16.mxu0 %v5986_v59  ;;  %v5992_v28 = vld [vmem:[%s9373_s1 + $0x44c] ss:$16 sps:$4 sm:$0xff]  }
 0x14e   :  { %v1750_v18 = vpop.f32.mrf.mxu0 }
 0x14f   :  { %v1943_v35 = vpop.f32.mrf.mxu1  ;;  %v7905_v12 = vadd.f32 %v1941_v54, %v1749_v33  ;;  %v1751_v36 = vadd.f32 %v1750_v18, %v7550_v56  ;;  %v5990_v18 = vld [vmem:[%s9373_s1 + $0x448] ss:$16 sps:$4 sm:$0xff]  }
 0x150   :  { %v1752_v20 = vpop.f32.mrf.mxu0  ;;  %2787 = vmatpush1.bf16.msra.mxu0 %v5984_v40 }
 0x151   :  { %v1945_v21 = vpop.f32.mrf.mxu1  ;;  %v7911_v29 = vadd.f32 %v1943_v35, %v1751_v36  ;;  %v1753_v59 = vadd.f32 %v1752_v20, %v7556_v38  ;;  %2788 = vmatprep.subr.bf16.mxu0 %v5989_v34 }
 0x152   :  { %v1756_v22 = vpop.f32.mrf.mxu0  ;;  %2447 = vmatmul.mubr.bf16.gmra.mxu0 %v6548_v49 }
 0x153   :  { %v1949_v16 = vpop.f32.mrf.mxu1  ;;  %2640 = vmatmul.mubr.bf16.gmra.mxu1 %v6550_v50  ;;  %v7919_v54 = vadd.f32 %v1945_v21, %v1753_v59  ;;  %v1757_v40 = vadd.f32 %v1756_v22, %v7550_v56  ;;  %2456 = vmatprep.mubr.bf16.mxu0 %v6552_v51  ;;  %v5995_v50 = vld [vmem:[%s9373_s1 + $0x42c] ss:$16 sps:$4 sm:$0xff]   ;;  %v5993_v59 = vld [vmem:[%s9373_s1 + $0x428] ss:$16 sps:$4 sm:$0xff]  }
 0x154   :  { %2649 = vmatprep.mubr.bf16.mxu1 %v6554_v52  ;;  %v1758_v33 = vpop.f32.mrf.mxu0  ;;  %2789 = vmatpush1.bf16.msra.mxu0 %v5987_v15 }
 0x155   :  { %v1951_v34 = vpop.f32.mrf.mxu1  ;;  %v7927_v35 = vadd.f32 %v1949_v16, %v1757_v40  ;;  %v1759_v49 = vadd.f32 %v1758_v33, %v7556_v38  ;;  %2790 = vmatprep.subr.bf16.mxu0 %v5992_v28  ;;  %v5998_v16 = vld [vmem:[%s9373_s1 + $0x40c] ss:$16 sps:$4 sm:$0xff]  }
 0x156   :  { %v1760_v36 = vpop.f32.mrf.mxu0 }
 0x157   :  { %v1953_v51 = vpop.f32.mrf.mxu1  ;;  %v7933_v20 = vadd.f32 %v1951_v34, %v1759_v49  ;;  %v1761_v52 = vadd.f32 %v1760_v36, %v7550_v56  ;;  %v5996_v36 = vld [vmem:[%s9373_s1 + $0x408] ss:$16 sps:$4 sm:$0xff]  }
 0x158   :  { %v1762_v21 = vpop.f32.mrf.mxu0  ;;  %2791 = vmatpush1.bf16.msra.mxu0 %v5990_v18 }
 0x159   :  { %v1955_v15 = vpop.f32.mrf.mxu1  ;;  %v7939_v22 = vadd.f32 %v1953_v51, %v1761_v52  ;;  %v1763_v28 = vadd.f32 %v1762_v21, %v7556_v38  ;;  %2792 = vmatprep.subr.bf16.mxu0 %v5995_v50 }
 0x15a   :  { %v1766_v40 = vpop.f32.mrf.mxu0  ;;  %2457 = vmatmul.mubr.bf16.gmra.mxu0 %v6596_v3 }
 0x15b   :  { %v1959_v33 = vpop.f32.mrf.mxu1  ;;  %2650 = vmatmul.mubr.bf16.gmra.mxu1 %v6598_v4  ;;  %v7947_v34 = vadd.f32 %v1955_v15, %v1763_v28  ;;  %v1767_v18 = vadd.f32 %v1766_v40, %v7550_v56  ;;  %2466 = vmatprep.mubr.bf16.mxu0 %v6600_v5  ;;  %v6001_v4 = vld [vmem:[%s9373_s1 + $0x5ec] ss:$16 sps:$4 sm:$0xff]   ;;  %v5999_v28 = vld [vmem:[%s9373_s1 + $0x5e8] ss:$16 sps:$4 sm:$0xff]  }
 0x15c   :  { %2659 = vmatprep.mubr.bf16.mxu1 %v6602_v6  ;;  %v1768_v49 = vpop.f32.mrf.mxu0  ;;  %2793 = vmatpush1.bf16.msra.mxu0 %v5993_v59 }
 0x15d   :  { %v1961_v50 = vpop.f32.mrf.mxu1  ;;  %v7955_v51 = vadd.f32 %v1959_v33, %v1767_v18  ;;  %v1769_v3 = vadd.f32 %v1768_v49, %v7556_v38  ;;  %2794 = vmatprep.subr.bf16.mxu0 %v5998_v16  ;;  %v6004_v33 = vld [vmem:[%s9373_s1 + $0x5cc] ss:$16 sps:$4 sm:$0xff]  }
 0x15e   :  { %v1770_v52 = vpop.f32.mrf.mxu0 }
 0x15f   :  { %v1963_v5 = vpop.f32.mrf.mxu1  ;;  %v7961_v21 = vadd.f32 %v1961_v50, %v1769_v3  ;;  %v1771_v6 = vadd.f32 %v1770_v52, %v7550_v56  ;;  %v6002_v52 = vld [vmem:[%s9373_s1 + $0x5c8] ss:$16 sps:$4 sm:$0xff]  }
 0x160   :  { %v1772_v15 = vpop.f32.mrf.mxu0  ;;  %2795 = vmatpush1.bf16.msra.mxu0 %v5996_v36 }
 0x161   :  { %v1965_v59 = vpop.f32.mrf.mxu1  ;;  %v7967_v40 = vadd.f32 %v1963_v5, %v1771_v6  ;;  %v1773_v16 = vadd.f32 %v1772_v15, %v7556_v38  ;;  %2796 = vmatprep.subr.bf16.mxu0 %v6001_v4 }
 0x162   :  { %v1776_v18 = vpop.f32.mrf.mxu0  ;;  %2467 = vmatmul.mubr.bf16.gmra.mxu0 %v6644_v23 }
 0x163   :  { %v1969_v49 = vpop.f32.mrf.mxu1  ;;  %2660 = vmatmul.mubr.bf16.gmra.mxu1 %v6646_v24  ;;  %v7975_v50 = vadd.f32 %v1965_v59, %v1773_v16  ;;  %v1777_v36 = vadd.f32 %v1776_v18, %v7550_v56  ;;  %2476 = vmatprep.mubr.bf16.mxu0 %v6648_v25  ;;  %v6007_v24 = vld [vmem:[%s9373_s1 + $0x5ac] ss:$16 sps:$4 sm:$0xff]   ;;  %v6005_v16 = vld [vmem:[%s9373_s1 + $0x5a8] ss:$16 sps:$4 sm:$0xff]  }
 0x164   :  { %2669 = vmatprep.mubr.bf16.mxu1 %v6650_v26  ;;  %v1778_v3 = vpop.f32.mrf.mxu0  ;;  %2797 = vmatpush2.bf16.msra.mxu0 %v5999_v28 }
 0x165   :  { %v1971_v4 = vpop.f32.mrf.mxu1  ;;  %v7983_v5 = vadd.f32 %v1969_v49, %v1777_v36  ;;  %v1779_v23 = vadd.f32 %v1778_v3, %v7556_v38  ;;  %2798 = vmatprep.subr.bf16.mxu0 %v6004_v33  ;;  %v6010_v49 = vld [vmem:[%s9373_s1 + $0x58c] ss:$16 sps:$4 sm:$0xff]  }
 0x166   :  { %v1780_v6 = vpop.f32.mrf.mxu0 }
 0x167   :  { %v1973_v25 = vpop.f32.mrf.mxu1  ;;  %v7989_v15 = vadd.f32 %v1971_v4, %v1779_v23  ;;  %v1781_v26 = vadd.f32 %v1780_v6, %v7550_v56  ;;  %v6008_v6 = vld [vmem:[%s9373_s1 + $0x588] ss:$16 sps:$4 sm:$0xff]  }
 0x168   :  { %v1782_v59 = vpop.f32.mrf.mxu0  ;;  %2799 = vmatpush2.bf16.msra.mxu0 %v6002_v52 }
 0x169   :  { %v1975_v28 = vpop.f32.mrf.mxu1  ;;  %v7995_v18 = vadd.f32 %v1973_v25, %v1781_v26  ;;  %v1783_v33 = vadd.f32 %v1782_v59, %v7556_v38  ;;  %2800 = vmatprep.subr.bf16.mxu0 %v6007_v24 }
 0x16a   :  { %v1786_v36 = vpop.f32.mrf.mxu0  ;;  %2477 = vmatmul.mubr.bf16.gmra.mxu0 %v6692_v43 }
 0x16b   :  { %v1979_v3 = vpop.f32.mrf.mxu1  ;;  %2670 = vmatmul.mubr.bf16.gmra.mxu1 %v6694_v44  ;;  %v8003_v4 = vadd.f32 %v1975_v28, %v1783_v33  ;;  %v1787_v52 = vadd.f32 %v1786_v36, %v7550_v56  ;;  %2486 = vmatprep.mubr.bf16.mxu0 %v6696_v45  ;;  %v6013_v44 = vld [vmem:[%s9373_s1 + $0x56c] ss:$16 sps:$4 sm:$0xff]   ;;  %v6011_v33 = vld [vmem:[%s9373_s1 + $0x568] ss:$16 sps:$4 sm:$0xff]  }
 0x16c   :  { %2679 = vmatprep.mubr.bf16.mxu1 %v6698_v46  ;;  %v1788_v23 = vpop.f32.mrf.mxu0  ;;  %2801 = vmatpush2.bf16.msra.mxu0 %v6005_v16 }
 0x16d   :  { %v1981_v24 = vpop.f32.mrf.mxu1  ;;  %v8011_v25 = vadd.f32 %v1979_v3, %v1787_v52  ;;  %v1789_v43 = vadd.f32 %v1788_v23, %v7556_v38  ;;  %2802 = vmatprep.subr.bf16.mxu0 %v6010_v49  ;;  %v6016_v3 = vld [vmem:[%s9373_s1 + $0x54c] ss:$16 sps:$4 sm:$0xff]  }
 0x16e   :  { %v1790_v26 = vpop.f32.mrf.mxu0 }
 0x16f   :  { %v1983_v45 = vpop.f32.mrf.mxu1  ;;  %v8017_v59 = vadd.f32 %v1981_v24, %v1789_v43  ;;  %v1791_v46 = vadd.f32 %v1790_v26, %v7550_v56  ;;  %v6014_v26 = vld [vmem:[%s9373_s1 + $0x548] ss:$16 sps:$4 sm:$0xff]  }
 0x170   :  { %v1792_v28 = vpop.f32.mrf.mxu0  ;;  %2803 = vmatpush2.bf16.msra.mxu0 %v6008_v6 }
 0x171   :  { %v1985_v16 = vpop.f32.mrf.mxu1  ;;  %v8023_v36 = vadd.f32 %v1983_v45, %v1791_v46  ;;  %v1793_v49 = vadd.f32 %v1792_v28, %v7556_v38  ;;  %2804 = vmatprep.subr.bf16.mxu0 %v6013_v44 }
 0x172   :  { %v1796_v52 = vpop.f32.mrf.mxu0  ;;  %2487 = vmatmul.mubr.bf16.gmra.mxu0 %v6740_v1 }
 0x173   :  { %v1989_v23 = vpop.f32.mrf.mxu1  ;;  %2680 = vmatmul.mubr.bf16.gmra.mxu1 %v6742_v2  ;;  %v8031_v24 = vadd.f32 %v1985_v16, %v1793_v49  ;;  %v1797_v6 = vadd.f32 %v1796_v52, %v7550_v56  ;;  %2496 = vmatprep.mubr.bf16.mxu0 %v6744_v7  ;;  %v6019_v2 = vld [vmem:[%s9373_s1 + $0x52c] ss:$16 sps:$4 sm:$0xff]   ;;  %v6017_v49 = vld [vmem:[%s9373_s1 + $0x528] ss:$16 sps:$4 sm:$0xff]  }
 0x174   :  { %2689 = vmatprep.mubr.bf16.mxu1 %v6746_v8  ;;  %v1798_v43 = vpop.f32.mrf.mxu0  ;;  %2805 = vmatpush2.bf16.msra.mxu0 %v6011_v33 }
 0x175   :  { %v1991_v44 = vpop.f32.mrf.mxu1  ;;  %v8039_v45 = vadd.f32 %v1989_v23, %v1797_v6  ;;  %v1799_v1 = vadd.f32 %v1798_v43, %v7556_v38  ;;  %2806 = vmatprep.subr.bf16.mxu0 %v6016_v3  ;;  %v6022_v23 = vld [vmem:[%s9373_s1 + $0x50c] ss:$16 sps:$4 sm:$0xff]  }
 0x176   :  { %v1800_v46 = vpop.f32.mrf.mxu0 }
 0x177   :  { %v1993_v7 = vpop.f32.mrf.mxu1  ;;  %v8045_v28 = vadd.f32 %v1991_v44, %v1799_v1  ;;  %v1801_v8 = vadd.f32 %v1800_v46, %v7550_v56  ;;  %v6020_v46 = vld [vmem:[%s9373_s1 + $0x508] ss:$16 sps:$4 sm:$0xff]  }
 0x178   :  { %v1802_v16 = vpop.f32.mrf.mxu0  ;;  %2807 = vmatpush2.bf16.msra.mxu0 %v6014_v26 }
 0x179   :  { %v1995_v33 = vpop.f32.mrf.mxu1  ;;  %v8051_v52 = vadd.f32 %v1993_v7, %v1801_v8  ;;  %v1803_v3 = vadd.f32 %v1802_v16, %v7556_v38  ;;  %2808 = vmatprep.subr.bf16.mxu0 %v6019_v2 }
 0x17a   :  { %v1806_v6 = vpop.f32.mrf.mxu0  ;;  %2497 = vmatmul.mubr.bf16.gmra.mxu0 %v6791_v30 }
 0x17b   :  { %v1999_v43 = vpop.f32.mrf.mxu1  ;;  %2690 = vmatmul.mubr.bf16.gmra.mxu1 %v6793_v31  ;;  %v8059_v44 = vadd.f32 %v1995_v33, %v1803_v3  ;;  %v1807_v26 = vadd.f32 %v1806_v6, %v7550_v56  ;;  %2506 = vmatprep.mubr.bf16.mxu0 %v6795_v32 }
 0x17c   :  { %2699 = vmatprep.mubr.bf16.mxu1 %v6797_v37  ;;  %v1808_v1 = vpop.f32.mrf.mxu0  ;;  %2809 = vmatpush2.bf16.msra.mxu0 %v6017_v49  ;;  %v6025_v49 = vld [vmem:[%s9376_s3 + $0x74] ss:$8 sps:$4 sm:$0xff]  }
 0x17d   :  { %9563 = vst [vmem:[#allocation97_spill] sm:$0xff] %v8059_v44  ;;  %v2001_v2 = vpop.f32.mrf.mxu1  ;;  %v8067_v7 = vadd.f32 %v1999_v43, %v1807_v26  ;;  %v1809_v30 = vadd.f32 %v1808_v1, %v7556_v38  ;;  %2810 = vmatprep.subr.bf16.mxu0 %v6022_v23 }
 0x17e   :  { %v1810_v31 = vpop.f32.mrf.mxu0 }
 0x17f   :  { %9564 = vst [vmem:[#allocation98_spill] sm:$0xff] %v8067_v7  ;;  %v2003_v8 = vpop.f32.mrf.mxu1  ;;  %v8070_v16 = vadd.f32 %v2001_v2, %v1809_v30  ;;  %v1811_v32 = vadd.f32 %v1810_v31, %v7550_v56  ;;  %v9568_v30 = vld [vmem:[#allocation59_spill] sm:$0xff] }
 0x180   :  { %v1812_v33 = vpop.f32.mrf.mxu0  ;;  %2811 = vmatpush2.bf16.msra.mxu0 %v6020_v46 }
 0x181   :  { %9565 = vst [vmem:[#allocation99_spill] sm:$0xff] %v8070_v16  ;;  %v2005_v37 = vpop.f32.mrf.mxu1  ;;  %v8076_v3 = vadd.f32 %v2003_v8, %v1811_v32  ;;  %v1813_v6 = vadd.f32 %v1812_v33, %v7556_v38  ;;  %3754 = vmatprep.subr.bf16.mxu0 %v6025_v49 }
 0x182   :  { %v2042_v43 = vpop.f32.mrf.mxu0  ;;  %2507 = vmatmul.mubr.bf16.gmra.mxu0 %v6839_v60  ;;  %v9569_v60 = vld [vmem:[#allocation61_spill] sm:$0xff] }
 0x183   :  { %9566 = vst [vmem:[#allocation100_spill] sm:$0xff] %v8076_v3  ;;  %v2235_v26 = vpop.f32.mrf.mxu1  ;;  %2700 = vmatmul.mubr.bf16.gmra.mxu1 %v6841_v61  ;;  %v8081_v23 = vadd.f32 %v2005_v37, %v1813_v6  ;;  %v2043_v56 = vadd.f32 %v2042_v43, %v7582_v58  ;;  %2516 = vmatprep.mubr.bf16.mxu0 %v6843_v62  ;;  %v9574_v3 = vld [vmem:[#allocation4_spill] sm:$0xff] }
 0x184   :  { %2709 = vmatprep.mubr.bf16.mxu1 %v6845_v63  ;;  %v2044_v1 = vpop.f32.mrf.mxu0  ;;  %v9572_v63 = vld [vmem:[#allocation3_spill] sm:$0xff] }
 0x185   :  { %9567 = vst [vmem:[#allocation101_spill] sm:$0xff] %v8081_v23  ;;  %v2237_v2 = vpop.f32.mrf.mxu1  ;;  %v2236_v46 = vadd.f32 %v2235_v26, %v2043_v56  ;;  %v2045_v38 = vadd.f32 %v2044_v1, %v9568_v30  ;;  %v9571_v23 = vld [vmem:[#allocation2_spill] sm:$0xff]  ;;  %v9573_v1 = vld [vmem:[#allocation63_spill] sm:$0xff] }
 0x186   :  { %v2046_v31 = vpop.f32.mrf.mxu0 }
 0x187   :  { %v2239_v8 = vpop.f32.mrf.mxu1  ;;  %v2238_v32 = vadd.f32 %v2237_v2, %v2045_v38  ;;  %v2047_v33 = vadd.f32 %v2046_v31, %v9569_v60  ;;  %v3166_v49 = vmax.f32 %v2236_v46, 0.0  ;;  %v9575_v2 = vld [vmem:[#allocation5_spill] sm:$0xff] }
 0x188   :  { %v2048_v61 = vpop.f32.mrf.mxu0 }
 0x189   :  { %v2241_v37 = vpop.f32.mrf.mxu1  ;;  %v2240_v6 = vadd.f32 %v2239_v8, %v2047_v33  ;;  %v2049_v58 = vadd.f32 %v2048_v61, %v9570_v55  ;;  %v3167_v38 = vmax.f32 %v2238_v32, 0.0  ;;  %v9577_v61 = vld [vmem:[#allocation66_spill] sm:$0xff] }
 0x18a   :  { %v2052_v43 = vpop.f32.mrf.mxu0  ;;  %2517 = vmatmul.mubr.bf16.gmra.mxu0 %v9571_v23 }
 0x18b   :  { %v2245_v62 = vpop.f32.mrf.mxu1  ;;  %2710 = vmatmul.mubr.bf16.gmra.mxu1 %v9572_v63  ;;  %v3170_v26 = vmax.f32 %v2240_v6, 0.0  ;;  %v2242_v56 = vadd.f32 %v2241_v37, %v2049_v58  ;;  %v2053_v30 = vadd.f32 %v2052_v43, %v9573_v1  ;;  %2526 = vmatprep.mubr.bf16.mxu0 %v9574_v3  ;;  %v9578_v6 = vld [vmem:[#allocation68_spill] sm:$0xff] }
 0x18c   :  { %2719 = vmatprep.mubr.bf16.mxu1 %v9575_v2  ;;  %v2054_v31 = vpop.f32.mrf.mxu0  ;;  %v9580_v2 = vld [vmem:[#allocation69_spill] sm:$0xff] }
 0x18d   :  { %v2247_v8 = vpop.f32.mrf.mxu1  ;;  %v8094_v60 = vpack.c.bf16 %v3170_v26, %v3166_v49  ;;  %v3171_v55 = vmax.f32 %v2242_v56, 0.0  ;;  %v2246_v33 = vadd.f32 %v2245_v62, %v2053_v30  ;;  %v2055_v23 = vadd.f32 %v2054_v31, %v9577_v61  ;;  %v9581_v49 = vld [vmem:[#allocation6_spill] sm:$0xff]  ;;  %v9582_v26 = vld [vmem:[#allocation7_spill] sm:$0xff]  ;;  %v9584_v61 = vld [vmem:[#allocation8_spill] sm:$0xff] }
 0x18e   :  { %v2056_v16 = vpop.f32.mrf.mxu0  ;;  %v9583_v31 = vld [vmem:[#allocation70_spill] sm:$0xff] }
 0x18f   :  { %9576 = vst [vmem:[#allocation59_spill] sm:$0xff] %v8094_v60  ;;  %v2249_v63 = vpop.f32.mrf.mxu1  ;;  %v2248_v46 = vadd.f32 %v2247_v8, %v2055_v23  ;;  %v2057_v37 = vadd.f32 %v2056_v16, %v9578_v6  ;;  %v8098_v58 = vpack.c.bf16 %v3171_v55, %v3167_v38  ;;  %v3174_v62 = vmax.f32 %v2246_v33, 0.0  ;;  %v9585_v16 = vld [vmem:[#allocation9_spill] sm:$0xff] }
 0x190   :  { %v2058_v43 = vpop.f32.mrf.mxu0  ;;  %v6040_v33 = vld [vmem:[%s9376_s3 + $0x174] ss:$8 sps:$4 sm:$0xff]  }
 0x191   :  { %9579 = vst [vmem:[#allocation61_spill] sm:$0xff] %v8098_v58  ;;  %v2251_v3 = vpop.f32.mrf.mxu1  ;;  %v2250_v1 = vadd.f32 %v2249_v63, %v2057_v37  ;;  %v2059_v32 = vadd.f32 %v2058_v43, %v9580_v2  ;;  %v3175_v38 = vmax.f32 %v2248_v46, 0.0  ;;  %v9587_v43 = vld [vmem:[#allocation73_spill] sm:$0xff]  ;;  %3947 = vmatprep.subr.bf16.mxu1 %v6040_v33 }
 0x192   :  { %v2062_v7 = vpop.f32.mrf.mxu0  ;;  %2527 = vmatmul.mubr.bf16.gmra.mxu0 %v9581_v49 }
 0x193   :  { %v2255_v44 = vpop.f32.mrf.mxu1  ;;  %2720 = vmatmul.mubr.bf16.gmra.mxu1 %v9582_v26  ;;  %v3178_v56 = vmax.f32 %v2250_v1, 0.0  ;;  %v2252_v30 = vadd.f32 %v2251_v3, %v2059_v32  ;;  %v2063_v8 = vadd.f32 %v2062_v7, %v9583_v31  ;;  %2536 = vmatprep.mubr.bf16.mxu0 %v9584_v61  ;;  %v9588_v32 = vld [vmem:[#allocation75_spill] sm:$0xff]  ;;  %v9591_v61 = vld [vmem:[#allocation10_spill] sm:$0xff] }
 0x194   :  { %2729 = vmatprep.mubr.bf16.mxu1 %v9585_v16  ;;  %v2064_v55 = vpop.f32.mrf.mxu0  ;;  %v9592_v16 = vld [vmem:[#allocation11_spill] sm:$0xff] }
 0x195   :  { %v2257_v23 = vpop.f32.mrf.mxu1  ;;  %v8106_v63 = vpack.c.bf16 %v3178_v56, %v3174_v62  ;;  %v3179_v6 = vmax.f32 %v2252_v30, 0.0  ;;  %v2256_v37 = vadd.f32 %v2255_v44, %v2063_v8  ;;  %v2065_v2 = vadd.f32 %v2064_v55, %v9587_v43  ;;  %v9590_v56 = vld [vmem:[#allocation76_spill] sm:$0xff] }
 0x196   :  { %v2066_v3 = vpop.f32.mrf.mxu0 }
 0x197   :  { %9586 = vst [vmem:[#allocation62_spill] sm:$0xff] %v8106_v63  ;;  %v2259_v1 = vpop.f32.mrf.mxu1  ;;  %v2258_v7 = vadd.f32 %v2257_v23, %v2065_v2  ;;  %v2067_v49 = vadd.f32 %v2066_v3, %v9588_v32  ;;  %v8113_v26 = vpack.c.bf16 %v3179_v6, %v3175_v38  ;;  %v3182_v55 = vmax.f32 %v2256_v37, 0.0  ;;  %v9593_v23 = vld [vmem:[#allocation77_spill] sm:$0xff]  ;;  %v9594_v3 = vld [vmem:[#allocation12_spill] sm:$0xff] }
 0x198   :  { %v2068_v46 = vpop.f32.mrf.mxu0  ;;  %v9595_v38 = vld [vmem:[#allocation13_spill] sm:$0xff] }
 0x199   :  { %9589 = vst [vmem:[#allocation2_spill] sm:$0xff] %v8113_v26  ;;  %v2261_v31 = vpop.f32.mrf.mxu1  ;;  %v2260_v62 = vadd.f32 %v2259_v1, %v2067_v49  ;;  %v2069_v30 = vadd.f32 %v2068_v46, %v9590_v56  ;;  %v3183_v6 = vmax.f32 %v2258_v7, 0.0  ;;  %v9597_v56 = vld [vmem:[#allocation80_spill] sm:$0xff] }
 0x19a   :  { %v2072_v44 = vpop.f32.mrf.mxu0  ;;  %2537 = vmatmul.mubr.bf16.gmra.mxu0 %v9591_v61 }
 0x19b   :  { %v2265_v8 = vpop.f32.mrf.mxu1  ;;  %2730 = vmatmul.mubr.bf16.gmra.mxu1 %v9592_v16  ;;  %v3186_v43 = vmax.f32 %v2260_v62, 0.0  ;;  %v2262_v63 = vadd.f32 %v2261_v31, %v2069_v30  ;;  %v2073_v2 = vadd.f32 %v2072_v44, %v9593_v23  ;;  %2546 = vmatprep.mubr.bf16.mxu0 %v9594_v3  ;;  %v9598_v62 = vld [vmem:[#allocation82_spill] sm:$0xff] }
 0x19c   :  { %2739 = vmatprep.mubr.bf16.mxu1 %v9595_v38  ;;  %v2074_v33 = vpop.f32.mrf.mxu0  ;;  %v9600_v38 = vld [vmem:[#allocation83_spill] sm:$0xff] }
 0x19d   :  { %v2267_v1 = vpop.f32.mrf.mxu1  ;;  %v8121_v32 = vpack.c.bf16 %v3186_v43, %v3182_v55  ;;  %v3187_v49 = vmax.f32 %v2262_v63, 0.0  ;;  %v2266_v46 = vadd.f32 %v2265_v8, %v2073_v2  ;;  %v2075_v61 = vadd.f32 %v2074_v33, %v9597_v56  ;;  %v9601_v55 = vld [vmem:[#allocation14_spill] sm:$0xff]  ;;  %v9602_v63 = vld [vmem:[#allocation15_spill] sm:$0xff]  ;;  %v9603_v33 = vld [vmem:[#allocation84_spill] sm:$0xff] }
 0x19e   :  { %v2076_v26 = vpop.f32.mrf.mxu0  ;;  %v9604_v56 = vld [vmem:[#allocation16_spill] sm:$0xff] }
 0x19f   :  { %9596 = vst [vmem:[#allocation3_spill] sm:$0xff] %v8121_v32  ;;  %v2269_v16 = vpop.f32.mrf.mxu1  ;;  %v2268_v37 = vadd.f32 %v2267_v1, %v2075_v61  ;;  %v2077_v31 = vadd.f32 %v2076_v26, %v9598_v62  ;;  %v8125_v30 = vpack.c.bf16 %v3187_v49, %v3183_v6  ;;  %v3190_v8 = vmax.f32 %v2266_v46, 0.0  ;;  %v9605_v26 = vld [vmem:[#allocation17_spill] sm:$0xff] }
 0x1a0   :  { %v2078_v44 = vpop.f32.mrf.mxu0 }
 0x1a1   :  { %9599 = vst [vmem:[#allocation63_spill] sm:$0xff] %v8125_v30  ;;  %v2271_v23 = vpop.f32.mrf.mxu1  ;;  %v2270_v3 = vadd.f32 %v2269_v16, %v2077_v31  ;;  %v2079_v7 = vadd.f32 %v2078_v44, %v9600_v38  ;;  %v3191_v6 = vmax.f32 %v2268_v37, 0.0  ;;  %v9606_v44 = vld [vmem:[#allocation87_spill] sm:$0xff] }
 0x1a2   :  { %v2082_v60 = vpop.f32.mrf.mxu0  ;;  %2547 = vmatmul.mubr.bf16.gmra.mxu0 %v9601_v55 }
 0x1a3   :  { %v2275_v58 = vpop.f32.mrf.mxu1  ;;  %2740 = vmatmul.mubr.bf16.gmra.mxu1 %v9602_v63  ;;  %v3194_v43 = vmax.f32 %v2270_v3, 0.0  ;;  %v2272_v2 = vadd.f32 %v2271_v23, %v2079_v7  ;;  %v2083_v1 = vadd.f32 %v2082_v60, %v9603_v33  ;;  %2556 = vmatprep.mubr.bf16.mxu0 %v9604_v56  ;;  %v9607_v3 = vld [vmem:[#allocation89_spill] sm:$0xff] }
 0x1a4   :  { %2749 = vmatprep.mubr.bf16.mxu1 %v9605_v26  ;;  %v2084_v49 = vpop.f32.mrf.mxu0  ;;  %v9608_v26 = vld [vmem:[#allocation90_spill] sm:$0xff] }
 0x1a5   :  { %v2277_v61 = vpop.f32.mrf.mxu1  ;;  %v8133_v16 = vpack.c.bf16 %v3194_v43, %v3190_v8  ;;  %v3195_v62 = vmax.f32 %v2272_v2, 0.0  ;;  %v2276_v31 = vadd.f32 %v2275_v58, %v2083_v1  ;;  %v2085_v38 = vadd.f32 %v2084_v49, %v9606_v44  ;;  %v9609_v8 = vld [vmem:[#allocation18_spill] sm:$0xff]  ;;  %v9610_v43 = vld [vmem:[#allocation19_spill] sm:$0xff] }
 0x1a6   :  { %v2086_v55 = vpop.f32.mrf.mxu0 }
 0x1a7   :  { %v2279_v63 = vpop.f32.mrf.mxu1  ;;  %v2278_v46 = vadd.f32 %v2277_v61, %v2085_v38  ;;  %v2087_v23 = vadd.f32 %v2086_v55, %v9607_v3  ;;  %v8137_v7 = vpack.c.bf16 %v3195_v62, %v3191_v6  ;;  %v3198_v58 = vmax.f32 %v2276_v31, 0.0  ;;  %v9611_v61 = vld [vmem:[#allocation20_spill] sm:$0xff]  ;;  %v9612_v6 = vld [vmem:[#allocation21_spill] sm:$0xff] }
 0x1a8   :  { %v2088_v60 = vpop.f32.mrf.mxu0 }
 0x1a9   :  { %v2281_v33 = vpop.f32.mrf.mxu1  ;;  %v2280_v56 = vadd.f32 %v2279_v63, %v2087_v23  ;;  %v2089_v37 = vadd.f32 %v2088_v60, %v9608_v26  ;;  %v3199_v62 = vmax.f32 %v2278_v46, 0.0 }
 0x1aa   :  { %v2092_v32 = vpop.f32.mrf.mxu0  ;;  %2557 = vmatmul.mubr.bf16.gmra.mxu0 %v9609_v8  ;;  %v9613_v8 = vld [vmem:[#allocation94_spill] sm:$0xff] }
 0x1ab   :  { %v2285_v30 = vpop.f32.mrf.mxu1  ;;  %2750 = vmatmul.mubr.bf16.gmra.mxu1 %v9610_v43  ;;  %v3202_v2 = vmax.f32 %v2280_v56, 0.0  ;;  %v2282_v1 = vadd.f32 %v2281_v33, %v2089_v37  ;;  %v2093_v49 = vadd.f32 %v2092_v32, %v7787_v39  ;;  %2566 = vmatprep.mubr.bf16.mxu0 %v9611_v61 }
 0x1ac   :  { %2759 = vmatprep.mubr.bf16.mxu1 %v9612_v6  ;;  %v2094_v44 = vpop.f32.mrf.mxu0  ;;  %v9616_v6 = vld [vmem:[#allocation24_spill] sm:$0xff] }
 0x1ad   :  { %v2287_v38 = vpop.f32.mrf.mxu1  ;;  %v8145_v55 = vpack.c.bf16 %v3202_v2, %v3198_v58  ;;  %v3203_v63 = vmax.f32 %v2282_v1, 0.0  ;;  %v2286_v3 = vadd.f32 %v2285_v30, %v2093_v49  ;;  %v2095_v23 = vadd.f32 %v2094_v44, %v7794_v11  ;;  %v9614_v58 = vld [vmem:[#allocation22_spill] sm:$0xff]  ;;  %v9615_v2 = vld [vmem:[#allocation23_spill] sm:$0xff] }
 0x1ae   :  { %v2096_v60 = vpop.f32.mrf.mxu0 }
 0x1af   :  { %v2289_v26 = vpop.f32.mrf.mxu1  ;;  %v2288_v31 = vadd.f32 %v2287_v38, %v2095_v23  ;;  %v2097_v33 = vadd.f32 %v2096_v60, %v7799_v48  ;;  %v8149_v56 = vpack.c.bf16 %v3203_v63, %v3199_v62  ;;  %v3206_v30 = vmax.f32 %v2286_v3, 0.0  ;;  %v9617_v48 = vld [vmem:[#allocation25_spill] sm:$0xff] }
 0x1b0   :  { %v2098_v39 = vpop.f32.mrf.mxu0 }
 0x1b1   :  { %v2291_v32 = vpop.f32.mrf.mxu1  ;;  %v2290_v37 = vadd.f32 %v2289_v26, %v2097_v33  ;;  %v2099_v46 = vadd.f32 %v2098_v39, %v9613_v8  ;;  %v3207_v62 = vmax.f32 %v2288_v31, 0.0 }
 0x1b2   :  { %v2102_v43 = vpop.f32.mrf.mxu0  ;;  %2567 = vmatmul.mubr.bf16.gmra.mxu0 %v9614_v58 }
 0x1b3   :  { %v2295_v61 = vpop.f32.mrf.mxu1  ;;  %2760 = vmatmul.mubr.bf16.gmra.mxu1 %v9615_v2  ;;  %v3210_v11 = vmax.f32 %v2290_v37, 0.0  ;;  %v2292_v1 = vadd.f32 %v2291_v32, %v2099_v46  ;;  %v2103_v49 = vadd.f32 %v2102_v43, %v7822_v0  ;;  %2576 = vmatprep.mubr.bf16.mxu0 %v9616_v6  ;;  %v9618_v2 = vld [vmem:[#allocation26_spill] sm:$0xff] }
 0x1b4   :  { %2769 = vmatprep.mubr.bf16.mxu1 %v9617_v48  ;;  %v2104_v44 = vpop.f32.mrf.mxu0 }
 0x1b5   :  { %v2297_v38 = vpop.f32.mrf.mxu1  ;;  %v8157_v63 = vpack.c.bf16 %v3210_v11, %v3206_v30  ;;  %v3211_v23 = vmax.f32 %v2292_v1, 0.0  ;;  %v2296_v60 = vadd.f32 %v2295_v61, %v2103_v49  ;;  %v2105_v26 = vadd.f32 %v2104_v44, %v7829_v47  ;;  %v9619_v30 = vld [vmem:[#allocation27_spill] sm:$0xff]  ;;  %v9620_v49 = vld [vmem:[#allocation28_spill] sm:$0xff] }
 0x1b6   :  { %v2106_v33 = vpop.f32.mrf.mxu0 }
 0x1b7   :  { %v2299_v39 = vpop.f32.mrf.mxu1  ;;  %v2298_v3 = vadd.f32 %v2297_v38, %v2105_v26  ;;  %v2107_v32 = vadd.f32 %v2106_v33, %v7832_v13  ;;  %v8161_v37 = vpack.c.bf16 %v3211_v23, %v3207_v62  ;;  %v3214_v61 = vmax.f32 %v2296_v60, 0.0 }
 0x1b8   :  { %v2108_v0 = vpop.f32.mrf.mxu0  ;;  %v9621_v13 = vmov 0  }
 0x1b9   :  { %v2301_v8 = vpop.f32.mrf.mxu1  ;;  %v2300_v46 = vadd.f32 %v2299_v39, %v2107_v32  ;;  %v2109_v31 = vadd.f32 %v2108_v0, %v7838_v57  ;;  %v3215_v6 = vmax.f32 %v2298_v3, 0.0  ;;  %v6023_v3 = vld [vmem:[%s9376_s3 + $0x70] ss:$8 sps:$4 sm:$0xff]  }
 0x1ba   :  { %v2112_v43 = vpop.f32.mrf.mxu0  ;;  %2577 = vmatmul.mubr.bf16.gmra.mxu0 %v9618_v2  ;;  %v9622_v2 = vld [vmem:[#allocation29_spill] sm:$0xff] }
 0x1bb   :  { %v2305_v58 = vpop.f32.mrf.mxu1  ;;  %2770 = vmatmul.mubr.bf16.gmra.mxu1 %v9619_v30  ;;  %v3218_v47 = vmax.f32 %v2300_v46, 0.0  ;;  %v2302_v11 = vadd.f32 %v2301_v8, %v2109_v31  ;;  %v2113_v1 = vadd.f32 %v2112_v43, %v7843_v10  ;;  %2812 = vmatprep.mubr.bf16.mxu0 %v9620_v49  ;;  %v6038_v8 = vld [vmem:[%s9376_s3 + $0x170] ss:$8 sps:$4 sm:$0xff]   ;;  %v6028_v31 = vld [vmem:[%s9376_s3 + $0x64] ss:$8 sps:$4 sm:$0xff]  }
 0x1bc   :  { %3005 = vmatprep.mubr.bf16.mxu1 %v9621_v13  ;;  %v2114_v48 = vpop.f32.mrf.mxu0  ;;  %v9623_v30 = vld [vmem:[#allocation30_spill] sm:$0xff] }
 0x1bd   :  { %v2307_v62 = vpop.f32.mrf.mxu1  ;;  %v8169_v44 = vpack.c.bf16 %v3218_v47, %v3214_v61  ;;  %v3219_v57 = vmax.f32 %v2302_v11, 0.0  ;;  %v2306_v38 = vadd.f32 %v2305_v58, %v2113_v1  ;;  %v2115_v23 = vadd.f32 %v2114_v48, %v7846_v9  ;;  %v9624_v1 = vld [vmem:[#allocation31_spill] sm:$0xff] }
 0x1be   :  { %v2116_v26 = vpop.f32.mrf.mxu0 }
 0x1bf   :  { %v2309_v33 = vpop.f32.mrf.mxu1  ;;  %v2308_v60 = vadd.f32 %v2307_v62, %v2115_v23  ;;  %v2117_v39 = vadd.f32 %v2116_v26, %v7855_v19  ;;  %v8173_v32 = vpack.c.bf16 %v3219_v57, %v3215_v6  ;;  %v6049_v19 = vld [vmem:[%s9376_s3 + $0x164] ss:$8 sps:$4 sm:$0xff]   ;;  %v3222_v61 = vmax.f32 %v2306_v38, 0.0  ;;  %v6026_v62 = vld [vmem:[%s9376_s3 + $0x60] ss:$8 sps:$4 sm:$0xff]  }
 0x1c0   :  { %v2118_v10 = vpop.f32.mrf.mxu0  ;;  %v6047_v57 = vld [vmem:[%s9376_s3 + $0x160] ss:$8 sps:$4 sm:$0xff]  }
 0x1c1   :  { %v2311_v0 = vpop.f32.mrf.mxu1  ;;  %v2310_v46 = vadd.f32 %v2309_v33, %v2117_v39  ;;  %v2119_v9 = vadd.f32 %v2118_v10, %v7863_v14  ;;  %v3223_v49 = vmax.f32 %v2308_v60, 0.0  ;;  %v6031_v33 = vld [vmem:[%s9376_s3 + $0x54] ss:$8 sps:$4 sm:$0xff]  }
 0x1c2   :  { %v2122_v43 = vpop.f32.mrf.mxu0  ;;  %2813 = vmatmul.mubr.bf16.vlgmr.msra.gmra.mxu0 %v9622_v2  ;;  %v6058_v60 = vld [vmem:[%s9376_s3 + $0x154] ss:$8 sps:$4 sm:$0xff]  }
 0x1c3   :  { %v2315_v58 = vpop.f32.mrf.mxu1  ;;  %5357 = vmatmul.mubr.msk.bf16.vlgmr.msra.gmra.mxu1 %vm1573_vm0, %v9623_v30  ;;  %v3226_v47 = vmax.f32 %v2310_v46, 0.0  ;;  %v2312_v11 = vadd.f32 %v2311_v0, %v2119_v9  ;;  %v2123_v14 = vadd.f32 %v2122_v43, %v7874_v17  ;;  %2822 = vmatprep.mubr.bf16.mxu0 %v9624_v1 }
 0x1c4   :  { %3015 = vmatprep.mubr.bf16.mxu1 %v9621_v13  ;;  %v2124_v6 = vpop.f32.mrf.mxu0  ;;  %3755 = vmatpush1.bf16.msra.mxu0 %v6023_v3 }
 0x1c5   :  { %v2317_v48 = vpop.f32.mrf.mxu1  ;;  %3948 = vmatpush1.bf16.msra.mxu1 %v6038_v8  ;;  %v8200_v38 = vpack.c.bf16 %v3226_v47, %v3222_v61  ;;  %v3227_v17 = vmax.f32 %v2312_v11, 0.0  ;;  %v2316_v23 = vadd.f32 %v2315_v58, %v2123_v14  ;;  %v2125_v26 = vadd.f32 %v2124_v6, %v7877_v42  ;;  %3756 = vmatprep.subr.bf16.mxu0 %v6028_v31  ;;  %v6029_v42 = vld [vmem:[%s9376_s3 + $0x50] ss:$8 sps:$4 sm:$0xff]   ;;  %v6067_v58 = vld [vmem:[%s9376_s3 + $0x144] ss:$8 sps:$4 sm:$0xff]  }
 0x1c6   :  { %3949 = vmatprep.subr.bf16.mxu1 %v6049_v19  ;;  %v2126_v39 = vpop.f32.mrf.mxu0  ;;  %v6056_v31 = vld [vmem:[%s9376_s3 + $0x150] ss:$8 sps:$4 sm:$0xff]  }
 0x1c7   :  { %v2319_v10 = vpop.f32.mrf.mxu1  ;;  %v2318_v0 = vadd.f32 %v2317_v48, %v2125_v26  ;;  %v2127_v3 = vadd.f32 %v2126_v39, %v7883_v41  ;;  %v8210_v8 = vpack.c.bf16 %v3227_v17, %v3223_v49  ;;  %v6034_v41 = vld [vmem:[%s9376_s3 + $0x44] ss:$8 sps:$4 sm:$0xff]   ;;  %v9625_v61 = vld [vmem:[#allocation32_spill] sm:$0xff]  ;;  %v9626_v47 = vld [vmem:[#allocation33_spill] sm:$0xff]  ;;  %v3230_v11 = vmax.f32 %v2316_v23, 0.0 }
 0x1c8   :  { %v2128_v46 = vpop.f32.mrf.mxu0  ;;  %3757 = vmatpush1.bf16.msra.mxu0 %v6026_v62  ;;  %v9627_v49 = vld [vmem:[#allocation34_spill] sm:$0xff]  ;;  %v6076_v39 = vld [vmem:[%s9376_s3 + $0x134] ss:$8 sps:$4 sm:$0xff]  }
 0x1c9   :  { %v2321_v9 = vpop.f32.mrf.mxu1  ;;  %3950 = vmatpush1.bf16.msra.mxu1 %v6047_v57  ;;  %v2320_v19 = vadd.f32 %v2319_v10, %v2127_v3  ;;  %v2129_v43 = vadd.f32 %v2128_v46, %v7891_v27  ;;  %3758 = vmatprep.subr.bf16.mxu0 %v6031_v33  ;;  %v3231_v6 = vmax.f32 %v2318_v0, 0.0  ;;  %v6032_v57 = vld [vmem:[%s9376_s3 + $0x40] ss:$8 sps:$4 sm:$0xff]  }
 0x1ca   :  { %3951 = vmatprep.subr.bf16.mxu1 %v6058_v60  ;;  %v2132_v2 = vpop.f32.mrf.mxu0  ;;  %2823 = vmatmul.mubr.bf16.gmra.mxu0 %v9625_v61  ;;  %v6065_v17 = vld [vmem:[%s9376_s3 + $0x140] ss:$8 sps:$4 sm:$0xff]   ;;  %v6037_v60 = vld [vmem:[%s9376_s3 + $0x34] ss:$8 sps:$4 sm:$0xff]  }
 0x1cb   :  { %v2325_v30 = vpop.f32.mrf.mxu1  ;;  %5358 = vmatmul.mubr.msk.bf16.gmra.mxu1 %vm1573_vm0, %v9626_v47  ;;  %v3234_v14 = vmax.f32 %v2320_v19, 0.0  ;;  %v2322_v27 = vadd.f32 %v2321_v9, %v2129_v43  ;;  %v2133_v1 = vadd.f32 %v2132_v2, %v7899_v53  ;;  %2832 = vmatprep.mubr.bf16.mxu0 %v9627_v49  ;;  %v6074_v19 = vld [vmem:[%s9376_s3 + $0x130] ss:$8 sps:$4 sm:$0xff]   ;;  %v9628_v61 = vld [vmem:[#allocation35_spill] sm:$0xff] }
 0x1cc   :  { %3025 = vmatprep.mubr.bf16.mxu1 %v9621_v13  ;;  %v2134_v48 = vpop.f32.mrf.mxu0  ;;  %3759 = vmatpush1.bf16.msra.mxu0 %v6029_v42  ;;  %v9629_v47 = vld [vmem:[#allocation36_spill] sm:$0xff] }
 0x1cd   :  { %v2327_v62 = vpop.f32.mrf.mxu1  ;;  %3952 = vmatpush1.bf16.msra.mxu1 %v6056_v31  ;;  %v8237_v23 = vpack.c.bf16 %v3234_v14, %v3230_v11  ;;  %v3235_v53 = vmax.f32 %v2322_v27, 0.0  ;;  %v2326_v26 = vadd.f32 %v2325_v30, %v2133_v1  ;;  %v2135_v33 = vadd.f32 %v2134_v48, %v7905_v12  ;;  %3760 = vmatprep.subr.bf16.mxu0 %v6034_v41  ;;  %v6035_v12 = vld [vmem:[%s9376_s3 + $0x30] ss:$8 sps:$4 sm:$0xff]  }
 0x1ce   :  { %3953 = vmatprep.subr.bf16.mxu1 %v6067_v58  ;;  %v2136_v10 = vpop.f32.mrf.mxu0  ;;  %v6085_v58 = vld [vmem:[%s9376_s3 + $0x124] ss:$8 sps:$4 sm:$0xff]   ;;  %v9630_v1 = vld [vmem:[#allocation37_spill] sm:$0xff] }
 0x1cf   :  { %v2329_v0 = vpop.f32.mrf.mxu1  ;;  %v2328_v3 = vadd.f32 %v2327_v62, %v2135_v33  ;;  %v2137_v46 = vadd.f32 %v2136_v10, %v7911_v29  ;;  %v8247_v9 = vpack.c.bf16 %v3235_v53, %v3231_v6  ;;  %v6043_v29 = vld [vmem:[%s9376_s3 + $0x24] ss:$8 sps:$4 sm:$0xff]   ;;  %v3238_v11 = vmax.f32 %v2326_v26, 0.0  ;;  %v6041_v62 = vld [vmem:[%s9376_s3 + $0x20] ss:$8 sps:$4 sm:$0xff]  }
 0x1d0   :  { %v2138_v42 = vpop.f32.mrf.mxu0  ;;  %3761 = vmatpush1.bf16.msra.mxu0 %v6032_v57  ;;  %v6083_v57 = vld [vmem:[%s9376_s3 + $0x120] ss:$8 sps:$4 sm:$0xff]   ;;  %v6046_v33 = vld [vmem:[%s9376_s3 + $0x14] ss:$8 sps:$4 sm:$0xff]  }
 0x1d1   :  { %v2331_v31 = vpop.f32.mrf.mxu1  ;;  %3954 = vmatpush1.bf16.msra.mxu1 %v6065_v17  ;;  %v2330_v43 = vadd.f32 %v2329_v0, %v2137_v46  ;;  %v2139_v41 = vadd.f32 %v2138_v42, %v7919_v54  ;;  %3762 = vmatprep.subr.bf16.mxu0 %v6037_v60  ;;  %v3239_v49 = vmax.f32 %v2328_v3, 0.0  ;;  %v6091_v60 = vld [vmem:[%s9376_s3 + $0x114] ss:$8 sps:$4 sm:$0xff]  }
 0x1d2   :  { %3955 = vmatprep.subr.bf16.mxu1 %v6076_v39  ;;  %v2142_v2 = vpop.f32.mrf.mxu0  ;;  %2833 = vmatmul.mubr.bf16.gmra.mxu0 %v9628_v61 }
 0x1d3   :  { %v2335_v30 = vpop.f32.mrf.mxu1  ;;  %5359 = vmatmul.mubr.msk.bf16.gmra.mxu1 %vm1573_vm0, %v9629_v47  ;;  %v3242_v14 = vmax.f32 %v2330_v43, 0.0  ;;  %v2332_v54 = vadd.f32 %v2331_v31, %v2139_v41  ;;  %v2143_v27 = vadd.f32 %v2142_v2, %v7927_v35  ;;  %2842 = vmatprep.mubr.bf16.mxu0 %v9630_v1  ;;  %v6094_v41 = vld [vmem:[%s9376_s3 + $0x104] ss:$8 sps:$4 sm:$0xff]  }
 0x1d4   :  { %3035 = vmatprep.mubr.bf16.mxu1 %v9621_v13  ;;  %v2144_v6 = vpop.f32.mrf.mxu0  ;;  %3763 = vmatpush1.bf16.msra.mxu0 %v6035_v12  ;;  %v6089_v12 = vld [vmem:[%s9376_s3 + $0x110] ss:$8 sps:$4 sm:$0xff]   ;;  %v9631_v2 = vld [vmem:[#allocation38_spill] sm:$0xff] }
 0x1d5   :  { %v2337_v48 = vpop.f32.mrf.mxu1  ;;  %3956 = vmatpush1.bf16.msra.mxu1 %v6074_v19  ;;  %v8274_v17 = vpack.c.bf16 %v3242_v14, %v3238_v11  ;;  %v3243_v35 = vmax.f32 %v2332_v54, 0.0  ;;  %v2336_v53 = vadd.f32 %v2335_v30, %v2143_v27  ;;  %v2145_v26 = vadd.f32 %v2144_v6, %v7933_v20  ;;  %3764 = vmatprep.subr.bf16.mxu0 %v6043_v29  ;;  %v6044_v20 = vld [vmem:[%s9376_s3 + $0x10] ss:$8 sps:$4 sm:$0xff]   ;;  %v9632_v30 = vld [vmem:[#allocation39_spill] sm:$0xff] }
 0x1d6   :  { %3957 = vmatprep.subr.bf16.mxu1 %v6085_v58  ;;  %v2146_v39 = vpop.f32.mrf.mxu0  ;;  %v9633_v14 = vld [vmem:[#allocation40_spill] sm:$0xff]  ;;  %v6092_v6 = vld [vmem:[%s9376_s3 + $0x100] ss:$8 sps:$4 sm:$0xff]  }
 0x1d7   :  { %v2339_v10 = vpop.f32.mrf.mxu1  ;;  %v2338_v0 = vadd.f32 %v2337_v48, %v2145_v26  ;;  %v2147_v3 = vadd.f32 %v2146_v39, %v7939_v22  ;;  %v8284_v46 = vpack.c.bf16 %v3243_v35, %v3239_v49  ;;  %v6052_v22 = vld [vmem:[%s9376_s3 + $0x4] ss:$8 sps:$4 sm:$0xff]   ;;  %v3246_v61 = vmax.f32 %v2336_v53, 0.0  ;;  %v6050_v49 = vld [vmem:[%s9376_s3] ss:$8 sps:$4 sm:$0xff]  }
 0x1d8   :  { %v2148_v42 = vpop.f32.mrf.mxu0  ;;  %3765 = vmatpush1.bf16.msra.mxu0 %v6041_v62  ;;  %v6055_v35 = vld [vmem:[%s9376_s3 + $0xf4] ss:$8 sps:$4 sm:$0xff]  }
 0x1d9   :  { %v2341_v31 = vpop.f32.mrf.mxu1  ;;  %3958 = vmatpush1.bf16.msra.mxu1 %v6083_v57  ;;  %v2340_v19 = vadd.f32 %v2339_v10, %v2147_v3  ;;  %v2149_v43 = vadd.f32 %v2148_v42, %v7947_v34  ;;  %3766 = vmatprep.subr.bf16.mxu0 %v6046_v33  ;;  %v3247_v54 = vmax.f32 %v2338_v0, 0.0  ;;  %v6097_v53 = vld [vmem:[%s9376_s3 + $0x1f4] ss:$8 sps:$4 sm:$0xff]   ;;  %v6095_v42 = vld [vmem:[%s9376_s3 + $0x1f0] ss:$8 sps:$4 sm:$0xff]  }
 0x1da   :  { %3959 = vmatprep.subr.bf16.mxu1 %v6091_v60  ;;  %v2152_v29 = vpop.f32.mrf.mxu0  ;;  %2843 = vmatmul.mubr.bf16.gmra.mxu0 %v9631_v2 }
 0x1db   :  { %v2345_v58 = vpop.f32.mrf.mxu1  ;;  %5360 = vmatmul.mubr.msk.bf16.gmra.mxu1 %vm1573_vm0, %v9632_v30  ;;  %v3250_v47 = vmax.f32 %v2340_v19, 0.0  ;;  %v2342_v34 = vadd.f32 %v2341_v31, %v2149_v43  ;;  %v2153_v11 = vadd.f32 %v2152_v29, %v7955_v51  ;;  %2852 = vmatprep.mubr.bf16.mxu0 %v9633_v14  ;;  %v9636_v30 = vld [vmem:[#allocation43_spill] sm:$0xff] }
 0x1dc   :  { %3045 = vmatprep.mubr.bf16.mxu1 %v9621_v13  ;;  %v2154_v27 = vpop.f32.mrf.mxu0  ;;  %3767 = vmatpush1.bf16.msra.mxu0 %v6044_v20  ;;  %v6098_v14 = vld [vmem:[%s9376_s3 + $0x1e0] ss:$8 sps:$4 sm:$0xff]  }
 0x1dd   :  { %v2347_v1 = vpop.f32.mrf.mxu1  ;;  %3960 = vmatpush1.bf16.msra.mxu1 %v6089_v12  ;;  %v8311_v48 = vpack.c.bf16 %v3250_v47, %v3246_v61  ;;  %v3251_v51 = vmax.f32 %v2342_v34, 0.0  ;;  %v2346_v62 = vadd.f32 %v2345_v58, %v2153_v11  ;;  %v2155_v57 = vadd.f32 %v2154_v27, %v7961_v21  ;;  %3768 = vmatprep.subr.bf16.mxu0 %v6052_v22  ;;  %v6053_v21 = vld [vmem:[%s9376_s3 + $0xf0] ss:$8 sps:$4 sm:$0xff]   ;;  %v6100_v12 = vld [vmem:[%s9376_s3 + $0x1e4] ss:$8 sps:$4 sm:$0xff]  }
 0x1de   :  { %3961 = vmatprep.subr.bf16.mxu1 %v6094_v41  ;;  %v2156_v26 = vpop.f32.mrf.mxu0  ;;  %v9634_v22 = vld [vmem:[#allocation41_spill] sm:$0xff]  ;;  %v9635_v41 = vld [vmem:[#allocation42_spill] sm:$0xff] }
 0x1df   :  { %v2349_v33 = vpop.f32.mrf.mxu1  ;;  %v2348_v60 = vadd.f32 %v2347_v1, %v2155_v57  ;;  %v2157_v39 = vadd.f32 %v2156_v26, %v7967_v40  ;;  %v8321_v10 = vpack.c.bf16 %v3251_v51, %v3247_v54  ;;  %v6061_v40 = vld [vmem:[%s9376_s3 + $0xe4] ss:$8 sps:$4 sm:$0xff]   ;;  %v3254_v29 = vmax.f32 %v2346_v62, 0.0  ;;  %v6059_v11 = vld [vmem:[%s9376_s3 + $0xe0] ss:$8 sps:$4 sm:$0xff]  }
 0x1e0   :  { %v2158_v0 = vpop.f32.mrf.mxu0  ;;  %3769 = vmatpush1.bf16.msra.mxu0 %v6050_v49  ;;  %v6064_v49 = vld [vmem:[%s9376_s3 + $0xd4] ss:$8 sps:$4 sm:$0xff]  }
 0x1e1   :  { %v2351_v3 = vpop.f32.mrf.mxu1  ;;  %3962 = vmatpush1.bf16.msra.mxu1 %v6092_v6  ;;  %v2350_v31 = vadd.f32 %v2349_v33, %v2157_v39  ;;  %v2159_v20 = vadd.f32 %v2158_v0, %v7975_v50  ;;  %3770 = vmatprep.subr.bf16.mxu0 %v6055_v35  ;;  %v3255_v61 = vmax.f32 %v2348_v60, 0.0  ;;  %v6103_v6 = vld [vmem:[%s9376_s3 + $0x1d4] ss:$8 sps:$4 sm:$0xff]   ;;  %v6101_v60 = vld [vmem:[%s9376_s3 + $0x1d0] ss:$8 sps:$4 sm:$0xff]  }
 0x1e2   :  { %3963 = vmatprep.subr.bf16.mxu1 %v6097_v53  ;;  %v2162_v19 = vpop.f32.mrf.mxu0  ;;  %2853 = vmatmul.mubr.bf16.gmra.mxu0 %v9634_v22 }
 0x1e3   :  { %v2355_v43 = vpop.f32.mrf.mxu1  ;;  %5361 = vmatmul.mubr.msk.bf16.gmra.mxu1 %vm1573_vm0, %v9635_v41  ;;  %v3258_v58 = vmax.f32 %v2350_v31, 0.0  ;;  %v2352_v50 = vadd.f32 %v2351_v3, %v2159_v20  ;;  %v2163_v2 = vadd.f32 %v2162_v19, %v7983_v5  ;;  %2862 = vmatprep.mubr.bf16.mxu0 %v9636_v30  ;;  %v9638_v31 = vld [vmem:[#allocation45_spill] sm:$0xff] }
 0x1e4   :  { %3055 = vmatprep.mubr.bf16.mxu1 %v9621_v13  ;;  %v2164_v47 = vpop.f32.mrf.mxu0  ;;  %3771 = vmatpush2.bf16.msra.mxu0 %v6053_v21 }
 0x1e5   :  { %v2357_v34 = vpop.f32.mrf.mxu1  ;;  %3964 = vmatpush2.bf16.msra.mxu1 %v6095_v42  ;;  %v8348_v54 = vpack.c.bf16 %v3258_v58, %v3254_v29  ;;  %v3259_v5 = vmax.f32 %v2352_v50, 0.0  ;;  %v2356_v27 = vadd.f32 %v2355_v43, %v2163_v2  ;;  %v2165_v1 = vadd.f32 %v2164_v47, %v7989_v15  ;;  %3772 = vmatprep.subr.bf16.mxu0 %v6061_v40  ;;  %v6062_v15 = vld [vmem:[%s9376_s3 + $0xd0] ss:$8 sps:$4 sm:$0xff]   ;;  %v9639_v43 = vld [vmem:[#allocation46_spill] sm:$0xff]  ;;  %v6073_v58 = vld [vmem:[%s9376_s3 + $0xb4] ss:$8 sps:$4 sm:$0xff]  }
 0x1e6   :  { %3965 = vmatprep.subr.bf16.mxu1 %v6100_v12  ;;  %v2166_v51 = vpop.f32.mrf.mxu0  ;;  %v9637_v42 = vld [vmem:[#allocation44_spill] sm:$0xff]  ;;  %v6068_v29 = vld [vmem:[%s9376_s3 + $0xc0] ss:$8 sps:$4 sm:$0xff]   ;;  %v6106_v47 = vld [vmem:[%s9376_s3 + $0x1c4] ss:$8 sps:$4 sm:$0xff]  }
 0x1e7   :  { %v2359_v62 = vpop.f32.mrf.mxu1  ;;  %v2358_v57 = vadd.f32 %v2357_v34, %v2165_v1  ;;  %v2167_v35 = vadd.f32 %v2166_v51, %v7995_v18  ;;  %v8358_v53 = vpack.c.bf16 %v3259_v5, %v3255_v61  ;;  %v6070_v18 = vld [vmem:[%s9376_s3 + $0xc4] ss:$8 sps:$4 sm:$0xff]   ;;  %v3262_v20 = vmax.f32 %v2356_v27, 0.0  ;;  %v6104_v61 = vld [vmem:[%s9376_s3 + $0x1c0] ss:$8 sps:$4 sm:$0xff]  }
 0x1e8   :  { %v2168_v26 = vpop.f32.mrf.mxu0  ;;  %3773 = vmatpush2.bf16.msra.mxu0 %v6059_v11 }
 0x1e9   :  { %v2361_v33 = vpop.f32.mrf.mxu1  ;;  %3966 = vmatpush2.bf16.msra.mxu1 %v6098_v14  ;;  %v2360_v39 = vadd.f32 %v2359_v62, %v2167_v35  ;;  %v2169_v0 = vadd.f32 %v2168_v26, %v8003_v4  ;;  %3774 = vmatprep.subr.bf16.mxu0 %v6064_v49  ;;  %v3263_v4 = vmax.f32 %v2358_v57, 0.0  ;;  %v6079_v62 = vld [vmem:[%s9376_s3 + $0xa4] ss:$8 sps:$4 sm:$0xff]   ;;  %v9641_v26 = vld [vmem:[#allocation48_spill] sm:$0xff] }
 0x1ea   :  { %3967 = vmatprep.subr.bf16.mxu1 %v6103_v6  ;;  %v2172_v3 = vpop.f32.mrf.mxu0  ;;  %2863 = vmatmul.mubr.bf16.gmra.mxu0 %v9637_v42  ;;  %v9640_v35 = vld [vmem:[#allocation47_spill] sm:$0xff]  ;;  %v6082_v42 = vld [vmem:[%s9376_s3 + $0x94] ss:$8 sps:$4 sm:$0xff]  }
 0x1eb   :  { %v2365_v21 = vpop.f32.mrf.mxu1  ;;  %5362 = vmatmul.mubr.msk.bf16.gmra.mxu1 %vm1573_vm0, %v9638_v31  ;;  %v3266_v40 = vmax.f32 %v2360_v39, 0.0  ;;  %v2362_v12 = vadd.f32 %v2361_v33, %v2169_v0  ;;  %v2173_v19 = vadd.f32 %v2172_v3, %v8011_v25  ;;  %2872 = vmatprep.mubr.bf16.mxu0 %v9639_v43  ;;  %v9642_v0 = vld [vmem:[#allocation49_spill] sm:$0xff] }
 0x1ec   :  { %3065 = vmatprep.mubr.bf16.mxu1 %v9621_v13  ;;  %v2174_v22 = vpop.f32.mrf.mxu0  ;;  %3775 = vmatpush2.bf16.msra.mxu0 %v6062_v15 }
 0x1ed   :  { %v2367_v41 = vpop.f32.mrf.mxu1  ;;  %3968 = vmatpush2.bf16.msra.mxu1 %v6101_v60  ;;  %v8382_v50 = vpack.c.bf16 %v3266_v40, %v3262_v20  ;;  %v3267_v25 = vmax.f32 %v2362_v12, 0.0  ;;  %v2366_v2 = vadd.f32 %v2365_v21, %v2173_v19  ;;  %v2175_v30 = vadd.f32 %v2174_v22, %v8017_v59  ;;  %3776 = vmatprep.subr.bf16.mxu0 %v6070_v18  ;;  %v6071_v59 = vld [vmem:[%s9376_s3 + $0xb0] ss:$8 sps:$4 sm:$0xff]   ;;  %v6077_v21 = vld [vmem:[%s9376_s3 + $0xa0] ss:$8 sps:$4 sm:$0xff]  }
 0x1ee   :  { %v2176_v34 = vpop.f32.mrf.mxu0  ;;  %3969 = vmatprep.subr.bf16.mxu1 %v6106_v47  ;;  %v6107_v12 = vld [vmem:[%s9376_s3 + $0x1b0] ss:$8 sps:$4 sm:$0xff]   ;;  %v6109_v19 = vld [vmem:[%s9376_s3 + $0x1b4] ss:$8 sps:$4 sm:$0xff]   ;;  %v6088_v47 = vld [vmem:[%s9376_s3 + $0x84] ss:$8 sps:$4 sm:$0xff]  }
 0x1ef   :  { %v2369_v11 = vpop.f32.mrf.mxu1  ;;  %v2368_v14 = vadd.f32 %v2367_v41, %v2175_v30  ;;  %v2177_v5 = vadd.f32 %v2176_v34, %v8023_v36  ;;  %v8392_v27 = vpack.c.bf16 %v3267_v25, %v3263_v4  ;;  %v3270_v33 = vmax.f32 %v2366_v2, 0.0  ;;  %v9643_v30 = vld [vmem:[#allocation97_spill] sm:$0xff] }
 0x1f0   :  { %v2178_v1 = vpop.f32.mrf.mxu0  ;;  %3777 = vmatpush2.bf16.msra.mxu0 %v6068_v29 }
 0x1f1   :  { %v2371_v49 = vpop.f32.mrf.mxu1  ;;  %3970 = vmatpush2.bf16.msra.mxu1 %v6104_v61  ;;  %v2370_v6 = vadd.f32 %v2369_v11, %v2177_v5  ;;  %v2179_v51 = vadd.f32 %v2178_v1, %v8031_v24  ;;  %3778 = vmatprep.subr.bf16.mxu0 %v6073_v58  ;;  %v3271_v24 = vmax.f32 %v2368_v14, 0.0  ;;  %v9644_v11 = vld [vmem:[#allocation50_spill] sm:$0xff]  ;;  %v9645_v14 = vld [vmem:[#allocation51_spill] sm:$0xff]  ;;  %v9646_v5 = vld [vmem:[#allocation53_spill] sm:$0xff] }
 0x1f2   :  { %v2182_v36 = vpop.f32.mrf.mxu0  ;;  %2873 = vmatmul.mubr.bf16.gmra.mxu0 %v9640_v35  ;;  %3971 = vmatprep.subr.bf16.mxu1 %v6109_v19  ;;  %v583_v1 = vsub.s32 2, %v9646_v5  ;;  %v6147_v19 = vld [vmem:[%s9375_s2] sm:$0xf] }
 0x1f3   :  { %v2375_v57 = vpop.f32.mrf.mxu1  ;;  %5363 = vmatmul.mubr.msk.bf16.gmra.mxu1 %vm1573_vm0, %v9641_v26  ;;  %v3274_v15 = vmax.f32 %v2370_v6, 0.0  ;;  %v2372_v60 = vadd.f32 %v2371_v49, %v2179_v51  ;;  %v2183_v39 = vadd.f32 %v2182_v36, %v8039_v45  ;;  %2882 = vmatprep.mubr.bf16.mxu0 %v9642_v0  ;;  %v9647_v51 = vld [vmem:[#allocation98_spill] sm:$0xff]  ;;  %v9648_v36 = vld [vmem:[#allocation52_spill] sm:$0xff] }
 0x1f4   :  { %3075 = vmatprep.mubr.bf16.mxu1 %v9621_v13  ;;  %v2184_v18 = vpop.f32.mrf.mxu0  ;;  %3779 = vmatpush2.bf16.msra.mxu0 %v6071_v59 }
 0x1f5   :  { %v2377_v3 = vpop.f32.mrf.mxu1  ;;  %v8413_v31 = vpack.c.bf16 %v3274_v15, %v3270_v33  ;;  %v3275_v20 = vmax.f32 %v2372_v60, 0.0  ;;  %v2376_v45 = vadd.f32 %v2375_v57, %v2183_v39  ;;  %v2185_v40 = vadd.f32 %v2184_v18, %v8045_v28  ;;  %3780 = vmatprep.subr.bf16.mxu0 %v6079_v62  ;;  %v6080_v28 = vld [vmem:[%s9376_s3 + $0x90] ss:$8 sps:$4 sm:$0xff]   ;;  %3972 = vmatpush2.bf16.msra.mxu1 %v6107_v12  ;;  %v6086_v15 = vld [vmem:[%s9376_s3 + $0x80] ss:$8 sps:$4 sm:$0xff]  }
 0x1f6   :  { %v2186_v43 = vpop.f32.mrf.mxu0  ;;  %v587_v33 = vsub.s32 3, %v9646_v5 }
 0x1f7   :  { %v2379_v4 = vpop.f32.mrf.mxu1  ;;  %v2378_v22 = vadd.f32 %v2377_v3, %v2185_v40  ;;  %v2187_v41 = vadd.f32 %v2186_v43, %v8051_v52  ;;  %v8423_v29 = vpack.c.bf16 %v3275_v20, %v3271_v24  ;;  %v3278_v49 = vmax.f32 %v2376_v45, 0.0  ;;  %v9650_v24 = vld [vmem:[#allocation99_spill] sm:$0xff]  ;;  %v9651_v40 = vld [vmem:[#allocation100_spill] sm:$0xff] }
 0x1f8   :  { %v2188_v58 = vpop.f32.mrf.mxu0  ;;  %3781 = vmatpush2.bf16.msra.mxu0 %v6077_v21  ;;  %v6110_v3 = vld [vmem:[%s9376_s3 + $0x1a0] ss:$8 sps:$4 sm:$0xff]   ;;  %v6112_v21 = vld [vmem:[%s9376_s3 + $0x1a4] ss:$8 sps:$4 sm:$0xff]   ;;  %v8456_v43 = vrot.slane %v6147_v19, %v583_v1 }
 0x1f9   :  { %v2381_v25 = vpop.f32.mrf.mxu1  ;;  %v2380_v2 = vadd.f32 %v2379_v4, %v2187_v41  ;;  %v2189_v61 = vadd.f32 %v2188_v58, %v9643_v30  ;;  %3782 = vmatprep.subr.bf16.mxu0 %v6082_v42  ;;  %v3279_v57 = vmax.f32 %v2378_v22, 0.0  ;;  %3973 = vmatprep.subr.bf16.mxu1 %v6112_v21  ;;  %v6113_v21 = vld [vmem:[%s9376_s3 + $0x190] ss:$8 sps:$4 sm:$0xff]  }
 0x1fa   :  { %v2192_v52 = vpop.f32.mrf.mxu0  ;;  %2883 = vmatmul.mubr.bf16.gmra.mxu0 %v9644_v11  ;;  %3974 = vmatpush2.bf16.msra.mxu1 %v6110_v3 }
 0x1fb   :  { %v2385_v34 = vpop.f32.mrf.mxu1  ;;  %5364 = vmatmul.mubr.msk.bf16.gmra.mxu1 %vm1573_vm0, %v9645_v14  ;;  %v3282_v59 = vmax.f32 %v2380_v2, 0.0  ;;  %v2382_v6 = vadd.f32 %v2381_v25, %v2189_v61  ;;  %v2193_v62 = vadd.f32 %v2192_v52, %v9647_v51  ;;  %2892 = vmatprep.mubr.bf16.mxu0 %v9648_v36  ;;  %v9652_v25 = vld [vmem:[#allocation101_spill] sm:$0xff]  ;;  %v8461_v2 = vrot.slane %v6147_v19, %v587_v33  ;;  %v9654_v52 = vld [vmem:[#allocation55_spill] sm:$0xff]  ;;  %v9659_v19 = vld [vmem:[#allocation58_spill] sm:$0xff] }
 0x1fc   :  { %3085 = vmatprep.mubr.bf16.mxu1 %v9621_v13  ;;  %v2194_v35 = vpop.f32.mrf.mxu0  ;;  %3783 = vmatpush2.bf16.msra.mxu0 %v6080_v28 }
 0x1fd   :  { %v2387_v26 = vpop.f32.mrf.mxu1  ;;  %v8443_v60 = vpack.c.bf16 %v3282_v59, %v3278_v49  ;;  %v3283_v39 = vmax.f32 %v2382_v6, 0.0  ;;  %v2386_v0 = vadd.f32 %v2385_v34, %v2193_v62  ;;  %v2195_v18 = vadd.f32 %v2194_v35, %v9650_v24  ;;  %3784 = vmatprep.subr.bf16.mxu0 %v6088_v47  ;;  %v9653_v47 = vld [vmem:[#allocation54_spill] sm:$0xff]  ;;  %v9655_v49 = vld [vmem:[#allocation56_spill] sm:$0xff] }
 0x1fe   :  { %v2196_v42 = vpop.f32.mrf.mxu0 }
 0x1ff   :  { %9649 = vst [vmem:[#allocation4_spill] sm:$0xff] %v8443_v60  ;;  %v2389_v20 = vpop.f32.mrf.mxu1  ;;  %v2388_v45 = vadd.f32 %v2387_v26, %v2195_v18  ;;  %v2197_v12 = vadd.f32 %v2196_v42, %v9651_v40  ;;  %v8458_v4 = vpack.c.bf16 %v3283_v39, %v3279_v57  ;;  %v3286_v34 = vmax.f32 %v2386_v0, 0.0  ;;  %v6115_v0 = vld [vmem:[%s9376_s3 + $0x194] ss:$8 sps:$4 sm:$0xff]  }
 0x200   :  { %v2198_v22 = vpop.f32.mrf.mxu0  ;;  %3785 = vmatpush2.bf16.msra.mxu0 %v6086_v15  ;;  %3975 = vmatprep.subr.bf16.mxu1 %v6115_v0 }
 0x201   :  { %v2391_v41 = vpop.f32.mrf.mxu1  ;;  %v2390_v58 = vadd.f32 %v2389_v20, %v2197_v12  ;;  %v2199_v28 = vadd.f32 %v2198_v22, %v9652_v25  ;;  %v3287_v59 = vmax.f32 %v2388_v45, 0.0  ;;  %v9658_v12 = vld [vmem:[#allocation57_spill] sm:$0xff]  ;;  %3976 = vmatpush2.bf16.msra.mxu1 %v6113_v21 }
 0x202   :  { %v2428_v30 = vpop.f32.mrf.mxu0  ;;  %2893 = vmatmul.mubr.bf16.gmra.mxu0 %v9653_v47 }
 0x203   :  { %v2621_v61 = vpop.f32.mrf.mxu1  ;;  %5365 = vmatmul.mubr.msk.bf16.gmra.mxu1 %vm1573_vm0, %v9654_v52  ;;  %v3290_v11 = vmax.f32 %v2390_v58, 0.0  ;;  %v2392_v14 = vadd.f32 %v2391_v41, %v2199_v28  ;;  %v2429_v1 = vadd.f32 %v2428_v30, %v8456_v43  ;;  %2902 = vmatprep.mubr.bf16.mxu0 %v9655_v49  ;;  %v9660_v58 = vld [vmem:[#allocation60_spill] sm:$0xff]  ;;  %v6118_v30 = vld [vmem:[%s9376_s3 + $0x184] ss:$8 sps:$4 sm:$0xff]   ;;  %v6116_v52 = vld [vmem:[%s9376_s3 + $0x180] ss:$8 sps:$4 sm:$0xff]  }
 0x204   :  { %3095 = vmatprep.mubr.bf16.mxu1 %v9621_v13  ;;  %v2430_v6 = vpop.f32.mrf.mxu0  ;;  %3977 = vmatprep.subr.bf16.mxu1 %v6118_v30 }
 0x205   :  { %v2623_v51 = vpop.f32.mrf.mxu1  ;;  %v8469_v62 = vpack.c.bf16 %v3290_v11, %v3286_v34  ;;  %v3291_v36 = vmax.f32 %v2392_v14, 0.0  ;;  %v8471_v57 = vadd.f32 %v2621_v61, %v2429_v1  ;;  %v2431_v35 = vadd.f32 %v2430_v6, %v8461_v2  ;;  %3978 = vmatpush2.bf16.msra.mxu1 %v6116_v52 }
 0x206   :  { %v2432_v26 = vpop.f32.mrf.mxu0 }
 0x207   :  { %9656 = vst [vmem:[#allocation5_spill] sm:$0xff] %v8469_v62  ;;  %v2625_v33 = vpop.f32.mrf.mxu1  ;;  %v8474_v15 = vadd.f32 %v2623_v51, %v2431_v35  ;;  %v2433_v39 = vadd.f32 %v2432_v26, %v8456_v43  ;;  %v8480_v24 = vpack.c.bf16 %v3291_v36, %v3287_v59  ;;  %v9661_v26 = vld [vmem:[#allocation64_spill] sm:$0xff] }
 0x208   :  { %v2434_v18 = vpop.f32.mrf.mxu0 }
 0x209   :  { %9657 = vst [vmem:[#allocation66_spill] sm:$0xff] %v8480_v24  ;;  %v2627_v3 = vpop.f32.mrf.mxu1  ;;  %v8485_v42 = vadd.f32 %v2625_v33, %v2433_v39  ;;  %v2435_v20 = vadd.f32 %v2434_v18, %v8461_v2  ;;  %v9662_v33 = vld [vmem:[#allocation65_spill] sm:$0xff]  ;;  %v9663_v18 = vld [vmem:[#allocation67_spill] sm:$0xff] }
 0x20a   :  { %v2438_v45 = vpop.f32.mrf.mxu0  ;;  %2903 = vmatmul.mubr.bf16.gmra.mxu0 %v9658_v12  ;;  %v9676_v24 = vld [vmem:[#allocation91_spill] sm:$0xff] }
 0x20b   :  { %v2631_v40 = vpop.f32.mrf.mxu1  ;;  %5366 = vmatmul.mubr.msk.bf16.gmra.mxu1 %vm1573_vm0, %v9659_v19  ;;  %v8491_v22 = vadd.f32 %v2627_v3, %v2435_v20  ;;  %v2439_v41 = vadd.f32 %v2438_v45, %v8456_v43  ;;  %2912 = vmatprep.mubr.bf16.mxu0 %v9660_v58 }
 0x20c   :  { %3105 = vmatprep.mubr.bf16.mxu1 %v9621_v13  ;;  %v2440_v25 = vpop.f32.mrf.mxu0 }
 0x20d   :  { %v2633_v28 = vpop.f32.mrf.mxu1  ;;  %v8499_v61 = vadd.f32 %v2631_v40, %v2439_v41  ;;  %v2441_v47 = vadd.f32 %v2440_v25, %v8461_v2 }
 0x20e   :  { %v2442_v34 = vpop.f32.mrf.mxu0 }
 0x20f   :  { %v2635_v11 = vpop.f32.mrf.mxu1  ;;  %v8505_v14 = vadd.f32 %v2633_v28, %v2441_v47  ;;  %v2443_v1 = vadd.f32 %v2442_v34, %v8456_v43  ;;  %v9664_v34 = vld [vmem:[#allocation71_spill] sm:$0xff] }
 0x210   :  { %v2444_v49 = vpop.f32.mrf.mxu0 }
 0x211   :  { %v2637_v59 = vpop.f32.mrf.mxu1  ;;  %v8508_v6 = vadd.f32 %v2635_v11, %v2443_v1  ;;  %v2445_v51 = vadd.f32 %v2444_v49, %v8461_v2  ;;  %v9665_v11 = vld [vmem:[#allocation72_spill] sm:$0xff] }
 0x212   :  { %v2448_v36 = vpop.f32.mrf.mxu0  ;;  %2913 = vmatmul.mubr.bf16.gmra.mxu0 %v9661_v26 }
 0x213   :  { %v2641_v35 = vpop.f32.mrf.mxu1  ;;  %5367 = vmatmul.mubr.msk.bf16.gmra.mxu1 %vm1573_vm0, %v9662_v33  ;;  %v8514_v39 = vadd.f32 %v2637_v59, %v2445_v51  ;;  %v2449_v0 = vadd.f32 %v2448_v36, %v8456_v43  ;;  %2922 = vmatprep.mubr.bf16.mxu0 %v9663_v18  ;;  %v9666_v59 = vld [vmem:[#allocation74_spill] sm:$0xff] }
 0x214   :  { %3115 = vmatprep.mubr.bf16.mxu1 %v9621_v13  ;;  %v2450_v3 = vpop.f32.mrf.mxu0 }
 0x215   :  { %v2643_v21 = vpop.f32.mrf.mxu1  ;;  %v8519_v20 = vadd.f32 %v2641_v35, %v2449_v0  ;;  %v2451_v45 = vadd.f32 %v2450_v3, %v8461_v2 }
 0x216   :  { %v2452_v40 = vpop.f32.mrf.mxu0 }
 0x217   :  { %v2645_v12 = vpop.f32.mrf.mxu1  ;;  %v8522_v19 = vadd.f32 %v2643_v21, %v2451_v45  ;;  %v2453_v41 = vadd.f32 %v2452_v40, %v8456_v43 }
 0x218   :  { %v2454_v58 = vpop.f32.mrf.mxu0 }
 0x219   :  { %v2647_v25 = vpop.f32.mrf.mxu1  ;;  %v8525_v28 = vadd.f32 %v2645_v12, %v2453_v41  ;;  %v2455_v30 = vadd.f32 %v2454_v58, %v8461_v2 }
 0x21a   :  { %v2458_v47 = vpop.f32.mrf.mxu0  ;;  %2923 = vmatmul.mubr.bf16.gmra.mxu0 %v9664_v34  ;;  %v9669_v34 = vld [vmem:[#allocation81_spill] sm:$0xff] }
 0x21b   :  { %v2651_v52 = vpop.f32.mrf.mxu1  ;;  %5368 = vmatmul.mubr.msk.bf16.gmra.mxu1 %vm1573_vm0, %v9665_v11  ;;  %v8531_v1 = vadd.f32 %v2647_v25, %v2455_v30  ;;  %v2459_v49 = vadd.f32 %v2458_v47, %v8456_v43  ;;  %2932 = vmatprep.mubr.bf16.mxu0 %v9666_v59  ;;  %v9667_v25 = vld [vmem:[#allocation78_spill] sm:$0xff]  ;;  %v9668_v30 = vld [vmem:[#allocation79_spill] sm:$0xff] }
 0x21c   :  { %3125 = vmatprep.mubr.bf16.mxu1 %v9621_v13  ;;  %v2460_v51 = vpop.f32.mrf.mxu0 }
 0x21d   :  { %v2653_v36 = vpop.f32.mrf.mxu1  ;;  %v8536_v35 = vadd.f32 %v2651_v52, %v2459_v49  ;;  %v2461_v26 = vadd.f32 %v2460_v51, %v8461_v2 }
 0x21e   :  { %v2462_v33 = vpop.f32.mrf.mxu0 }
 0x21f   :  { %v2655_v0 = vpop.f32.mrf.mxu1  ;;  %v8539_v18 = vadd.f32 %v2653_v36, %v2461_v26  ;;  %v2463_v3 = vadd.f32 %v2462_v33, %v8456_v43 }
 0x220   :  { %v2464_v21 = vpop.f32.mrf.mxu0 }
 0x221   :  { %v2657_v45 = vpop.f32.mrf.mxu1  ;;  %v8542_v40 = vadd.f32 %v2655_v0, %v2463_v3  ;;  %v2465_v12 = vadd.f32 %v2464_v21, %v8461_v2 }
 0x222   :  { %v2468_v41 = vpop.f32.mrf.mxu0  ;;  %2933 = vmatmul.mubr.bf16.gmra.mxu0 %v9667_v25  ;;  %v9670_v25 = vld [vmem:[#allocation85_spill] sm:$0xff] }
 0x223   :  { %v2661_v58 = vpop.f32.mrf.mxu1  ;;  %5369 = vmatmul.mubr.msk.bf16.gmra.mxu1 %vm1573_vm0, %v9668_v30  ;;  %v8548_v47 = vadd.f32 %v2657_v45, %v2465_v12  ;;  %v2469_v52 = vadd.f32 %v2468_v41, %v8456_v43  ;;  %2942 = vmatprep.mubr.bf16.mxu0 %v9669_v34 }
 0x224   :  { %3135 = vmatprep.mubr.bf16.mxu1 %v9621_v13  ;;  %v2470_v11 = vpop.f32.mrf.mxu0 }
 0x225   :  { %v2663_v49 = vpop.f32.mrf.mxu1  ;;  %v8553_v59 = vadd.f32 %v2661_v58, %v2469_v52  ;;  %v2471_v51 = vadd.f32 %v2470_v11, %v8461_v2  ;;  %v9671_v58 = vld [vmem:[#allocation86_spill] sm:$0xff]  ;;  %v9672_v52 = vld [vmem:[#allocation88_spill] sm:$0xff] }
 0x226   :  { %v2472_v36 = vpop.f32.mrf.mxu0 }
 0x227   :  { %v2665_v26 = vpop.f32.mrf.mxu1  ;;  %v8556_v33 = vadd.f32 %v2663_v49, %v2471_v51  ;;  %v2473_v0 = vadd.f32 %v2472_v36, %v8456_v43 }
 0x228   :  { %v8559_v3 = vpop.f32.mrf.mxu0 }
 0x229   :  { %v8561_v21 = vpop.f32.mrf.mxu1  ;;  %v8563_v45 = vadd.f32 %v2665_v26, %v2473_v0 }
 0x22a   :  { %v2478_v12 = vpop.f32.mrf.mxu0  ;;  %2943 = vmatmul.mubr.bf16.gmra.mxu0 %v9670_v25 }
 0x22b   :  { %v2671_v41 = vpop.f32.mrf.mxu1  ;;  %5370 = vmatmul.mubr.msk.bf16.gmra.mxu1 %vm1573_vm0, %v9671_v58  ;;  %v2479_v30 = vadd.f32 %v2478_v12, %v8456_v43  ;;  %2952 = vmatprep.mubr.bf16.mxu0 %v9672_v52 }
 0x22c   :  { %3145 = vmatprep.mubr.bf16.mxu1 %v9621_v13  ;;  %v2480_v34 = vpop.f32.mrf.mxu0 }
 0x22d   :  { %v2673_v11 = vpop.f32.mrf.mxu1  ;;  %v8571_v49 = vadd.f32 %v2671_v41, %v2479_v30  ;;  %v2481_v51 = vadd.f32 %v2480_v34, %v8461_v2  ;;  %v9677_v41 = vld [vmem:[#allocation92_spill] sm:$0xff]  ;;  %v9678_v34 = vld [vmem:[#allocation93_spill] sm:$0xff] }
 0x22e   :  { %v2482_v36 = vpop.f32.mrf.mxu0 }
 0x22f   :  { %v2675_v26 = vpop.f32.mrf.mxu1  ;;  %v8574_v0 = vadd.f32 %v2673_v11, %v2481_v51  ;;  %v2483_v25 = vadd.f32 %v2482_v36, %v8456_v43 }
 0x230   :  { %v8577_v5 = vpop.f32.mrf.mxu0 }
 0x231   :  { %9673 = vst [vmem:[#allocation68_spill] sm:$0xff] %v8574_v0  ;;  %v8579_v58 = vpop.f32.mrf.mxu1  ;;  %v8581_v12 = vadd.f32 %v2675_v26, %v2483_v25  ;;  %v9684_v0 = vld [vmem:[#allocation95_spill] sm:$0xff] }
 0x232   :  { %9674 = vst [vmem:[#allocation69_spill] sm:$0xff] %v8579_v58  ;;  %v2488_v52 = vpop.f32.mrf.mxu0  ;;  %2953 = vmatmul.mubr.bf16.gmra.mxu0 %v9676_v24 }
 0x233   :  { %9675 = vst [vmem:[#allocation6_spill] sm:$0xff] %v8581_v12  ;;  %v2681_v62 = vpop.f32.mrf.mxu1  ;;  %5371 = vmatmul.mubr.msk.bf16.gmra.mxu1 %vm1573_vm0, %v9677_v41  ;;  %v2489_v30 = vadd.f32 %v2488_v52, %v8456_v43  ;;  %2962 = vmatprep.mubr.bf16.mxu0 %v9678_v34 }
 0x234   :  { %3155 = vmatprep.mubr.bf16.mxu1 %v9621_v13  ;;  %v2490_v11 = vpop.f32.mrf.mxu0 }
 0x235   :  { %v2683_v51 = vpop.f32.mrf.mxu1  ;;  %v8589_v36 = vadd.f32 %v2681_v62, %v2489_v30  ;;  %v2491_v26 = vadd.f32 %v2490_v11, %v8461_v2  ;;  %v9685_v62 = vld [vmem:[#allocation96_spill] sm:$0xff]  ;;  %v9686_v11 = vld [vmem:[#allocation61_spill] sm:$0xff] }
 0x236   :  { %v2492_v25 = vpop.f32.mrf.mxu0 }
 0x237   :  { %9679 = vst [vmem:[#allocation7_spill] sm:$0xff] %v8589_v36  ;;  %v2685_v60 = vpop.f32.mrf.mxu1  ;;  %v8592_v12 = vadd.f32 %v2683_v51, %v2491_v26  ;;  %v2493_v24 = vadd.f32 %v2492_v25, %v8456_v43 }
 0x238   :  { %v8595_v58 = vpop.f32.mrf.mxu0 }
 0x239   :  { %9680 = vst [vmem:[#allocation70_spill] sm:$0xff] %v8592_v12  ;;  %9681 = vst [vmem:[#allocation8_spill] sm:$0xff] %v8595_v58  ;;  %v8597_v41 = vpop.f32.mrf.mxu1  ;;  %v8599_v52 = vadd.f32 %v2685_v60, %v2493_v24  ;;  %v9692_v58 = vld [vmem:[#allocation59_spill] sm:$0xff] }
 0x23a   :  { %9682 = vst [vmem:[#allocation9_spill] sm:$0xff] %v8597_v41  ;;  %v2498_v34 = vpop.f32.mrf.mxu0  ;;  %2963 = vmatmul.mubr.bf16.gmra.mxu0 %v9684_v0 }
 0x23b   :  { %9683 = vst [vmem:[#allocation73_spill] sm:$0xff] %v8599_v52  ;;  %v2691_v13 = vpop.f32.mrf.mxu1  ;;  %5372 = vmatmul.mubr.msk.bf16.gmra.mxu1 %vm1573_vm0, %v9685_v62  ;;  %v2499_v30 = vadd.f32 %v2498_v34, %v8456_v43  ;;  %3786 = vmatprep.mubr.bf16.mxu0 %v9686_v11 }
 0x23c   :  { %v2500_v51 = vpop.f32.mrf.mxu0 }
 0x23d   :  { %v2693_v26 = vpop.f32.mrf.mxu1  ;;  %v8606_v25 = vadd.f32 %v2691_v13, %v2499_v30  ;;  %v2501_v12 = vadd.f32 %v2500_v51, %v8461_v2  ;;  %v9693_v30 = vld [vmem:[#allocation2_spill] sm:$0xff] }
 0x23e   :  { %v2502_v41 = vpop.f32.mrf.mxu0 }
 0x23f   :  { %9687 = vst [vmem:[#allocation75_spill] sm:$0xff] %v8606_v25  ;;  %v2695_v60 = vpop.f32.mrf.mxu1  ;;  %v8609_v24 = vadd.f32 %v2693_v26, %v2501_v12  ;;  %v2503_v52 = vadd.f32 %v2502_v41, %v8456_v43 }
 0x240   :  { %v8612_v0 = vpop.f32.mrf.mxu0 }
 0x241   :  { %9688 = vst [vmem:[#allocation76_spill] sm:$0xff] %v8609_v24  ;;  %9689 = vst [vmem:[#allocation10_spill] sm:$0xff] %v8612_v0  ;;  %v8614_v36 = vpop.f32.mrf.mxu1  ;;  %v8616_v62 = vadd.f32 %v2695_v60, %v2503_v52 }
 0x242   :  { %9690 = vst [vmem:[#allocation11_spill] sm:$0xff] %v8614_v36  ;;  %v2508_v34 = vpop.f32.mrf.mxu0  ;;  %3787 = vmatmul.mubr.bf16.vlgmr.msra.gmra.mxu0 %v9692_v58  ;;  %v9699_v36 = vld [vmem:[#allocation62_spill] sm:$0xff] }
 0x243   :  { %9691 = vst [vmem:[#allocation77_spill] sm:$0xff] %v8616_v62  ;;  %v2701_v11 = vpop.f32.mrf.mxu1  ;;  %v2509_v13 = vadd.f32 %v2508_v34, %v8456_v43  ;;  %3796 = vmatprep.mubr.bf16.mxu0 %v9693_v30 }
 0x244   :  { %v2510_v51 = vpop.f32.mrf.mxu0 }
 0x245   :  { %v2703_v25 = vpop.f32.mrf.mxu1  ;;  %v8621_v12 = vadd.f32 %v2701_v11, %v2509_v13  ;;  %v2511_v41 = vadd.f32 %v2510_v51, %v8461_v2  ;;  %v9700_v13 = vld [vmem:[#allocation63_spill] sm:$0xff] }
 0x246   :  { %v2512_v26 = vpop.f32.mrf.mxu0 }
 0x247   :  { %9694 = vst [vmem:[#allocation12_spill] sm:$0xff] %v8621_v12  ;;  %v2705_v24 = vpop.f32.mrf.mxu1  ;;  %v8624_v0 = vadd.f32 %v2703_v25, %v2511_v41  ;;  %v2513_v52 = vadd.f32 %v2512_v26, %v8456_v43 }
 0x248   :  { %v8627_v60 = vpop.f32.mrf.mxu0 }
 0x249   :  { %9695 = vst [vmem:[#allocation13_spill] sm:$0xff] %v8624_v0  ;;  %9696 = vst [vmem:[#allocation80_spill] sm:$0xff] %v8627_v60  ;;  %v8629_v62 = vpop.f32.mrf.mxu1  ;;  %v8631_v58 = vadd.f32 %v2705_v24, %v2513_v52 }
 0x24a   :  { %9697 = vst [vmem:[#allocation82_spill] sm:$0xff] %v8629_v62  ;;  %v2518_v34 = vpop.f32.mrf.mxu0  ;;  %3797 = vmatmul.mubr.bf16.gmra.mxu0 %v9699_v36  ;;  %v9704_v62 = vld [vmem:[#allocation3_spill] sm:$0xff] }
 0x24b   :  { %9698 = vst [vmem:[#allocation83_spill] sm:$0xff] %v8631_v58  ;;  %v2711_v30 = vpop.f32.mrf.mxu1  ;;  %v2519_v11 = vadd.f32 %v2518_v34, %v8456_v43  ;;  %3806 = vmatprep.mubr.bf16.mxu0 %v9700_v13 }
 0x24c   :  { %v2520_v51 = vpop.f32.mrf.mxu0 }
 0x24d   :  { %v2713_v12 = vpop.f32.mrf.mxu1  ;;  %v8636_v25 = vadd.f32 %v2711_v30, %v2519_v11  ;;  %v2521_v41 = vadd.f32 %v2520_v51, %v8461_v2 }
 0x24e   :  { %v2522_v26 = vpop.f32.mrf.mxu0 }
 0x24f   :  { %9701 = vst [vmem:[#allocation14_spill] sm:$0xff] %v8636_v25  ;;  %v2715_v0 = vpop.f32.mrf.mxu1  ;;  %v8639_v60 = vadd.f32 %v2713_v12, %v2521_v41  ;;  %v2523_v24 = vadd.f32 %v2522_v26, %v8456_v43 }
 0x250   :  { %v8642_v52 = vpop.f32.mrf.mxu0 }
 0x251   :  { %9702 = vst [vmem:[#allocation15_spill] sm:$0xff] %v8639_v60  ;;  %v8644_v58 = vpop.f32.mrf.mxu1  ;;  %v8646_v36 = vadd.f32 %v2715_v0, %v2523_v24 }
 0x252   :  { %v2528_v34 = vpop.f32.mrf.mxu0  ;;  %3807 = vmatmul.mubr.bf16.gmra.mxu0 %v9704_v62 }
 0x253   :  { %9703 = vst [vmem:[#allocation84_spill] sm:$0xff] %v8646_v36  ;;  %v2721_v13 = vpop.f32.mrf.mxu1  ;;  %v2529_v30 = vadd.f32 %v2528_v34, %v8456_v43  ;;  %3816 = vmatprep.mubr.bf16.mxu0 %v8137_v7 }
 0x254   :  { %v2530_v11 = vpop.f32.mrf.mxu0 }
 0x255   :  { %v2723_v51 = vpop.f32.mrf.mxu1  ;;  %v8651_v12 = vadd.f32 %v2721_v13, %v2529_v30  ;;  %v2531_v41 = vadd.f32 %v2530_v11, %v8461_v2 }
 0x256   :  { %v2532_v26 = vpop.f32.mrf.mxu0 }
 0x257   :  { %9705 = vst [vmem:[#allocation16_spill] sm:$0xff] %v8651_v12  ;;  %v2725_v60 = vpop.f32.mrf.mxu1  ;;  %v8654_v25 = vadd.f32 %v2723_v51, %v2531_v41  ;;  %v2533_v0 = vadd.f32 %v2532_v26, %v8456_v43 }
 0x258   :  { %v8657_v24 = vpop.f32.mrf.mxu0 }
 0x259   :  { %9706 = vst [vmem:[#allocation17_spill] sm:$0xff] %v8654_v25  ;;  %v8659_v36 = vpop.f32.mrf.mxu1  ;;  %v8661_v62 = vadd.f32 %v2725_v60, %v2533_v0 }
 0x25a   :  { %v2538_v34 = vpop.f32.mrf.mxu0  ;;  %3817 = vmatmul.mubr.bf16.gmra.mxu0 %v8133_v16 }
 0x25b   :  { %9707 = vst [vmem:[#allocation87_spill] sm:$0xff] %v8661_v62  ;;  %v2731_v7 = vpop.f32.mrf.mxu1  ;;  %v2539_v13 = vadd.f32 %v2538_v34, %v8456_v43  ;;  %3826 = vmatprep.mubr.bf16.mxu0 %v8149_v56 }
 0x25c   :  { %v2540_v30 = vpop.f32.mrf.mxu0 }
 0x25d   :  { %v2733_v11 = vpop.f32.mrf.mxu1  ;;  %v8666_v51 = vadd.f32 %v2731_v7, %v2539_v13  ;;  %v2541_v41 = vadd.f32 %v2540_v30, %v8461_v2 }
 0x25e   :  { %v2542_v26 = vpop.f32.mrf.mxu0 }
 0x25f   :  { %v2735_v25 = vpop.f32.mrf.mxu1  ;;  %v8669_v12 = vadd.f32 %v2733_v11, %v2541_v41  ;;  %v2543_v60 = vadd.f32 %v2542_v26, %v8456_v43 }
 0x260   :  { %v8672_v0 = vpop.f32.mrf.mxu0 }
 0x261   :  { %9708 = vst [vmem:[#allocation89_spill] sm:$0xff] %v8669_v12  ;;  %v8674_v62 = vpop.f32.mrf.mxu1  ;;  %v8676_v16 = vadd.f32 %v2735_v25, %v2543_v60  ;;  %v6119_v25 = vld [vmem:[%s9377_s5 + $0x78] sm:$0xff]  }
 0x262   :  { %v2548_v34 = vpop.f32.mrf.mxu0  ;;  %3827 = vmatmul.mubr.bf16.gmra.mxu0 %v8145_v55  ;;  %5484 = vmatprep.subr.bf16.mxu0 %v6119_v25 }
 0x263   :  { %9709 = vst [vmem:[#allocation90_spill] sm:$0xff] %v8676_v16  ;;  %v2741_v56 = vpop.f32.mrf.mxu1  ;;  %v2549_v7 = vadd.f32 %v2548_v34, %v8456_v43  ;;  %3836 = vmatprep.mubr.bf16.mxu0 %v8161_v37  ;;  %v6120_v37 = vld [vmem:[%s9377_s5 + $0x38] sm:$0xff]  }
 0x264   :  { %v2550_v13 = vpop.f32.mrf.mxu0  ;;  %5485 = vmatpush3.bf16.msra.mxu0 %v6120_v37 }
 0x265   :  { %v2743_v30 = vpop.f32.mrf.mxu1  ;;  %v8681_v11 = vadd.f32 %v2741_v56, %v2549_v7  ;;  %v2551_v41 = vadd.f32 %v2550_v13, %v8461_v2 }
 0x266   :  { %v2552_v26 = vpop.f32.mrf.mxu0 }
 0x267   :  { %9710 = vst [vmem:[#allocation18_spill] sm:$0xff] %v8681_v11  ;;  %v2745_v12 = vpop.f32.mrf.mxu1  ;;  %v8687_v60 = vadd.f32 %v2743_v30, %v2551_v41  ;;  %v2553_v55 = vadd.f32 %v2552_v26, %v8456_v43 }
 0x268   :  { %v8693_v34 = vpop.f32.mrf.mxu0 }
 0x269   :  { %9711 = vst [vmem:[#allocation19_spill] sm:$0xff] %v8687_v60  ;;  %9712 = vst [vmem:[#allocation20_spill] sm:$0xff] %v8693_v34  ;;  %v8695_v56 = vpop.f32.mrf.mxu1  ;;  %v8697_v7 = vadd.f32 %v2745_v12, %v2553_v55 }
 0x26a   :  { %9713 = vst [vmem:[#allocation21_spill] sm:$0xff] %v8695_v56  ;;  %v2558_v13 = vpop.f32.mrf.mxu0  ;;  %3837 = vmatmul.mubr.bf16.gmra.mxu0 %v8157_v63 }
 0x26b   :  { %v2751_v11 = vpop.f32.mrf.mxu1  ;;  %v2559_v30 = vadd.f32 %v2558_v13, %v8456_v43  ;;  %3846 = vmatprep.mubr.bf16.mxu0 %v8173_v32 }
 0x26c   :  { %v2560_v41 = vpop.f32.mrf.mxu0 }
 0x26d   :  { %v2753_v26 = vpop.f32.mrf.mxu1  ;;  %v8702_v60 = vadd.f32 %v2751_v11, %v2559_v30  ;;  %v2561_v34 = vadd.f32 %v2560_v41, %v8461_v2 }
 0x26e   :  { %v2562_v16 = vpop.f32.mrf.mxu0 }
 0x26f   :  { %v2755_v56 = vpop.f32.mrf.mxu1  ;;  %v8705_v25 = vadd.f32 %v2753_v26, %v2561_v34  ;;  %v2563_v12 = vadd.f32 %v2562_v16, %v8456_v43  ;;  %v6121_v26 = vld [vmem:[%s9377_s5 + $0x70] sm:$0xff]  }
 0x270   :  { %v8708_v55 = vpop.f32.mrf.mxu0  ;;  %5486 = vmatprep.subr.bf16.mxu0 %v6121_v26 }
 0x271   :  { %v8710_v37 = vpop.f32.mrf.mxu1  ;;  %v8712_v63 = vadd.f32 %v2755_v56, %v2563_v12  ;;  %v6122_v56 = vld [vmem:[%s9377_s5 + $0x30] sm:$0xff]  }
 0x272   :  { %9714 = vst [vmem:[#allocation94_spill] sm:$0xff] %v8710_v37  ;;  %v2568_v13 = vpop.f32.mrf.mxu0  ;;  %3847 = vmatmul.mubr.bf16.gmra.mxu0 %v8169_v44 }
 0x273   :  { %9715 = vst [vmem:[#allocation22_spill] sm:$0xff] %v8712_v63  ;;  %v2761_v32 = vpop.f32.mrf.mxu1  ;;  %v2569_v11 = vadd.f32 %v2568_v13, %v8456_v43  ;;  %3856 = vmatprep.mubr.bf16.mxu0 %v8210_v8  ;;  %5487 = vmatpush3.bf16.msra.mxu0 %v6122_v56 }
 0x274   :  { %v2570_v30 = vpop.f32.mrf.mxu0 }
 0x275   :  { %v2763_v41 = vpop.f32.mrf.mxu1  ;;  %v8717_v34 = vadd.f32 %v2761_v32, %v2569_v11  ;;  %v2571_v16 = vadd.f32 %v2570_v30, %v8461_v2 }
 0x276   :  { %v2572_v12 = vpop.f32.mrf.mxu0 }
 0x277   :  { %9716 = vst [vmem:[#allocation23_spill] sm:$0xff] %v8717_v34  ;;  %v2765_v44 = vpop.f32.mrf.mxu1  ;;  %v8726_v63 = vadd.f32 %v2763_v41, %v2571_v16  ;;  %v2573_v8 = vadd.f32 %v2572_v12, %v8456_v43 }
 0x278   :  { %v8729_v13 = vpop.f32.mrf.mxu0 }
 0x279   :  { %9717 = vst [vmem:[#allocation24_spill] sm:$0xff] %v8726_v63  ;;  %9718 = vst [vmem:[#allocation25_spill] sm:$0xff] %v8729_v13  ;;  %v8731_v32 = vpop.f32.mrf.mxu1  ;;  %v8733_v11 = vadd.f32 %v2765_v44, %v2573_v8 }
 0x27a   :  { %9719 = vst [vmem:[#allocation26_spill] sm:$0xff] %v8731_v32  ;;  %v2578_v30 = vpop.f32.mrf.mxu0  ;;  %3857 = vmatmul.mubr.bf16.gmra.mxu0 %v8200_v38 }
 0x27b   :  { %9720 = vst [vmem:[#allocation27_spill] sm:$0xff] %v8733_v11  ;;  %v2771_v34 = vpop.f32.mrf.mxu1  ;;  %v2579_v37 = vadd.f32 %v2578_v30, %v8456_v43  ;;  %3866 = vmatprep.mubr.bf16.mxu0 %v8247_v9 }
 0x27c   :  { %v2580_v41 = vpop.f32.mrf.mxu0 }
 0x27d   :  { %v2773_v16 = vpop.f32.mrf.mxu1  ;;  %v8738_v63 = vadd.f32 %v2771_v34, %v2579_v37  ;;  %v2581_v26 = vadd.f32 %v2580_v41, %v8461_v2 }
 0x27e   :  { %v2582_v12 = vpop.f32.mrf.mxu0 }
 0x27f   :  { %9721 = vst [vmem:[#allocation28_spill] sm:$0xff] %v8738_v63  ;;  %v2775_v13 = vpop.f32.mrf.mxu1  ;;  %v8741_v32 = vadd.f32 %v2773_v16, %v2581_v26  ;;  %v2583_v56 = vadd.f32 %v2582_v12, %v8456_v43  ;;  %v6123_v43 = vld [vmem:[%s9377_s5 + $0x68] sm:$0xff]  }
 0x280   :  { %v8744_v44 = vpop.f32.mrf.mxu0  ;;  %5488 = vmatprep.subr.bf16.mxu0 %v6123_v43 }
 0x281   :  { %9722 = vst [vmem:[#allocation29_spill] sm:$0xff] %v8741_v32  ;;  %9723 = vst [vmem:[#allocation30_spill] sm:$0xff] %v8744_v44  ;;  %v8746_v8 = vpop.f32.mrf.mxu1  ;;  %v8748_v38 = vadd.f32 %v2775_v13, %v2583_v56  ;;  %v6124_v13 = vld [vmem:[%s9377_s5 + $0x28] sm:$0xff]  }
 0x282   :  { %9724 = vst [vmem:[#allocation31_spill] sm:$0xff] %v8746_v8  ;;  %v2814_v30 = vpop.f32.mrf.mxu0  ;;  %3867 = vmatmul.mubr.bf16.gmra.mxu0 %v8237_v23 }
 0x283   :  { %9725 = vst [vmem:[#allocation32_spill] sm:$0xff] %v8748_v38  ;;  %v3007_v9 = vpop.f32.mrf.mxu1  ;;  %v2815_v37 = vadd.f32 %v2814_v30, %v8471_v57  ;;  %3876 = vmatprep.mubr.bf16.mxu0 %v8284_v46  ;;  %5489 = vmatpush3.bf16.msra.mxu0 %v6124_v13 }
 0x284   :  { %v2816_v34 = vpop.f32.mrf.mxu0 }
 0x285   :  { %v3009_v41 = vpop.f32.mrf.mxu1  ;;  %v2817_v16 = vadd.f32 %v2816_v34, %v8474_v15  ;;  %v3008_v56 = vadd.f32 %v3007_v9, %v2815_v37 }
 0x286   :  { %v2818_v26 = vpop.f32.mrf.mxu0 }
 0x287   :  { %v3011_v12 = vpop.f32.mrf.mxu1  ;;  %v2819_v23 = vadd.f32 %v2818_v26, %v8485_v42  ;;  %v3010_v30 = vadd.f32 %v3009_v41, %v2817_v16  ;;  %v3168_v32 = vmax.f32 %v3008_v56, 0.0 }
 0x288   :  { %v2820_v57 = vpop.f32.mrf.mxu0 }
 0x289   :  { %v3013_v46 = vpop.f32.mrf.mxu1  ;;  %v3012_v38 = vadd.f32 %v3011_v12, %v2819_v23  ;;  %v2821_v15 = vadd.f32 %v2820_v57, %v8491_v22  ;;  %v3169_v37 = vmax.f32 %v3010_v30, 0.0 }
 0x28a   :  { %v2824_v34 = vpop.f32.mrf.mxu0  ;;  %3877 = vmatmul.mubr.bf16.gmra.mxu0 %v8274_v17 }
 0x28b   :  { %v3017_v8 = vpop.f32.mrf.mxu1  ;;  %v3172_v63 = vmax.f32 %v3012_v38, 0.0  ;;  %v3014_v44 = vadd.f32 %v3013_v46, %v2821_v15  ;;  %v2825_v11 = vadd.f32 %v2824_v34, %v8499_v61  ;;  %3886 = vmatprep.mubr.bf16.mxu0 %v8321_v10  ;;  %v6125_v10 = vld [vmem:[%s9377_s5 + $0x60] sm:$0xff]  }
 0x28c   :  { %v2826_v42 = vpop.f32.mrf.mxu0  ;;  %5490 = vmatprep.subr.bf16.mxu0 %v6125_v10 }
 0x28d   :  { %v3019_v9 = vpop.f32.mrf.mxu1  ;;  %v3296_v43 = vpack.c.bf16 %v3172_v63, %v3168_v32  ;;  %v3173_v13 = vmax.f32 %v3014_v44, 0.0  ;;  %v2827_v41 = vadd.f32 %v2826_v42, %v8505_v14  ;;  %v3018_v26 = vadd.f32 %v3017_v8, %v2825_v11  ;;  %v6126_v14 = vld [vmem:[%s9377_s5 + $0x20] sm:$0xff]  }
 0x28e   :  { %v2828_v16 = vpop.f32.mrf.mxu0  ;;  %5491 = vmatpush3.bf16.msra.mxu0 %v6126_v14 }
 0x28f   :  { %v3021_v22 = vpop.f32.mrf.mxu1  ;;  %v2829_v12 = vadd.f32 %v2828_v16, %v8508_v6  ;;  %v3297_v17 = vpack.c.bf16 %v3173_v13, %v3169_v37  ;;  %v3020_v23 = vadd.f32 %v3019_v9, %v2827_v41  ;;  %v3176_v6 = vmax.f32 %v3018_v26, 0.0 }
 0x290   :  { %v2830_v56 = vpop.f32.mrf.mxu0 }
 0x291   :  { %v3023_v38 = vpop.f32.mrf.mxu1  ;;  %v3022_v57 = vadd.f32 %v3021_v22, %v2829_v12  ;;  %v2831_v61 = vadd.f32 %v2830_v56, %v8514_v39  ;;  %3979 = vmatprep.mubr.bf16.mxu1 %v3297_v17  ;;  %v3177_v30 = vmax.f32 %v3020_v23, 0.0 }
 0x292   :  { %v2834_v63 = vpop.f32.mrf.mxu0  ;;  %3887 = vmatmul.mubr.bf16.gmra.mxu0 %v8311_v48  ;;  %3980 = vmatmul.mubr.bf16.vlgmr.msra.gmra.mxu1 %v3296_v43 }
 0x293   :  { %v3027_v32 = vpop.f32.mrf.mxu1  ;;  %v3180_v11 = vmax.f32 %v3022_v57, 0.0  ;;  %v3024_v44 = vadd.f32 %v3023_v38, %v2831_v61  ;;  %v2835_v8 = vadd.f32 %v2834_v63, %v8519_v20  ;;  %3896 = vmatprep.mubr.bf16.mxu0 %v8358_v53 }
 0x294   :  { %v2836_v39 = vpop.f32.mrf.mxu0 }
 0x295   :  { %v3029_v46 = vpop.f32.mrf.mxu1  ;;  %v3300_v15 = vpack.c.bf16 %v3180_v11, %v3176_v6  ;;  %v3181_v34 = vmax.f32 %v3024_v44, 0.0  ;;  %v2837_v42 = vadd.f32 %v2836_v39, %v8522_v19  ;;  %v3028_v48 = vadd.f32 %v3027_v32, %v2835_v8 }
 0x296   :  { %v2838_v9 = vpop.f32.mrf.mxu0 }
 0x297   :  { %v3031_v37 = vpop.f32.mrf.mxu1  ;;  %v2839_v43 = vadd.f32 %v2838_v9, %v8525_v28  ;;  %v3301_v13 = vpack.c.bf16 %v3181_v34, %v3177_v30  ;;  %v3030_v20 = vadd.f32 %v3029_v46, %v2837_v42  ;;  %v3184_v17 = vmax.f32 %v3028_v48, 0.0 }
 0x298   :  { %v2840_v41 = vpop.f32.mrf.mxu0  ;;  %v2475_v46 = vadd.f32 %v8559_v3, %v8461_v2 }
 0x299   :  { %v3033_v16 = vpop.f32.mrf.mxu1  ;;  %v3032_v22 = vadd.f32 %v3031_v37, %v2839_v43  ;;  %v2841_v53 = vadd.f32 %v2840_v41, %v8531_v1  ;;  %3989 = vmatprep.mubr.bf16.mxu1 %v3301_v13  ;;  %v3185_v57 = vmax.f32 %v3030_v20, 0.0 }
 0x29a   :  { %v2844_v26 = vpop.f32.mrf.mxu0  ;;  %3897 = vmatmul.mubr.bf16.gmra.mxu0 %v8348_v54  ;;  %3990 = vmatmul.mubr.bf16.gmra.mxu1 %v3300_v15 }
 0x29b   :  { %v3037_v12 = vpop.f32.mrf.mxu1  ;;  %v3188_v19 = vmax.f32 %v3032_v22, 0.0  ;;  %v3034_v56 = vadd.f32 %v3033_v16, %v2841_v53  ;;  %v2845_v38 = vadd.f32 %v2844_v26, %v8536_v35  ;;  %3906 = vmatprep.mubr.bf16.mxu0 %v8392_v27  ;;  %v6127_v27 = vld [vmem:[%s9377_s5 + $0x58] sm:$0xff]  }
 0x29c   :  { %v2846_v28 = vpop.f32.mrf.mxu0  ;;  %5492 = vmatprep.subr.bf16.mxu0 %v6127_v27 }
 0x29d   :  { %v3039_v23 = vpop.f32.mrf.mxu1  ;;  %v3304_v61 = vpack.c.bf16 %v3188_v19, %v3184_v17  ;;  %v3189_v10 = vmax.f32 %v3034_v56, 0.0  ;;  %v2847_v1 = vadd.f32 %v2846_v28, %v8539_v18  ;;  %v3038_v32 = vadd.f32 %v3037_v12, %v2845_v38  ;;  %v6128_v18 = vld [vmem:[%s9377_s5 + $0x18] sm:$0xff]  }
 0x29e   :  { %v2848_v14 = vpop.f32.mrf.mxu0  ;;  %5493 = vmatpush3.bf16.msra.mxu0 %v6128_v18  ;;  %v2485_v19 = vadd.f32 %v8577_v5, %v8461_v2  ;;  %v6129_v18 = vld [vmem:[%s9377_s5 + $0x50] sm:$0xff]  }
 0x29f   :  { %v3041_v63 = vpop.f32.mrf.mxu1  ;;  %v2849_v54 = vadd.f32 %v2848_v14, %v8542_v40  ;;  %v3305_v6 = vpack.c.bf16 %v3189_v10, %v3185_v57  ;;  %v3040_v8 = vadd.f32 %v3039_v23, %v2847_v1  ;;  %v3192_v15 = vmax.f32 %v3038_v32, 0.0  ;;  %v9726_v14 = vld [vmem:[#allocation68_spill] sm:$0xff]  ;;  %5494 = vmatprep.subr.bf16.mxu0 %v6129_v18  ;;  %v9740_v18 = vld [vmem:[#allocation11_spill] sm:$0xff] }
 0x2a0   :  { %v2850_v11 = vpop.f32.mrf.mxu0 }
 0x2a1   :  { %v3043_v44 = vpop.f32.mrf.mxu1  ;;  %v3042_v39 = vadd.f32 %v3041_v63, %v2849_v54  ;;  %v2851_v35 = vadd.f32 %v2850_v11, %v8548_v47  ;;  %3999 = vmatprep.mubr.bf16.mxu1 %v3305_v6  ;;  %v3193_v48 = vmax.f32 %v3040_v8, 0.0  ;;  %v9727_v54 = vld [vmem:[#allocation69_spill] sm:$0xff]  ;;  %v9728_v11 = vld [vmem:[#allocation6_spill] sm:$0xff] }
 0x2a2   :  { %v2854_v40 = vpop.f32.mrf.mxu0  ;;  %3907 = vmatmul.mubr.bf16.gmra.mxu0 %v8382_v50  ;;  %4000 = vmatmul.mubr.bf16.gmra.mxu1 %v3304_v61  ;;  %v2668_v50 = vadd.f32 %v8561_v21, %v2475_v46  ;;  %v2678_v6 = vadd.f32 %v9727_v54, %v2485_v19  ;;  %v6130_v46 = vld [vmem:[%s9377_s5 + $0x10] sm:$0xff]   ;;  %v9735_v19 = vld [vmem:[#allocation73_spill] sm:$0xff]  ;;  %v9738_v54 = vld [vmem:[#allocation75_spill] sm:$0xff] }
 0x2a3   :  { %v3047_v30 = vpop.f32.mrf.mxu1  ;;  %v3196_v34 = vmax.f32 %v3042_v39, 0.0  ;;  %v3044_v47 = vadd.f32 %v3043_v44, %v2851_v35  ;;  %v2855_v42 = vadd.f32 %v2854_v40, %v8553_v59  ;;  %3916 = vmatprep.mubr.bf16.mxu0 %v8423_v29  ;;  %v9729_v40 = vld [vmem:[#allocation8_spill] sm:$0xff]  ;;  %5495 = vmatpush3.bf16.msra.mxu0 %v6130_v46 }
 0x2a4   :  { %v2856_v9 = vpop.f32.mrf.mxu0 }
 0x2a5   :  { %v3049_v37 = vpop.f32.mrf.mxu1  ;;  %v3308_v43 = vpack.c.bf16 %v3196_v34, %v3192_v15  ;;  %v3197_v13 = vmax.f32 %v3044_v47, 0.0  ;;  %v2857_v3 = vadd.f32 %v2856_v9, %v8556_v33  ;;  %v3048_v20 = vadd.f32 %v3047_v30, %v2855_v42  ;;  %v9730_v47 = vld [vmem:[#allocation4_spill] sm:$0xff] }
 0x2a6   :  { %v2858_v41 = vpop.f32.mrf.mxu0  ;;  %v2495_v30 = vadd.f32 %v9729_v40, %v8461_v2 }
 0x2a7   :  { %v3051_v16 = vpop.f32.mrf.mxu1  ;;  %v2859_v22 = vadd.f32 %v2858_v41, %v8563_v45  ;;  %v3309_v53 = vpack.c.bf16 %v3197_v13, %v3193_v48  ;;  %v3050_v29 = vadd.f32 %v3049_v37, %v2857_v3  ;;  %v3200_v33 = vmax.f32 %v3048_v20, 0.0  ;;  %v9731_v48 = vld [vmem:[#allocation7_spill] sm:$0xff]  ;;  %v9732_v13 = vld [vmem:[#allocation66_spill] sm:$0xff] }
 0x2a8   :  { %v2860_v59 = vpop.f32.mrf.mxu0 }
 0x2a9   :  { %v3053_v26 = vpop.f32.mrf.mxu1  ;;  %v3052_v12 = vadd.f32 %v3051_v16, %v2859_v22  ;;  %v2861_v17 = vadd.f32 %v2860_v59, %v2668_v50  ;;  %4009 = vmatprep.mubr.bf16.mxu1 %v3309_v53  ;;  %v3201_v61 = vmax.f32 %v3050_v29, 0.0  ;;  %v9733_v22 = vld [vmem:[#allocation70_spill] sm:$0xff]  ;;  %v9734_v29 = vld [vmem:[#allocation9_spill] sm:$0xff] }
 0x2aa   :  { %v2864_v56 = vpop.f32.mrf.mxu0  ;;  %3917 = vmatmul.mubr.bf16.gmra.mxu0 %v8413_v31  ;;  %4010 = vmatmul.mubr.bf16.gmra.mxu1 %v3308_v43 }
 0x2ab   :  { %v3057_v38 = vpop.f32.mrf.mxu1  ;;  %v3204_v21 = vmax.f32 %v3052_v12, 0.0  ;;  %v3054_v28 = vadd.f32 %v3053_v26, %v2861_v17  ;;  %v2865_v45 = vadd.f32 %v2864_v56, %v8571_v49  ;;  %3926 = vmatprep.mubr.bf16.mxu0 %v8458_v4  ;;  %v2688_v12 = vadd.f32 %v9734_v29, %v2495_v30  ;;  %v9741_v30 = vld [vmem:[#allocation77_spill] sm:$0xff] }
 0x2ac   :  { %v2866_v23 = vpop.f32.mrf.mxu0 }
 0x2ad   :  { %v3059_v57 = vpop.f32.mrf.mxu1  ;;  %v3312_v10 = vpack.c.bf16 %v3204_v21, %v3200_v33  ;;  %v3205_v1 = vmax.f32 %v3054_v28, 0.0  ;;  %v2867_v63 = vadd.f32 %v2866_v23, %v9726_v14  ;;  %v3058_v31 = vadd.f32 %v3057_v38, %v2865_v45  ;;  %v9737_v14 = vld [vmem:[#allocation5_spill] sm:$0xff] }
 0x2ae   :  { %v2868_v5 = vpop.f32.mrf.mxu0 }
 0x2af   :  { %v3061_v32 = vpop.f32.mrf.mxu1  ;;  %v2869_v44 = vadd.f32 %v2868_v5, %v9728_v11  ;;  %v3313_v8 = vpack.c.bf16 %v3205_v1, %v3201_v61  ;;  %v3060_v49 = vadd.f32 %v3059_v57, %v2867_v63  ;;  %v3208_v42 = vmax.f32 %v3058_v31, 0.0  ;;  %v9736_v57 = vld [vmem:[#allocation10_spill] sm:$0xff] }
 0x2b0   :  { %v2870_v39 = vpop.f32.mrf.mxu0  ;;  %v2505_v61 = vadd.f32 %v9736_v57, %v8461_v2 }
 0x2b1   :  { %v3063_v35 = vpop.f32.mrf.mxu1  ;;  %v3062_v27 = vadd.f32 %v3061_v32, %v2869_v44  ;;  %v2871_v4 = vadd.f32 %v2870_v39, %v2678_v6  ;;  %4019 = vmatprep.mubr.bf16.mxu1 %v3313_v8  ;;  %v3209_v16 = vmax.f32 %v3060_v49, 0.0 }
 0x2b2   :  { %v2874_v15 = vpop.f32.mrf.mxu0  ;;  %3927 = vmatmul.mubr.bf16.gmra.mxu0 %v9730_v47  ;;  %4020 = vmatmul.mubr.bf16.gmra.mxu1 %v3312_v10  ;;  %v2698_v46 = vadd.f32 %v9740_v18, %v2505_v61  ;;  %v9746_v61 = vld [vmem:[#allocation83_spill] sm:$0xff] }
 0x2b3   :  { %v3067_v34 = vpop.f32.mrf.mxu1  ;;  %v3212_v9 = vmax.f32 %v3062_v27, 0.0  ;;  %v3064_v37 = vadd.f32 %v3063_v35, %v2871_v4  ;;  %v2875_v43 = vadd.f32 %v2874_v15, %v9731_v48  ;;  %3936 = vmatprep.mubr.bf16.mxu0 %v9732_v13  ;;  %v9739_v35 = vld [vmem:[#allocation76_spill] sm:$0xff]  ;;  %v6132_v13 = vld [vmem:[%s9377_s5 + $0x8] sm:$0xff]  }
 0x2b4   :  { %v2876_v3 = vpop.f32.mrf.mxu0 }
 0x2b5   :  { %v3069_v41 = vpop.f32.mrf.mxu1  ;;  %v3316_v50 = vpack.c.bf16 %v3212_v9, %v3208_v42  ;;  %v3213_v20 = vmax.f32 %v3064_v37, 0.0  ;;  %v2877_v53 = vadd.f32 %v2876_v3, %v9733_v22  ;;  %v3068_v17 = vadd.f32 %v3067_v34, %v2875_v43  ;;  %v6131_v43 = vld [vmem:[%s9377_s5 + $0x48] sm:$0xff]   ;;  %v9742_v3 = vld [vmem:[#allocation80_spill] sm:$0xff] }
 0x2b6   :  { %v2878_v59 = vpop.f32.mrf.mxu0  ;;  %5496 = vmatprep.subr.bf16.mxu0 %v6131_v43 }
 0x2b7   :  { %v3071_v26 = vpop.f32.mrf.mxu1  ;;  %v2879_v56 = vadd.f32 %v2878_v59, %v9735_v19  ;;  %v3317_v38 = vpack.c.bf16 %v3213_v20, %v3209_v16  ;;  %v3070_v28 = vadd.f32 %v3069_v41, %v2877_v53  ;;  %v3216_v63 = vmax.f32 %v3068_v17, 0.0  ;;  %v9743_v59 = vld [vmem:[#allocation12_spill] sm:$0xff]  ;;  %5497 = vmatpush3.bf16.msra.mxu0 %v6132_v13 }
 0x2b8   :  { %v2880_v33 = vpop.f32.mrf.mxu0  ;;  %v2515_v41 = vadd.f32 %v9742_v3, %v8461_v2 }
 0x2b9   :  { %v3073_v21 = vpop.f32.mrf.mxu1  ;;  %v3072_v45 = vadd.f32 %v3071_v26, %v2879_v56  ;;  %v2881_v23 = vadd.f32 %v2880_v33, %v2688_v12  ;;  %4029 = vmatprep.mubr.bf16.mxu1 %v3317_v38  ;;  %v3217_v44 = vmax.f32 %v3070_v28, 0.0  ;;  %v9744_v38 = vld [vmem:[#allocation13_spill] sm:$0xff] }
 0x2ba   :  { %v2884_v10 = vpop.f32.mrf.mxu0  ;;  %3937 = vmatmul.mubr.bf16.gmra.mxu0 %v9737_v14  ;;  %4030 = vmatmul.mubr.bf16.gmra.mxu1 %v3316_v50 }
 0x2bb   :  { %v3077_v1 = vpop.f32.mrf.mxu1  ;;  %v3220_v5 = vmax.f32 %v3072_v45, 0.0  ;;  %v3074_v32 = vadd.f32 %v3073_v21, %v2881_v23  ;;  %v2885_v6 = vadd.f32 %v2884_v10, %v9738_v54  ;;  %v9745_v45 = vld [vmem:[#allocation82_spill] sm:$0xff] }
 0x2bc   :  { %v2886_v31 = vpop.f32.mrf.mxu0  ;;  %v2708_v23 = vadd.f32 %v9745_v45, %v2515_v41 }
 0x2bd   :  { %v3079_v11 = vpop.f32.mrf.mxu1  ;;  %v3320_v8 = vpack.c.bf16 %v3220_v5, %v3216_v63  ;;  %v3221_v39 = vmax.f32 %v3074_v32, 0.0  ;;  %v2887_v49 = vadd.f32 %v2886_v31, %v9739_v35  ;;  %v3078_v40 = vadd.f32 %v3077_v1, %v2885_v6  ;;  %v9747_v35 = vld [vmem:[#allocation14_spill] sm:$0xff] }
 0x2be   :  { %v2888_v27 = vpop.f32.mrf.mxu0  ;;  %v2525_v6 = vadd.f32 %v8642_v52, %v8461_v2 }
 0x2bf   :  { %v3081_v4 = vpop.f32.mrf.mxu1  ;;  %v2889_v15 = vadd.f32 %v2888_v27, %v9741_v30  ;;  %v3321_v34 = vpack.c.bf16 %v3221_v39, %v3217_v44  ;;  %v3080_v9 = vadd.f32 %v3079_v11, %v2887_v49  ;;  %v3224_v20 = vmax.f32 %v3078_v40, 0.0  ;;  %v9748_v30 = vld [vmem:[#allocation15_spill] sm:$0xff] }
 0x2c0   :  { %v2890_v47 = vpop.f32.mrf.mxu0 }
 0x2c1   :  { %v3083_v42 = vpop.f32.mrf.mxu1  ;;  %v3082_v37 = vadd.f32 %v3081_v4, %v2889_v15  ;;  %v2891_v48 = vadd.f32 %v2890_v47, %v2698_v46  ;;  %4039 = vmatprep.mubr.bf16.mxu1 %v3321_v34  ;;  %v3225_v17 = vmax.f32 %v3080_v9, 0.0  ;;  %v9749_v9 = vld [vmem:[#allocation84_spill] sm:$0xff] }
 0x2c2   :  { %v2894_v16 = vpop.f32.mrf.mxu0  ;;  %4040 = vmatmul.mubr.bf16.gmra.mxu1 %v3320_v8 }
 0x2c3   :  { %v3087_v50 = vpop.f32.mrf.mxu1  ;;  %v3228_v22 = vmax.f32 %v3082_v37, 0.0  ;;  %v3084_v53 = vadd.f32 %v3083_v42, %v2891_v48  ;;  %v2895_v26 = vadd.f32 %v2894_v16, %v9743_v59  ;;  %v2718_v42 = vadd.f32 %v8644_v58, %v2525_v6 }
 0x2c4   :  { %v2896_v29 = vpop.f32.mrf.mxu0  ;;  %v2535_v58 = vadd.f32 %v8657_v24, %v8461_v2 }
 0x2c5   :  { %v3089_v12 = vpop.f32.mrf.mxu1  ;;  %v3324_v19 = vpack.c.bf16 %v3228_v22, %v3224_v20  ;;  %v3229_v56 = vmax.f32 %v3084_v53, 0.0  ;;  %v2897_v33 = vadd.f32 %v2896_v29, %v9744_v38  ;;  %v3088_v57 = vadd.f32 %v3087_v50, %v2895_v26  ;;  %v6133_v50 = vld [vmem:[%s9377_s5 + $0x40] sm:$0xff]  }
 0x2c6   :  { %v2898_v21 = vpop.f32.mrf.mxu0  ;;  %v6134_v20 = vld [vmem:[%s9377_s5] sm:$0xff]   ;;  %5498 = vmatprep.subr.bf16.mxu0 %v6133_v50  ;;  %v2728_v24 = vadd.f32 %v8659_v36, %v2535_v58 }
 0x2c7   :  { %v3091_v28 = vpop.f32.mrf.mxu1  ;;  %v2899_v10 = vadd.f32 %v2898_v21, %v9746_v61  ;;  %v3325_v1 = vpack.c.bf16 %v3229_v56, %v3225_v17  ;;  %v3090_v5 = vadd.f32 %v3089_v12, %v2897_v33  ;;  %v3232_v44 = vmax.f32 %v3088_v57, 0.0  ;;  %v9750_v12 = vld [vmem:[#allocation16_spill] sm:$0xff]  ;;  %5499 = vmatpush3.bf16.msra.mxu0 %v6134_v20 }
 0x2c8   :  { %v2900_v14 = vpop.f32.mrf.mxu0 }
 0x2c9   :  { %v3093_v63 = vpop.f32.mrf.mxu1  ;;  %v3092_v32 = vadd.f32 %v3091_v28, %v2899_v10  ;;  %v2901_v54 = vadd.f32 %v2900_v14, %v2708_v23  ;;  %4049 = vmatprep.mubr.bf16.mxu1 %v3325_v1  ;;  %v3233_v18 = vmax.f32 %v3090_v5, 0.0  ;;  %v9751_v28 = vld [vmem:[#allocation17_spill] sm:$0xff]  ;;  %v9752_v10 = vld [vmem:[#allocation87_spill] sm:$0xff] }
 0x2ca   :  { %v2904_v31 = vpop.f32.mrf.mxu0  ;;  %4050 = vmatmul.mubr.bf16.gmra.mxu1 %v3324_v19 }
 0x2cb   :  { %v3097_v11 = vpop.f32.mrf.mxu1  ;;  %v3236_v8 = vmax.f32 %v3092_v32, 0.0  ;;  %v3094_v39 = vadd.f32 %v3093_v63, %v2901_v54  ;;  %v2905_v49 = vadd.f32 %v2904_v31, %v9747_v35  ;;  %v2545_v31 = vadd.f32 %v8672_v0, %v8461_v2 }
 0x2cc   :  { %v2906_v27 = vpop.f32.mrf.mxu0 }
 0x2cd   :  { %v3099_v4 = vpop.f32.mrf.mxu1  ;;  %v3328_v46 = vpack.c.bf16 %v3236_v8, %v3232_v44  ;;  %v3237_v40 = vmax.f32 %v3094_v39, 0.0  ;;  %v2907_v15 = vadd.f32 %v2906_v27, %v9748_v30  ;;  %v3098_v52 = vadd.f32 %v3097_v11, %v2905_v49 }
 0x2ce   :  { %v2908_v34 = vpop.f32.mrf.mxu0 }
 0x2cf   :  { %v3101_v47 = vpop.f32.mrf.mxu1  ;;  %v2909_v37 = vadd.f32 %v2908_v34, %v9749_v9  ;;  %v3329_v48 = vpack.c.bf16 %v3237_v40, %v3233_v18  ;;  %v3100_v3 = vadd.f32 %v3099_v4, %v2907_v15  ;;  %v3240_v59 = vmax.f32 %v3098_v52, 0.0  ;;  %v9753_v40 = vld [vmem:[#allocation89_spill] sm:$0xff] }
 0x2d0   :  { %v2910_v43 = vpop.f32.mrf.mxu0 }
 0x2d1   :  { %v3103_v13 = vpop.f32.mrf.mxu1  ;;  %v3102_v41 = vadd.f32 %v3101_v47, %v2909_v37  ;;  %v2911_v16 = vadd.f32 %v2910_v43, %v2718_v42  ;;  %4059 = vmatprep.mubr.bf16.mxu1 %v3329_v48  ;;  %v3241_v38 = vmax.f32 %v3100_v3, 0.0  ;;  %v2738_v47 = vadd.f32 %v8674_v62, %v2545_v31  ;;  %v9754_v42 = vld [vmem:[#allocation90_spill] sm:$0xff]  ;;  %v9755_v3 = vld [vmem:[#allocation20_spill] sm:$0xff] }
 0x2d2   :  { %v2914_v22 = vpop.f32.mrf.mxu0  ;;  %4060 = vmatmul.mubr.bf16.gmra.mxu1 %v3328_v46  ;;  %v9756_v62 = vld [vmem:[#allocation18_spill] sm:$0xff] }
 0x2d3   :  { %v3107_v53 = vpop.f32.mrf.mxu1  ;;  %v3244_v26 = vmax.f32 %v3102_v41, 0.0  ;;  %v3104_v29 = vadd.f32 %v3103_v13, %v2911_v16  ;;  %v2915_v17 = vadd.f32 %v2914_v22, %v9750_v12  ;;  %v2555_v41 = vadd.f32 %v9755_v3, %v8461_v2 }
 0x2d4   :  { %v2916_v19 = vpop.f32.mrf.mxu0 }
 0x2d5   :  { %v3109_v56 = vpop.f32.mrf.mxu1  ;;  %v3332_v33 = vpack.c.bf16 %v3244_v26, %v3240_v59  ;;  %v3245_v21 = vmax.f32 %v3104_v29, 0.0  ;;  %v2917_v45 = vadd.f32 %v2916_v19, %v9751_v28  ;;  %v3108_v61 = vadd.f32 %v3107_v53, %v2915_v17  ;;  %v9757_v19 = vld [vmem:[#allocation19_spill] sm:$0xff] }
 0x2d6   :  { %v2918_v23 = vpop.f32.mrf.mxu0 }
 0x2d7   :  { %v3111_v57 = vpop.f32.mrf.mxu1  ;;  %v2919_v1 = vadd.f32 %v2918_v23, %v9752_v10  ;;  %v3333_v14 = vpack.c.bf16 %v3245_v21, %v3241_v38  ;;  %v3110_v32 = vadd.f32 %v3109_v56, %v2917_v45  ;;  %v3248_v8 = vmax.f32 %v3108_v61, 0.0  ;;  %v9758_v21 = vld [vmem:[#allocation21_spill] sm:$0xff] }
 0x2d8   :  { %v2920_v63 = vpop.f32.mrf.mxu0  ;;  %v2748_v28 = vadd.f32 %v9758_v21, %v2555_v41 }
 0x2d9   :  { %v3113_v5 = vpop.f32.mrf.mxu1  ;;  %v3112_v54 = vadd.f32 %v3111_v57, %v2919_v1  ;;  %v2921_v6 = vadd.f32 %v2920_v63, %v2728_v24  ;;  %4069 = vmatprep.mubr.bf16.mxu1 %v3333_v14  ;;  %v3249_v4 = vmax.f32 %v3110_v32, 0.0  ;;  %v2565_v63 = vadd.f32 %v8708_v55, %v8461_v2 }
 0x2da   :  { %v2924_v11 = vpop.f32.mrf.mxu0  ;;  %4070 = vmatmul.mubr.bf16.gmra.mxu1 %v3332_v33 }
 0x2db   :  { %v3117_v44 = vpop.f32.mrf.mxu1  ;;  %v3252_v39 = vmax.f32 %v3112_v54, 0.0  ;;  %v3114_v35 = vadd.f32 %v3113_v5, %v2921_v6  ;;  %v2925_v36 = vadd.f32 %v2924_v11, %v8666_v51 }
 0x2dc   :  { %v2926_v49 = vpop.f32.mrf.mxu0 }
 0x2dd   :  { %v3119_v27 = vpop.f32.mrf.mxu1  ;;  %v3336_v18 = vpack.c.bf16 %v3252_v39, %v3248_v8  ;;  %v3253_v46 = vmax.f32 %v3114_v35, 0.0  ;;  %v2927_v30 = vadd.f32 %v2926_v49, %v9753_v40  ;;  %v3118_v0 = vadd.f32 %v3117_v44, %v2925_v36 }
 0x2de   :  { %v2928_v15 = vpop.f32.mrf.mxu0 }
 0x2df   :  { %v3121_v34 = vpop.f32.mrf.mxu1  ;;  %v2929_v52 = vadd.f32 %v2928_v15, %v9754_v42  ;;  %v3337_v9 = vpack.c.bf16 %v3253_v46, %v3249_v4  ;;  %v3120_v43 = vadd.f32 %v3119_v27, %v2927_v30  ;;  %v3256_v20 = vmax.f32 %v3118_v0, 0.0  ;;  %v9759_v4 = vld [vmem:[#allocation94_spill] sm:$0xff]  ;;  %v9761_v42 = vld [vmem:[#allocation25_spill] sm:$0xff] }
 0x2e0   :  { %v2930_v37 = vpop.f32.mrf.mxu0  ;;  %v9760_v46 = vld [vmem:[#allocation22_spill] sm:$0xff] }
 0x2e1   :  { %v3123_v48 = vpop.f32.mrf.mxu1  ;;  %v3122_v13 = vadd.f32 %v3121_v34, %v2929_v52  ;;  %v2931_v51 = vadd.f32 %v2930_v37, %v2738_v47  ;;  %4079 = vmatprep.mubr.bf16.mxu1 %v3337_v9  ;;  %v3257_v29 = vmax.f32 %v3120_v43, 0.0  ;;  %v2575_v52 = vadd.f32 %v9761_v42, %v8461_v2 }
 0x2e2   :  { %v2934_v16 = vpop.f32.mrf.mxu0  ;;  %4080 = vmatmul.mubr.bf16.gmra.mxu1 %v3336_v18  ;;  %v2758_v18 = vadd.f32 %v9759_v4, %v2565_v63 }
 0x2e3   :  { %v3127_v50 = vpop.f32.mrf.mxu1  ;;  %v3260_v58 = vmax.f32 %v3122_v13, 0.0  ;;  %v3124_v22 = vadd.f32 %v3123_v48, %v2931_v51  ;;  %v2935_v53 = vadd.f32 %v2934_v16, %v9756_v62  ;;  %v9762_v13 = vld [vmem:[#allocation23_spill] sm:$0xff] }
 0x2e4   :  { %v2936_v59 = vpop.f32.mrf.mxu0 }
 0x2e5   :  { %v3129_v26 = vpop.f32.mrf.mxu1  ;;  %v3340_v12 = vpack.c.bf16 %v3260_v58, %v3256_v20  ;;  %v3261_v17 = vmax.f32 %v3124_v22, 0.0  ;;  %v2937_v56 = vadd.f32 %v2936_v59, %v9757_v19  ;;  %v3128_v45 = vadd.f32 %v3127_v50, %v2935_v53  ;;  %v9763_v58 = vld [vmem:[#allocation24_spill] sm:$0xff]  ;;  %v9764_v59 = vld [vmem:[#allocation26_spill] sm:$0xff] }
 0x2e6   :  { %v2938_v38 = vpop.f32.mrf.mxu0 }
 0x2e7   :  { %v3131_v33 = vpop.f32.mrf.mxu1  ;;  %v2939_v23 = vadd.f32 %v2938_v38, %v8697_v7  ;;  %v3341_v57 = vpack.c.bf16 %v3261_v17, %v3257_v29  ;;  %v3130_v10 = vadd.f32 %v3129_v26, %v2937_v56  ;;  %v3264_v54 = vmax.f32 %v3128_v45, 0.0  ;;  %v9766_v45 = vld [vmem:[#allocation30_spill] sm:$0xff] }
 0x2e8   :  { %v2940_v24 = vpop.f32.mrf.mxu0  ;;  %v2768_v26 = vadd.f32 %v9764_v59, %v2575_v52 }
 0x2e9   :  { %v3133_v61 = vpop.f32.mrf.mxu1  ;;  %v3132_v1 = vadd.f32 %v3131_v33, %v2939_v23  ;;  %v2941_v14 = vadd.f32 %v2940_v24, %v2748_v28  ;;  %4089 = vmatprep.mubr.bf16.mxu1 %v3341_v57  ;;  %v3265_v8 = vmax.f32 %v3130_v10, 0.0  ;;  %v2585_v23 = vadd.f32 %v9766_v45, %v8461_v2 }
 0x2ea   :  { %v2944_v5 = vpop.f32.mrf.mxu0  ;;  %4090 = vmatmul.mubr.bf16.gmra.mxu1 %v3340_v12  ;;  %v9765_v12 = vld [vmem:[#allocation27_spill] sm:$0xff] }
 0x2eb   :  { %v3137_v32 = vpop.f32.mrf.mxu1  ;;  %v3268_v6 = vmax.f32 %v3132_v1, 0.0  ;;  %v3134_v31 = vadd.f32 %v3133_v61, %v2941_v14  ;;  %v2945_v11 = vadd.f32 %v2944_v5, %v8702_v60  ;;  %v9767_v14 = vld [vmem:[#allocation28_spill] sm:$0xff] }
 0x2ec   :  { %v2946_v44 = vpop.f32.mrf.mxu0 }
 0x2ed   :  { %v3139_v7 = vpop.f32.mrf.mxu1  ;;  %v3344_v39 = vpack.c.bf16 %v3268_v6, %v3264_v54  ;;  %v3269_v35 = vmax.f32 %v3134_v31, 0.0  ;;  %v2947_v36 = vadd.f32 %v2946_v44, %v8705_v25  ;;  %v3138_v55 = vadd.f32 %v3137_v32, %v2945_v11  ;;  %v9768_v11 = vld [vmem:[#allocation29_spill] sm:$0xff] }
 0x2ee   :  { %v2948_v49 = vpop.f32.mrf.mxu0 }
 0x2ef   :  { %v3141_v27 = vpop.f32.mrf.mxu1  ;;  %v2949_v40 = vadd.f32 %v2948_v49, %v9760_v46  ;;  %v3345_v30 = vpack.c.bf16 %v3269_v35, %v3265_v8  ;;  %v3140_v47 = vadd.f32 %v3139_v7, %v2947_v36  ;;  %v3272_v25 = vmax.f32 %v3138_v55, 0.0  ;;  %v9770_v36 = vld [vmem:[#allocation32_spill] sm:$0xff] }
 0x2f0   :  { %v2950_v15 = vpop.f32.mrf.mxu0 }
 0x2f1   :  { %v3143_v34 = vpop.f32.mrf.mxu1  ;;  %v3142_v0 = vadd.f32 %v3141_v27, %v2949_v40  ;;  %v2951_v60 = vadd.f32 %v2950_v15, %v2758_v18  ;;  %4099 = vmatprep.mubr.bf16.mxu1 %v3345_v30  ;;  %v3273_v16 = vmax.f32 %v3140_v47, 0.0 }
 0x2f2   :  { %v2954_v9 = vpop.f32.mrf.mxu0  ;;  %4100 = vmatmul.mubr.bf16.gmra.mxu1 %v3344_v39  ;;  %v9769_v39 = vld [vmem:[#allocation31_spill] sm:$0xff] }
 0x2f3   :  { %v3147_v37 = vpop.f32.mrf.mxu1  ;;  %v3276_v48 = vmax.f32 %v3142_v0, 0.0  ;;  %v3144_v43 = vadd.f32 %v3143_v34, %v2951_v60  ;;  %v2955_v51 = vadd.f32 %v2954_v9, %v9762_v13  ;;  %v2778_v35 = vadd.f32 %v9769_v39, %v2585_v23 }
 0x2f4   :  { %v2956_v3 = vpop.f32.mrf.mxu0 }
 0x2f5   :  { %v3149_v41 = vpop.f32.mrf.mxu1  ;;  %v3348_v50 = vpack.c.bf16 %v3276_v48, %v3272_v25  ;;  %v3277_v20 = vmax.f32 %v3144_v43, 0.0  ;;  %v2957_v22 = vadd.f32 %v2956_v3, %v9763_v58  ;;  %v3148_v29 = vadd.f32 %v3147_v37, %v2955_v51 }
 0x2f6   :  { %v2958_v62 = vpop.f32.mrf.mxu0 }
 0x2f7   :  { %v3151_v53 = vpop.f32.mrf.mxu1  ;;  %v2959_v17 = vadd.f32 %v2958_v62, %v9765_v12  ;;  %v3349_v19 = vpack.c.bf16 %v3277_v20, %v3273_v16  ;;  %v3150_v33 = vadd.f32 %v3149_v41, %v2957_v22  ;;  %v3280_v61 = vmax.f32 %v3148_v29, 0.0 }
 0x2f8   :  { %v2960_v56 = vpop.f32.mrf.mxu0 }
 0x2f9   :  { %v3153_v38 = vpop.f32.mrf.mxu1  ;;  %v3152_v21 = vadd.f32 %v3151_v53, %v2959_v17  ;;  %v2961_v28 = vadd.f32 %v2960_v56, %v2768_v26  ;;  %4109 = vmatprep.mubr.bf16.mxu1 %v3349_v19  ;;  %v3281_v54 = vmax.f32 %v3150_v33, 0.0 }
 0x2fa   :  { %v2964_v57 = vpop.f32.mrf.mxu0  ;;  %4110 = vmatmul.mubr.bf16.gmra.mxu1 %v3348_v50 }
 0x2fb   :  { %v3157_v24 = vpop.f32.mrf.mxu1  ;;  %v3284_v10 = vmax.f32 %v3152_v21, 0.0  ;;  %v3154_v1 = vadd.f32 %v3153_v38, %v2961_v28  ;;  %v2965_v63 = vadd.f32 %v2964_v57, %v9767_v14 }
 0x2fc   :  { %v2966_v5 = vpop.f32.mrf.mxu0 }
 0x2fd   :  { %v3159_v32 = vpop.f32.mrf.mxu1  ;;  %v3352_v6 = vpack.c.bf16 %v3284_v10, %v3280_v61  ;;  %v3285_v31 = vmax.f32 %v3154_v1, 0.0  ;;  %v2967_v44 = vadd.f32 %v2966_v5, %v9768_v11  ;;  %v3158_v2 = vadd.f32 %v3157_v24, %v2965_v63  ;;  %v3422_v61 = vld [vmem:[%s9378_s4] sm:$0x3]  ;;  %v9771_v1 = vld [vmem:[#allocation53_spill] sm:$0xff] }
 0x2fe   :  { %v2968_v7 = vpop.f32.mrf.mxu0  ;;  %v9772_v14 = vsub.s32 1, %v9771_v1  ;;  %v9773_v5 = vsub.s32 0, %v9771_v1 }
 0x2ff   :  { %v3161_v8 = vpop.f32.mrf.mxu1  ;;  %v2969_v49 = vadd.f32 %v2968_v7, %v9770_v36  ;;  %v3353_v27 = vpack.c.bf16 %v3285_v31, %v3281_v54  ;;  %v3160_v18 = vadd.f32 %v3159_v32, %v2967_v44  ;;  %v3288_v15 = vmax.f32 %v3158_v2, 0.0 }
 0x300   :  { %v2970_v4 = vpop.f32.mrf.mxu0  ;;  %v8948_v63 = vrot.slane %v3422_v61, %v9772_v14  ;;  %v8952_v32 = vrot.slane %v3422_v61, %v9773_v5 }
 0x301   :  { %v3162_v55 = vadd.f32 %v3161_v8, %v2969_v49  ;;  %v2971_v46 = vadd.f32 %v2970_v4, %v2778_v35  ;;  %4119 = vmatprep.mubr.bf16.mxu1 %v3353_v27  ;;  %v3163_v40 = vpop.f32.mrf.mxu1  ;;  %v3289_v60 = vmax.f32 %v3160_v18, 0.0  ;;  %v6135_v18 = vld [vmem:[%s9379_s7 + $0x38] sm:$0xff]  }
 0x302   :  { %v3788_v30 = vpop.f32.mrf.mxu0  ;;  %4120 = vmatmul.mubr.bf16.gmra.mxu1 %v3352_v6  ;;  %5640 = vmatprep.subr.bf16.mxu1 %v6135_v18 }
 0x303   :  { %v3292_v34 = vmax.f32 %v3162_v55, 0.0  ;;  %v3164_v47 = vadd.f32 %v3163_v40, %v2971_v46  ;;  %v3789_v7 = vadd.f32 %v3788_v30, %v8952_v32  ;;  %v6136_v40 = vld [vmem:[%s9379_s7 + $0x30] sm:$0xff]   ;;  %5641 = vmatpush3.bf16.msra.mxu1 %v6135_v18 }
 0x304   :  { %v3790_v0 = vpop.f32.mrf.mxu0  ;;  %5642 = vmatprep.subr.bf16.mxu1 %v6136_v40 }
 0x305   :  { %v3356_v42 = vpack.c.bf16 %v3292_v34, %v3288_v15  ;;  %v3293_v52 = vmax.f32 %v3164_v47, 0.0  ;;  %v3791_v11 = vadd.f32 %v3790_v0, %v8948_v63 }
 0x306   :  { %v3792_v9 = vpop.f32.mrf.mxu0 }
 0x307   :  { %v3357_v37 = vpack.c.bf16 %v3293_v52, %v3289_v60  ;;  %v3793_v44 = vadd.f32 %v3792_v9, %v8952_v32  ;;  %v6137_v9 = vld [vmem:[%s9379_s7 + $0x28] sm:$0xff]   ;;  %5643 = vmatpush3.bf16.msra.mxu1 %v6136_v40 }
 0x308   :  { %v3794_v25 = vpop.f32.mrf.mxu0  ;;  %5644 = vmatprep.subr.bf16.mxu1 %v6137_v9 }
 0x309   :  { %4129 = vmatprep.mubr.bf16.mxu1 %v3357_v37  ;;  %v3795_v39 = vadd.f32 %v3794_v25, %v8948_v63 }
 0x30a   :  { %v8889_v48 = vpop.f32.mrf.mxu0  ;;  %4130 = vmatmul.mubr.bf16.gmra.mxu1 %v3356_v42 }
 0x30b   :  { %v3799_v37 = vadd.f32 %v8889_v48, %v8952_v32  ;;  %v6138_v48 = vld [vmem:[%s9379_s7 + $0x20] sm:$0xff]   ;;  %5645 = vmatpush3.bf16.msra.mxu1 %v6137_v9 }
 0x30c   :  { %v3800_v43 = vpop.f32.mrf.mxu0  ;;  %5646 = vmatprep.subr.bf16.mxu1 %v6138_v48 }
 0x30d   :  { %v3801_v60 = vadd.f32 %v3800_v43, %v8948_v63 }
 0x30e   :  { %v3802_v13 = vpop.f32.mrf.mxu0 }
 0x30f   :  { %v3803_v42 = vadd.f32 %v3802_v13, %v8952_v32  ;;  %5647 = vmatpush3.bf16.msra.mxu1 %v6138_v48 }
 0x310   :  { %v8891_v51 = vpop.f32.mrf.mxu0 }
 0x311   :  { %v3805_v1 = vadd.f32 %v8891_v51, %v8948_v63 }
 0x312   :  { %v8893_v3 = vpop.f32.mrf.mxu0 }
 0x314   :  { %v8895_v41 = vpop.f32.mrf.mxu0 }
 0x316   :  { %v8897_v16 = vpop.f32.mrf.mxu0 }
 0x318   :  { %v8899_v50 = vpop.f32.mrf.mxu0 }
 0x31a   :  { %v8901_v20 = vpop.f32.mrf.mxu0 }
 0x31c   :  { %v8903_v58 = vpop.f32.mrf.mxu0 }
 0x31e   :  { %v8905_v22 = vpop.f32.mrf.mxu0 }
 0x320   :  { %v8907_v62 = vpop.f32.mrf.mxu0 }
 0x322   :  { %v8909_v53 = vpop.f32.mrf.mxu0 }
 0x324   :  { %v8911_v59 = vpop.f32.mrf.mxu0 }
 0x326   :  { %v8913_v26 = vpop.f32.mrf.mxu0 }
 0x328   :  { %v8915_v29 = vpop.f32.mrf.mxu0 }
 0x32a   :  { %v8917_v12 = vpop.f32.mrf.mxu0 }
 0x32c   :  { %v8919_v17 = vpop.f32.mrf.mxu0 }
 0x32e   :  { %v8921_v19 = vpop.f32.mrf.mxu0 }
 0x330   :  { %v8923_v56 = vpop.f32.mrf.mxu0 }
 0x332   :  { %v8925_v38 = vpop.f32.mrf.mxu0 }
 0x334   :  { %v8927_v33 = vpop.f32.mrf.mxu0 }
 0x336   :  { %v8929_v21 = vpop.f32.mrf.mxu0 }
 0x338   :  { %v8931_v28 = vpop.f32.mrf.mxu0 }
 0x33a   :  { %v8933_v45 = vpop.f32.mrf.mxu0 }
 0x33c   :  { %v8935_v23 = vpop.f32.mrf.mxu0 }
 0x33e   :  { %v8937_v57 = vpop.f32.mrf.mxu0 }
 0x340   :  { %v8939_v24 = vpop.f32.mrf.mxu0 }
 0x342   :  { %v8944_v10 = vpop.f32.mrf.mxu0 }
 0x344   :  { %v8954_v6 = vpop.f32.mrf.mxu0 }
 0x346   :  { %v8960_v36 = vpop.f32.mrf.mxu0 }
 0x348   :  { %v8968_v34 = vpop.f32.mrf.mxu0 }
 0x34a   :  { %v8979_v43 = vpop.f32.mrf.mxu0 }
 0x34c   :  { %v8984_v51 = vpop.f32.mrf.mxu0 }
 0x352   :  { %v3981_v54 = vpop.f32.mrf.mxu1 }
 0x353   :  { %v3982_v49 = vadd.f32 %v3981_v54, %v3789_v7 }
 0x354   :  { %v3983_v31 = vpop.f32.mrf.mxu1 }
 0x355   :  { %v3984_v35 = vadd.f32 %v3983_v31, %v3791_v11  ;;  %v4140_v47 = vmax.f32 %v3982_v49, 0.0  ;;  %v3813_v49 = vadd.f32 %v8897_v16, %v8952_v32 }
 0x356   :  { %v3985_v8 = vpop.f32.mrf.mxu1 }
 0x357   :  { %v3986_v2 = vadd.f32 %v3985_v8, %v3793_v44  ;;  %v4141_v30 = vmax.f32 %v3984_v35, 0.0 }
 0x358   :  { %v3987_v27 = vpop.f32.mrf.mxu1 }
 0x359   :  { %v3988_v4 = vadd.f32 %v3987_v27, %v3795_v39  ;;  %v4142_v55 = vmax.f32 %v3986_v2, 0.0  ;;  %v3811_v2 = vadd.f32 %v8895_v41, %v8948_v63 }
 0x35a   :  { %v3991_v46 = vpop.f32.mrf.mxu1 }
 0x35b   :  { %v4143_v15 = vmax.f32 %v3988_v4, 0.0  ;;  %v4204_v25 = vpack.c.bf16 %v4142_v55, %v4140_v47  ;;  %v3992_v13 = vadd.f32 %v3991_v46, %v3799_v37  ;;  %v3809_v4 = vadd.f32 %v8893_v3, %v8952_v32 }
 0x35c   :  { %v3993_v0 = vpop.f32.mrf.mxu1  ;;  %v3815_v46 = vadd.f32 %v8899_v50, %v8948_v63  ;;  %v3821_v50 = vadd.f32 %v8903_v58, %v8948_v63 }
 0x35d   :  { %v4205_v52 = vpack.c.bf16 %v4143_v15, %v4141_v30  ;;  %v3994_v14 = vadd.f32 %v3993_v0, %v3801_v60  ;;  %v4144_v39 = vmax.f32 %v3992_v13, 0.0  ;;  %v8994_v15 = vpop.f32.mrf.mxu0  ;;  %v3825_v13 = vadd.f32 %v8907_v62, %v8948_v63 }
 0x35e   :  { %v3995_v61 = vpop.f32.mrf.mxu1  ;;  %v3831_v62 = vadd.f32 %v8911_v59, %v8948_v63 }
 0x35f   :  { %v3996_v5 = vadd.f32 %v3995_v61, %v3803_v42  ;;  %4403 = vmatprep.mubr.bf16.mxu0 %v4205_v52  ;;  %v4145_v7 = vmax.f32 %v3994_v14, 0.0  ;;  %v8996_v3 = vpop.f32.mrf.mxu0 }
 0x360   :  { %v3997_v54 = vpop.f32.mrf.mxu1  ;;  %4404 = vmatmul.mubr.bf16.vlgmr.msra.gmra.mxu0 %v4204_v25  ;;  %v3823_v25 = vadd.f32 %v8905_v22, %v8952_v32 }
 0x361   :  { %v3998_v31 = vadd.f32 %v3997_v54, %v3805_v1  ;;  %v4146_v11 = vmax.f32 %v3996_v5, 0.0  ;;  %v3819_v1 = vadd.f32 %v8901_v20, %v8952_v32  ;;  %v9006_v48 = vpop.f32.mrf.mxu0 }
 0x362   :  { %v4001_v44 = vpop.f32.mrf.mxu1 }
 0x363   :  { %v4147_v8 = vmax.f32 %v3998_v31, 0.0  ;;  %v4206_v18 = vpack.c.bf16 %v4146_v11, %v4144_v39  ;;  %v4002_v47 = vadd.f32 %v4001_v44, %v3809_v4  ;;  %v3829_v4 = vadd.f32 %v8909_v53, %v8952_v32 }
 0x364   :  { %v4003_v35 = vpop.f32.mrf.mxu1 }
 0x365   :  { %v4207_v27 = vpack.c.bf16 %v4147_v8, %v4145_v7  ;;  %v4004_v40 = vadd.f32 %v4003_v35, %v3811_v2  ;;  %v4148_v9 = vmax.f32 %v4002_v47, 0.0  ;;  %v9008_v35 = vpop.f32.mrf.mxu0 }
 0x366   :  { %v4005_v55 = vpop.f32.mrf.mxu1 }
 0x367   :  { %v4006_v30 = vadd.f32 %v4005_v55, %v3813_v49  ;;  %4411 = vmatprep.mubr.bf16.mxu0 %v4207_v27  ;;  %v4149_v42 = vmax.f32 %v4004_v40, 0.0  ;;  %v3833_v49 = vadd.f32 %v8913_v26, %v8952_v32  ;;  %v9018_v47 = vpop.f32.mrf.mxu0 }
 0x368   :  { %v4007_v41 = vpop.f32.mrf.mxu1  ;;  %4412 = vmatmul.mubr.bf16.gmra.mxu0 %v4206_v18 }
 0x369   :  { %v4008_v16 = vadd.f32 %v4007_v41, %v3815_v46  ;;  %v4150_v0 = vmax.f32 %v4006_v30, 0.0  ;;  %v3835_v46 = vadd.f32 %v8915_v29, %v8948_v63  ;;  %v3841_v29 = vadd.f32 %v8919_v17, %v8948_v63 }
 0x36a   :  { %v4011_v60 = vpop.f32.mrf.mxu1 }
 0x36b   :  { %v4151_v52 = vmax.f32 %v4008_v16, 0.0  ;;  %v4208_v14 = vpack.c.bf16 %v4150_v0, %v4148_v9  ;;  %v4012_v11 = vadd.f32 %v4011_v60, %v3819_v1 }
 0x36c   :  { %v4013_v37 = vpop.f32.mrf.mxu1 }
 0x36d   :  { %v4209_v61 = vpack.c.bf16 %v4151_v52, %v4149_v42  ;;  %v4014_v54 = vadd.f32 %v4013_v37, %v3821_v50  ;;  %v4152_v20 = vmax.f32 %v4012_v11, 0.0  ;;  %v9020_v52 = vpop.f32.mrf.mxu0  ;;  %v3843_v37 = vadd.f32 %v8921_v19, %v8952_v32 }
 0x36e   :  { %v4015_v5 = vpop.f32.mrf.mxu1 }
 0x36f   :  { %v4016_v31 = vadd.f32 %v4015_v5, %v3823_v25  ;;  %4419 = vmatprep.mubr.bf16.mxu0 %v4209_v61  ;;  %v4153_v8 = vmax.f32 %v4014_v54, 0.0  ;;  %v3839_v25 = vadd.f32 %v8917_v12, %v8952_v32  ;;  %v9030_v54 = vpop.f32.mrf.mxu0 }
 0x370   :  { %v4017_v44 = vpop.f32.mrf.mxu1  ;;  %4420 = vmatmul.mubr.bf16.gmra.mxu0 %v4208_v14  ;;  %v3845_v14 = vadd.f32 %v8923_v56, %v8948_v63  ;;  %v3851_v56 = vadd.f32 %v8927_v33, %v8948_v63 }
 0x371   :  { %v4018_v58 = vadd.f32 %v4017_v44, %v3825_v13  ;;  %v4154_v7 = vmax.f32 %v4016_v31, 0.0 }
 0x372   :  { %v4021_v22 = vpop.f32.mrf.mxu1 }
 0x373   :  { %v4155_v39 = vmax.f32 %v4018_v58, 0.0  ;;  %v4210_v18 = vpack.c.bf16 %v4154_v7, %v4152_v20  ;;  %v4022_v41 = vadd.f32 %v4021_v22, %v3829_v4  ;;  %v9032_v22 = vpop.f32.mrf.mxu0 }
 0x374   :  { %v4023_v2 = vpop.f32.mrf.mxu1 }
 0x375   :  { %v4211_v27 = vpack.c.bf16 %v4155_v39, %v4153_v8  ;;  %v4024_v40 = vadd.f32 %v4023_v2, %v3831_v62  ;;  %v4156_v53 = vmax.f32 %v4022_v41, 0.0  ;;  %v3853_v39 = vadd.f32 %v8929_v21, %v8952_v32 }
 0x376   :  { %v4025_v55 = vpop.f32.mrf.mxu1  ;;  %v3849_v2 = vadd.f32 %v8925_v38, %v8952_v32 }
 0x377   :  { %v4026_v30 = vadd.f32 %v4025_v55, %v3833_v49  ;;  %4427 = vmatprep.mubr.bf16.mxu0 %v4211_v27  ;;  %v4157_v60 = vmax.f32 %v4024_v40, 0.0  ;;  %v3855_v27 = vadd.f32 %v8931_v28, %v8948_v63  ;;  %v9042_v55 = vpop.f32.mrf.mxu0  ;;  %v3861_v28 = vadd.f32 %v8935_v23, %v8948_v63 }
 0x378   :  { %v4027_v16 = vpop.f32.mrf.mxu1  ;;  %4428 = vmatmul.mubr.bf16.gmra.mxu0 %v4210_v18 }
 0x379   :  { %v4028_v59 = vadd.f32 %v4027_v16, %v3835_v46  ;;  %v4158_v0 = vmax.f32 %v4026_v30, 0.0 }
 0x37a   :  { %v4031_v26 = vpop.f32.mrf.mxu1 }
 0x37b   :  { %v4159_v42 = vmax.f32 %v4028_v59, 0.0  ;;  %v4212_v61 = vpack.c.bf16 %v4158_v0, %v4156_v53  ;;  %v4032_v31 = vadd.f32 %v4031_v26, %v3839_v25  ;;  %v9044_v59 = vpop.f32.mrf.mxu0  ;;  %v3863_v26 = vadd.f32 %v8937_v57, %v8952_v32 }
 0x37c   :  { %v4033_v9 = vpop.f32.mrf.mxu1 }
 0x37d   :  { %v4213_v50 = vpack.c.bf16 %v4159_v42, %v4157_v60  ;;  %v4034_v5 = vadd.f32 %v4033_v9, %v3841_v29  ;;  %v4160_v12 = vmax.f32 %v4032_v31, 0.0  ;;  %v3859_v42 = vadd.f32 %v8933_v45, %v8952_v32  ;;  %v9054_v25 = vpop.f32.mrf.mxu0 }
 0x37e   :  { %v4035_v1 = vpop.f32.mrf.mxu1  ;;  %v3865_v29 = vadd.f32 %v8939_v24, %v8948_v63  ;;  %v3871_v24 = vadd.f32 %v8954_v6, %v8948_v63 }
 0x37f   :  { %v4036_v13 = vadd.f32 %v4035_v1, %v3843_v37  ;;  %4435 = vmatprep.mubr.bf16.mxu0 %v4213_v50  ;;  %v4161_v58 = vmax.f32 %v4034_v5, 0.0  ;;  %v9056_v31 = vpop.f32.mrf.mxu0 }
 0x380   :  { %v4037_v11 = vpop.f32.mrf.mxu1  ;;  %4436 = vmatmul.mubr.bf16.gmra.mxu0 %v4212_v61 }
 0x381   :  { %v4038_v17 = vadd.f32 %v4037_v11, %v3845_v14  ;;  %v4162_v44 = vmax.f32 %v4036_v13, 0.0 }
 0x382   :  { %v4041_v19 = vpop.f32.mrf.mxu1 }
 0x383   :  { %v4163_v7 = vmax.f32 %v4038_v17, 0.0  ;;  %v4214_v62 = vpack.c.bf16 %v4162_v44, %v4160_v12  ;;  %v4042_v46 = vadd.f32 %v4041_v19, %v3849_v2  ;;  %v3873_v17 = vadd.f32 %v8960_v36, %v8952_v32 }
 0x384   :  { %v4043_v8 = vpop.f32.mrf.mxu1  ;;  %v3869_v19 = vadd.f32 %v8944_v10, %v8952_v32  ;;  %v3875_v12 = vadd.f32 %v8968_v34, %v8948_v63  ;;  %v3881_v34 = vadd.f32 %v8984_v51, %v8948_v63 }
 0x385   :  { %v4215_v20 = vpack.c.bf16 %v4163_v7, %v4161_v58  ;;  %v4044_v4 = vadd.f32 %v4043_v8, %v3851_v56  ;;  %v4164_v38 = vmax.f32 %v4042_v46, 0.0  ;;  %v3883_v46 = vadd.f32 %v8994_v15, %v8952_v32 }
 0x386   :  { %v4045_v49 = vpop.f32.mrf.mxu1 }
 0x387   :  { %v4046_v18 = vadd.f32 %v4045_v49, %v3853_v39  ;;  %4443 = vmatprep.mubr.bf16.mxu0 %v4215_v20  ;;  %v4165_v41 = vmax.f32 %v4044_v4, 0.0  ;;  %v9066_v39 = vpop.f32.mrf.mxu0 }
 0x388   :  { %v4047_v40 = vpop.f32.mrf.mxu1  ;;  %4444 = vmatmul.mubr.bf16.gmra.mxu0 %v4214_v62 }
 0x389   :  { %v4048_v33 = vadd.f32 %v4047_v40, %v3855_v27  ;;  %v4166_v30 = vmax.f32 %v4046_v18, 0.0  ;;  %v9068_v4 = vpop.f32.mrf.mxu0 }
 0x38a   :  { %v4051_v21 = vpop.f32.mrf.mxu1 }
 0x38b   :  { %v4167_v16 = vmax.f32 %v4048_v33, 0.0  ;;  %v4216_v53 = vpack.c.bf16 %v4166_v30, %v4164_v38  ;;  %v4052_v61 = vadd.f32 %v4051_v21, %v3859_v42  ;;  %v3879_v33 = vadd.f32 %v8979_v43, %v8952_v32 }
 0x38c   :  { %v4053_v0 = vpop.f32.mrf.mxu1 }
 0x38d   :  { %v4217_v60 = vpack.c.bf16 %v4167_v16, %v4165_v41  ;;  %v4054_v37 = vadd.f32 %v4053_v0, %v3861_v28  ;;  %v4168_v45 = vmax.f32 %v4052_v61, 0.0  ;;  %v3885_v41 = vadd.f32 %v8996_v3, %v8948_v63  ;;  %v9078_v0 = vpop.f32.mrf.mxu0  ;;  %v6139_v61 = vld [vmem:[%s9379_s7 + $0x18] sm:$0xff]  }
 0x38e   :  { %v4055_v9 = vpop.f32.mrf.mxu1  ;;  %v3891_v3 = vadd.f32 %v9008_v35, %v8948_v63  ;;  %5648 = vmatprep.subr.bf16.mxu1 %v6139_v61 }
 0x38f   :  { %v4056_v50 = vadd.f32 %v4055_v9, %v3863_v26  ;;  %4451 = vmatprep.mubr.bf16.mxu0 %v4217_v60  ;;  %v4169_v5 = vmax.f32 %v4054_v37, 0.0  ;;  %v9080_v9 = vpop.f32.mrf.mxu0  ;;  %v3893_v37 = vadd.f32 %v9018_v47, %v8952_v32  ;;  %5649 = vmatpush3.bf16.msra.mxu1 %v6139_v61 }
 0x390   :  { %v4057_v1 = vpop.f32.mrf.mxu1  ;;  %4452 = vmatmul.mubr.bf16.gmra.mxu0 %v4216_v53 }
 0x391   :  { %v4058_v23 = vadd.f32 %v4057_v1, %v3865_v29  ;;  %v4170_v14 = vmax.f32 %v4056_v50, 0.0  ;;  %v3889_v1 = vadd.f32 %v9006_v48, %v8952_v32  ;;  %v9093_v35 = vpop.f32.mrf.mxu0  ;;  %v6140_v48 = vld [vmem:[%s9379_s7 + $0x10] sm:$0xff]  }
 0x392   :  { %v4061_v57 = vpop.f32.mrf.mxu1  ;;  %5650 = vmatprep.subr.bf16.mxu1 %v6140_v48 }
 0x393   :  { %v4171_v13 = vmax.f32 %v4058_v23, 0.0  ;;  %v4218_v58 = vpack.c.bf16 %v4170_v14, %v4168_v45  ;;  %v4062_v20 = vadd.f32 %v4061_v57, %v3869_v19  ;;  %v3895_v57 = vadd.f32 %v9020_v52, %v8948_v63  ;;  %v3924_v52 = vpop.f32.mrf.mxu0  ;;  %5651 = vmatpush3.bf16.msra.mxu1 %v6140_v48 }
 0x394   :  { %v4063_v11 = vpop.f32.mrf.mxu1 }
 0x395   :  { %v4219_v44 = vpack.c.bf16 %v4171_v13, %v4169_v5  ;;  %v4064_v8 = vadd.f32 %v4063_v11, %v3871_v24  ;;  %v4172_v10 = vmax.f32 %v4062_v20, 0.0  ;;  %v6141_v20 = vld [vmem:[%s9379_s7 + $0x8] sm:$0xff]  }
 0x396   :  { %v4065_v7 = vpop.f32.mrf.mxu1  ;;  %5652 = vmatprep.subr.bf16.mxu1 %v6141_v20 }
 0x397   :  { %v4066_v56 = vadd.f32 %v4065_v7, %v3873_v17  ;;  %4459 = vmatprep.mubr.bf16.mxu0 %v4219_v44  ;;  %v4173_v49 = vmax.f32 %v4064_v8, 0.0  ;;  %v3903_v8 = vadd.f32 %v9042_v55, %v8952_v32  ;;  %5653 = vmatpush3.bf16.msra.mxu1 %v6141_v20 }
 0x398   :  { %v4067_v2 = vpop.f32.mrf.mxu1  ;;  %4460 = vmatmul.mubr.bf16.gmra.mxu0 %v4218_v58 }
 0x399   :  { %v4068_v6 = vadd.f32 %v4067_v2, %v3875_v12  ;;  %v4174_v62 = vmax.f32 %v4066_v56, 0.0  ;;  %v3901_v12 = vadd.f32 %v9032_v22, %v8948_v63  ;;  %v3899_v2 = vadd.f32 %v9030_v54, %v8952_v32  ;;  %v9109_v22 = vpop.f32.mrf.mxu0  ;;  %v6142_v54 = vld [vmem:[%s9379_s7] sm:$0xff]  }
 0x39a   :  { %v4071_v36 = vpop.f32.mrf.mxu1  ;;  %5654 = vmatprep.subr.bf16.mxu1 %v6142_v54  ;;  %v3929_v20 = vadd.f32 %v9109_v22, %v8952_v32 }
 0x39b   :  { %v4175_v27 = vmax.f32 %v4068_v6, 0.0  ;;  %v4220_v30 = vpack.c.bf16 %v4174_v62, %v4172_v10  ;;  %v4072_v28 = vadd.f32 %v4071_v36, %v3879_v33  ;;  %v3905_v36 = vadd.f32 %v9044_v59, %v8948_v63  ;;  %v3930_v59 = vpop.f32.mrf.mxu0  ;;  %5655 = vmatpush3.bf16.msra.mxu1 %v6142_v54 }
 0x39c   :  { %v4073_v18 = vpop.f32.mrf.mxu1 }
 0x39d   :  { %v4221_v40 = vpack.c.bf16 %v4175_v27, %v4173_v49  ;;  %v4074_v16 = vadd.f32 %v4073_v18, %v3881_v34  ;;  %v4176_v43 = vmax.f32 %v4072_v28, 0.0  ;;  %v3909_v28 = vadd.f32 %v9054_v25, %v8952_v32 }
 0x39e   :  { %v4075_v21 = vpop.f32.mrf.mxu1 }
 0x39f   :  { %v4076_v38 = vadd.f32 %v4075_v21, %v3883_v46  ;;  %4467 = vmatprep.mubr.bf16.mxu0 %v4221_v40  ;;  %v4177_v42 = vmax.f32 %v4074_v16, 0.0  ;;  %v3913_v16 = vadd.f32 %v9066_v39, %v8952_v32 }
 0x3a0   :  { %v4077_v26 = vpop.f32.mrf.mxu1  ;;  %4468 = vmatmul.mubr.bf16.gmra.mxu0 %v4220_v30 }
 0x3a1   :  { %v4078_v51 = vadd.f32 %v4077_v26, %v3885_v41  ;;  %v4178_v60 = vmax.f32 %v4076_v38, 0.0  ;;  %v3911_v41 = vadd.f32 %v9056_v31, %v8948_v63 }
 0x3a2   :  { %v4081_v15 = vpop.f32.mrf.mxu1 }
 0x3a3   :  { %v4179_v53 = vmax.f32 %v4078_v51, 0.0  ;;  %v4222_v23 = vpack.c.bf16 %v4178_v60, %v4176_v43  ;;  %v4082_v47 = vadd.f32 %v4081_v15, %v3889_v1  ;;  %v3915_v60 = vadd.f32 %v9068_v4, %v8948_v63 }
 0x3a4   :  { %v4083_v29 = vpop.f32.mrf.mxu1  ;;  %v3923_v4 = vadd.f32 %v9093_v35, %v8952_v32 }
 0x3a5   :  { %v4223_v50 = vpack.c.bf16 %v4179_v53, %v4177_v42  ;;  %v4084_v5 = vadd.f32 %v4083_v29, %v3891_v3  ;;  %v4180_v58 = vmax.f32 %v4082_v47, 0.0  ;;  %v3932_v53 = vpop.f32.mrf.mxu0  ;;  %v3925_v47 = vadd.f32 %v3924_v52, %v8948_v63 }
 0x3a6   :  { %v4085_v14 = vpop.f32.mrf.mxu1 }
 0x3a7   :  { %v4086_v13 = vadd.f32 %v4085_v14, %v3893_v37  ;;  %4475 = vmatprep.mubr.bf16.mxu0 %v4223_v50  ;;  %v4181_v44 = vmax.f32 %v4084_v5, 0.0  ;;  %v3934_v61 = vpop.f32.mrf.mxu0 }
 0x3a8   :  { %v4087_v45 = vpop.f32.mrf.mxu1  ;;  %4476 = vmatmul.mubr.bf16.gmra.mxu0 %v4222_v23  ;;  %v3921_v23 = vadd.f32 %v9080_v9, %v8948_v63 }
 0x3a9   :  { %v4088_v11 = vadd.f32 %v4087_v45, %v3895_v57  ;;  %v4182_v24 = vmax.f32 %v4086_v13, 0.0  ;;  %v3919_v57 = vadd.f32 %v9078_v0, %v8952_v32  ;;  %v3938_v48 = vpop.f32.mrf.mxu0  ;;  %v3931_v0 = vadd.f32 %v3930_v59, %v8948_v63 }
 0x3aa   :  { %v4091_v17 = vpop.f32.mrf.mxu1 }
 0x3ab   :  { %v4183_v19 = vmax.f32 %v4088_v11, 0.0  ;;  %v4224_v6 = vpack.c.bf16 %v4182_v24, %v4180_v58  ;;  %v4092_v55 = vadd.f32 %v4091_v17, %v3899_v2 }
 0x3ac   :  { %v4093_v7 = vpop.f32.mrf.mxu1 }
 0x3ad   :  { %v4225_v56 = vpack.c.bf16 %v4183_v19, %v4181_v44  ;;  %v4094_v49 = vadd.f32 %v4093_v7, %v3901_v12  ;;  %v4184_v30 = vmax.f32 %v4092_v55, 0.0  ;;  %v3940_v7 = vpop.f32.mrf.mxu0 }
 0x3ae   :  { %v4095_v62 = vpop.f32.mrf.mxu1  ;;  %v3941_v22 = vadd.f32 %v3940_v7, %v8948_v63 }
 0x3af   :  { %v4096_v27 = vadd.f32 %v4095_v62, %v3903_v8  ;;  %4483 = vmatprep.mubr.bf16.mxu0 %v4225_v56  ;;  %v4185_v40 = vmax.f32 %v4094_v49, 0.0  ;;  %v3933_v56 = vadd.f32 %v3932_v53, %v8952_v32  ;;  %v3935_v62 = vadd.f32 %v3934_v61, %v8948_v63 }
 0x3b0   :  { %v4097_v10 = vpop.f32.mrf.mxu1  ;;  %4484 = vmatmul.mubr.bf16.gmra.mxu0 %v4224_v6 }
 0x3b1   :  { %v4098_v18 = vadd.f32 %v4097_v10, %v3905_v36  ;;  %v4186_v34 = vmax.f32 %v4096_v27, 0.0  ;;  %v3942_v27 = vpop.f32.mrf.mxu0 }
 0x3b2   :  { %v4101_v46 = vpop.f32.mrf.mxu1 }
 0x3b3   :  { %v4187_v33 = vmax.f32 %v4098_v18, 0.0  ;;  %v4226_v26 = vpack.c.bf16 %v4186_v34, %v4184_v30  ;;  %v4102_v43 = vadd.f32 %v4101_v46, %v3909_v28 }
 0x3b4   :  { %v4103_v21 = vpop.f32.mrf.mxu1 }
 0x3b5   :  { %v4227_v38 = vpack.c.bf16 %v4187_v33, %v4185_v40  ;;  %v4104_v15 = vadd.f32 %v4103_v21, %v3911_v41  ;;  %v4188_v1 = vmax.f32 %v4102_v43, 0.0  ;;  %v3944_v33 = vpop.f32.mrf.mxu0  ;;  %v3943_v21 = vadd.f32 %v3942_v27, %v8952_v32 }
 0x3b6   :  { %v4105_v51 = vpop.f32.mrf.mxu1 }
 0x3b7   :  { %v4106_v42 = vadd.f32 %v4105_v51, %v3913_v16  ;;  %4491 = vmatprep.mubr.bf16.mxu0 %v4227_v38  ;;  %v4189_v39 = vmax.f32 %v4104_v15, 0.0  ;;  %v3939_v16 = vadd.f32 %v3938_v48, %v8952_v32 }
 0x3b8   :  { %v4107_v29 = vpop.f32.mrf.mxu1  ;;  %4492 = vmatmul.mubr.bf16.gmra.mxu0 %v4226_v26  ;;  %v3945_v26 = vadd.f32 %v3944_v33, %v8948_v63  ;;  %v9141_v63 = vld [vmem:[%s9380_s6] ss:$0 sm:$0xff] }
 0x3b9   :  { %v4108_v31 = vadd.f32 %v4107_v29, %v3915_v60  ;;  %v4190_v3 = vmax.f32 %v4106_v42, 0.0 }
 0x3ba   :  { %v4111_v37 = vpop.f32.mrf.mxu1 }
 0x3bb   :  { %v4191_v50 = vmax.f32 %v4108_v31, 0.0  ;;  %v4228_v5 = vpack.c.bf16 %v4190_v3, %v4188_v1  ;;  %v4112_v24 = vadd.f32 %v4111_v37, %v3919_v57  ;;  %v6143_v57 = vld [vmem:[%s9381_s9 + $0x18] sm:$0xff]  }
 0x3bc   :  { %v4113_v25 = vpop.f32.mrf.mxu1  ;;  %5688 = vmatprep.subr.bf16.mxu1 %v6143_v57 }
 0x3bd   :  { %v4229_v14 = vpack.c.bf16 %v4191_v50, %v4189_v39  ;;  %v4114_v45 = vadd.f32 %v4113_v25, %v3921_v23  ;;  %v4192_v12 = vmax.f32 %v4112_v24, 0.0 }
 0x3be   :  { %v4115_v13 = vpop.f32.mrf.mxu1 }
 0x3bf   :  { %v4116_v11 = vadd.f32 %v4115_v13, %v3923_v4  ;;  %4499 = vmatprep.mubr.bf16.mxu0 %v4229_v14  ;;  %v4193_v58 = vmax.f32 %v4114_v45, 0.0 }
 0x3c0   :  { %v4117_v17 = vpop.f32.mrf.mxu1  ;;  %4500 = vmatmul.mubr.bf16.gmra.mxu0 %v4228_v5 }
 0x3c1   :  { %v4118_v44 = vadd.f32 %v4117_v17, %v3925_v47  ;;  %v4194_v9 = vmax.f32 %v4116_v11, 0.0 }
 0x3c2   :  { %v4121_v19 = vpop.f32.mrf.mxu1 }
 0x3c3   :  { %v4195_v35 = vmax.f32 %v4118_v44, 0.0  ;;  %v4230_v2 = vpack.c.bf16 %v4194_v9, %v4192_v12  ;;  %v4122_v55 = vadd.f32 %v4121_v19, %v3929_v20 }
 0x3c4   :  { %v4123_v8 = vpop.f32.mrf.mxu1 }
 0x3c5   :  { %v4231_v52 = vpack.c.bf16 %v4195_v35, %v4193_v58  ;;  %v4124_v36 = vadd.f32 %v4123_v8, %v3931_v0  ;;  %v4196_v59 = vmax.f32 %v4122_v55, 0.0 }
 0x3c6   :  { %v4125_v6 = vpop.f32.mrf.mxu1 }
 0x3c7   :  { %v4126_v49 = vadd.f32 %v4125_v6, %v3933_v56  ;;  %4507 = vmatprep.mubr.bf16.mxu0 %v4231_v52  ;;  %v4197_v46 = vmax.f32 %v4124_v36, 0.0 }
 0x3c8   :  { %v4127_v10 = vpop.f32.mrf.mxu1  ;;  %4508 = vmatmul.mubr.bf16.gmra.mxu0 %v4230_v2 }
 0x3c9   :  { %v4128_v18 = vadd.f32 %v4127_v10, %v3935_v62  ;;  %v4198_v54 = vmax.f32 %v4126_v49, 0.0 }
 0x3ca   :  { %v4131_v34 = vpop.f32.mrf.mxu1 }
 0x3cb   :  { %v4199_v40 = vmax.f32 %v4128_v18, 0.0  ;;  %v4232_v38 = vpack.c.bf16 %v4198_v54, %v4196_v59  ;;  %v4132_v15 = vadd.f32 %v4131_v34, %v3939_v16 }
 0x3cc   :  { %v4133_v30 = vpop.f32.mrf.mxu1 }
 0x3cd   :  { %v4233_v41 = vpack.c.bf16 %v4199_v40, %v4197_v46  ;;  %v4134_v51 = vadd.f32 %v4133_v30, %v3941_v22  ;;  %v4200_v3 = vmax.f32 %v4132_v15, 0.0 }
 0x3ce   :  { %v4135_v28 = vpop.f32.mrf.mxu1 }
 0x3cf   :  { %v4136_v60 = vadd.f32 %v4135_v28, %v3943_v21  ;;  %4515 = vmatprep.mubr.bf16.mxu0 %v4233_v41  ;;  %v4201_v29 = vmax.f32 %v4134_v51, 0.0 }
 0x3d0   :  { %v4137_v42 = vpop.f32.mrf.mxu1  ;;  %4516 = vmatmul.mubr.bf16.gmra.mxu0 %v4232_v38 }
 0x3d1   :  { %v4138_v53 = vadd.f32 %v4137_v42, %v3945_v26  ;;  %v4202_v43 = vmax.f32 %v4136_v60, 0.0 }
 0x3d3   :  { %v4203_v31 = vmax.f32 %v4138_v53, 0.0  ;;  %v4234_v39 = vpack.c.bf16 %v4202_v43, %v4200_v3 }
 0x3d5   :  { %v4235_v37 = vpack.c.bf16 %v4203_v31, %v4201_v29 }
 0x3d7   :  { %4523 = vmatprep.mubr.bf16.mxu0 %v4235_v37 }
 0x3d8   :  { %4524 = vmatmul.mubr.bf16.gmra.mxu0 %v4234_v39 }
 0x420   :  { %v5500_v32 = vpop.f32.mrf.mxu0 }
 0x422   :  { %v5501_v50 = vpop.f32.mrf.mxu0 }
 0x423   :  { %v5502_v61 = vadd.f32 %v5501_v50, %v5500_v32 }
 0x424   :  { %v5503_v1 = vpop.f32.mrf.mxu0 }
 0x425   :  { %v4406_v23 = vadd.f32 %v5502_v61, %v9141_v63 }
 0x426   :  { %v5504_v25 = vpop.f32.mrf.mxu0 }
 0x427   :  { %v5505_v4 = vadd.f32 %v5504_v25, %v5503_v1  ;;  %v4532_v47 = vmax.f32 %v4406_v23, 0.0 }
 0x428   :  { %v5506_v14 = vpop.f32.mrf.mxu0 }
 0x429   :  { %v4409_v5 = vadd.f32 %v5505_v4, %v9141_v63 }
 0x42a   :  { %v5507_v13 = vpop.f32.mrf.mxu0 }
 0x42b   :  { %v4533_v45 = vmax.f32 %v4409_v5, 0.0  ;;  %v5508_v11 = vadd.f32 %v5507_v13, %v5506_v14 }
 0x42c   :  { %v5509_v48 = vpop.f32.mrf.mxu0 }
 0x42d   :  { %v4564_v24 = vpack.c.bf16 %v4533_v45, %v4532_v47  ;;  %v4414_v44 = vadd.f32 %v5508_v11, %v9141_v63 }
 0x42e   :  { %v5510_v17 = vpop.f32.mrf.mxu0 }
 0x42f   :  { %v5511_v9 = vadd.f32 %v5510_v17, %v5509_v48  ;;  %5656 = vmatprep.mubr.bf16.mxu1 %v4564_v24  ;;  %v4534_v7 = vmax.f32 %v4414_v44, 0.0 }
 0x430   :  { %v5512_v19 = vpop.f32.mrf.mxu0 }
 0x431   :  { %v4417_v58 = vadd.f32 %v5511_v9, %v9141_v63 }
 0x432   :  { %v5513_v35 = vpop.f32.mrf.mxu0 }
 0x433   :  { %v4535_v12 = vmax.f32 %v4417_v58, 0.0  ;;  %v5514_v8 = vadd.f32 %v5513_v35, %v5512_v19 }
 0x434   :  { %v5515_v0 = vpop.f32.mrf.mxu0 }
 0x435   :  { %v4565_v56 = vpack.c.bf16 %v4535_v12, %v4534_v7  ;;  %v4422_v20 = vadd.f32 %v5514_v8, %v9141_v63 }
 0x436   :  { %v5516_v52 = vpop.f32.mrf.mxu0 }
 0x437   :  { %v5517_v2 = vadd.f32 %v5516_v52, %v5515_v0  ;;  %5657 = vmatmul.mubr.bf16.vlgmr.msra.gmra.mxu1 %v4565_v56  ;;  %v4536_v49 = vmax.f32 %v4422_v20, 0.0 }
 0x438   :  { %v5518_v6 = vpop.f32.mrf.mxu0  ;;  %5689 = vmatpush3.bf16.msra.mxu1 %v6143_v57 }
 0x439   :  { %v4425_v62 = vadd.f32 %v5517_v2, %v9141_v63 }
 0x43a   :  { %v5519_v36 = vpop.f32.mrf.mxu0 }
 0x43b   :  { %v4537_v27 = vmax.f32 %v4425_v62, 0.0  ;;  %v5520_v55 = vadd.f32 %v5519_v36, %v5518_v6 }
 0x43c   :  { %v5521_v10 = vpop.f32.mrf.mxu0 }
 0x43d   :  { %v4566_v18 = vpack.c.bf16 %v4537_v27, %v4536_v49  ;;  %v4430_v34 = vadd.f32 %v5520_v55, %v9141_v63 }
 0x43e   :  { %v5522_v54 = vpop.f32.mrf.mxu0 }
 0x43f   :  { %v5523_v46 = vadd.f32 %v5522_v54, %v5521_v10  ;;  %5660 = vmatprep.mubr.bf16.mxu1 %v4566_v18  ;;  %v4538_v30 = vmax.f32 %v4430_v34, 0.0 }
 0x440   :  { %v5524_v40 = vpop.f32.mrf.mxu0 }
 0x441   :  { %v4433_v33 = vadd.f32 %v5523_v46, %v9141_v63 }
 0x442   :  { %v5525_v59 = vpop.f32.mrf.mxu0 }
 0x443   :  { %v4539_v22 = vmax.f32 %v4433_v33, 0.0  ;;  %v5526_v21 = vadd.f32 %v5525_v59, %v5524_v40 }
 0x444   :  { %v5527_v41 = vpop.f32.mrf.mxu0 }
 0x445   :  { %v4567_v16 = vpack.c.bf16 %v4539_v22, %v4538_v30  ;;  %v4438_v28 = vadd.f32 %v5526_v21, %v9141_v63 }
 0x446   :  { %v5528_v38 = vpop.f32.mrf.mxu0 }
 0x447   :  { %v5529_v26 = vadd.f32 %v5528_v38, %v5527_v41  ;;  %5661 = vmatmul.mubr.bf16.gmra.mxu1 %v4567_v16  ;;  %v4540_v42 = vmax.f32 %v4438_v28, 0.0 }
 0x448   :  { %v5530_v51 = vpop.f32.mrf.mxu0 }
 0x449   :  { %v4441_v60 = vadd.f32 %v5529_v26, %v9141_v63 }
 0x44a   :  { %v5531_v15 = vpop.f32.mrf.mxu0 }
 0x44b   :  { %v4541_v53 = vmax.f32 %v4441_v60, 0.0  ;;  %v5532_v43 = vadd.f32 %v5531_v15, %v5530_v51 }
 0x44c   :  { %v5533_v29 = vpop.f32.mrf.mxu0 }
 0x44d   :  { %v4568_v31 = vpack.c.bf16 %v4541_v53, %v4540_v42  ;;  %v4446_v37 = vadd.f32 %v5532_v43, %v9141_v63  ;;  %v6144_v42 = vld [vmem:[%s9381_s9 + $0x10] sm:$0xff]  }
 0x44e   :  { %v5534_v3 = vpop.f32.mrf.mxu0  ;;  %5690 = vmatprep.subr.bf16.mxu1 %v6144_v42 }
 0x44f   :  { %v5535_v39 = vadd.f32 %v5534_v3, %v5533_v29  ;;  %5664 = vmatprep.mubr.bf16.mxu1 %v4568_v31  ;;  %v4542_v1 = vmax.f32 %v4446_v37, 0.0  ;;  %5691 = vmatpush3.bf16.msra.mxu1 %v6144_v42 }
 0x450   :  { %v5536_v32 = vpop.f32.mrf.mxu0 }
 0x451   :  { %v4449_v50 = vadd.f32 %v5535_v39, %v9141_v63  ;;  %v6145_v39 = vld [vmem:[%s9381_s9 + $0x8] sm:$0xff]  }
 0x452   :  { %v5537_v61 = vpop.f32.mrf.mxu0  ;;  %5692 = vmatprep.subr.bf16.mxu1 %v6145_v39 }
 0x453   :  { %v4543_v25 = vmax.f32 %v4449_v50, 0.0  ;;  %v5538_v23 = vadd.f32 %v5537_v61, %v5536_v32  ;;  %5693 = vmatpush3.bf16.msra.mxu1 %v6145_v39 }
 0x454   :  { %v5539_v4 = vpop.f32.mrf.mxu0 }
 0x455   :  { %v4569_v14 = vpack.c.bf16 %v4543_v25, %v4542_v1  ;;  %v4454_v5 = vadd.f32 %v5538_v23, %v9141_v63  ;;  %v6146_v23 = vld [vmem:[%s9381_s9] sm:$0xff]  }
 0x456   :  { %v5540_v57 = vpop.f32.mrf.mxu0  ;;  %5694 = vmatprep.subr.bf16.mxu1 %v6146_v23 }
 0x457   :  { %v5541_v13 = vadd.f32 %v5540_v57, %v5539_v4  ;;  %5665 = vmatmul.mubr.bf16.gmra.mxu1 %v4569_v14  ;;  %v4544_v48 = vmax.f32 %v4454_v5, 0.0 }
 0x458   :  { %v5542_v47 = vpop.f32.mrf.mxu0  ;;  %5695 = vmatpush3.bf16.msra.mxu1 %v6146_v23 }
 0x459   :  { %v4457_v45 = vadd.f32 %v5541_v13, %v9141_v63 }
 0x45a   :  { %v5543_v11 = vpop.f32.mrf.mxu0 }
 0x45b   :  { %v4545_v24 = vmax.f32 %v4457_v45, 0.0  ;;  %v5544_v17 = vadd.f32 %v5543_v11, %v5542_v47 }
 0x45c   :  { %v5545_v44 = vpop.f32.mrf.mxu0 }
 0x45d   :  { %v4570_v9 = vpack.c.bf16 %v4545_v24, %v4544_v48  ;;  %v4462_v58 = vadd.f32 %v5544_v17, %v9141_v63 }
 0x45e   :  { %v5546_v19 = vpop.f32.mrf.mxu0 }
 0x45f   :  { %v5547_v35 = vadd.f32 %v5546_v19, %v5545_v44  ;;  %5668 = vmatprep.mubr.bf16.mxu1 %v4570_v9  ;;  %v4546_v0 = vmax.f32 %v4462_v58, 0.0 }
 0x460   :  { %v5548_v7 = vpop.f32.mrf.mxu0 }
 0x461   :  { %v4465_v12 = vadd.f32 %v5547_v35, %v9141_v63 }
 0x462   :  { %v5549_v8 = vpop.f32.mrf.mxu0 }
 0x463   :  { %v4547_v56 = vmax.f32 %v4465_v12, 0.0  ;;  %v5550_v52 = vadd.f32 %v5549_v8, %v5548_v7 }
 0x464   :  { %v5551_v20 = vpop.f32.mrf.mxu0 }
 0x465   :  { %v4571_v2 = vpack.c.bf16 %v4547_v56, %v4546_v0  ;;  %v4470_v62 = vadd.f32 %v5550_v52, %v9141_v63 }
 0x466   :  { %v5552_v6 = vpop.f32.mrf.mxu0 }
 0x467   :  { %v5553_v36 = vadd.f32 %v5552_v6, %v5551_v20  ;;  %5669 = vmatmul.mubr.bf16.gmra.mxu1 %v4571_v2  ;;  %v4548_v10 = vmax.f32 %v4470_v62, 0.0 }
 0x468   :  { %v5554_v49 = vpop.f32.mrf.mxu0 }
 0x469   :  { %v4473_v27 = vadd.f32 %v5553_v36, %v9141_v63 }
 0x46a   :  { %v5555_v55 = vpop.f32.mrf.mxu0 }
 0x46b   :  { %v4549_v18 = vmax.f32 %v4473_v27, 0.0  ;;  %v5556_v54 = vadd.f32 %v5555_v55, %v5554_v49 }
 0x46c   :  { %v5557_v34 = vpop.f32.mrf.mxu0 }
 0x46d   :  { %v4572_v46 = vpack.c.bf16 %v4549_v18, %v4548_v10  ;;  %v4478_v33 = vadd.f32 %v5556_v54, %v9141_v63 }
 0x46e   :  { %v5558_v40 = vpop.f32.mrf.mxu0 }
 0x46f   :  { %v5559_v59 = vadd.f32 %v5558_v40, %v5557_v34  ;;  %5672 = vmatprep.mubr.bf16.mxu1 %v4572_v46  ;;  %v4550_v41 = vmax.f32 %v4478_v33, 0.0 }
 0x470   :  { %v5560_v30 = vpop.f32.mrf.mxu0 }
 0x471   :  { %v4481_v22 = vadd.f32 %v5559_v59, %v9141_v63 }
 0x472   :  { %v5561_v21 = vpop.f32.mrf.mxu0 }
 0x473   :  { %v4551_v16 = vmax.f32 %v4481_v22, 0.0  ;;  %v5562_v38 = vadd.f32 %v5561_v21, %v5560_v30 }
 0x474   :  { %v5563_v28 = vpop.f32.mrf.mxu0 }
 0x475   :  { %v4573_v26 = vpack.c.bf16 %v4551_v16, %v4550_v41  ;;  %v4486_v60 = vadd.f32 %v5562_v38, %v9141_v63 }
 0x476   :  { %v5564_v51 = vpop.f32.mrf.mxu0 }
 0x477   :  { %v5565_v15 = vadd.f32 %v5564_v51, %v5563_v28  ;;  %5673 = vmatmul.mubr.bf16.gmra.mxu1 %v4573_v26  ;;  %v4552_v31 = vmax.f32 %v4486_v60, 0.0 }
 0x478   :  { %v5566_v53 = vpop.f32.mrf.mxu0 }
 0x479   :  { %v4489_v43 = vadd.f32 %v5565_v15, %v9141_v63 }
 0x47a   :  { %v5567_v29 = vpop.f32.mrf.mxu0 }
 0x47b   :  { %v4553_v3 = vmax.f32 %v4489_v43, 0.0  ;;  %v5568_v37 = vadd.f32 %v5567_v29, %v5566_v53  ;;  %v9190_v53 = vld [vmem:[%s9382_s8] ss:$0 sm:$0xff] }
 0x47c   :  { %v5569_v32 = vpop.f32.mrf.mxu0 }
 0x47d   :  { %v4574_v50 = vpack.c.bf16 %v4553_v3, %v4552_v31  ;;  %v4494_v1 = vadd.f32 %v5568_v37, %v9141_v63 }
 0x47e   :  { %v5570_v61 = vpop.f32.mrf.mxu0 }
 0x47f   :  { %v5571_v25 = vadd.f32 %v5570_v61, %v5569_v32  ;;  %5676 = vmatprep.mubr.bf16.mxu1 %v4574_v50  ;;  %v4554_v5 = vmax.f32 %v4494_v1, 0.0 }
 0x480   :  { %v5572_v4 = vpop.f32.mrf.mxu0 }
 0x481   :  { %v4497_v14 = vadd.f32 %v5571_v25, %v9141_v63 }
 0x482   :  { %v5573_v57 = vpop.f32.mrf.mxu0 }
 0x483   :  { %v4555_v13 = vmax.f32 %v4497_v14, 0.0  ;;  %v5574_v47 = vadd.f32 %v5573_v57, %v5572_v4 }
 0x484   :  { %v5575_v45 = vpop.f32.mrf.mxu0 }
 0x485   :  { %v4575_v11 = vpack.c.bf16 %v4555_v13, %v4554_v5  ;;  %v4502_v24 = vadd.f32 %v5574_v47, %v9141_v63 }
 0x486   :  { %v5576_v48 = vpop.f32.mrf.mxu0 }
 0x487   :  { %v5577_v17 = vadd.f32 %v5576_v48, %v5575_v45  ;;  %5677 = vmatmul.mubr.bf16.gmra.mxu1 %v4575_v11  ;;  %v4556_v58 = vmax.f32 %v4502_v24, 0.0 }
 0x488   :  { %v5578_v44 = vpop.f32.mrf.mxu0 }
 0x489   :  { %v4505_v9 = vadd.f32 %v5577_v17, %v9141_v63 }
 0x48a   :  { %v5579_v19 = vpop.f32.mrf.mxu0 }
 0x48b   :  { %v4557_v35 = vmax.f32 %v4505_v9, 0.0  ;;  %v5580_v7 = vadd.f32 %v5579_v19, %v5578_v44 }
 0x48c   :  { %v5581_v12 = vpop.f32.mrf.mxu0 }
 0x48d   :  { %v4576_v8 = vpack.c.bf16 %v4557_v35, %v4556_v58  ;;  %v4510_v56 = vadd.f32 %v5580_v7, %v9141_v63 }
 0x48e   :  { %v5582_v0 = vpop.f32.mrf.mxu0 }
 0x48f   :  { %v5583_v52 = vadd.f32 %v5582_v0, %v5581_v12  ;;  %5680 = vmatprep.mubr.bf16.mxu1 %v4576_v8  ;;  %v4558_v62 = vmax.f32 %v4510_v56, 0.0 }
 0x490   :  { %v5584_v20 = vpop.f32.mrf.mxu0 }
 0x491   :  { %v4513_v2 = vadd.f32 %v5583_v52, %v9141_v63 }
 0x492   :  { %v5585_v6 = vpop.f32.mrf.mxu0 }
 0x493   :  { %v4559_v36 = vmax.f32 %v4513_v2, 0.0  ;;  %v5586_v49 = vadd.f32 %v5585_v6, %v5584_v20 }
 0x494   :  { %v5587_v27 = vpop.f32.mrf.mxu0 }
 0x495   :  { %v4577_v55 = vpack.c.bf16 %v4559_v36, %v4558_v62  ;;  %v4518_v18 = vadd.f32 %v5586_v49, %v9141_v63 }
 0x496   :  { %v5588_v10 = vpop.f32.mrf.mxu0 }
 0x497   :  { %v5589_v54 = vadd.f32 %v5588_v10, %v5587_v27  ;;  %5681 = vmatmul.mubr.bf16.gmra.mxu1 %v4577_v55  ;;  %v4560_v33 = vmax.f32 %v4518_v18, 0.0 }
 0x498   :  { %v5590_v34 = vpop.f32.mrf.mxu0 }
 0x499   :  { %v4521_v46 = vadd.f32 %v5589_v54, %v9141_v63 }
 0x49a   :  { %v5591_v40 = vpop.f32.mrf.mxu0 }
 0x49b   :  { %v4561_v59 = vmax.f32 %v4521_v46, 0.0  ;;  %v5592_v30 = vadd.f32 %v5591_v40, %v5590_v34 }
 0x49c   :  { %v5593_v22 = vpop.f32.mrf.mxu0 }
 0x49d   :  { %v4578_v21 = vpack.c.bf16 %v4561_v59, %v4560_v33  ;;  %v4526_v16 = vadd.f32 %v5592_v30, %v9141_v63 }
 0x49e   :  { %v5594_v41 = vpop.f32.mrf.mxu0 }
 0x49f   :  { %v5595_v38 = vadd.f32 %v5594_v41, %v5593_v22  ;;  %5684 = vmatprep.mubr.bf16.mxu1 %v4578_v21  ;;  %v4562_v26 = vmax.f32 %v4526_v16, 0.0 }
 0x4a1   :  { %v4529_v28 = vadd.f32 %v5595_v38, %v9141_v63 }
 0x4a3   :  { %v4563_v51 = vmax.f32 %v4529_v28, 0.0 }
 0x4a5   :  { %v4579_v60 = vpack.c.bf16 %v4563_v51, %v4562_v26 }
 0x4a7   :  { %5685 = vmatmul.mubr.bf16.gmra.mxu1 %v4579_v60 }
 0x4f7   :  { %v5658_v15 = vpop.f32.mrf.mxu1 }
 0x4f8   :  { %v4694_v3 = vadd.f32 %v5658_v15, %v9190_v53 }
 0x4f9   :  { %v4685_v42 = vpop.f32.mrf.mxu1 }
 0x4fa   :  { %v4686_v29 = vadd.f32 %v9190_v53, %v4685_v42  ;;  %v4814_v61 = vmax.f32 %v4694_v3, 0.0 }
 0x4fb   :  { %v5659_v43 = vpop.f32.mrf.mxu1 }
 0x4fc   :  { %v4697_v31 = vadd.f32 %v5659_v43, %v9190_v53  ;;  %v4812_v32 = vmax.f32 %v4686_v29, 0.0 }
 0x4fd   :  { %v4688_v37 = vpop.f32.mrf.mxu1 }
 0x4fe   :  { %v4689_v63 = vadd.f32 %v9190_v53, %v4688_v37  ;;  %v4815_v39 = vmax.f32 %v4697_v31, 0.0 }
 0x500   :  { %v4813_v50 = vmax.f32 %v4689_v63, 0.0  ;;  %v4845_v25 = vpack.c.bf16 %v4815_v39, %v4814_v61 }
 0x502   :  { %v4844_v1 = vpack.c.bf16 %v4813_v50, %v4812_v32 }
 0x504   :  { %5696 = vmatprep.mubr.msk.bf16.mxu1 %vm4899_vm1, %v4844_v1 }
 0x505   :  { %5697 = vmatmul.mubr.msk.bf16.vlgmr.msra.gmra.mxu1 %vm4899_vm1, %v4845_v25 }
 0x507   :  { %v5662_v23 = vpop.f32.mrf.mxu1 }
 0x508   :  { %v4710_v13 = vadd.f32 %v5662_v23, %v9190_v53 }
 0x509   :  { %v4701_v4 = vpop.f32.mrf.mxu1 }
 0x50a   :  { %v4702_v57 = vadd.f32 %v9190_v53, %v4701_v4  ;;  %v4818_v17 = vmax.f32 %v4710_v13, 0.0 }
 0x50b   :  { %v5663_v14 = vpop.f32.mrf.mxu1 }
 0x50c   :  { %v4713_v5 = vadd.f32 %v5663_v14, %v9190_v53  ;;  %v4816_v48 = vmax.f32 %v4702_v57, 0.0 }
 0x50d   :  { %v4704_v47 = vpop.f32.mrf.mxu1 }
 0x50e   :  { %v4705_v45 = vadd.f32 %v9190_v53, %v4704_v47  ;;  %v4819_v11 = vmax.f32 %v4713_v5, 0.0 }
 0x510   :  { %v4817_v24 = vmax.f32 %v4705_v45, 0.0  ;;  %v4847_v9 = vpack.c.bf16 %v4819_v11, %v4818_v17 }
 0x512   :  { %v4846_v44 = vpack.c.bf16 %v4817_v24, %v4816_v48 }
 0x514   :  { %5700 = vmatprep.mubr.msk.bf16.mxu1 %vm4899_vm1, %v4846_v44 }
 0x515   :  { %5701 = vmatmul.mubr.msk.bf16.gmra.mxu1 %vm4899_vm1, %v4847_v9 }
 0x517   :  { %v5666_v19 = vpop.f32.mrf.mxu1 }
 0x518   :  { %v4726_v8 = vadd.f32 %v5666_v19, %v9190_v53 }
 0x519   :  { %v4717_v58 = vpop.f32.mrf.mxu1 }
 0x51a   :  { %v4718_v7 = vadd.f32 %v9190_v53, %v4717_v58  ;;  %v4822_v6 = vmax.f32 %v4726_v8, 0.0 }
 0x51b   :  { %v5667_v35 = vpop.f32.mrf.mxu1 }
 0x51c   :  { %v4729_v12 = vadd.f32 %v5667_v35, %v9190_v53  ;;  %v4820_v20 = vmax.f32 %v4718_v7, 0.0 }
 0x51d   :  { %v4720_v0 = vpop.f32.mrf.mxu1 }
 0x51e   :  { %v4721_v56 = vadd.f32 %v9190_v53, %v4720_v0  ;;  %v4823_v52 = vmax.f32 %v4729_v12, 0.0 }
 0x520   :  { %v4821_v2 = vmax.f32 %v4721_v56, 0.0  ;;  %v4849_v36 = vpack.c.bf16 %v4823_v52, %v4822_v6 }
 0x522   :  { %v4848_v62 = vpack.c.bf16 %v4821_v2, %v4820_v20 }
 0x524   :  { %5704 = vmatprep.mubr.msk.bf16.mxu1 %vm4899_vm1, %v4848_v62 }
 0x525   :  { %5705 = vmatmul.mubr.msk.bf16.gmra.mxu1 %vm4899_vm1, %v4849_v36 }
 0x527   :  { %v5670_v49 = vpop.f32.mrf.mxu1 }
 0x528   :  { %v4742_v54 = vadd.f32 %v5670_v49, %v9190_v53 }
 0x529   :  { %v4733_v27 = vpop.f32.mrf.mxu1 }
 0x52a   :  { %v4734_v10 = vadd.f32 %v9190_v53, %v4733_v27  ;;  %v4826_v30 = vmax.f32 %v4742_v54, 0.0 }
 0x52b   :  { %v5671_v55 = vpop.f32.mrf.mxu1 }
 0x52c   :  { %v4745_v18 = vadd.f32 %v5671_v55, %v9190_v53  ;;  %v4824_v33 = vmax.f32 %v4734_v10, 0.0 }
 0x52d   :  { %v4736_v34 = vpop.f32.mrf.mxu1 }
 0x52e   :  { %v4737_v46 = vadd.f32 %v9190_v53, %v4736_v34  ;;  %v4827_v40 = vmax.f32 %v4745_v18, 0.0 }
 0x530   :  { %v4825_v59 = vmax.f32 %v4737_v46, 0.0  ;;  %v4851_v21 = vpack.c.bf16 %v4827_v40, %v4826_v30  ;;  %v9243_v46 = vld [vmem:[%s9383_s10] ss:$0 sm:$0xff] }
 0x532   :  { %v4850_v22 = vpack.c.bf16 %v4825_v59, %v4824_v33 }
 0x534   :  { %5708 = vmatprep.mubr.msk.bf16.mxu1 %vm4899_vm1, %v4850_v22 }
 0x535   :  { %5709 = vmatmul.mubr.msk.bf16.gmra.mxu1 %vm4899_vm1, %v4851_v21 }
 0x537   :  { %v5674_v41 = vpop.f32.mrf.mxu1 }
 0x538   :  { %v4758_v51 = vadd.f32 %v5674_v41, %v9190_v53 }
 0x539   :  { %v4749_v16 = vpop.f32.mrf.mxu1 }
 0x53a   :  { %v4750_v28 = vadd.f32 %v9190_v53, %v4749_v16  ;;  %v4830_v31 = vmax.f32 %v4758_v51, 0.0 }
 0x53b   :  { %v5675_v38 = vpop.f32.mrf.mxu1 }
 0x53c   :  { %v4761_v26 = vadd.f32 %v5675_v38, %v9190_v53  ;;  %v4828_v43 = vmax.f32 %v4750_v28, 0.0 }
 0x53d   :  { %v4752_v60 = vpop.f32.mrf.mxu1 }
 0x53e   :  { %v4753_v15 = vadd.f32 %v9190_v53, %v4752_v60  ;;  %v4831_v42 = vmax.f32 %v4761_v26, 0.0 }
 0x540   :  { %v4829_v29 = vmax.f32 %v4753_v15, 0.0  ;;  %v4853_v37 = vpack.c.bf16 %v4831_v42, %v4830_v31 }
 0x542   :  { %v4852_v3 = vpack.c.bf16 %v4829_v29, %v4828_v43 }
 0x544   :  { %5712 = vmatprep.mubr.msk.bf16.mxu1 %vm4899_vm1, %v4852_v3 }
 0x545   :  { %5713 = vmatmul.mubr.msk.bf16.gmra.mxu1 %vm4899_vm1, %v4853_v37 }
 0x547   :  { %v5678_v63 = vpop.f32.mrf.mxu1 }
 0x548   :  { %v4774_v1 = vadd.f32 %v5678_v63, %v9190_v53 }
 0x549   :  { %v4765_v39 = vpop.f32.mrf.mxu1 }
 0x54a   :  { %v4766_v50 = vadd.f32 %v9190_v53, %v4765_v39  ;;  %v4834_v5 = vmax.f32 %v4774_v1, 0.0 }
 0x54b   :  { %v5679_v32 = vpop.f32.mrf.mxu1 }
 0x54c   :  { %v4777_v61 = vadd.f32 %v5679_v32, %v9190_v53  ;;  %v4832_v14 = vmax.f32 %v4766_v50, 0.0 }
 0x54d   :  { %v4768_v25 = vpop.f32.mrf.mxu1 }
 0x54e   :  { %v4769_v23 = vadd.f32 %v9190_v53, %v4768_v25  ;;  %v4835_v4 = vmax.f32 %v4777_v61, 0.0 }
 0x550   :  { %v4833_v57 = vmax.f32 %v4769_v23, 0.0  ;;  %v4855_v47 = vpack.c.bf16 %v4835_v4, %v4834_v5 }
 0x552   :  { %v4854_v13 = vpack.c.bf16 %v4833_v57, %v4832_v14 }
 0x554   :  { %5716 = vmatprep.mubr.msk.bf16.mxu1 %vm4899_vm1, %v4854_v13 }
 0x555   :  { %5717 = vmatmul.mubr.msk.bf16.gmra.mxu1 %vm4899_vm1, %v4855_v47 }
 0x557   :  { %v5682_v45 = vpop.f32.mrf.mxu1 }
 0x558   :  { %v4790_v44 = vadd.f32 %v5682_v45, %v9190_v53 }
 0x559   :  { %v4781_v11 = vpop.f32.mrf.mxu1 }
 0x55a   :  { %v4782_v24 = vadd.f32 %v9190_v53, %v4781_v11  ;;  %v4838_v12 = vmax.f32 %v4790_v44, 0.0 }
 0x55b   :  { %v5683_v48 = vpop.f32.mrf.mxu1 }
 0x55c   :  { %v4793_v17 = vadd.f32 %v5683_v48, %v9190_v53  ;;  %v4836_v35 = vmax.f32 %v4782_v24, 0.0 }
 0x55d   :  { %v4784_v9 = vpop.f32.mrf.mxu1 }
 0x55e   :  { %v4785_v19 = vadd.f32 %v9190_v53, %v4784_v9  ;;  %v4839_v58 = vmax.f32 %v4793_v17, 0.0 }
 0x560   :  { %v4837_v7 = vmax.f32 %v4785_v19, 0.0  ;;  %v4857_v0 = vpack.c.bf16 %v4839_v58, %v4838_v12 }
 0x562   :  { %v4856_v8 = vpack.c.bf16 %v4837_v7, %v4836_v35 }
 0x564   :  { %5720 = vmatprep.mubr.msk.bf16.mxu1 %vm4899_vm1, %v4856_v8 }
 0x565   :  { %5721 = vmatmul.mubr.msk.bf16.gmra.mxu1 %vm4899_vm1, %v4857_v0 }
 0x567   :  { %v5686_v56 = vpop.f32.mrf.mxu1 }
 0x568   :  { %v4806_v62 = vadd.f32 %v5686_v56, %v9190_v53 }
 0x569   :  { %v4797_v52 = vpop.f32.mrf.mxu1 }
 0x56a   :  { %v4798_v2 = vadd.f32 %v9190_v53, %v4797_v52  ;;  %v4842_v18 = vmax.f32 %v4806_v62, 0.0 }
 0x56b   :  { %v5687_v20 = vpop.f32.mrf.mxu1 }
 0x56c   :  { %v4809_v6 = vadd.f32 %v5687_v20, %v9190_v53  ;;  %v4840_v55 = vmax.f32 %v4798_v2, 0.0 }
 0x56d   :  { %v4800_v36 = vpop.f32.mrf.mxu1 }
 0x56e   :  { %v4801_v49 = vadd.f32 %v9190_v53, %v4800_v36  ;;  %v4843_v27 = vmax.f32 %v4809_v6, 0.0 }
 0x570   :  { %v4841_v10 = vmax.f32 %v4801_v49, 0.0  ;;  %v4859_v34 = vpack.c.bf16 %v4843_v27, %v4842_v18 }
 0x572   :  { %v4858_v54 = vpack.c.bf16 %v4841_v10, %v4840_v55 }
 0x574   :  { %5724 = vmatprep.mubr.msk.bf16.mxu1 %vm4899_vm1, %v4858_v54 }
 0x575   :  { %5725 = vmatmul.mubr.msk.bf16.gmra.mxu1 %vm4899_vm1, %v4859_v34 }
 0x5c5   :  { %v5698_v40 = vpop.f32.mrf.mxu1 }
 0x5c6   :  { %v4991_v33 = vadd.f32 %v5698_v40, %v9243_v46 }
 0x5c7   :  { %v4982_v59 = vpop.f32.mrf.mxu1 }
 0x5c8   :  { %5111 = vst [vmem:[%s9384_s11 + $0x10] sm:$0xff] %v4991_v33  ;;  %v4983_v53 = vadd.f32 %v9243_v46, %v4982_v59 }
 0x5c9   :  { %v5699_v30 = vpop.f32.mrf.mxu1 }
 0x5ca   :  { %5109 = vst [vmem:[%s9384_s11] sm:$0xff] %v4983_v53  ;;  %v4994_v22 = vadd.f32 %v5699_v30, %v9243_v46 }
 0x5cb   :  { %v4985_v21 = vpop.f32.mrf.mxu1 }
 0x5cc   :  { %5112 = vst [vmem:[%s9384_s11 + $0x18] sm:$0xff] %v4994_v22  ;;  %v4986_v41 = vadd.f32 %v9243_v46, %v4985_v21 }
 0x5ce   :  { %5110 = vst [vmem:[%s9384_s11 + $0x8] sm:$0xff] %v4986_v41 }
 0x5d5   :  { %v5702_v16 = vpop.f32.mrf.mxu1 }
 0x5d6   :  { %v5007_v38 = vadd.f32 %v5702_v16, %v9243_v46 }
 0x5d7   :  { %v4998_v28 = vpop.f32.mrf.mxu1 }
 0x5d8   :  { %5115 = vst [vmem:[%s9384_s11 + $0x30] sm:$0xff] %v5007_v38  ;;  %v4999_v26 = vadd.f32 %v9243_v46, %v4998_v28 }
 0x5d9   :  { %v5703_v51 = vpop.f32.mrf.mxu1 }
 0x5da   :  { %5113 = vst [vmem:[%s9384_s11 + $0x20] sm:$0xff] %v4999_v26  ;;  %v5010_v60 = vadd.f32 %v5703_v51, %v9243_v46 }
 0x5db   :  { %v5001_v15 = vpop.f32.mrf.mxu1 }
 0x5dc   :  { %5116 = vst [vmem:[%s9384_s11 + $0x38] sm:$0xff] %v5010_v60  ;;  %v5002_v42 = vadd.f32 %v9243_v46, %v5001_v15 }
 0x5de   :  { %5114 = vst [vmem:[%s9384_s11 + $0x28] sm:$0xff] %v5002_v42 }
 0x5e5   :  { %v5706_v43 = vpop.f32.mrf.mxu1 }
 0x5e6   :  { %v5023_v29 = vadd.f32 %v5706_v43, %v9243_v46 }
 0x5e7   :  { %v5014_v31 = vpop.f32.mrf.mxu1 }
 0x5e8   :  { %5119 = vst [vmem:[%s9384_s11 + $0x50] sm:$0xff] %v5023_v29  ;;  %v5015_v3 = vadd.f32 %v9243_v46, %v5014_v31 }
 0x5e9   :  { %v5707_v37 = vpop.f32.mrf.mxu1 }
 0x5ea   :  { %5117 = vst [vmem:[%s9384_s11 + $0x40] sm:$0xff] %v5015_v3  ;;  %v5026_v63 = vadd.f32 %v5707_v37, %v9243_v46 }
 0x5eb   :  { %v5017_v39 = vpop.f32.mrf.mxu1 }
 0x5ec   :  { %5120 = vst [vmem:[%s9384_s11 + $0x58] sm:$0xff] %v5026_v63  ;;  %v5018_v32 = vadd.f32 %v9243_v46, %v5017_v39 }
 0x5ee   :  { %5118 = vst [vmem:[%s9384_s11 + $0x48] sm:$0xff] %v5018_v32 }
 0x5f5   :  { %v5710_v50 = vpop.f32.mrf.mxu1 }
 0x5f6   :  { %v5039_v61 = vadd.f32 %v5710_v50, %v9243_v46 }
 0x5f7   :  { %v5030_v1 = vpop.f32.mrf.mxu1 }
 0x5f8   :  { %5123 = vst [vmem:[%s9384_s11 + $0x70] sm:$0xff] %v5039_v61  ;;  %v5031_v25 = vadd.f32 %v9243_v46, %v5030_v1 }
 0x5f9   :  { %v5711_v23 = vpop.f32.mrf.mxu1 }
 0x5fa   :  { %5121 = vst [vmem:[%s9384_s11 + $0x60] sm:$0xff] %v5031_v25  ;;  %v5042_v4 = vadd.f32 %v5711_v23, %v9243_v46 }
 0x5fb   :  { %v5033_v14 = vpop.f32.mrf.mxu1 }
 0x5fc   :  { %5124 = vst [vmem:[%s9384_s11 + $0x78] sm:$0xff] %v5042_v4  ;;  %v5034_v57 = vadd.f32 %v9243_v46, %v5033_v14 }
 0x5fe   :  { %5122 = vst [vmem:[%s9384_s11 + $0x68] sm:$0xff] %v5034_v57 }
 0x605   :  { %v5714_v5 = vpop.f32.mrf.mxu1 }
 0x606   :  { %v5055_v13 = vadd.f32 %v5714_v5, %v9243_v46 }
 0x607   :  { %v5046_v47 = vpop.f32.mrf.mxu1 }
 0x608   :  { %5127 = vst [vmem:[%s9384_s11 + $0x90] sm:$0xff] %v5055_v13  ;;  %v5047_v45 = vadd.f32 %v9243_v46, %v5046_v47 }
 0x609   :  { %v5715_v11 = vpop.f32.mrf.mxu1 }
 0x60a   :  { %5125 = vst [vmem:[%s9384_s11 + $0x80] sm:$0xff] %v5047_v45  ;;  %v5058_v48 = vadd.f32 %v5715_v11, %v9243_v46 }
 0x60b   :  { %v5049_v24 = vpop.f32.mrf.mxu1 }
 0x60c   :  { %5128 = vst [vmem:[%s9384_s11 + $0x98] sm:$0xff] %v5058_v48  ;;  %v5050_v17 = vadd.f32 %v9243_v46, %v5049_v24 }
 0x60e   :  { %5126 = vst [vmem:[%s9384_s11 + $0x88] sm:$0xff] %v5050_v17 }
 0x615   :  { %v5718_v44 = vpop.f32.mrf.mxu1 }
 0x616   :  { %v5071_v9 = vadd.f32 %v5718_v44, %v9243_v46 }
 0x617   :  { %v5062_v19 = vpop.f32.mrf.mxu1 }
 0x618   :  { %5131 = vst [vmem:[%s9384_s11 + $0xb0] sm:$0xff] %v5071_v9  ;;  %v5063_v58 = vadd.f32 %v9243_v46, %v5062_v19 }
 0x619   :  { %v5719_v35 = vpop.f32.mrf.mxu1 }
 0x61a   :  { %5129 = vst [vmem:[%s9384_s11 + $0xa0] sm:$0xff] %v5063_v58  ;;  %v5074_v7 = vadd.f32 %v5719_v35, %v9243_v46 }
 0x61b   :  { %v5065_v12 = vpop.f32.mrf.mxu1 }
 0x61c   :  { %5132 = vst [vmem:[%s9384_s11 + $0xb8] sm:$0xff] %v5074_v7  ;;  %v5066_v8 = vadd.f32 %v9243_v46, %v5065_v12 }
 0x61e   :  { %5130 = vst [vmem:[%s9384_s11 + $0xa8] sm:$0xff] %v5066_v8 }
 0x625   :  { %v5722_v0 = vpop.f32.mrf.mxu1 }
 0x626   :  { %v5087_v56 = vadd.f32 %v5722_v0, %v9243_v46 }
 0x627   :  { %v5078_v52 = vpop.f32.mrf.mxu1 }
 0x628   :  { %5135 = vst [vmem:[%s9384_s11 + $0xd0] sm:$0xff] %v5087_v56  ;;  %v5079_v20 = vadd.f32 %v9243_v46, %v5078_v52 }
 0x629   :  { %v5723_v2 = vpop.f32.mrf.mxu1 }
 0x62a   :  { %5133 = vst [vmem:[%s9384_s11 + $0xc0] sm:$0xff] %v5079_v20  ;;  %v5090_v6 = vadd.f32 %v5723_v2, %v9243_v46 }
 0x62b   :  { %v5081_v62 = vpop.f32.mrf.mxu1 }
 0x62c   :  { %5136 = vst [vmem:[%s9384_s11 + $0xd8] sm:$0xff] %v5090_v6  ;;  %v5082_v36 = vadd.f32 %v9243_v46, %v5081_v62 }
 0x62e   :  { %5134 = vst [vmem:[%s9384_s11 + $0xc8] sm:$0xff] %v5082_v36 }
 0x635   :  { %v5726_v49 = vpop.f32.mrf.mxu1 }
 0x636   :  { %v5103_v27 = vadd.f32 %v5726_v49, %v9243_v46 }
 0x637   :  { %v5094_v55 = vpop.f32.mrf.mxu1 }
 0x638   :  { %5139 = vst [vmem:[%s9384_s11 + $0xf0] sm:$0xff] %v5103_v27  ;;  %v5095_v10 = vadd.f32 %v9243_v46, %v5094_v55 }
 0x639   :  { %v5727_v18 = vpop.f32.mrf.mxu1 }
 0x63a   :  { %5137 = vst [vmem:[%s9384_s11 + $0xe0] sm:$0xff] %v5095_v10  ;;  %v5106_v54 = vadd.f32 %v5727_v18, %v9243_v46 }
 0x63b   :  { %v5097_v34 = vpop.f32.mrf.mxu1 }
 0x63c   :  { %5140 = vst [vmem:[%s9384_s11 + $0xf8] sm:$0xff] %v5106_v54  ;;  %v5098_v40 = vadd.f32 %v9243_v46, %v5097_v34 }
 0x63e   :  { %5138 = vst [vmem:[%s9384_s11 + $0xe8] sm:$0xff] %v5098_v40 }

</bundles_post_ra>
